<compile_context>
chip_gen: v6e
topology: v6e:2x2x1
jax: 0.10.0
libtpu: 0.0.40
codegen_flags: <defaults>
</compile_context>

<pallas_src>
import functools

import jax
import jax.numpy as jnp
import numpy as np
from jax.experimental import pallas as pl
from jax.experimental.pallas import tpu as pltpu


def _pick_tile_rows(Hout, Wout, max_gemm_rows=8192):
    """Pick TH (output rows per grid step).

    Constraints:
      * TH divides Hout (exact grid),
      * TH*Wout is a multiple of 128 (lane-dense stores) unless TH == Hout,
      * TH*Wout <= max_gemm_rows (bounds VMEM for the f32 accumulator /
        bf16 patch temporaries; safe for v7x's smaller VMEM as well).
    """
    best = None
    for th in range(1, Hout + 1):
        if Hout % th:
            continue
        if th != Hout and (th * Wout) % 128 != 0:
            continue
        if th * Wout <= max_gemm_rows:
            best = th
    return best if best is not None else Hout


def _upsample_conv_pallas(xp, w, b, *, K, s, Cout, TH):
    """Direct convolution on the padded NHWC activation.

    xp : (N, Hp, Wp, Cin)   bfloat16   upsampled + reflection-padded, NHWC
    w  : (K, K, Cin, Cout)  bfloat16
    b  : (1, Cout)          float32
    returns (N, Cout, Hout*Wout) float32  (NCHW with flattened spatial dims)
    """
    N, Hp, Wp, Cin = xp.shape
    Hout = (Hp - K) // s + 1
    Wout = (Wp - K) // s + 1
    T = Hout // TH                      # row tiles (TH divides Hout)
    TH_in = (TH - 1) * s + K            # input rows needed per output tile
    row_span = (TH - 1) * s + 1
    col_span = (Wout - 1) * s + 1
    M2 = TH * Wout                      # implicit-GEMM M dimension per tile

    def kernel(x_ref, w_ref, b_ref, o_ref):
        t = pl.program_id(1)
        row0 = t * (TH * s)
        # One dynamic (major-dim) slice per grid step: the halo'd row slab.
        slab = x_ref[0, pl.ds(row0, TH_in), :, :]          # (TH_in, Wp, Cin) bf16

        # Bias folded into the accumulator init (f32).
        acc = jnp.broadcast_to(b_ref[...], (M2, Cout)).astype(jnp.float32)

        # Direct conv = K*K shifted bf16 matmuls accumulated in f32 (MXU).
        for kh in range(K):
            for kw in range(K):
                patch = slab[kh:kh + row_span:s, kw:kw + col_span:s, :]
                lhs = patch.reshape(M2, Cin)               # free when Wout%8==0
                acc = acc + jnp.dot(lhs, w_ref[kh, kw],
                                    preferred_element_type=jnp.float32)

        # Write NCHW directly: (Cout, TH*Wout) -> lane-dense stores, and no
        # NHWC->NCHW transpose in the wrapper afterwards.
        o_ref[0] = jnp.transpose(acc, (1, 0))

    return pl.pallas_call(
        kernel,
        out_shape=jax.ShapeDtypeStruct((N, Cout, Hout * Wout), jnp.float32),
        grid_spec=pltpu.PrefetchScalarGridSpec(
            num_scalar_prefetch=0,
            grid=(N, T),
            in_specs=[
                # Full padded image per batch element; block index constant
                # across the row-tile axis -> fetched once per image.
                pl.BlockSpec((1, Hp, Wp, Cin), lambda n, t: (n, 0, 0, 0)),
                pl.BlockSpec((K, K, Cin, Cout), lambda n, t: (0, 0, 0, 0)),
                pl.BlockSpec((1, Cout), lambda n, t: (0, 0)),
            ],
            out_specs=pl.BlockSpec((1, Cout, M2), lambda n, t: (n, 0, t)),
        ),
        compiler_params=pltpu.CompilerParams(
            dimension_semantics=("parallel", "parallel"),
            # Generous but safe on all generations (v7x physical VMEM = 64 MiB).
            vmem_limit_bytes=48 * 1024 * 1024,
        ),
    )(xp, w, b)


class UpsampleConvLayer:
    """JAX/Pallas port of the PyTorch UpsampleConvLayer."""

    def __init__(self, in_channels, out_channels, kernel_size, stride,
                 upsample=None, key=None):
        self.in_channels = in_channels
        self.out_channels = out_channels
        self.kernel_size = kernel_size
        self.stride = stride
        self.upsample = upsample
        self.reflection_padding = int(np.floor(kernel_size / 2))

        if key is None:
            key = jax.random.PRNGKey(0)
        kw_, kb_ = jax.random.split(key)
        # PyTorch Conv2d default init: U(-1/sqrt(fan_in), 1/sqrt(fan_in)).
        fan_in = in_channels * kernel_size * kernel_size
        bound = 1.0 / np.sqrt(fan_in)
        self.weight = jax.random.uniform(
            kw_, (out_channels, in_channels, kernel_size, kernel_size),
            minval=-bound, maxval=bound, dtype=jnp.float32)
        self.bias = jax.random.uniform(
            kb_, (out_channels,), minval=-bound, maxval=bound,
            dtype=jnp.float32)

    @functools.partial(jax.jit, static_argnums=0)
    def __call__(self, x):
        # x: (N, Cin, H, W) float32 -- NCHW like PyTorch.
        N, Cin, H, W = x.shape
        K, s, pad = self.kernel_size, self.stride, self.reflection_padding

        # NCHW -> NHWC + bf16 cast at the original (small) size.
        xh = jnp.transpose(x, (0, 2, 3, 1)).astype(jnp.bfloat16)

        # Nearest-neighbour upsample (nn.Upsample default mode).
        if self.upsample:
            u = int(self.upsample)
            xh = jnp.repeat(jnp.repeat(xh, u, axis=1), u, axis=2)

        # ReflectionPad2d (edge not repeated -> numpy/jnp 'reflect').
        if pad:
            xh = jnp.pad(xh, ((0, 0), (pad, pad), (pad, pad), (0, 0)),
                         mode="reflect")

        Hp, Wp = xh.shape[1], xh.shape[2]
        Hout = (Hp - K) // s + 1
        Wout = (Wp - K) // s + 1

        # Weight (Cout,Cin,K,K) -> (K,K,Cin,Cout) bf16; bias f32 row vector.
        w_kern = jnp.transpose(self.weight, (2, 3, 1, 0)).astype(jnp.bfloat16)
        b_kern = self.bias.reshape(1, self.out_channels).astype(jnp.float32)

        TH = _pick_tile_rows(Hout, Wout)
        out = _upsample_conv_pallas(xh, w_kern, b_kern,
                                    K=K, s=s, Cout=self.out_channels, TH=TH)
        # Free dim-split reshape (contiguous minor dim) -> NCHW.
        return out.reshape(N, self.out_channels, Hout, Wout)


# ---------------------------------------------------------------------------
# Reference implementation (pure JAX, f32) for a correctness sanity-check.
# ---------------------------------------------------------------------------
def _reference_forward(layer, x):
    if layer.upsample:
        u = int(layer.upsample)
        x = jnp.repeat(jnp.repeat(x, u, axis=2), u, axis=3)
    p = layer.reflection_padding
    x = jnp.pad(x, ((0, 0), (0, 0), (p, p), (p, p)), mode="reflect")
    out = jax.lax.conv_general_dilated(
        x, layer.weight,
        window_strides=(layer.stride, layer.stride),
        padding="VALID",
        dimension_numbers=("NCHW", "OIHW", "NCHW"),
        precision=jax.lax.Precision.HIGHEST)
    return out + layer.bias.reshape(1, -1, 1, 1)


if __name__ == "__main__":
    key = jax.random.PRNGKey(0)
    k_x, k_p = jax.random.split(key)

    # Small shapes: batch=2, in_ch=4, out_ch=8, spatial=16, kernel=3,
    # stride=1, upsample=2 (typical decoder block of the style-transfer net).
    N, Cin, H, W = 2, 4, 16, 16
    layer = UpsampleConvLayer(in_channels=Cin, out_channels=8,
                              kernel_size=3, stride=1, upsample=2, key=k_p)

    x = jax.random.normal(k_x, (N, Cin, H, W), dtype=jnp.float32)

    out = jax.block_until_ready(layer(x))
    ref = jax.block_until_ready(_reference_forward(layer, x))

    assert out.shape == ref.shape == (N, 8, H * 2, W * 2), out.shape
    # Matmul operands are bf16 (f32 accumulation), so tolerance is relaxed
    # relative to the pure-f32 reference.
    err = float(jnp.max(jnp.abs(out - ref)))
    assert err < 7.5e-2, err

    print("KERNEL_OK")
</pallas_src>

<mosaic_0001>
module attributes {stable_mosaic.version = 11 : i64} {
  func.func @kernel(%arg0: i32, %arg1: i32, %arg2: memref<1x34x34x4xbf16, #tpu.memory_space<vmem>>, %arg3: memref<3x3x4x8xbf16, #tpu.memory_space<vmem>>, %arg4: memref<1x8xf32, #tpu.memory_space<vmem>>, %arg5: memref<1x8x1024xf32, #tpu.memory_space<vmem>>) attributes {dimension_semantics = [#tpu.dimension_semantics<parallel>, #tpu.dimension_semantics<parallel>], iteration_bounds = array<i64: 2, 1>, scalar_prefetch = 0 : i64, scratch_operands = 0 : i64, tpu.core_type = #tpu.core_type<tc>, window_params = [{transform_indices = @transform_0, window_bounds = array<i64: 1, 34, 34, 4>}, {pipeline_mode = #tpu.pipeline_mode<synchronous>, transform_indices = @transform_1, window_bounds = array<i64: 3, 3, 4, 8>}, {pipeline_mode = #tpu.pipeline_mode<synchronous>, transform_indices = @transform_2, window_bounds = array<i64: 1, 8>}, {transform_indices = @transform_3, window_bounds = array<i64: 1, 8, 1024>}]} {
    %c32_i32 = arith.constant 32 : i32
    %0 = arith.muli %arg1, %c32_i32 : i32
    %c0 = arith.constant 0 : index
    %1 = arith.index_cast %0 : i32 to index
    %c0_0 = arith.constant 0 : index
    %c0_1 = arith.constant 0 : index
    %2 = vector.load %arg2[%c0, %1, %c0_0, %c0_1] : memref<1x34x34x4xbf16, #tpu.memory_space<vmem>>, vector<1x34x34x4xbf16>
    %3 = vector.shape_cast %2 : vector<1x34x34x4xbf16> to vector<34x34x4xbf16>
    %c0_2 = arith.constant 0 : index
    %c0_3 = arith.constant 0 : index
    %4 = vector.load %arg4[%c0_2, %c0_3] : memref<1x8xf32, #tpu.memory_space<vmem>>, vector<1x8xf32>
    %5 = vector.shape_cast %4 : vector<1x8xf32> to vector<1x8xf32>
    %6 = vector.broadcast %5 : vector<1x8xf32> to vector<1024x8xf32>
    %7 = vector.extract_strided_slice %3 {offsets = [0, 0, 0], sizes = [32, 32, 4], strides = [1, 1, 1]} : vector<34x34x4xbf16> to vector<32x32x4xbf16>
    %8 = vector.shape_cast %7 : vector<32x32x4xbf16> to vector<1024x4xbf16>
    %c0_4 = arith.constant 0 : index
    %c0_5 = arith.constant 0 : index
    %c0_6 = arith.constant 0 : index
    %c0_7 = arith.constant 0 : index
    %9 = vector.load %arg3[%c0_4, %c0_5, %c0_6, %c0_7] : memref<3x3x4x8xbf16, #tpu.memory_space<vmem>>, vector<1x1x4x8xbf16>
    %10 = vector.shape_cast %9 : vector<1x1x4x8xbf16> to vector<4x8xbf16>
    %cst = arith.constant dense<0.000000e+00> : vector<1024x8xf32>
    %11 = tpu.matmul %8, %10, %cst {dimension_numbers = #tpu.dot_dimension_numbers<[1], [0], [0], [1], [0, 0, 1, 1], [], []>} : vector<1024x4xbf16>, vector<4x8xbf16>, vector<1024x8xf32> -> vector<1024x8xf32>
    %12 = arith.addf %6, %11 : vector<1024x8xf32>
    %13 = vector.extract_strided_slice %3 {offsets = [0, 1, 0], sizes = [32, 32, 4], strides = [1, 1, 1]} : vector<34x34x4xbf16> to vector<32x32x4xbf16>
    %14 = vector.shape_cast %13 : vector<32x32x4xbf16> to vector<1024x4xbf16>
    %c0_8 = arith.constant 0 : index
    %c1 = arith.constant 1 : index
    %c0_9 = arith.constant 0 : index
    %c0_10 = arith.constant 0 : index
    %15 = vector.load %arg3[%c0_8, %c1, %c0_9, %c0_10] : memref<3x3x4x8xbf16, #tpu.memory_space<vmem>>, vector<1x1x4x8xbf16>
    %16 = vector.shape_cast %15 : vector<1x1x4x8xbf16> to vector<4x8xbf16>
    %cst_11 = arith.constant dense<0.000000e+00> : vector<1024x8xf32>
    %17 = tpu.matmul %14, %16, %cst_11 {dimension_numbers = #tpu.dot_dimension_numbers<[1], [0], [0], [1], [0, 0, 1, 1], [], []>} : vector<1024x4xbf16>, vector<4x8xbf16>, vector<1024x8xf32> -> vector<1024x8xf32>
    %18 = arith.addf %12, %17 : vector<1024x8xf32>
    %19 = vector.extract_strided_slice %3 {offsets = [0, 2, 0], sizes = [32, 32, 4], strides = [1, 1, 1]} : vector<34x34x4xbf16> to vector<32x32x4xbf16>
    %20 = vector.shape_cast %19 : vector<32x32x4xbf16> to vector<1024x4xbf16>
    %c0_12 = arith.constant 0 : index
    %c2 = arith.constant 2 : index
    %c0_13 = arith.constant 0 : index
    %c0_14 = arith.constant 0 : index
    %21 = vector.load %arg3[%c0_12, %c2, %c0_13, %c0_14] : memref<3x3x4x8xbf16, #tpu.memory_space<vmem>>, vector<1x1x4x8xbf16>
    %22 = vector.shape_cast %21 : vector<1x1x4x8xbf16> to vector<4x8xbf16>
    %cst_15 = arith.constant dense<0.000000e+00> : vector<1024x8xf32>
    %23 = tpu.matmul %20, %22, %cst_15 {dimension_numbers = #tpu.dot_dimension_numbers<[1], [0], [0], [1], [0, 0, 1, 1], [], []>} : vector<1024x4xbf16>, vector<4x8xbf16>, vector<1024x8xf32> -> vector<1024x8xf32>
    %24 = arith.addf %18, %23 : vector<1024x8xf32>
    %25 = vector.extract_strided_slice %3 {offsets = [1, 0, 0], sizes = [32, 32, 4], strides = [1, 1, 1]} : vector<34x34x4xbf16> to vector<32x32x4xbf16>
    %26 = vector.shape_cast %25 : vector<32x32x4xbf16> to vector<1024x4xbf16>
    %c1_16 = arith.constant 1 : index
    %c0_17 = arith.constant 0 : index
    %c0_18 = arith.constant 0 : index
    %c0_19 = arith.constant 0 : index
    %27 = vector.load %arg3[%c1_16, %c0_17, %c0_18, %c0_19] : memref<3x3x4x8xbf16, #tpu.memory_space<vmem>>, vector<1x1x4x8xbf16>
    %28 = vector.shape_cast %27 : vector<1x1x4x8xbf16> to vector<4x8xbf16>
    %cst_20 = arith.constant dense<0.000000e+00> : vector<1024x8xf32>
    %29 = tpu.matmul %26, %28, %cst_20 {dimension_numbers = #tpu.dot_dimension_numbers<[1], [0], [0], [1], [0, 0, 1, 1], [], []>} : vector<1024x4xbf16>, vector<4x8xbf16>, vector<1024x8xf32> -> vector<1024x8xf32>
    %30 = arith.addf %24, %29 : vector<1024x8xf32>
    %31 = vector.extract_strided_slice %3 {offsets = [1, 1, 0], sizes = [32, 32, 4], strides = [1, 1, 1]} : vector<34x34x4xbf16> to vector<32x32x4xbf16>
    %32 = vector.shape_cast %31 : vector<32x32x4xbf16> to vector<1024x4xbf16>
    %c1_21 = arith.constant 1 : index
    %c1_22 = arith.constant 1 : index
    %c0_23 = arith.constant 0 : index
    %c0_24 = arith.constant 0 : index
    %33 = vector.load %arg3[%c1_21, %c1_22, %c0_23, %c0_24] : memref<3x3x4x8xbf16, #tpu.memory_space<vmem>>, vector<1x1x4x8xbf16>
    %34 = vector.shape_cast %33 : vector<1x1x4x8xbf16> to vector<4x8xbf16>
    %cst_25 = arith.constant dense<0.000000e+00> : vector<1024x8xf32>
    %35 = tpu.matmul %32, %34, %cst_25 {dimension_numbers = #tpu.dot_dimension_numbers<[1], [0], [0], [1], [0, 0, 1, 1], [], []>} : vector<1024x4xbf16>, vector<4x8xbf16>, vector<1024x8xf32> -> vector<1024x8xf32>
    %36 = arith.addf %30, %35 : vector<1024x8xf32>
    %37 = vector.extract_strided_slice %3 {offsets = [1, 2, 0], sizes = [32, 32, 4], strides = [1, 1, 1]} : vector<34x34x4xbf16> to vector<32x32x4xbf16>
    %38 = vector.shape_cast %37 : vector<32x32x4xbf16> to vector<1024x4xbf16>
    %c1_26 = arith.constant 1 : index
    %c2_27 = arith.constant 2 : index
    %c0_28 = arith.constant 0 : index
    %c0_29 = arith.constant 0 : index
    %39 = vector.load %arg3[%c1_26, %c2_27, %c0_28, %c0_29] : memref<3x3x4x8xbf16, #tpu.memory_space<vmem>>, vector<1x1x4x8xbf16>
    %40 = vector.shape_cast %39 : vector<1x1x4x8xbf16> to vector<4x8xbf16>
    %cst_30 = arith.constant dense<0.000000e+00> : vector<1024x8xf32>
    %41 = tpu.matmul %38, %40, %cst_30 {dimension_numbers = #tpu.dot_dimension_numbers<[1], [0], [0], [1], [0, 0, 1, 1], [], []>} : vector<1024x4xbf16>, vector<4x8xbf16>, vector<1024x8xf32> -> vector<1024x8xf32>
    %42 = arith.addf %36, %41 : vector<1024x8xf32>
    %43 = vector.extract_strided_slice %3 {offsets = [2, 0, 0], sizes = [32, 32, 4], strides = [1, 1, 1]} : vector<34x34x4xbf16> to vector<32x32x4xbf16>
    %44 = vector.shape_cast %43 : vector<32x32x4xbf16> to vector<1024x4xbf16>
    %c2_31 = arith.constant 2 : index
    %c0_32 = arith.constant 0 : index
    %c0_33 = arith.constant 0 : index
    %c0_34 = arith.constant 0 : index
    %45 = vector.load %arg3[%c2_31, %c0_32, %c0_33, %c0_34] : memref<3x3x4x8xbf16, #tpu.memory_space<vmem>>, vector<1x1x4x8xbf16>
    %46 = vector.shape_cast %45 : vector<1x1x4x8xbf16> to vector<4x8xbf16>
    %cst_35 = arith.constant dense<0.000000e+00> : vector<1024x8xf32>
    %47 = tpu.matmul %44, %46, %cst_35 {dimension_numbers = #tpu.dot_dimension_numbers<[1], [0], [0], [1], [0, 0, 1, 1], [], []>} : vector<1024x4xbf16>, vector<4x8xbf16>, vector<1024x8xf32> -> vector<1024x8xf32>
    %48 = arith.addf %42, %47 : vector<1024x8xf32>
    %49 = vector.extract_strided_slice %3 {offsets = [2, 1, 0], sizes = [32, 32, 4], strides = [1, 1, 1]} : vector<34x34x4xbf16> to vector<32x32x4xbf16>
    %50 = vector.shape_cast %49 : vector<32x32x4xbf16> to vector<1024x4xbf16>
    %c2_36 = arith.constant 2 : index
    %c1_37 = arith.constant 1 : index
    %c0_38 = arith.constant 0 : index
    %c0_39 = arith.constant 0 : index
    %51 = vector.load %arg3[%c2_36, %c1_37, %c0_38, %c0_39] : memref<3x3x4x8xbf16, #tpu.memory_space<vmem>>, vector<1x1x4x8xbf16>
    %52 = vector.shape_cast %51 : vector<1x1x4x8xbf16> to vector<4x8xbf16>
    %cst_40 = arith.constant dense<0.000000e+00> : vector<1024x8xf32>
    %53 = tpu.matmul %50, %52, %cst_40 {dimension_numbers = #tpu.dot_dimension_numbers<[1], [0], [0], [1], [0, 0, 1, 1], [], []>} : vector<1024x4xbf16>, vector<4x8xbf16>, vector<1024x8xf32> -> vector<1024x8xf32>
    %54 = arith.addf %48, %53 : vector<1024x8xf32>
    %55 = vector.extract_strided_slice %3 {offsets = [2, 2, 0], sizes = [32, 32, 4], strides = [1, 1, 1]} : vector<34x34x4xbf16> to vector<32x32x4xbf16>
    %56 = vector.shape_cast %55 : vector<32x32x4xbf16> to vector<1024x4xbf16>
    %c2_41 = arith.constant 2 : index
    %c2_42 = arith.constant 2 : index
    %c0_43 = arith.constant 0 : index
    %c0_44 = arith.constant 0 : index
    %57 = vector.load %arg3[%c2_41, %c2_42, %c0_43, %c0_44] : memref<3x3x4x8xbf16, #tpu.memory_space<vmem>>, vector<1x1x4x8xbf16>
    %58 = vector.shape_cast %57 : vector<1x1x4x8xbf16> to vector<4x8xbf16>
    %cst_45 = arith.constant dense<0.000000e+00> : vector<1024x8xf32>
    %59 = tpu.matmul %56, %58, %cst_45 {dimension_numbers = #tpu.dot_dimension_numbers<[1], [0], [0], [1], [0, 0, 1, 1], [], []>} : vector<1024x4xbf16>, vector<4x8xbf16>, vector<1024x8xf32> -> vector<1024x8xf32>
    %60 = arith.addf %54, %59 : vector<1024x8xf32>
    %61 = tpu.transpose %60, [1, 0] : vector<1024x8xf32> -> vector<8x1024xf32>
    %c0_46 = arith.constant 0 : index
    %c0_47 = arith.constant 0 : index
    %c0_48 = arith.constant 0 : index
    %62 = vector.load %arg5[%c0_46, %c0_47, %c0_48] : memref<1x8x1024xf32, #tpu.memory_space<vmem>>, vector<1x8x1024xf32>
    %63 = vector.shape_cast %62 : vector<1x8x1024xf32> to vector<8x1024xf32>
    %64 = vector.shape_cast %61 : vector<8x1024xf32> to vector<1x8x1024xf32>
    tpu.vector_store %arg5[%c0_46, %c0_47, %c0_48], %64 {strides = array<i32>} : memref<1x8x1024xf32, #tpu.memory_space<vmem>>, vector<1x8x1024xf32>,
    return
  }
  func.func @transform_0(%arg0: i32, %arg1: i32) -> (i32, i32, i32, i32) {
    %c0_i32 = arith.constant 0 : i32
    %c0_i32_0 = arith.constant 0 : i32
    %c0_i32_1 = arith.constant 0 : i32
    %c0_i32_2 = arith.constant 0 : i32
    return %arg0, %c0_i32, %c0_i32_0, %c0_i32_1 : i32, i32, i32, i32
  }
  func.func @transform_1(%arg0: i32, %arg1: i32) -> (i32, i32, i32, i32) {
    %c0_i32 = arith.constant 0 : i32
    %c0_i32_0 = arith.constant 0 : i32
    %c0_i32_1 = arith.constant 0 : i32
    %c0_i32_2 = arith.constant 0 : i32
    %c0_i32_3 = arith.constant 0 : i32
    return %c0_i32, %c0_i32_0, %c0_i32_1, %c0_i32_2 : i32, i32, i32, i32
  }
  func.func @transform_2(%arg0: i32, %arg1: i32) -> (i32, i32) {
    %c0_i32 = arith.constant 0 : i32
    %c0_i32_0 = arith.constant 0 : i32
    %c0_i32_1 = arith.constant 0 : i32
    return %c0_i32, %c0_i32_0 : i32, i32
  }
  func.func @transform_3(%arg0: i32, %arg1: i32) -> (i32, i32, i32) {
    %c0_i32 = arith.constant 0 : i32
    %c0_i32_0 = arith.constant 0 : i32
    return %arg0, %c0_i32, %arg1 : i32, i32, i32
  }
}

</mosaic_0001>

<bundles_post_ra>
// kernel: a_call__.1
= control target key start
LH: loop header
LB: loop body
LE: loop exit
PB: predicated region body
PF: predicated region fallthrough
CT: control target
= control target key end

     0   :  { %s13032_s12 = smov 0   ;;  %s13034_s13 = smov 0   ;;  %s19139_s0 = inlined_call_operand.vmem [shape: bf16[2,34,34,4], index: 0, kind: input, shape index: {}]   ;;  %s19140_s1 = inlined_call_operand.vmem [shape: bf16[3,3,4,8], index: 1, kind: input, shape index: {}]   ;;  %s19141_s2 = inlined_call_operand.vmem [shape: f32[1,8], index: 2, kind: input, shape index: {}]   ;;  %s19142_s3 = inlined_call_operand.vmem [shape: f32[2,8,1024], index: 3, kind: output, shape index: {}]  }
   0x1   :  { %s13036_s14 = smov 0  }
   0x2 LB: > { %s25_s15 = sadd.s32 1, %s13006_s13  ;;  %p10168_p0 = scmp.ge.s32.totalorder %s13010_s14, 1  ;;  %s13010_s14 = sphi %s13036_s14, %s13_s14   ;;  %s13006_s13 = sphi %s13034_s13, %s21514_s13   ;;  %s13002_s12 = sphi %s13032_s12, %s21513_s12  }
   0x3   : > { %p27_p1 = scmp.ge.s32.totalorder %s25_s15, 2  ;;  %p151_p2 = scmp.lt.s32.totalorder %s13010_s14, 3 }
   0x5   : > { %s21516_s15 = smov (%p27_p1, %s25_s15), 0  ;;  %p152_p3 = pnand %p10168_p0, %p151_p2 }
   0x7   : > { %155 = sbr.rel (%p152_p3) target bundleno = 1558 (0x616), region = 32 }
   0xc   : > { %v376_v0 = vld [vmem:[%s19140_s1] sm:$0x3]  ;;  %vm890_vm0 = vcmask 1041408   ;;  %p179_p4 = scmp.lt.s32.totalorder %s13002_s12, 1  ;;  %v10301_v2 = vld [vmem:[%s19140_s1 + $0x2] sm:$0x3] }
   0xd   : > { %12756 = vmatprep.subr.msk.bf16.mxu1 %vm890_vm0, %v376_v0  ;;  %12755 = vmatprep.subr.msk.bf16.mxu0 %vm890_vm0, %v376_v0  ;;  %v892_v1 = vsel %vm890_vm0, %v376_v0, 0  ;;  %v10462_v3 = vld [vmem:[%s19140_s1 + $0x4] sm:$0x3]  ;;  %vm697_vm1 = vcmask 31744   ;;  %v3365_v19 = vsel %vm890_vm0, %v10301_v2, 0  ;;  %vm4072_vm2 = vcmask 1042432  }
   0xe   : > { %12754 = vmatpush3.bf16.msra.mxu1 %v892_v1  ;;  %11584 = vmatpush3.bf16.msra.mxu0 %v892_v1  ;;  %s21518_s12 = smov (!%p179_p4, %s13002_s12), 1  ;;  %v4878_v15 = vsel %vm890_vm0, %v10462_v3, 0  ;;  %vm4073_vm3 = vcmask 1046532   ;;  %vm1567_vm5 = vsmask.f32 3328 }
   0xf   : > { %12757 = vmatprep.subr.msk.bf16.mxu1 %vm890_vm0, %v10301_v2  ;;  %12758 = vmatprep.subr.msk.bf16.mxu0 %vm890_vm0, %v10462_v3  ;;  %s12765_s22 = smul.u32 680, %s21518_s12  ;;  %vm13358_vm4 = vmor %vm4072_vm2, %vm4073_vm3  ;;  %vm1568_vm6 = vsmask.f32 7440 }
  0x10   : > { %vm13960_vm7 = vmor %vm1567_vm5, %vm1568_vm6 }
  0x11   : > { %s13070_s25 = scalar_lea.vmem %s19139_s0, %s12765_s22 }
  0x12   : > { %v13073_v4 = vld [vmem:[%s13070_s25] sm:$0xf]  ;;  %v13076_v5 = vld [vmem:[%s13070_s25 + $0x4] sm:$0xf]  ;;  %v13094_v10 = vld [vmem:[%s13070_s25 + $0x8] sm:$0xf] }
  0x13   : > { %v13079_v6 = vld [vmem:[%s13070_s25 + $0x140] sm:$0xf]  ;;  %v10173_v7 = vcombine.low %v13073_v4, %v13076_v5  ;;  %v13084_v8 = vld [vmem:[%s13070_s25 + $0x144] sm:$0xf]  ;;  %v13097_v11 = vld [vmem:[%s13070_s25 + $0xc] sm:$0xf] }
  0x14   : > { %19640 = vst [vmem:[#allocation2_spill] sm:$0xff] %v13079_v6  ;;  %19641 = vst [vmem:[#allocation3_spill] sm:$0xff] %v13084_v8  ;;  %v13088_v9 = vcombine.low %v13079_v6, %v13084_v8  ;;  %v13100_v12 = vld [vmem:[%s13070_s25 + $0x148] sm:$0xf]  ;;  %v13103_v13 = vld [vmem:[%s13070_s25 + $0x14c] sm:$0xf]  ;;  %v10174_v14 = vcombine.low %v13094_v10, %v13097_v11 }
  0x15   : > { %11585 = vmatprep.mubr.msk.bf16.mxu0 %vm697_vm1, %v10173_v7  ;;  %19643 = vst [vmem:[#allocation5_spill] sm:$0xff] %v13103_v13  ;;  %v13109_v16 = vld [vmem:[%s13070_s25 + $0x14] sm:$0xf]  ;;  %v13112_v17 = vld [vmem:[%s13070_s25 + $0x18] sm:$0xf]  ;;  %v13117_v18 = vcombine.low %v13100_v12, %v13103_v13  ;;  %v1571_v37 = vshrl.u32 %v13073_v4, 16 }
  0x16   : > { %19642 = vst [vmem:[#allocation4_spill] sm:$0xff] %v13088_v9  ;;  %11649 = vmatprep.mubr.msk.bf16.mxu1 %vm697_vm1, %v13088_v9  ;;  %11586 = vmatmul.mubr.msk.bf16.vlgmr.msra.gmra.mxu0 %vm697_vm1, %v10174_v14  ;;  %v13121_v20 = vld [vmem:[%s13070_s25 + $0x154] sm:$0xf]  ;;  %v13124_v21 = vld [vmem:[%s13070_s25 + $0x158] sm:$0xf]  ;;  %v13130_v22 = vcombine.low %v13109_v16, %v13112_v17  ;;  %v1574_v38 = vshll.u32 %v13073_v4, 16 }
  0x17   : > { %19644 = vst [vmem:[#allocation6_spill] sm:$0xff] %v13117_v18  ;;  %11844 = vmatpush3.bf16.msra.mxu0 %v4878_v15  ;;  %19645 = vst [vmem:[#allocation7_spill] sm:$0xff] %v13121_v20  ;;  %11650 = vmatmul.mubr.msk.bf16.vlgmr.msra.gmra.mxu1 %vm697_vm1, %v13117_v18  ;;  %v13133_v23 = vld [vmem:[%s13070_s25 + $0x1c] sm:$0xf]  ;;  %v13136_v24 = vld [vmem:[%s13070_s25 + $0x20] sm:$0xf]  ;;  %v13145_v26 = vcombine.low %v13121_v20, %v13124_v21 }
  0x18   : > { %19646 = vst [vmem:[#allocation8_spill] sm:$0xff] %v13124_v21  ;;  %19647 = vst [vmem:[#allocation9_spill] sm:$0xff] %v13130_v22  ;;  %11714 = vmatpush3.bf16.msra.mxu1 %v3365_v19  ;;  %v13139_v25 = vld [vmem:[%s13070_s25 + $0x15c] sm:$0xf]  ;;  %11589 = vmatprep.mubr.msk.bf16.mxu0 %vm697_vm1, %v13130_v22  ;;  %v13148_v27 = vld [vmem:[%s13070_s25 + $0x160] sm:$0xf]  ;;  %v13152_v28 = vcombine.low %v13133_v23, %v13136_v24 }
  0x19   : > { %19648 = vst [vmem:[#allocation10_spill] sm:$0xff] %v13145_v26  ;;  %19649 = vst [vmem:[#allocation11_spill] sm:$0xff] %v13148_v27  ;;  %v13155_v29 = vld [vmem:[%s13070_s25 + $0x28] sm:$0xf]  ;;  %11653 = vmatprep.mubr.msk.bf16.mxu1 %vm697_vm1, %v13145_v26  ;;  %v13161_v30 = vcombine.low %v13139_v25, %v13148_v27  ;;  %v13164_v31 = vld [vmem:[%s13070_s25 + $0x2c] sm:$0xf] }
  0x1a   : > { %19650 = vst [vmem:[#allocation12_spill] sm:$0xff] %v13152_v28  ;;  %v13168_v32 = vcombine.low %v13155_v29, %v13164_v31  ;;  %v13171_v33 = vld [vmem:[%s13070_s25 + $0x168] sm:$0xf]  ;;  %v13176_v34 = vld [vmem:[%s13070_s25 + $0x16c] sm:$0xf]  ;;  %v1580_v39 = vshll.u32 %v13076_v5, 16 }
  0x1b   : > { %19651 = vst [vmem:[#allocation13_spill] sm:$0xff] %v13161_v30  ;;  %19653 = vst [vmem:[#allocation15_spill] sm:$0xff] %v13171_v33  ;;  %v13182_v35 = vcombine.low %v13171_v33, %v13176_v34  ;;  %v13185_v36 = vld [vmem:[%s13070_s25 + $0x30] sm:$0xf]  ;;  %v1584_v40 = vshrl.u32 %v13076_v5, 16  ;;  %v19143_v45 = vrot.slane %v13076_v5, 5 }
  0x1c   : > { %19652 = vst [vmem:[#allocation14_spill] sm:$0xff] %v13168_v32  ;;  %19654 = vst [vmem:[#allocation16_spill] sm:$0xff] %v13176_v34  ;;  %v13194_v41 = vld [vmem:[%s13070_s25 + $0x34] sm:$0xf]  ;;  %v13199_v42 = vld [vmem:[%s13070_s25 + $0x170] sm:$0xf] }
  0x1d   : > { %19655 = vst [vmem:[#allocation17_spill] sm:$0xff] %v13182_v35  ;;  %v13202_v43 = vld [vmem:[%s13070_s25 + $0x174] sm:$0xf]  ;;  %v13205_v44 = vld [vmem:[%s13070_s25 + $0x3c] sm:$0xf]  ;;  %v2275_v46 = vshrl.u32 %v13079_v6, 16  ;;  %v13211_v47 = vcombine.low %v13185_v36, %v13194_v41 }
  0x1e   : > { %11590 = vmatmul.mubr.msk.bf16.gmra.mxu0 %vm697_vm1, %v13152_v28  ;;  %19656 = vst [vmem:[#allocation18_spill] sm:$0xff] %v13202_v43  ;;  %v13214_v48 = vld [vmem:[%s13070_s25 + $0x40] sm:$0xf]  ;;  %v13221_v50 = vld [vmem:[%s13070_s25 + $0x17c] sm:$0xf]  ;;  %v1573_v51 = vrot.slane %v1571_v37, 4  ;;  %v13225_v53 = vcombine.low %v13199_v42, %v13202_v43 }
  0x1f   : > { %11593 = vmatprep.mubr.msk.bf16.mxu0 %vm697_vm1, %v13168_v32  ;;  %11654 = vmatmul.mubr.msk.bf16.gmra.mxu1 %vm697_vm1, %v13161_v30  ;;  %19657 = vst [vmem:[#allocation19_spill] sm:$0xff] %v13211_v47  ;;  %v13218_v49 = vcombine.low %v13205_v44, %v13214_v48  ;;  %19659 = vst [vmem:[#allocation21_spill] sm:$0xff] %v13221_v50  ;;  %v1576_v52 = vrot.slane %v1574_v38, 5  ;;  %v13228_v54 = vld [vmem:[%s13070_s25 + $0x180] sm:$0xf]  ;;  %v13230_v55 = vrot.slane %v1580_v39, 5 }
  0x20   : > { %11657 = vmatprep.mubr.msk.bf16.mxu1 %vm697_vm1, %v13182_v35  ;;  %19660 = vst [vmem:[#allocation22_spill] sm:$0xff] %v13225_v53  ;;  %19661 = vst [vmem:[#allocation23_spill] sm:$0xff] %v13228_v54  ;;  %v1586_v56 = vrot.slane %v1584_v40, 4  ;;  %v2278_v57 = vshll.u32 %v13079_v6, 16  ;;  %v13235_v58 = vcombine.low %v13221_v50, %v13228_v54  ;;  %v13240_v60 = vrot.slane %v19143_v45, 4 }
  0x21   : > { %19658 = vst [vmem:[#allocation20_spill] sm:$0xff] %v13218_v49  ;;  %v13242_v61 = vrot.slane %v2275_v46, 4  ;;  %v2284_v62 = vshll.u32 %v13084_v8, 16  ;;  %v2288_v63 = vshrl.u32 %v13084_v8, 16  ;;  %v13252_v1 = vld [vmem:[%s13070_s25 + $0x44] sm:$0xf]  ;;  %v1577_v19 = vor.u32 %v1576_v52, %v1573_v51 }
  0x22   : > { %19662 = vst [vmem:[#allocation24_spill] sm:$0xff] %v13235_v58  ;;  %v13255_v2 = vld [vmem:[%s13070_s25 + $0x48] sm:$0xf]  ;;  %v1600_v3 = vshll.u32 %v13097_v11, 16  ;;  %v1604_v7 = vshrl.u32 %v13097_v11, 16  ;;  %v1587_v37 = vor.u32 %v1586_v56, %v13230_v55  ;;  %v13268_v38 = vrot.slane %v2278_v57, 5 }
  0x23   : > { %19663 = vst [vmem:[#allocation25_spill] sm:$0xff] %v13242_v61  ;;  %v13262_v14 = vld [vmem:[%s13070_s25 + $0x50] sm:$0xf]  ;;  %v13265_v15 = vld [vmem:[%s13070_s25 + $0x54] sm:$0xf]  ;;  %v1594_v39 = vshrl.u32 %v13094_v10, 16  ;;  %v13283_v51 = vcombine.low %v13252_v1, %v13255_v2 }
  0x24   : > { %19664 = vst [vmem:[#allocation26_spill] sm:$0xff] %v13262_v14  ;;  %19665 = vst [vmem:[#allocation27_spill] sm:$0xff] %v13265_v15  ;;  %v13274_v40 = vld [vmem:[%s13070_s25 + $0x184] sm:$0xf]  ;;  %v13277_v46 = vld [vmem:[%s13070_s25 + $0x188] sm:$0xf] }
  0x25   : > { %19666 = vst [vmem:[#allocation28_spill] sm:$0xff] %v13268_v38  ;;  %19667 = vst [vmem:[#allocation29_spill] sm:$0xff] %v13277_v46  ;;  %v2298_v59 = vshrl.u32 %v13100_v12, 16  ;;  %v13286_v52 = vld [vmem:[%s13070_s25 + $0x190] sm:$0xf]  ;;  %v13291_v57 = vrot.slane %v2284_v62, 5  ;;  %v13304_v30 = vcombine.low %v13274_v40, %v13277_v46 }
  0x26   : > { %11594 = vmatmul.mubr.msk.bf16.gmra.mxu0 %vm697_vm1, %v13211_v47  ;;  %19668 = vst [vmem:[#allocation30_spill] sm:$0xff] %v13283_v51  ;;  %19669 = vst [vmem:[#allocation31_spill] sm:$0xff] %v13286_v52  ;;  %v13289_v56 = vld [vmem:[%s13070_s25 + $0x194] sm:$0xf]  ;;  %v13299_v0 = vrot.slane %v1600_v3, 5  ;;  %v1606_v12 = vrot.slane %v1604_v7, 4 }
  0x27   : > { %11597 = vmatprep.mubr.msk.bf16.mxu0 %vm697_vm1, %v13218_v49  ;;  %11658 = vmatmul.mubr.msk.bf16.gmra.mxu1 %vm697_vm1, %v13225_v53  ;;  %19670 = vst [vmem:[#allocation32_spill] sm:$0xff] %v13289_v56  ;;  %19671 = vst [vmem:[#allocation33_spill] sm:$0xff] %v13291_v57  ;;  %v13297_v53 = vcombine.low %v13262_v14, %v13265_v15  ;;  %v2308_v35 = vshrl.u32 %v13103_v13, 16  ;;  %v13306_v62 = vrot.slane %v1577_v19, 4  ;;  %v13308_v45 = vrot.slane %v1587_v37, 4 }
  0x28   : > { %11661 = vmatprep.mubr.msk.bf16.mxu1 %vm697_vm1, %v13235_v58  ;;  %v2304_v58 = vshll.u32 %v13103_v13, 16  ;;  %19673 = vst [vmem:[#allocation35_spill] sm:$0xff] %v13304_v30  ;;  %v13310_v26 = vrot.slane %v2288_v63, 4  ;;  %v13314_v3 = vcombine.low %v13286_v52, %v13289_v56  ;;  %v13316_v7 = vrot.slane %v1594_v39, 4  ;;  %v13332_v37 = vld [vmem:[%s13070_s25 + $0x58] sm:$0xf] }
  0x29   : > { %19672 = vst [vmem:[#allocation34_spill] sm:$0xff] %v13297_v53  ;;  %v19676_v18 = vrot.slane %v13097_v11, 5  ;;  %v13322_v49 = vrot.slane %v2298_v59, 4  ;;  %19679 = vst [vmem:[#allocation40_spill] sm:$0xff] %v13332_v37  ;;  %v13335_v39 = vld [vmem:[%s13070_s25 + $0x5c] sm:$0xf] }
  0x2a   : > { %19674 = vst [vmem:[#allocation36_spill] sm:$0xff] %v13310_v26  ;;  %19675 = vst [vmem:[#allocation37_spill] sm:$0xff] %v13314_v3  ;;  %v13326_v63 = vrot.slane %v2304_v58, 5  ;;  %v13338_v59 = vrot.slane %v2308_v35, 4  ;;  %v13343_v58 = vld [vmem:[%s13070_s25 + $0x64] sm:$0xf]  ;;  %v13367_v19 = vcombine.low %v13332_v37, %v13335_v39 }
  0x2b   : > { %v13320_v9 = vrot.slane %v19676_v18, 4  ;;  %19677 = vst [vmem:[#allocation38_spill] sm:$0xff] %v13322_v49  ;;  %19680 = vst [vmem:[#allocation41_spill] sm:$0xff] %v13335_v39  ;;  %v1607_v18 = vor.u32 %v1606_v12, %v13299_v0  ;;  %v13355_v47 = vld [vmem:[%s13070_s25 + $0x19c] sm:$0xf]  ;;  %v19685_v35 = vmov 0 }
  0x2c   : > { %19678 = vst [vmem:[#allocation39_spill] sm:$0xff] %v13326_v63  ;;  %19681 = vst [vmem:[#allocation42_spill] sm:$0xff] %v13338_v59  ;;  %v19686_v35 = vsel %vm13358_vm4, 4294967295, %v19685_v35  ;;  %v4080_v12 = vrot.slane %v13094_v10, 5  ;;  %v13373_v28 = vld [vmem:[%s13070_s25 + $0x1a8] sm:$0xf] }
  0x2d   : > { %19682 = vst [vmem:[#allocation43_spill] sm:$0xff] %v13343_v58  ;;  %19684 = vst [vmem:[#allocation45_spill] sm:$0xff] %v13355_v47  ;;  %v19691_v22 = vrot.slane %v13076_v5, 5  ;;  %v19692_v49 = vrot.slane %v13073_v4, 9  ;;  %v2342_v32 = vshrl.u32 %v13139_v25, 16  ;;  %v2348_v59 = vshll.u32 %v13148_v27, 16 }
  0x2e   : > { %11598 = vmatmul.mubr.msk.bf16.gmra.mxu0 %vm697_vm1, %v13283_v51  ;;  %v13346_v51 = vld [vmem:[%s13070_s25 + $0x68] sm:$0xf]  ;;  %19687 = vst [vmem:[#allocation46_spill] sm:$0xff] %v19686_v35  ;;  %19688 = vst [vmem:[#allocation47_spill] sm:$0xff] %v13367_v19  ;;  %v13390_v6 = vrot.slane %v1607_v18, 4  ;;  %v2352_v18 = vshrl.u32 %v13148_v27, 16 }
  0x2f   : > { %11601 = vmatprep.mubr.msk.bf16.mxu0 %vm697_vm1, %v13297_v53  ;;  %11662 = vmatmul.mubr.msk.bf16.gmra.mxu1 %vm697_vm1, %v13304_v30  ;;  %19683 = vst [vmem:[#allocation44_spill] sm:$0xff] %v13346_v51  ;;  %v13352_v53 = vld [vmem:[%s13070_s25 + $0x198] sm:$0xf]  ;;  %19690 = vst [vmem:[#allocation49_spill] sm:$0xff] %v13373_v28  ;;  %v13381_v13 = vsel %vm13358_vm4, %v19692_v49, %v19691_v22  ;;  %v13388_v63 = vcombine.low %v13343_v58, %v13346_v51  ;;  %v13414_v25 = vrot.slane %v2342_v32, 4 }
  0x30   : > { %11665 = vmatprep.mubr.msk.bf16.mxu1 %vm697_vm1, %v13314_v3  ;;  %v13370_v3 = vld [vmem:[%s13070_s25 + $0x1a4] sm:$0xf]  ;;  %v13395_v4 = vcombine.low %v13352_v53, %v13355_v47  ;;  %v13400_v22 = vsel %vm13358_vm4, %v13240_v60, %v4080_v12  ;;  %v4082_v60 = vrot.slane %v4080_v12, 4  ;;  %v13416_v49 = vrot.slane %v2348_v59, 5  ;;  %v13421_v21 = vld [vmem:[%s13070_s25 + $0x6c] sm:$0xf] }
  0x31   : > { %19689 = vst [vmem:[#allocation48_spill] sm:$0xff] %v13370_v3  ;;  %19693 = vst [vmem:[#allocation50_spill] sm:$0xff] %v13388_v63  ;;  %v13407_v5 = vcombine.low %v13370_v3, %v13373_v28  ;;  %v13424_v30 = vld [vmem:[%s13070_s25 + $0x70] sm:$0xf]  ;;  %v13433_v59 = vld [vmem:[%s13070_s25 + $0x78] sm:$0xf] }
  0x32   : > { %19694 = vst [vmem:[#allocation51_spill] sm:$0xff] %v13395_v4  ;;  %19695 = vst [vmem:[#allocation52_spill] sm:$0xff] %v13400_v22  ;;  %v13436_v8 = vld [vmem:[%s13070_s25 + $0x7c] sm:$0xf]  ;;  %v13444_v27 = vrot.slane %v2352_v18, 4  ;;  %v2386_v20 = vshrl.u32 %v13199_v42, 16 }
  0x33   : > { %19696 = vst [vmem:[#allocation53_spill] sm:$0xff] %v13407_v5  ;;  %19697 = vst [vmem:[#allocation54_spill] sm:$0xff] %v13414_v25  ;;  %v13450_v32 = vld [vmem:[%s13070_s25 + $0x1ac] sm:$0xf]  ;;  %v13453_v12 = vld [vmem:[%s13070_s25 + $0x1b0] sm:$0xf] }
  0x34   : > { %19698 = vst [vmem:[#allocation55_spill] sm:$0xff] %v13416_v49  ;;  %19699 = vst [vmem:[#allocation56_spill] sm:$0xff] %v13421_v21  ;;  %v2396_v25 = vshrl.u32 %v13202_v43, 16  ;;  %v13465_v18 = vld [vmem:[%s13070_s25 + $0x1bc] sm:$0xf]  ;;  %v13479_v38 = vcombine.low %v13450_v32, %v13453_v12  ;;  %v13481_v42 = vrot.slane %v2386_v20, 4 }
  0x35   : > { %19700 = vst [vmem:[#allocation57_spill] sm:$0xff] %v13424_v30  ;;  %19701 = vst [vmem:[#allocation58_spill] sm:$0xff] %v13433_v59  ;;  %v1590_v20 = vshll.u32 %v13094_v10, 16  ;;  %v2430_v57 = vshrl.u32 %v13274_v40, 16  ;;  %v13512_v10 = vld [vmem:[%s13070_s25 + $0x8c] sm:$0xf] }
  0x36   : > { %11602 = vmatmul.mubr.msk.bf16.gmra.mxu0 %vm697_vm1, %v13367_v19  ;;  %19702 = vst [vmem:[#allocation59_spill] sm:$0xff] %v13436_v8  ;;  %19704 = vst [vmem:[#allocation60_spill] sm:$0xff] %v13444_v27  ;;  %v13472_v27 = vcombine.low %v13433_v59, %v13436_v8  ;;  %v13491_v34 = vrot.slane %v2396_v25, 4  ;;  %v13505_v25 = vld [vmem:[%s13070_s25 + $0x84] sm:$0xf]  ;;  %v2528_v3 = vshrl.u32 %v13453_v12, 16 }
  0x37   : > { %11605 = vmatprep.mubr.msk.bf16.mxu0 %vm697_vm1, %v13388_v63  ;;  %11666 = vmatmul.mubr.msk.bf16.gmra.mxu1 %vm697_vm1, %v13395_v4  ;;  %v19703_v63 = vrot.slane %v13097_v11, 5  ;;  %19705 = vst [vmem:[#allocation61_spill] sm:$0xff] %v13453_v12  ;;  %v2392_v4 = vshll.u32 %v13202_v43, 16  ;;  %v13459_v11 = vcombine.low %v13421_v21, %v13424_v30  ;;  %19708 = vst [vmem:[#allocation64_spill] sm:$0xff] %v13465_v18  ;;  %v13522_v50 = vld [vmem:[%s13070_s25 + $0x1c0] sm:$0xf] }
  0x38   : > { %11669 = vmatprep.mubr.msk.bf16.mxu1 %vm697_vm1, %v13407_v5  ;;  %19709 = vst [vmem:[#allocation65_spill] sm:$0xff] %v13472_v27  ;;  %19710 = vst [vmem:[#allocation66_spill] sm:$0xff] %v13479_v38  ;;  %v13525_v43 = vld [vmem:[%s13070_s25 + $0x1c4] sm:$0xf]  ;;  %v13538_v5 = vrot.slane %v1590_v20, 5  ;;  %v13547_v40 = vrot.slane %v2430_v57, 4 }
  0x39   : > { %v13442_v19 = vsel %vm13358_vm4, %v4082_v60, %v19703_v63  ;;  %19706 = vst [vmem:[#allocation62_spill] sm:$0xff] %v13459_v11  ;;  %v13462_v63 = vld [vmem:[%s13070_s25 + $0x1b8] sm:$0xf]  ;;  %19711 = vst [vmem:[#allocation67_spill] sm:$0xff] %v13481_v42  ;;  %v13489_v26 = vrot.slane %v2392_v4, 5  ;;  %v13554_v20 = vcombine.low %v13522_v50, %v13525_v43 }
  0x3a   : > { %19707 = vst [vmem:[#allocation63_spill] sm:$0xff] %v13462_v63  ;;  %v13487_v49 = vcombine.low %v13462_v63, %v13465_v18  ;;  %19714 = vst [vmem:[#allocation70_spill] sm:$0xff] %v13491_v34  ;;  %v13502_v4 = vld [vmem:[%s13070_s25 + $0x80] sm:$0xf]  ;;  %v13515_v60 = vld [vmem:[%s13070_s25 + $0x90] sm:$0xf] }
  0x3b   : > { %19713 = vst [vmem:[#allocation69_spill] sm:$0xff] %v13489_v26  ;;  %19715 = vst [vmem:[#allocation71_spill] sm:$0xff] %v13515_v60  ;;  %v13533_v42 = vld [vmem:[%s13070_s25 + $0x1cc] sm:$0xf]  ;;  %v13536_v34 = vld [vmem:[%s13070_s25 + $0x1d0] sm:$0xf]  ;;  %v13545_v33 = vcombine.low %v13512_v10, %v13515_v60 }
  0x3c   : > { %19712 = vst [vmem:[#allocation68_spill] sm:$0xff] %v13487_v49  ;;  %19716 = vst [vmem:[#allocation72_spill] sm:$0xff] %v13525_v43  ;;  %v13562_v57 = vcombine.low %v13533_v42, %v13536_v34  ;;  %v2480_v26 = vshll.u32 %v13355_v47, 16  ;;  %v13576_v22 = vld [vmem:[%s13070_s25 + $0x94] sm:$0xf] }
  0x3d   : > { %19718 = vst [vmem:[#allocation74_spill] sm:$0xff] %v13533_v42  ;;  %19719 = vst [vmem:[#allocation75_spill] sm:$0xff] %v13536_v34  ;;  %v13589_v56 = vld [vmem:[%s13070_s25 + $0xa4] sm:$0xf]  ;;  %v13649_v58 = vld [vmem:[%s13070_s25 + $0xa8] sm:$0xf] }
  0x3e   : > { %11606 = vmatmul.mubr.msk.bf16.gmra.mxu0 %vm697_vm1, %v13459_v11  ;;  %v2436_v11 = vshll.u32 %v13277_v46, 16  ;;  %19720 = vst [vmem:[#allocation76_spill] sm:$0xff] %v13545_v33  ;;  %19721 = vst [vmem:[#allocation77_spill] sm:$0xff] %v13547_v40  ;;  %v13596_v40 = vld [vmem:[%s13070_s25 + $0x1d4] sm:$0xf] }
  0x3f   : > { %11609 = vmatprep.mubr.msk.bf16.mxu0 %vm697_vm1, %v13472_v27  ;;  %11670 = vmatmul.mubr.msk.bf16.gmra.mxu1 %vm697_vm1, %v13479_v38  ;;  %v2440_v27 = vshrl.u32 %v13277_v46, 16  ;;  %v13530_v38 = vcombine.low %v13502_v4, %v13505_v25  ;;  %19723 = vst [vmem:[#allocation79_spill] sm:$0xff] %v13554_v20  ;;  %19725 = vst [vmem:[#allocation81_spill] sm:$0xff] %v13562_v57  ;;  %v2474_v46 = vshrl.u32 %v13352_v53, 16  ;;  %v13579_v53 = vld [vmem:[%s13070_s25 + $0x98] sm:$0xf] }
  0x40   : > { %11673 = vmatprep.mubr.msk.bf16.mxu1 %vm697_vm1, %v13487_v49  ;;  %v13549_v61 = vrot.slane %v2436_v11, 5  ;;  %v2484_v49 = vshrl.u32 %v13355_v47, 16  ;;  %19726 = vst [vmem:[#allocation82_spill] sm:$0xff] %v13576_v22  ;;  %19727 = vst [vmem:[#allocation83_spill] sm:$0xff] %v13579_v53  ;;  %v13604_v11 = vcombine.low %v13576_v22, %v13579_v53  ;;  %v13616_v47 = vrot.slane %v2480_v26, 5 }
  0x41   : > { %19717 = vst [vmem:[#allocation73_spill] sm:$0xff] %v13530_v38  ;;  %v13556_v54 = vrot.slane %v2440_v27, 4  ;;  %v1597_v27 = vor.u32 %v13316_v7, %v13538_v5  ;;  %v13586_v7 = vld [vmem:[%s13070_s25 + $0xa0] sm:$0xf]  ;;  %19729 = vst [vmem:[#allocation85_spill] sm:$0xff] %v13589_v56  ;;  %v4090_v26 = vrot.slane %v13112_v17, 5 }
  0x42   : > { %19722 = vst [vmem:[#allocation78_spill] sm:$0xff] %v13549_v61  ;;  %19728 = vst [vmem:[#allocation84_spill] sm:$0xff] %v13586_v7  ;;  %v13610_v61 = vld [vmem:[%s13070_s25 + $0x1e4] sm:$0xf]  ;;  %v13622_v39 = vcombine.low %v13586_v7, %v13589_v56  ;;  %v13652_v37 = vld [vmem:[%s13070_s25 + $0xac] sm:$0xf] }
  0x43   : > { %19724 = vst [vmem:[#allocation80_spill] sm:$0xff] %v13556_v54  ;;  %v13599_v54 = vld [vmem:[%s13070_s25 + $0x1d8] sm:$0xf]  ;;  %19731 = vst [vmem:[#allocation87_spill] sm:$0xff] %v13604_v11  ;;  %v13612_v52 = vrot.slane %v1597_v27, 4  ;;  %v2524_v27 = vshll.u32 %v13453_v12, 16  ;;  %v13681_v59 = vcombine.low %v13649_v58, %v13652_v37 }
  0x44   : > { %19730 = vst [vmem:[#allocation86_spill] sm:$0xff] %v13599_v54  ;;  %19733 = vst [vmem:[#allocation89_spill] sm:$0xff] %v13610_v61  ;;  %v13671_v12 = vld [vmem:[%s13070_s25 + $0x1e8] sm:$0xf]  ;;  %v13684_v30 = vld [vmem:[%s13070_s25 + $0x1f4] sm:$0xf] }
  0x45   : > { %19735 = vst [vmem:[#allocation91_spill] sm:$0xff] %v13616_v47  ;;  %19737 = vst [vmem:[#allocation93_spill] sm:$0xff] %v13622_v39  ;;  %v13674_v47 = vld [vmem:[%s13070_s25 + $0x1ec] sm:$0xf]  ;;  %v13724_v63 = vld [vmem:[%s13070_s25 + $0xbc] sm:$0xf] }
  0x46   : > { %11610 = vmatmul.mubr.msk.bf16.gmra.mxu0 %vm697_vm1, %v13530_v38  ;;  %19742 = vst [vmem:[#allocation98_spill] sm:$0xff] %v13674_v47  ;;  %19744 = vst [vmem:[#allocation100_spill] sm:$0xff] %v13681_v59  ;;  %v13702_v8 = vcombine.low %v13671_v12, %v13674_v47  ;;  %v13727_v51 = vld [vmem:[%s13070_s25 + $0xc0] sm:$0xf]  ;;  %v337_v60 = vld [vmem:[%s13070_s25 + $0x228] sm:$0xf] }
  0x47   : > { %11613 = vmatprep.mubr.msk.bf16.mxu0 %vm697_vm1, %v13545_v33  ;;  %11674 = vmatmul.mubr.msk.bf16.gmra.mxu1 %vm697_vm1, %v13554_v20  ;;  %v13607_v20 = vld [vmem:[%s13070_s25 + $0x1e0] sm:$0xf]  ;;  %v13614_v33 = vrot.slane %v2474_v46, 4  ;;  %v13629_v46 = vcombine.low %v13596_v40, %v13599_v54  ;;  %19745 = vst [vmem:[#allocation101_spill] sm:$0xff] %v13684_v30 }
  0x48   : > { %11677 = vmatprep.mubr.msk.bf16.mxu1 %vm697_vm1, %v13562_v57  ;;  %19732 = vst [vmem:[#allocation88_spill] sm:$0xff] %v13607_v20  ;;  %v13618_v57 = vrot.slane %v2484_v49, 4  ;;  %v2518_v49 = vshrl.u32 %v13450_v32, 16  ;;  %v13636_v38 = vcombine.low %v13607_v20, %v13610_v61  ;;  %v10431_v32 = vrot.slane %v13109_v16, 9  ;;  %19748 = vst [vmem:[#allocation104_spill] sm:$0xff] %v13702_v8 }
  0x49   : > { %19734 = vst [vmem:[#allocation90_spill] sm:$0xff] %v13614_v33  ;;  %19738 = vst [vmem:[#allocation94_spill] sm:$0xff] %v13629_v46  ;;  %v13676_v33 = vrot.slane %v2528_v3, 4 }
  0x4a   : > { %19736 = vst [vmem:[#allocation92_spill] sm:$0xff] %v13618_v57  ;;  %19739 = vst [vmem:[#allocation95_spill] sm:$0xff] %v13636_v38  ;;  %v13661_v57 = vld [vmem:[%s13070_s25 + $0xb8] sm:$0xf]  ;;  %v13664_v28 = vrot.slane %v2518_v49, 4 }
  0x4b   : > { %19743 = vst [vmem:[#allocation99_spill] sm:$0xff] %v13676_v33  ;;  %v13687_v49 = vld [vmem:[%s13070_s25 + $0x1f8] sm:$0xf]  ;;  %v2562_v33 = vshrl.u32 %v13522_v50, 16 }
  0x4c   : > { %19740 = vst [vmem:[#allocation96_spill] sm:$0xff] %v13664_v28  ;;  %19746 = vst [vmem:[#allocation102_spill] sm:$0xff] %v13687_v49  ;;  %v13707_v3 = vcombine.low %v13684_v30, %v13687_v49  ;;  %v19750_v28 = vshrl.u32 %v13109_v16, 16 }
  0x4d   : > { %v13729_v21 = vrot.slane %v2562_v33, 4  ;;  %v13751_v33 = vld [vmem:[%s13070_s25 + $0x1fc] sm:$0xf] }
  0x4e   : > { %11614 = vmatmul.mubr.msk.bf16.gmra.mxu0 %vm697_vm1, %v13604_v11  ;;  %v13658_v11 = vld [vmem:[%s13070_s25 + $0xb4] sm:$0xf]  ;;  %19749 = vst [vmem:[#allocation105_spill] sm:$0xff] %v13707_v3  ;;  %v1617_v18 = vrot.slane %v19750_v28, 4  ;;  %v19755_v28 = vrot.slane %v13133_v23, 5 }
  0x4f   : > { %11617 = vmatprep.mubr.msk.bf16.mxu0 %vm697_vm1, %v13622_v39  ;;  %11678 = vmatmul.mubr.msk.bf16.gmra.mxu1 %vm697_vm1, %v13629_v46  ;;  %v13666_v39 = vrot.slane %v2524_v27, 5  ;;  %v4091_v27 = vsel %vm13358_vm4, %v10431_v32, %v4090_v26  ;;  %v13696_v46 = vcombine.low %v13658_v11, %v13661_v57  ;;  %v4092_v32 = vrot.slane %v4090_v26, 4  ;;  %19752 = vst [vmem:[#allocation106_spill] sm:$0xff] %v13729_v21  ;;  %v13762_v21 = vld [vmem:[%s13070_s25 + $0x208] sm:$0xf] }
  0x50   : > { %11681 = vmatprep.mubr.msk.bf16.mxu1 %vm697_vm1, %v13636_v38  ;;  %v2572_v38 = vshrl.u32 %v13525_v43, 16  ;;  %v19751_v26 = vshll.u32 %v13109_v16, 16  ;;  %v13736_v16 = vld [vmem:[%s13070_s25 + $0xc8] sm:$0xf]  ;;  %19759 = vst [vmem:[#allocation112_spill] sm:$0xff] %v13762_v21 }
  0x51   : > { %19741 = vst [vmem:[#allocation97_spill] sm:$0xff] %v13666_v39  ;;  %19747 = vst [vmem:[#allocation103_spill] sm:$0xff] %v13696_v46  ;;  %v2568_v39 = vshll.u32 %v13525_v43, 16  ;;  %v4094_v14 = vsel %vm13358_vm4, %v4092_v32, %v19755_v28  ;;  %v13759_v43 = vcombine.low %v13724_v63, %v13727_v51  ;;  %v330_v32 = vld [vmem:[%s13070_s25 + $0x20c] sm:$0xf] }
  0x52   : > { %v1620_v15 = vrot.slane %v19751_v26, 5  ;;  %v13739_v26 = vld [vmem:[%s13070_s25 + $0xcc] sm:$0xf]  ;;  %v13765_v28 = vcombine.low %v4091_v27, %v4094_v14 }
  0x53   : > { %v13731_v50 = vrot.slane %v2568_v39, 5  ;;  %19754 = vst [vmem:[#allocation108_spill] sm:$0xff] %v13739_v26  ;;  %v13754_v39 = vld [vmem:[%s13070_s25 + $0x200] sm:$0xf]  ;;  %19758 = vst [vmem:[#allocation111_spill] sm:$0xff] %v13759_v43 }
  0x54   : > { %19757 = vst [vmem:[#allocation110_spill] sm:$0xff] %v13754_v39  ;;  %19760 = vst [vmem:[#allocation113_spill] sm:$0xff] %v13765_v28  ;;  %v13778_v14 = vcombine.low %v13751_v33, %v13754_v39 }
  0x55   : > { %19753 = vst [vmem:[#allocation107_spill] sm:$0xff] %v13731_v50  ;;  %v13772_v50 = vcombine.low %v13736_v16, %v13739_v26 }
  0x56   : > { %11618 = vmatmul.mubr.msk.bf16.gmra.mxu0 %vm697_vm1, %v13681_v59  ;;  %19762 = vst [vmem:[#allocation115_spill] sm:$0xff] %v13778_v14  ;;  %v13810_v59 = vld [vmem:[%s13070_s25 + $0xdc] sm:$0xf] }
  0x57   : > { %11621 = vmatprep.mubr.msk.bf16.mxu0 %vm697_vm1, %v13696_v46  ;;  %11682 = vmatmul.mubr.msk.bf16.gmra.mxu1 %vm697_vm1, %v13702_v8  ;;  %v13745_v46 = vrot.slane %v2572_v38, 4  ;;  %v2606_v8 = vshrl.u32 %v13596_v40, 16  ;;  %v1621_v38 = vor.u32 %v1620_v15, %v1617_v18  ;;  %19761 = vst [vmem:[#allocation114_spill] sm:$0xff] %v13772_v50  ;;  %v1624_v15 = vshll.u32 %v13112_v17, 16  ;;  %19769 = vst [vmem:[#allocation122_spill] sm:$0xff] %v13810_v59 }
  0x58   : > { %11685 = vmatprep.mubr.msk.bf16.mxu1 %vm697_vm1, %v13707_v3  ;;  %v2612_v3 = vshll.u32 %v13599_v54, 16  ;;  %v13785_v40 = vcombine.low %v13762_v21, %v330_v32  ;;  %v13805_v32 = vld [vmem:[%s13070_s25 + $0xd4] sm:$0xf] }
  0x59   : > { %19756 = vst [vmem:[#allocation109_spill] sm:$0xff] %v13745_v46  ;;  %v2616_v46 = vshrl.u32 %v13599_v54, 16  ;;  %v13787_v42 = vrot.slane %v2606_v8, 4  ;;  %v13793_v18 = vrot.slane %v1621_v38, 4  ;;  %v13802_v8 = vld [vmem:[%s13070_s25 + $0xd0] sm:$0xf] }
  0x5a   : > { %19763 = vst [vmem:[#allocation116_spill] sm:$0xff] %v13785_v40  ;;  %v13795_v22 = vrot.slane %v2612_v3, 5  ;;  %19767 = vst [vmem:[#allocation120_spill] sm:$0xff] %v13802_v8  ;;  %v13813_v38 = vld [vmem:[%s13070_s25 + $0xe0] sm:$0xf]  ;;  %v13815_v3 = vrot.slane %v1624_v15, 5  ;;  %v13829_v15 = vcombine.low %v13802_v8, %v13805_v32 }
  0x5b   : > { %19764 = vst [vmem:[#allocation117_spill] sm:$0xff] %v13787_v42  ;;  %v13797_v27 = vrot.slane %v2616_v46, 4  ;;  %19768 = vst [vmem:[#allocation121_spill] sm:$0xff] %v13805_v32  ;;  %v19771_v46 = vshrl.u32 %v13112_v17, 16  ;;  %v332_v54 = vld [vmem:[%s13070_s25 + $0x214] sm:$0xf] }
  0x5c   : > { %19765 = vst [vmem:[#allocation118_spill] sm:$0xff] %v13795_v22  ;;  %19770 = vst [vmem:[#allocation123_spill] sm:$0xff] %v13813_v38  ;;  %v2660_v42 = vshrl.u32 %v13674_v47, 16  ;;  %v335_v17 = vld [vmem:[%s13070_s25 + $0x220] sm:$0xf]  ;;  %v1678_v32 = vshll.u32 %v13185_v36, 16 }
  0x5d   : > { %19766 = vst [vmem:[#allocation119_spill] sm:$0xff] %v13797_v27  ;;  %v1630_v34 = vrot.slane %v19771_v46, 4  ;;  %19772 = vst [vmem:[#allocation124_spill] sm:$0xff] %v13829_v15  ;;  %v334_v27 = vld [vmem:[%s13070_s25 + $0x21c] sm:$0xf]  ;;  %v2700_v46 = vshll.u32 %v13754_v39, 16 }
  0x5e   : > { %11622 = vmatmul.mubr.msk.bf16.gmra.mxu0 %vm697_vm1, %v13759_v43  ;;  %v331_v43 = vld [vmem:[%s13070_s25 + $0x210] sm:$0xf]  ;;  %v13848_v61 = vcombine.low %v334_v27, %v335_v17  ;;  %v13854_v56 = vrot.slane %v2660_v42, 4  ;;  %v13867_v42 = vld [vmem:[%s13070_s25 + $0xe8] sm:$0xf] }
  0x5f   : > { %11625 = vmatprep.mubr.msk.bf16.mxu0 %vm697_vm1, %v13772_v50  ;;  %11686 = vmatmul.mubr.msk.bf16.gmra.mxu1 %vm697_vm1, %v13778_v14  ;;  %v2650_v50 = vshrl.u32 %v13671_v12, 16  ;;  %v2656_v14 = vshll.u32 %v13674_v47, 16  ;;  %v13842_v7 = vcombine.low %v331_v43, %v332_v54  ;;  %v1631_v53 = vor.u32 %v1630_v34, %v13815_v3  ;;  %19780 = vst [vmem:[#allocation132_spill] sm:$0xff] %v13867_v42  ;;  %v260_v27 = vld [vmem:[%s13070_s25 + $0xf4] sm:$0xf] }
  0x60   : > { %11689 = vmatprep.mubr.msk.bf16.mxu1 %vm697_vm1, %v13785_v40  ;;  %v13838_v40 = vcombine.low %v13810_v59, %v13813_v38  ;;  %19775 = vst [vmem:[#allocation127_spill] sm:$0xff] %v13848_v61  ;;  %19778 = vst [vmem:[#allocation130_spill] sm:$0xff] %v13854_v56  ;;  %v1634_v34 = vshll.u32 %v13133_v23, 16  ;;  %v2694_v54 = vshrl.u32 %v13751_v33, 16  ;;  %v336_v43 = vld [vmem:[%s13070_s25 + $0x224] sm:$0xf] }
  0x61   : > { %19774 = vst [vmem:[#allocation126_spill] sm:$0xff] %v13842_v7  ;;  %v13850_v20 = vrot.slane %v2650_v50, 4  ;;  %v13852_v22 = vrot.slane %v2656_v14, 5  ;;  %v13864_v50 = vld [vmem:[%s13070_s25 + $0xe4] sm:$0xf]  ;;  %v13875_v17 = vrot.slane %v1631_v53, 4  ;;  %v13900_v49 = vcombine.low %v336_v43, %v337_v60 }
  0x62   : > { %19773 = vst [vmem:[#allocation125_spill] sm:$0xff] %v13838_v40  ;;  %19779 = vst [vmem:[#allocation131_spill] sm:$0xff] %v13864_v50  ;;  %v13872_v14 = vld [vmem:[%s13070_s25 + $0xf0] sm:$0xf]  ;;  %v13902_v56 = vrot.slane %v1634_v34, 5  ;;  %v13906_v30 = vrot.slane %v2700_v46, 5 }
  0x63   : > { %19776 = vst [vmem:[#allocation128_spill] sm:$0xff] %v13850_v20  ;;  %19777 = vst [vmem:[#allocation129_spill] sm:$0xff] %v13852_v22  ;;  %v339_v53 = vld [vmem:[%s13070_s25 + $0x230] sm:$0xf]  ;;  %v13904_v22 = vrot.slane %v2694_v54, 4 }
  0x64   : > { %19781 = vst [vmem:[#allocation133_spill] sm:$0xff] %v13872_v14  ;;  %19784 = vst [vmem:[#allocation136_spill] sm:$0xff] %v13900_v49  ;;  %v262_v34 = vld [vmem:[%s13070_s25 + $0xfc] sm:$0xf]  ;;  %v265_v43 = vld [vmem:[%s13070_s25 + $0x108] sm:$0xf] }
  0x65   : > { %19785 = vst [vmem:[#allocation137_spill] sm:$0xff] %v13904_v22  ;;  %19786 = vst [vmem:[#allocation138_spill] sm:$0xff] %v13906_v30  ;;  %v341_v60 = vld [vmem:[%s13070_s25 + $0x238] sm:$0xf]  ;;  %v342_v46 = vld [vmem:[%s13070_s25 + $0x23c] sm:$0xf] }
  0x66   : > { %11626 = vmatmul.mubr.msk.bf16.gmra.mxu0 %vm697_vm1, %v13829_v15  ;;  %v340_v15 = vld [vmem:[%s13070_s25 + $0x234] sm:$0xf]  ;;  %v346_v54 = vld [vmem:[%s13070_s25 + $0x24c] sm:$0xf]  ;;  %v351_v22 = vld [vmem:[%s13070_s25 + $0x260] sm:$0xf] }
  0x67   : > { %11629 = vmatprep.mubr.msk.bf16.mxu0 %vm697_vm1, %v13838_v40  ;;  %11690 = vmatmul.mubr.msk.bf16.gmra.mxu1 %vm697_vm1, %v13842_v7  ;;  %v2704_v7 = vshrl.u32 %v13754_v39, 16  ;;  %v13888_v40 = vcombine.low %v13864_v50, %v13867_v42  ;;  %v13908_v33 = vcombine.low %v339_v53, %v340_v15  ;;  %v344_v15 = vld [vmem:[%s13070_s25 + $0x244] sm:$0xf]  ;;  %v274_v30 = vld [vmem:[%s13070_s25 + $0x12c] sm:$0xf]  ;;  %v19801_v42 = vrot.slane %v13133_v23, 5 }
  0x68   : > { %11693 = vmatprep.mubr.msk.bf16.mxu1 %vm697_vm1, %v13848_v61  ;;  %v13896_v61 = vcombine.low %v13872_v14, %v260_v27  ;;  %v19788_v27 = vshrl.u32 %v13133_v23, 16  ;;  %v13943_v53 = vld [vmem:[%s19140_s1 + $0x6] sm:$0x3]  ;;  %v276_v8 = vld [vmem:[%s13070_s25 + $0x134] sm:$0xf] }
  0x69   : > { %19782 = vst [vmem:[#allocation134_spill] sm:$0xff] %v13888_v40  ;;  %19787 = vst [vmem:[#allocation139_spill] sm:$0xff] %v13908_v33  ;;  %v13912_v20 = vrot.slane %v2704_v7, 4  ;;  %v261_v7 = vld [vmem:[%s13070_s25 + $0xf8] sm:$0xf]  ;;  %12759 = vmatprep.subr.msk.bf16.mxu1 %vm890_vm0, %v13943_v53  ;;  %v4095_v50 = vrot.slane %v19801_v42, 4 }
  0x6a   : > { %19783 = vst [vmem:[#allocation135_spill] sm:$0xff] %v13896_v61  ;;  %v1640_v47 = vrot.slane %v19788_v27, 4  ;;  %v264_v27 = vld [vmem:[%s13070_s25 + $0x104] sm:$0xf] }
  0x6b   : > { %19789 = vst [vmem:[#allocation140_spill] sm:$0xff] %v13912_v20  ;;  %v13948_v21 = vcombine.low %v264_v27, %v265_v43  ;;  %v19794_v43 = vmov 0  ;;  %v266_v27 = vld [vmem:[%s13070_s25 + $0x10c] sm:$0xf] }
  0x6c   : > { %v1641_v12 = vor.u32 %v1640_v47, %v13902_v56  ;;  %v203_v47 = vld [vmem:[%s13070_s25 + $0x10] sm:$0x1]  ;;  %v19795_v43 = vsel %vm13960_vm7, 4294967295, %v19794_v43 }
  0x6d   : > { %19791 = vst [vmem:[#allocation142_spill] sm:$0xff] %v13948_v21  ;;  %v4086_v39 = vrot.slane %v203_v47, 5  ;;  %19796 = vst [vmem:[#allocation145_spill] sm:$0xff] %v19795_v43 }
  0x6e   : > { %11630 = vmatmul.mubr.msk.bf16.gmra.mxu0 %vm697_vm1, %v13888_v40  ;;  %v345_v40 = vld [vmem:[%s13070_s25 + $0x248] sm:$0xf] }
  0x6f   : > { %11633 = vmatprep.mubr.msk.bf16.mxu0 %vm697_vm1, %v13896_v61  ;;  %11694 = vmatmul.mubr.msk.bf16.gmra.mxu1 %vm697_vm1, %v13900_v49  ;;  %v13937_v61 = vcombine.low %v261_v7, %v262_v34  ;;  %v13953_v7 = vcombine.low %v341_v60, %v342_v46  ;;  %v1610_v34 = vshll.u32 %v203_v47, 16  ;;  %v13967_v60 = vld [vmem:[%s19140_s1 + $0x8] sm:$0x3]  ;;  %v13969_v46 = vrot.slane %v1641_v12, 4 }
  0x70   : > { %11697 = vmatprep.mubr.msk.bf16.mxu1 %vm697_vm1, %v13908_v33  ;;  %v13957_v33 = vcombine.low %v344_v15, %v345_v40  ;;  %v267_v40 = vld [vmem:[%s13070_s25 + $0x110] sm:$0xf]  ;;  %v1583_v15 = vsel %vm13960_vm7, %v13306_v62, %v13230_v55  ;;  %v1593_v47 = vsel %vm13960_vm7, %v13308_v45, %v13538_v5  ;;  %v1603_v12 = vsel %vm13960_vm7, %v13612_v52, %v13299_v0  ;;  %v269_v62 = vld [vmem:[%s13070_s25 + $0x118] sm:$0xf]  ;;  %v208_v5 = vld [vmem:[%s13070_s25 + $0x24] sm:$0x1] }
  0x71   : > { %19790 = vst [vmem:[#allocation141_spill] sm:$0xff] %v13937_v61  ;;  %19792 = vst [vmem:[#allocation143_spill] sm:$0xff] %v13953_v7  ;;  %v1612_v49 = vrot.slane %v1610_v34, 5  ;;  %12760 = vmatprep.subr.msk.bf16.mxu0 %vm890_vm0, %v13967_v60  ;;  %v347_v55 = vld [vmem:[%s13070_s25 + $0x250] sm:$0xf]  ;;  %v13995_v45 = vcombine.low %v1583_v15, %v1593_v47  ;;  %v14000_v0 = vsel %vm13358_vm4, %v13320_v9, %v4086_v39  ;;  %v4099_v23 = vrot.slane %v208_v5, 5 }
  0x72   : > { %19793 = vst [vmem:[#allocation144_spill] sm:$0xff] %v13957_v33  ;;  %v1627_v52 = vsel %vm13960_vm7, %v13793_v18, %v13815_v3  ;;  %v349_v34 = vld [vmem:[%s13070_s25 + $0x258] sm:$0xf]  ;;  %v1637_v39 = vsel %vm13960_vm7, %v13875_v17, %v13902_v56  ;;  %v1644_v18 = vshll.u32 %v13136_v24, 16  ;;  %v14023_v3 = vcombine.low %v266_v27, %v267_v40  ;;  %v271_v47 = vld [vmem:[%s13070_s25 + $0x120] sm:$0xf] }
  0x73   : > { %v1613_v15 = vsel %vm13960_vm7, %v13390_v6, %v1612_v49  ;;  %v352_v6 = vld [vmem:[%s13070_s25 + $0x264] sm:$0xf]  ;;  %v14031_v9 = vcombine.low %v1627_v52, %v1637_v39  ;;  %v19799_v56 = vshrl.u32 %v13136_v24, 16  ;;  %v1654_v27 = vshll.u32 %v208_v5, 16  ;;  %v277_v5 = vld [vmem:[%s13070_s25 + $0x138] sm:$0xf] }
  0x74   : > { %19797 = vst [vmem:[#allocation146_spill] sm:$0xff] %v14023_v3  ;;  %v14029_v49 = vcombine.low %v1603_v12, %v1613_v15  ;;  %v14038_v14 = vrot.slane %v1644_v18, 5  ;;  %v4096_v40 = vrot.slane %v13136_v24, 5  ;;  %v19802_v12 = vshrl.u32 %v13155_v29, 16  ;;  %v354_v18 = vld [vmem:[%s13070_s25 + $0x26c] sm:$0xf] }
  0x75   : > { %19798 = vst [vmem:[#allocation147_spill] sm:$0xff] %v14031_v9  ;;  %v1650_v17 = vrot.slane %v19799_v56, 4  ;;  %v19803_v52 = vshll.u32 %v13155_v29, 16  ;;  %v355_v56 = vld [vmem:[%s13070_s25 + $0x270] sm:$0xf]  ;;  %v1656_v26 = vrot.slane %v1654_v27, 5 }
  0x76   : > { %11634 = vmatmul.mubr.msk.bf16.gmra.mxu0 %vm697_vm1, %v13937_v61  ;;  %v270_v61 = vld [vmem:[%s13070_s25 + $0x11c] sm:$0xf]  ;;  %v1661_v15 = vrot.slane %v19802_v12, 4  ;;  %v4098_v38 = vrot.slane %v4096_v40, 4 }
  0x77   : > { %11637 = vmatprep.mubr.msk.bf16.mxu0 %vm697_vm1, %v13948_v21  ;;  %11698 = vmatmul.mubr.msk.bf16.gmra.mxu1 %vm697_vm1, %v13953_v7  ;;  %v350_v21 = vld [vmem:[%s13070_s25 + $0x25c] sm:$0xf]  ;;  %v272_v7 = vld [vmem:[%s13070_s25 + $0x124] sm:$0xf]  ;;  %v14035_v20 = vcombine.low %v269_v62, %v270_v61  ;;  %v1664_v39 = vrot.slane %v19803_v52, 5  ;;  %v1668_v61 = vshll.u32 %v13164_v31, 16  ;;  %v14049_v62 = vcombine.low %v346_v54, %v347_v55 }
  0x78   : > { %11701 = vmatprep.mubr.msk.bf16.mxu1 %vm697_vm1, %v13957_v33  ;;  %v275_v33 = vld [vmem:[%s13070_s25 + $0x130] sm:$0xf]  ;;  %v1651_v24 = vor.u32 %v1650_v17, %v14038_v14  ;;  %v14054_v42 = vcombine.low %v349_v34, %v350_v21  ;;  %v19806_v52 = vshrl.u32 %v13164_v31, 16  ;;  %v14063_v54 = vcombine.low %v271_v47, %v272_v7 }
  0x79   : > { %19800 = vst [vmem:[#allocation148_spill] sm:$0xff] %v14035_v20  ;;  %19804 = vst [vmem:[#allocation149_spill] sm:$0xff] %v14049_v62  ;;  %v14056_v12 = vrot.slane %v1668_v61, 5  ;;  %v14065_v55 = vcombine.low %v351_v22, %v352_v6  ;;  %v14067_v17 = vcombine.low %v274_v30, %v275_v33  ;;  %v4103_v21 = vrot.slane %v13164_v31, 5  ;;  %v356_v61 = vld [vmem:[%s13070_s25 + $0x274] sm:$0xf] }
  0x7a   : > { %19805 = vst [vmem:[#allocation150_spill] sm:$0xff] %v14054_v42  ;;  %v1674_v59 = vrot.slane %v19806_v52, 4  ;;  %19807 = vst [vmem:[#allocation151_spill] sm:$0xff] %v14063_v54  ;;  %v14074_v34 = vcombine.low %v354_v18, %v355_v56  ;;  %v357_v52 = vld [vmem:[%s13070_s25 + $0x278] sm:$0xf]  ;;  %v4097_v7 = vsel %vm13358_vm4, %v4095_v50, %v4096_v40  ;;  %v1665_v47 = vor.u32 %v1664_v39, %v1661_v15 }
  0x7b   : > { %19808 = vst [vmem:[#allocation152_spill] sm:$0xff] %v14065_v55  ;;  %19809 = vst [vmem:[#allocation153_spill] sm:$0xff] %v14067_v17  ;;  %v1652_v30 = vrot.slane %v1651_v24, 4  ;;  %v4100_v31 = vsel %vm13358_vm4, %v4098_v38, %v4099_v23  ;;  %v10432_v33 = vrot.slane %v13155_v29, 9  ;;  %v1680_v6 = vrot.slane %v1678_v32, 5 }
  0x7c   : > { %19810 = vst [vmem:[#allocation154_spill] sm:$0xff] %v14074_v34  ;;  %v1675_v22 = vor.u32 %v1674_v59, %v14056_v12  ;;  %v4105_v27 = vrot.slane %v4103_v21, 4  ;;  %v4106_v50 = vrot.slane %v13185_v36, 5  ;;  %v19811_v40 = vshrl.u32 %v13185_v36, 16 }
  0x7d   : > { %v14091_v39 = vcombine.low %v276_v8, %v277_v5  ;;  %v14093_v18 = vcombine.low %v356_v61, %v357_v52  ;;  %v14097_v38 = vsel %vm890_vm0, %v13943_v53, 0  ;;  %v1688_v29 = vshll.u32 %v13194_v41, 16  ;;  %v213_v8 = vld [vmem:[%s13070_s25 + $0x38] sm:$0x1] }
  0x7e   : > { %11638 = vmatmul.mubr.msk.bf16.gmra.mxu0 %vm697_vm1, %v14023_v3  ;;  %v1684_v15 = vrot.slane %v19811_v40, 4  ;;  %v14102_v59 = vsel %vm890_vm0, %v13967_v60, 0  ;;  %v1647_v36 = vsel %vm13960_vm7, %v13969_v46, %v14038_v14  ;;  %v14108_v32 = vcombine.low %v4097_v7, %v4100_v31 }
  0x7f   : > { %11641 = vmatprep.mubr.msk.bf16.mxu0 %vm697_vm1, %v14035_v20  ;;  %11702 = vmatmul.mubr.msk.bf16.gmra.mxu1 %vm697_vm1, %v14049_v62  ;;  %19812 = vst [vmem:[#allocation155_spill] sm:$0xff] %v14091_v39  ;;  %19813 = vst [vmem:[#allocation156_spill] sm:$0xff] %v14093_v18  ;;  %v19815_v56 = vshrl.u32 %v13194_v41, 16  ;;  %v1657_v53 = vsel %vm13960_vm7, %v1652_v30, %v1656_v26  ;;  %v1666_v23 = vrot.slane %v1665_v47, 4  ;;  %v1676_v5 = vrot.slane %v1675_v22, 4 }
  0x80   : > { %11705 = vmatprep.mubr.msk.bf16.mxu1 %vm697_vm1, %v14054_v42  ;;  %19814 = vst [vmem:[#allocation157_spill] sm:$0xff] %v14108_v32  ;;  %v14115_v61 = vrot.slane %v1688_v29, 5  ;;  %v4104_v60 = vsel %vm13358_vm4, %v10432_v33, %v4103_v21  ;;  %v4107_v52 = vsel %vm13358_vm4, %v4105_v27, %v4106_v50  ;;  %v1685_v14 = vor.u32 %v1684_v15, %v1680_v6  ;;  %v19831_v42 = vld [vmem:[#allocation40_spill] sm:$0xff] }
  0x81   : > { %v1694_v24 = vrot.slane %v19815_v56, 4  ;;  %v4109_v46 = vrot.slane %v13194_v41, 5  ;;  %v1698_v7 = vshll.u32 %v213_v8, 16  ;;  %v19816_v31 = vshrl.u32 %v13205_v44, 16 }
  0x82   : > { %v19817_v47 = vshll.u32 %v13205_v44, 16  ;;  %v1712_v22 = vshll.u32 %v13214_v48, 16  ;;  %v14131_v21 = vcombine.low %v1647_v36, %v1657_v53  ;;  %v19819_v41 = vshrl.u32 %v13214_v48, 16 }
  0x83   : > { %v1705_v26 = vrot.slane %v19816_v31, 4  ;;  %v1695_v33 = vor.u32 %v1694_v24, %v14115_v61  ;;  %v1722_v40 = vshll.u32 %v13252_v1, 16  ;;  %v1671_v44 = vsel %vm13960_vm7, %v1666_v23, %v14056_v12 }
  0x84   : > { %v1708_v30 = vrot.slane %v19817_v47, 5  ;;  %19818 = vst [vmem:[#allocation158_spill] sm:$0xff] %v14131_v21  ;;  %v1718_v27 = vrot.slane %v19819_v41, 4  ;;  %v1681_v15 = vsel %vm13960_vm7, %v1676_v5, %v1680_v6  ;;  %v4108_v29 = vrot.slane %v4106_v50, 4 }
  0x85   : > { %v14144_v36 = vrot.slane %v1712_v22, 5  ;;  %v14148_v56 = vcombine.low %v4104_v60, %v4107_v52  ;;  %v1686_v24 = vrot.slane %v1685_v14, 4  ;;  %v4111_v53 = vrot.slane %v4109_v46, 4 }
  0x86   : > { %11642 = vmatmul.mubr.msk.bf16.gmra.mxu0 %vm697_vm1, %v14063_v54  ;;  %v4112_v31 = vrot.slane %v213_v8, 5  ;;  %v1700_v47 = vrot.slane %v1698_v7, 5  ;;  %v1709_v41 = vor.u32 %v1708_v30, %v1705_v26  ;;  %v4116_v23 = vrot.slane %v13214_v48, 5  ;;  %v218_v8 = vld [vmem:[%s13070_s25 + $0x4c] sm:$0x1] }
  0x87   : > { %11645 = vmatprep.mubr.msk.bf16.mxu0 %vm697_vm1, %v14067_v17  ;;  %11706 = vmatmul.mubr.msk.bf16.gmra.mxu1 %vm697_vm1, %v14065_v55  ;;  %19820 = vst [vmem:[#allocation159_spill] sm:$0xff] %v14148_v56  ;;  %v1719_v12 = vor.u32 %v1718_v27, %v14144_v36  ;;  %v1696_v6 = vrot.slane %v1695_v33, 4  ;;  %v1724_v50 = vrot.slane %v1722_v40, 5  ;;  %v4119_v5 = vrot.slane %v13252_v1, 5 }
  0x88   : > { %11709 = vmatprep.mubr.msk.bf16.mxu1 %vm697_vm1, %v14074_v34  ;;  %v19821_v22 = vshrl.u32 %v13252_v1, 16  ;;  %v14155_v34 = vcombine.low %v1671_v44, %v1681_v15  ;;  %v4110_v60 = vsel %vm13358_vm4, %v4108_v29, %v4109_v46  ;;  %v1732_v52 = vshll.u32 %v13255_v2, 16  ;;  %v12858_v1 = vld [vmem:[%s13070_s25 + $0x3c] sm:$0xf]  ;;  %v19824_v15 = vld [vmem:[#allocation52_spill] sm:$0xff] }
  0x89   : > { %v19823_v14 = vshrl.u32 %v13255_v2, 16  ;;  %v1691_v48 = vsel %vm13960_vm7, %v1686_v24, %v14115_v61  ;;  %v4113_v26 = vsel %vm13358_vm4, %v4111_v53, %v4112_v31  ;;  %v10433_v30 = vrot.slane %v12858_v1, 9 }
  0x8a   : > { %v1728_v55 = vrot.slane %v19821_v22, 4  ;;  %19822 = vst [vmem:[#allocation160_spill] sm:$0xff] %v14155_v34  ;;  %v4122_v33 = vrot.slane %v13255_v2, 5  ;;  %v1710_v46 = vrot.slane %v1709_v41, 4  ;;  %v1720_v27 = vrot.slane %v1719_v12, 4  ;;  %v19826_v22 = vld [vmem:[#allocation26_spill] sm:$0xff] }
  0x8b   : > { %v1738_v7 = vrot.slane %v19823_v14, 4  ;;  %v4118_v40 = vrot.slane %v4116_v23, 4  ;;  %v14172_v44 = vrot.slane %v1732_v52, 5  ;;  %v19825_v29 = vcombine.low %v13381_v13, %v19824_v15 }
  0x8c   : > { %v1701_v61 = vsel %vm13960_vm7, %v1696_v6, %v1700_v47  ;;  %v1729_v24 = vor.u32 %v1728_v55, %v1724_v50  ;;  %v1742_v53 = vshll.u32 %v218_v8, 16  ;;  %v4121_v2 = vrot.slane %v4119_v5, 4  ;;  %v12859_v47 = vld [vmem:[%s13070_s25 + $0x54] sm:$0xf]  ;;  %v19829_v6 = vld [vmem:[#allocation27_spill] sm:$0xff] }
  0x8d   : > { %v1739_v31 = vor.u32 %v1738_v7, %v14172_v44  ;;  %v4124_v41 = vrot.slane %v4122_v33, 4  ;;  %v4125_v12 = vrot.slane %v218_v8, 5  ;;  %v19827_v52 = vshrl.u32 %v19826_v22, 16 }
  0x8e   : > { %11646 = vmatmul.mubr.msk.bf16.gmra.mxu0 %vm697_vm1, %v14091_v39  ;;  %v19828_v13 = vshll.u32 %v19826_v22, 16  ;;  %v1756_v55 = vshll.u32 %v12859_v47, 16  ;;  %v19830_v15 = vshrl.u32 %v19829_v6, 16  ;;  %v1715_v8 = vsel %vm13960_vm7, %v1710_v46, %v14144_v36  ;;  %v14729_v39 = vld [vmem:[%s13070_s25 + $0xf8] sm:$0xf] }
  0x8f   : > { %11845 = vmatprep.mubr.msk.bf16.mxu0 %vm697_vm1, %v19825_v29  ;;  %11710 = vmatmul.mubr.msk.bf16.gmra.mxu1 %vm697_vm1, %v14093_v18  ;;  %v1749_v14 = vrot.slane %v19827_v52, 4  ;;  %v1766_v18 = vshll.u32 %v19831_v42, 16  ;;  %v1725_v7 = vsel %vm13960_vm7, %v1720_v27, %v1724_v50  ;;  %v4120_v22 = vsel %vm13358_vm4, %v4118_v40, %v4119_v5 }
  0x90   : > { %11715 = vmatprep.mubr.msk.bf16.mxu1 %vm697_vm1, %v13995_v45  ;;  %v1752_v1 = vrot.slane %v19828_v13, 5  ;;  %v1762_v29 = vrot.slane %v19830_v15, 4  ;;  %v4117_v45 = vsel %vm13358_vm4, %v10433_v30, %v4116_v23  ;;  %v1730_v52 = vrot.slane %v1729_v24, 4 }
  0x91   : > { %v1744_v13 = vrot.slane %v1742_v53, 5  ;;  %v4123_v6 = vsel %vm13358_vm4, %v4121_v2, %v4122_v33  ;;  %v14204_v15 = vrot.slane %v1756_v55, 5  ;;  %v1740_v62 = vrot.slane %v1739_v31, 4 }
  0x92   : > { %v4126_v36 = vsel %vm13358_vm4, %v4124_v41, %v4125_v12  ;;  %v1753_v46 = vor.u32 %v1752_v1, %v1749_v14  ;;  %v4129_v50 = vrot.slane %v12859_v47, 5  ;;  %v14208_v27 = vcombine.low %v4110_v60, %v4113_v26  ;;  %v19837_v26 = vld [vmem:[#allocation41_spill] sm:$0xff]  ;;  %v223_v14 = vld [vmem:[%s13070_s25 + $0x60] sm:$0x1] }
  0x93   : > { %v1763_v23 = vor.u32 %v1762_v29, %v14204_v15  ;;  %v14211_v30 = vrot.slane %v1766_v18, 5  ;;  %v19833_v5 = vshrl.u32 %v19831_v42, 16  ;;  %v19834_v33 = vcombine.low %v13442_v19, %v14000_v0  ;;  %v12861_v41 = vld [vmem:[%s13070_s25 + $0x5c] sm:$0xf] }
  0x94   : > { %19832 = vst [vmem:[#allocation52_spill] sm:$0xff] %v14208_v27  ;;  %v14219_v24 = vcombine.low %v1691_v48, %v1701_v61  ;;  %v14221_v53 = vcombine.low %v4117_v45, %v4120_v22  ;;  %v4132_v60 = vrot.slane %v19831_v42, 5  ;;  %v1776_v2 = vshll.u32 %v19837_v26, 16  ;;  %v12860_v48 = vld [vmem:[%s13070_s25 + $0x50] sm:$0xf] }
  0x95   : > { %v1772_v40 = vrot.slane %v19833_v5, 4  ;;  %v14228_v18 = vcombine.low %v1715_v8, %v1725_v7  ;;  %v1735_v19 = vsel %vm13960_vm7, %v1730_v52, %v14172_v44  ;;  %v14233_v0 = vcombine.low %v4123_v6, %v4126_v36  ;;  %v19841_v7 = vld [vmem:[#allocation43_spill] sm:$0xff] }
  0x96   : > { %11846 = vmatmul.mubr.msk.bf16.vlgmr.msra.gmra.mxu0 %vm697_vm1, %v19834_v33  ;;  %19835 = vst [vmem:[#allocation26_spill] sm:$0xff] %v14219_v24  ;;  %19836 = vst [vmem:[#allocation27_spill] sm:$0xff] %v14221_v53  ;;  %v10434_v61 = vrot.slane %v12860_v48, 9  ;;  %v1745_v42 = vsel %vm13960_vm7, %v1740_v62, %v1744_v13  ;;  %v4131_v31 = vrot.slane %v4129_v50, 4  ;;  %v4135_v12 = vrot.slane %v12861_v41, 5 }
  0x97   : > { %12104 = vmatpush3.bf16.msra.mxu0 %v14102_v59  ;;  %11849 = vmatprep.mubr.msk.bf16.mxu0 %vm697_vm1, %v13765_v28  ;;  %19838 = vst [vmem:[#allocation40_spill] sm:$0xff] %v14228_v18  ;;  %19839 = vst [vmem:[#allocation41_spill] sm:$0xff] %v14233_v0  ;;  %v1754_v59 = vrot.slane %v1753_v46, 4  ;;  %v1764_v44 = vrot.slane %v1763_v23, 4  ;;  %v1773_v1 = vor.u32 %v1772_v40, %v14211_v30  ;;  %v14246_v47 = vrot.slane %v1776_v2, 5  ;;  %v19844_v46 = vld [vmem:[#allocation44_spill] sm:$0xff] }
  0x98   : > { %11716 = vmatmul.mubr.msk.bf16.vlgmr.msra.gmra.mxu1 %vm697_vm1, %v14029_v49  ;;  %v19840_v49 = vshrl.u32 %v19837_v26, 16  ;;  %v4134_v62 = vrot.slane %v4132_v60, 4  ;;  %v4137_v29 = vrot.slane %v4135_v12, 4  ;;  %v4138_v8 = vrot.slane %v223_v14, 5  ;;  %v12862_v6 = vld [vmem:[%s13070_s25 + $0x68] sm:$0xf] }
  0x99   : > { %11974 = vmatpush3.bf16.msra.mxu1 %v14097_v38  ;;  %11719 = vmatprep.mubr.msk.bf16.mxu1 %vm697_vm1, %v14031_v9  ;;  %v19842_v45 = vshrl.u32 %v19841_v7, 16  ;;  %v4130_v38 = vsel %vm13358_vm4, %v10434_v61, %v4129_v50  ;;  %v19843_v52 = vshll.u32 %v19841_v7, 16  ;;  %v1800_v36 = vshll.u32 %v12862_v6, 16  ;;  %v19847_v2 = vld [vmem:[#allocation56_spill] sm:$0xff] }
  0x9a   : > { %v1782_v55 = vrot.slane %v19840_v49, 4  ;;  %v19845_v23 = vshrl.u32 %v19844_v46, 16  ;;  %v14259_v40 = vcombine.low %v1735_v19, %v1745_v42  ;;  %v4133_v33 = vsel %vm13358_vm4, %v4131_v31, %v4132_v60  ;;  %v12865_v46 = vld [vmem:[%s13070_s25 + $0x64] sm:$0xf] }
  0x9b   : > { %v1793_v22 = vrot.slane %v19842_v45, 4  ;;  %v1796_v13 = vrot.slane %v19843_v52, 5  ;;  %v1786_v26 = vshll.u32 %v223_v14, 16  ;;  %v1810_v48 = vshll.u32 %v19847_v2, 16 }
  0x9c   : > { %v1806_v5 = vrot.slane %v19845_v23, 4  ;;  %19846 = vst [vmem:[#allocation43_spill] sm:$0xff] %v14259_v40  ;;  %v1759_v50 = vsel %vm13960_vm7, %v1754_v59, %v14204_v15  ;;  %v14267_v61 = vrot.slane %v1773_v1, 4  ;;  %v1783_v41 = vor.u32 %v1782_v55, %v14246_v47 }
  0x9d   : > { %v14270_v49 = vrot.slane %v1800_v36, 5  ;;  %v1769_v60 = vsel %vm13960_vm7, %v1764_v44, %v14211_v30  ;;  %v4136_v19 = vsel %vm13358_vm4, %v4134_v62, %v4135_v12  ;;  %v4139_v15 = vsel %vm13358_vm4, %v4137_v29, %v4138_v8  ;;  %v12863_v12 = vld [vmem:[%s13070_s25 + $0x6c] sm:$0xf]  ;;  %v12864_v62 = vld [vmem:[%s13070_s25 + $0x70] sm:$0xf]  ;;  %v19850_v8 = vld [vmem:[#allocation57_spill] sm:$0xff] }
  0x9e   : > { %11850 = vmatmul.mubr.msk.bf16.gmra.mxu0 %vm697_vm1, %v14108_v32  ;;  %v1797_v42 = vor.u32 %v1796_v13, %v1793_v22  ;;  %v1812_v31 = vrot.slane %v1810_v48, 5  ;;  %v4142_v14 = vrot.slane %v12862_v6, 5  ;;  %v19848_v1 = vshrl.u32 %v19847_v2, 16  ;;  %v228_v6 = vld [vmem:[%s13070_s25 + $0x74] sm:$0x1] }
  0x9f   : > { %11853 = vmatprep.mubr.msk.bf16.mxu0 %vm697_vm1, %v14148_v56  ;;  %v1807_v59 = vor.u32 %v1806_v5, %v14270_v49  ;;  %v14288_v30 = vcombine.low %v4130_v38, %v4133_v33  ;;  %v4145_v44 = vrot.slane %v12863_v12, 5  ;;  %v1820_v29 = vshll.u32 %v12864_v62, 16 }
  0xa0   : > { %v1816_v55 = vrot.slane %v19848_v1, 4  ;;  %11720 = vmatmul.mubr.msk.bf16.gmra.mxu1 %vm697_vm1, %v14131_v21  ;;  %v19851_v7 = vshrl.u32 %v19850_v8, 16  ;;  %v14296_v22 = vcombine.low %v1759_v50, %v1769_v60  ;;  %v1779_v52 = vsel %vm13960_vm7, %v14267_v61, %v14246_v47 }
  0xa1   : > { %19849 = vst [vmem:[#allocation44_spill] sm:$0xff] %v14288_v30  ;;  %11723 = vmatprep.mubr.msk.bf16.mxu1 %vm697_vm1, %v14155_v34  ;;  %v1784_v13 = vrot.slane %v1783_v41, 4  ;;  %v1788_v38 = vrot.slane %v1786_v26, 5  ;;  %v14303_v36 = vcombine.low %v4136_v19, %v4139_v15  ;;  %v10435_v23 = vrot.slane %v12865_v46, 9  ;;  %v19854_v26 = vld [vmem:[#allocation58_spill] sm:$0xff] }
  0xa2   : > { %v1826_v45 = vrot.slane %v19851_v7, 4  ;;  %19852 = vst [vmem:[#allocation56_spill] sm:$0xff] %v14296_v22  ;;  %v14306_v5 = vrot.slane %v1820_v29, 5  ;;  %v4148_v33 = vrot.slane %v12864_v62, 5  ;;  %v1798_v2 = vrot.slane %v1797_v42, 4 }
  0xa3   : > { %19853 = vst [vmem:[#allocation57_spill] sm:$0xff] %v14303_v36  ;;  %v1808_v48 = vrot.slane %v1807_v59, 4  ;;  %v4144_v50 = vrot.slane %v4142_v14, 4  ;;  %v1817_v60 = vor.u32 %v1816_v55, %v1812_v31  ;;  %v1830_v12 = vshll.u32 %v228_v6, 16  ;;  %v14314_v46 = vld [vmem:[%s13070_s25 + $0x7c] sm:$0xf] }
  0xa4   : > { %v1827_v1 = vor.u32 %v1826_v45, %v14306_v5  ;;  %v4147_v8 = vrot.slane %v4145_v44, 4  ;;  %v4151_v47 = vrot.slane %v228_v6, 5  ;;  %v4150_v61 = vrot.slane %v4148_v33, 4  ;;  %v19857_v55 = vld [vmem:[#allocation59_spill] sm:$0xff] }
  0xa5   : > { %v19855_v41 = vshrl.u32 %v19854_v26, 16  ;;  %v19856_v15 = vshll.u32 %v19854_v26, 16  ;;  %v1844_v62 = vshll.u32 %v14314_v46, 16  ;;  %v1789_v42 = vsel %vm13960_vm7, %v1784_v13, %v1788_v38 }
  0xa6   : > { %11854 = vmatmul.mubr.msk.bf16.gmra.mxu0 %vm697_vm1, %v14208_v27  ;;  %v4143_v59 = vsel %vm13358_vm4, %v10435_v23, %v4142_v14  ;;  %v19858_v29 = vshrl.u32 %v19857_v55, 16  ;;  %v1854_v6 = vshll.u32 %v13502_v4, 16  ;;  %v1803_v26 = vsel %vm13960_vm7, %v1798_v2, %v14270_v49 }
  0xa7   : > { %v1837_v19 = vrot.slane %v19855_v41, 4  ;;  %v1840_v7 = vrot.slane %v19856_v15, 5  ;;  %11857 = vmatprep.mubr.msk.bf16.mxu0 %vm697_vm1, %v14221_v53  ;;  %v4146_v41 = vsel %vm13358_vm4, %v4144_v50, %v4145_v44  ;;  %v1818_v13 = vrot.slane %v1817_v60, 4  ;;  %v233_v60 = vld [vmem:[%s13070_s25 + $0x88] sm:$0x1] }
  0xa8   : > { %v1850_v45 = vrot.slane %v19858_v29, 4  ;;  %v14333_v38 = vrot.slane %v1844_v62, 5  ;;  %11724 = vmatmul.mubr.msk.bf16.gmra.mxu1 %vm697_vm1, %v14219_v24  ;;  %v1813_v14 = vsel %vm13960_vm7, %v1808_v48, %v1812_v31  ;;  %v1828_v23 = vrot.slane %v1827_v1, 4 }
  0xa9   : > { %v1832_v15 = vrot.slane %v1830_v12, 5  ;;  %v4149_v55 = vsel %vm13358_vm4, %v4147_v8, %v4148_v33  ;;  %11727 = vmatprep.mubr.msk.bf16.mxu1 %vm697_vm1, %v14228_v18  ;;  %v4152_v49 = vsel %vm13358_vm4, %v4150_v61, %v4151_v47  ;;  %v1841_v44 = vor.u32 %v1840_v7, %v1837_v19  ;;  %v12867_v12 = vld [vmem:[%s13070_s25 + $0x84] sm:$0xf]  ;;  %v12868_v19 = vld [vmem:[%s13070_s25 + $0x80] sm:$0xf] }
  0xaa   : > { %v14345_v2 = vrot.slane %v1854_v6, 5  ;;  %v4155_v50 = vrot.slane %v14314_v46, 5  ;;  %v1851_v31 = vor.u32 %v1850_v45, %v14333_v38  ;;  %v19859_v48 = vshrl.u32 %v13502_v4, 16  ;;  %v12869_v45 = vld [vmem:[%s13070_s25 + $0x78] sm:$0xf] }
  0xab   : > { %v1864_v33 = vshll.u32 %v12867_v12, 16  ;;  %v19860_v8 = vshrl.u32 %v13505_v25, 16  ;;  %v14355_v29 = vcombine.low %v1779_v52, %v1789_v42  ;;  %v14357_v47 = vcombine.low %v1803_v26, %v1813_v14 }
  0xac   : > { %v1860_v1 = vrot.slane %v19859_v48, 4  ;;  %v14359_v61 = vcombine.low %v4143_v59, %v4146_v41  ;;  %v4158_v7 = vrot.slane %v12868_v19, 5  ;;  %v1823_v46 = vsel %vm13960_vm7, %v1818_v13, %v14306_v5  ;;  %v12871_v19 = vld [vmem:[%s13070_s25 + $0x94] sm:$0xf] }
  0xad   : > { %v1870_v62 = vrot.slane %v19860_v8, 4  ;;  %19861 = vst [vmem:[#allocation58_spill] sm:$0xff] %v14355_v29  ;;  %19862 = vst [vmem:[#allocation59_spill] sm:$0xff] %v14357_v47  ;;  %v10436_v4 = vrot.slane %v12869_v45, 9  ;;  %v1866_v6 = vrot.slane %v1864_v33, 5  ;;  %v1874_v48 = vshll.u32 %v233_v60, 16 }
  0xae   : > { %19863 = vst [vmem:[#allocation161_spill] sm:$0xff] %v14359_v61  ;;  %v1833_v25 = vsel %vm13960_vm7, %v1828_v23, %v1832_v15  ;;  %v14368_v52 = vcombine.low %v4149_v55, %v4152_v49  ;;  %v1861_v42 = vor.u32 %v1860_v1, %v14345_v2  ;;  %v4161_v59 = vrot.slane %v12867_v12, 5  ;;  %11858 = vmatmul.mubr.msk.bf16.gmra.mxu0 %vm697_vm1, %v14233_v0  ;;  %v12870_v49 = vld [vmem:[%s13070_s25 + $0x90] sm:$0xf] }
  0xaf   : > { %v1842_v26 = vrot.slane %v1841_v44, 4  ;;  %v1852_v41 = vrot.slane %v1851_v31, 4  ;;  %v4157_v5 = vrot.slane %v4155_v50, 4  ;;  %v1871_v13 = vor.u32 %v1870_v62, %v1866_v6  ;;  %11861 = vmatprep.mubr.msk.bf16.mxu0 %vm697_vm1, %v14288_v30  ;;  %v19867_v31 = vld [vmem:[#allocation71_spill] sm:$0xff] }
  0xb0   : > { %19864 = vst [vmem:[#allocation162_spill] sm:$0xff] %v14368_v52  ;;  %v4160_v14 = vrot.slane %v4158_v7, 4  ;;  %v19865_v33 = vshrl.u32 %v13512_v10, 16  ;;  %v19866_v15 = vshll.u32 %v13512_v10, 16  ;;  %v1888_v1 = vshll.u32 %v12870_v49, 16  ;;  %11728 = vmatmul.mubr.msk.bf16.gmra.mxu1 %vm697_vm1, %v14259_v40 }
  0xb1   : > { %v1876_v12 = vrot.slane %v1874_v48, 5  ;;  %v4164_v44 = vrot.slane %v233_v60, 5  ;;  %v19868_v8 = vshrl.u32 %v19867_v31, 16  ;;  %v1898_v45 = vshll.u32 %v12871_v19, 16  ;;  %11731 = vmatprep.mubr.msk.bf16.mxu1 %vm697_vm1, %v14296_v22 }
  0xb2   : > { %v1881_v23 = vrot.slane %v19865_v33, 4  ;;  %v1884_v55 = vrot.slane %v19866_v15, 5  ;;  %v1862_v33 = vrot.slane %v1861_v42, 4  ;;  %v1872_v30 = vrot.slane %v1871_v13, 4 }
  0xb3   : > { %v1894_v62 = vrot.slane %v19868_v8, 4  ;;  %v4163_v10 = vrot.slane %v4161_v59, 4  ;;  %v14387_v15 = vrot.slane %v1888_v1, 5  ;;  %v14389_v0 = vcombine.low %v1823_v46, %v1833_v25 }
  0xb4   : > { %v1847_v60 = vsel %vm13960_vm7, %v1842_v26, %v14333_v38  ;;  %v4156_v48 = vsel %vm13358_vm4, %v10436_v4, %v4155_v50  ;;  %v4168_v31 = vrot.slane %v12870_v49, 5  ;;  %v1857_v8 = vsel %vm13960_vm7, %v1852_v41, %v14345_v2  ;;  %v19870_v38 = vld [vmem:[#allocation82_spill] sm:$0xff]  ;;  %v14409_v4 = vld [vmem:[%s13070_s25 + $0x98] sm:$0xf] }
  0xb5   : > { %19869 = vst [vmem:[#allocation71_spill] sm:$0xff] %v14389_v0  ;;  %v4159_v42 = vsel %vm13358_vm4, %v4157_v5, %v4158_v7  ;;  %v1885_v13 = vor.u32 %v1884_v55, %v1881_v23  ;;  %v1895_v46 = vor.u32 %v1894_v62, %v14387_v15  ;;  %v4162_v25 = vsel %vm13358_vm4, %v4160_v14, %v4161_v59  ;;  %v12873_v5 = vld [vmem:[%s13070_s25 + $0x8c] sm:$0xf]  ;;  %v238_v55 = vld [vmem:[%s13070_s25 + $0x9c] sm:$0x1] }
  0xb6   : > { %v14404_v1 = vrot.slane %v1898_v45, 5  ;;  %v19871_v26 = vshrl.u32 %v19870_v38, 16  ;;  %v1908_v49 = vshll.u32 %v14409_v4, 16  ;;  %v1867_v2 = vsel %vm13960_vm7, %v1862_v33, %v1866_v6  ;;  %11862 = vmatmul.mubr.msk.bf16.gmra.mxu0 %vm697_vm1, %v14303_v36  ;;  %v19872_v45 = vld [vmem:[#allocation83_spill] sm:$0xff] }
  0xb7   : > { %v1877_v7 = vsel %vm13960_vm7, %v1872_v30, %v1876_v12  ;;  %v4165_v41 = vsel %vm13358_vm4, %v4163_v10, %v4164_v44  ;;  %v10437_v59 = vrot.slane %v12873_v5, 9  ;;  %v4170_v14 = vrot.slane %v4168_v31, 4  ;;  %11865 = vmatprep.mubr.msk.bf16.mxu0 %vm697_vm1, %v14359_v61 }
  0xb8   : > { %v1904_v50 = vrot.slane %v19871_v26, 4  ;;  %v4171_v23 = vrot.slane %v12871_v19, 5  ;;  %v14422_v62 = vrot.slane %v1908_v49, 5  ;;  %v19873_v38 = vshrl.u32 %v19872_v45, 16  ;;  %11732 = vmatmul.mubr.msk.bf16.gmra.mxu1 %vm697_vm1, %v14355_v29 }
  0xb9   : > { %v14428_v30 = vcombine.low %v1847_v60, %v1857_v8  ;;  %v14430_v6 = vcombine.low %v4156_v48, %v4159_v42  ;;  %v1886_v12 = vrot.slane %v1885_v13, 4  ;;  %v1896_v44 = vrot.slane %v1895_v46, 4  ;;  %11735 = vmatprep.mubr.msk.bf16.mxu1 %vm697_vm1, %v14357_v47  ;;  %v19878_v8 = vld [vmem:[#allocation84_spill] sm:$0xff] }
  0xba   : > { %v1914_v26 = vrot.slane %v19873_v38, 4  ;;  %v14434_v19 = vcombine.low %v1867_v2, %v1877_v7  ;;  %v14436_v33 = vcombine.low %v4162_v25, %v4165_v41  ;;  %v1905_v10 = vor.u32 %v1904_v50, %v14404_v1  ;;  %v12874_v7 = vld [vmem:[%s13070_s25 + $0xa4] sm:$0xf]  ;;  %v19881_v41 = vld [vmem:[#allocation85_spill] sm:$0xff] }
  0xbb   : > { %19874 = vst [vmem:[#allocation82_spill] sm:$0xff] %v14428_v30  ;;  %19875 = vst [vmem:[#allocation83_spill] sm:$0xff] %v14430_v6  ;;  %v4174_v49 = vrot.slane %v14409_v4, 5  ;;  %v4169_v60 = vsel %vm13358_vm4, %v10437_v59, %v4168_v31  ;;  %v1918_v48 = vshll.u32 %v238_v55, 16  ;;  %v19879_v42 = vshrl.u32 %v19878_v8, 16 }
  0xbc   : > { %19876 = vst [vmem:[#allocation163_spill] sm:$0xff] %v14434_v19  ;;  %19877 = vst [vmem:[#allocation164_spill] sm:$0xff] %v14436_v33  ;;  %v19880_v46 = vshll.u32 %v19878_v8, 16  ;;  %v4172_v25 = vsel %vm13358_vm4, %v4170_v14, %v4171_v23  ;;  %v1915_v50 = vor.u32 %v1914_v26, %v14422_v62  ;;  %v1932_v4 = vshll.u32 %v12874_v7, 16  ;;  %v12875_v8 = vld [vmem:[%s13070_s25 + $0xa8] sm:$0xf] }
  0xbd   : > { %v1925_v13 = vrot.slane %v19879_v42, 4  ;;  %v19882_v5 = vshrl.u32 %v19881_v41, 16  ;;  %v1891_v31 = vsel %vm13960_vm7, %v1886_v12, %v14387_v15  ;;  %v1901_v59 = vsel %vm13960_vm7, %v1896_v44, %v14404_v1 }
  0xbe   : > { %v1928_v2 = vrot.slane %v19880_v46, 5  ;;  %v4173_v38 = vrot.slane %v4171_v23, 4  ;;  %v1942_v42 = vshll.u32 %v12875_v8, 16  ;;  %v14461_v14 = vrot.slane %v1905_v10, 4  ;;  %11866 = vmatmul.mubr.msk.bf16.gmra.mxu0 %vm697_vm1, %v14368_v52  ;;  %v12876_v10 = vld [vmem:[%s13070_s25 + $0xa0] sm:$0xf] }
  0xbf   : > { %v1938_v45 = vrot.slane %v19882_v5, 4  ;;  %v4176_v26 = vrot.slane %v4174_v49, 4  ;;  %v4177_v46 = vrot.slane %v238_v55, 5  ;;  %v14463_v41 = vrot.slane %v1932_v4, 5  ;;  %11869 = vmatprep.mubr.msk.bf16.mxu0 %vm697_vm1, %v14430_v6 }
  0xc0   : > { %v14465_v5 = vcombine.low %v4169_v60, %v4172_v25  ;;  %v14467_v61 = vrot.slane %v1918_v48, 5  ;;  %v1929_v15 = vor.u32 %v1928_v2, %v1925_v13  ;;  %v4181_v12 = vrot.slane %v12874_v7, 5  ;;  %v243_v25 = vld [vmem:[%s13070_s25 + $0xb0] sm:$0x1]  ;;  %v12877_v2 = vld [vmem:[%s13070_s25 + $0xac] sm:$0xf]  ;;  %11736 = vmatmul.mubr.msk.bf16.gmra.mxu1 %vm697_vm1, %v14389_v0 }
  0xc1   : > { %v14471_v1 = vrot.slane %v1915_v50, 4  ;;  %v1939_v23 = vor.u32 %v1938_v45, %v14463_v41  ;;  %v14474_v44 = vrot.slane %v1942_v42, 5  ;;  %v10438_v55 = vrot.slane %v12876_v10, 9  ;;  %11739 = vmatprep.mubr.msk.bf16.mxu1 %vm697_vm1, %v14428_v30 }
  0xc2   : > { %19883 = vst [vmem:[#allocation84_spill] sm:$0xff] %v14465_v5  ;;  %v4184_v60 = vrot.slane %v12875_v8, 5  ;;  %v19884_v48 = vshrl.u32 %v13649_v58, 16  ;;  %v1952_v7 = vshll.u32 %v12877_v2, 16  ;;  %v19885_v4 = vshrl.u32 %v13652_v37, 16 }
  0xc3   : > { %v14487_v45 = vcombine.low %v1891_v31, %v1901_v59  ;;  %v1911_v42 = vsel %vm13960_vm7, %v14461_v14, %v14422_v62  ;;  %v4175_v8 = vsel %vm13358_vm4, %v4173_v38, %v4174_v49  ;;  %v4178_v58 = vsel %vm13358_vm4, %v4176_v26, %v4177_v46 }
  0xc4   : > { %v1948_v13 = vrot.slane %v19884_v48, 4  ;;  %v1958_v50 = vrot.slane %v19885_v4, 4  ;;  %v1930_v37 = vrot.slane %v1929_v15, 4  ;;  %v4183_v10 = vrot.slane %v4181_v12, 4 }
  0xc5   : > { %19886 = vst [vmem:[#allocation85_spill] sm:$0xff] %v14487_v45  ;;  %v14499_v48 = vrot.slane %v1952_v7, 5  ;;  %v4187_v31 = vrot.slane %v12877_v2, 5  ;;  %v1921_v62 = vsel %vm13960_vm7, %v14471_v1, %v14467_v61  ;;  %v1940_v59 = vrot.slane %v1939_v23, 4  ;;  %v12878_v61 = vld [vmem:[%s13070_s25 + $0xb8] sm:$0xf] }
  0xc6   : > { %v4182_v49 = vsel %vm13358_vm4, %v10438_v55, %v4181_v12  ;;  %v1962_v38 = vshll.u32 %v243_v25, 16  ;;  %v1949_v14 = vor.u32 %v1948_v13, %v14474_v44  ;;  %v4186_v46 = vrot.slane %v4184_v60, 4  ;;  %11870 = vmatmul.mubr.msk.bf16.gmra.mxu0 %vm697_vm1, %v14436_v33  ;;  %v12885_v33 = vld [vmem:[%s13070_s25 + $0xd4] sm:$0xf] }
  0xc7   : > { %v1959_v26 = vor.u32 %v1958_v50, %v14499_v48  ;;  %v19887_v15 = vshrl.u32 %v13658_v11, 16  ;;  %v4189_v2 = vrot.slane %v4187_v31, 4  ;;  %v4190_v4 = vrot.slane %v243_v25, 5  ;;  %v12879_v50 = vld [vmem:[%s13070_s25 + $0xbc] sm:$0xf]  ;;  %11873 = vmatprep.mubr.msk.bf16.mxu0 %vm697_vm1, %v14465_v5 }
  0xc8   : > { %v19888_v6 = vshll.u32 %v13658_v11, 16  ;;  %v1976_v1 = vshll.u32 %v12878_v61, 16  ;;  %v1935_v12 = vsel %vm13960_vm7, %v1930_v37, %v14463_v41  ;;  %v4185_v23 = vsel %vm13358_vm4, %v4183_v10, %v4184_v60  ;;  %11740 = vmatmul.mubr.msk.bf16.gmra.mxu1 %vm697_vm1, %v14434_v19 }
  0xc9   : > { %v1969_v7 = vrot.slane %v19887_v15, 4  ;;  %v19889_v55 = vshrl.u32 %v13661_v57, 16  ;;  %v1986_v15 = vshll.u32 %v12879_v50, 16  ;;  %v1945_v11 = vsel %vm13960_vm7, %v1940_v59, %v14474_v44  ;;  %11743 = vmatprep.mubr.msk.bf16.mxu1 %vm697_vm1, %v14487_v45  ;;  %v14911_v45 = vld [vmem:[%s13070_s25 + $0x120] sm:$0xf] }
  0xca   : > { %v1972_v52 = vrot.slane %v19888_v6, 5  ;;  %v14527_v6 = vrot.slane %v1962_v38, 5  ;;  %v14529_v25 = vrot.slane %v1976_v1, 5  ;;  %v4194_v41 = vrot.slane %v12878_v61, 5  ;;  %v12880_v38 = vld [vmem:[%s13070_s25 + $0xb4] sm:$0xf] }
  0xcb   : > { %v1982_v13 = vrot.slane %v19889_v55, 4  ;;  %v14533_v57 = vrot.slane %v1949_v14, 4  ;;  %v14535_v60 = vrot.slane %v1959_v26, 4  ;;  %v4188_v37 = vsel %vm13358_vm4, %v4186_v46, %v4187_v31  ;;  %v14550_v46 = vld [vmem:[%s13070_s25 + $0xc0] sm:$0xf] }
  0xcc   : > { %v1973_v10 = vor.u32 %v1972_v52, %v1969_v7  ;;  %v4191_v44 = vsel %vm13358_vm4, %v4189_v2, %v4190_v4  ;;  %v1988_v59 = vrot.slane %v1986_v15, 5  ;;  %v10439_v61 = vrot.slane %v12880_v38, 9  ;;  %v248_v15 = vld [vmem:[%s13070_s25 + $0xc4] sm:$0x1] }
  0xcd   : > { %v19890_v1 = vshrl.u32 %v13724_v63, 16  ;;  %v1983_v26 = vor.u32 %v1982_v13, %v14529_v25  ;;  %v4196_v31 = vrot.slane %v4194_v41, 4  ;;  %v4197_v52 = vrot.slane %v12879_v50, 5 }
  0xce   : > { %v1996_v7 = vshll.u32 %v14550_v46, 16  ;;  %v14553_v55 = vcombine.low %v1911_v42, %v1921_v62  ;;  %v14555_v2 = vcombine.low %v4175_v8, %v4178_v58  ;;  %v14557_v4 = vcombine.low %v4182_v49, %v4185_v23 }
  0xcf   : > { %v1992_v14 = vrot.slane %v19890_v1, 4  ;;  %v19894_v63 = vshrl.u32 %v13727_v51, 16  ;;  %v14562_v1 = vcombine.low %v1935_v12, %v1945_v11  ;;  %v1955_v13 = vsel %vm13960_vm7, %v14533_v57, %v14499_v48 }
  0xd0   : > { %19891 = vst [vmem:[#allocation165_spill] sm:$0xff] %v14553_v55  ;;  %19892 = vst [vmem:[#allocation166_spill] sm:$0xff] %v14555_v2  ;;  %v1974_v50 = vrot.slane %v1973_v10, 4  ;;  %v14568_v5 = vrot.slane %v1996_v7, 5  ;;  %v1965_v42 = vsel %vm13960_vm7, %v14535_v60, %v14527_v6  ;;  %v14574_v8 = vcombine.low %v4188_v37, %v4191_v44  ;;  %11874 = vmatmul.mubr.msk.bf16.gmra.mxu0 %vm697_vm1, %v14555_v2  ;;  %v12882_v60 = vld [vmem:[%s13070_s25 + $0xcc] sm:$0xf] }
  0xd1   : > { %19893 = vst [vmem:[#allocation167_spill] sm:$0xff] %v14557_v4  ;;  %v2002_v38 = vrot.slane %v19894_v63, 4  ;;  %19895 = vst [vmem:[#allocation168_spill] sm:$0xff] %v14562_v1  ;;  %v4195_v51 = vsel %vm13358_vm4, %v10439_v61, %v4194_v41  ;;  %v1993_v58 = vor.u32 %v1992_v14, %v1988_v59  ;;  %v1984_v62 = vrot.slane %v1983_v26, 4  ;;  %11877 = vmatprep.mubr.msk.bf16.mxu0 %vm697_vm1, %v14557_v4  ;;  %v19899_v61 = vld [vmem:[#allocation108_spill] sm:$0xff] }
  0xd2   : > { %19896 = vst [vmem:[#allocation169_spill] sm:$0xff] %v14574_v8  ;;  %v4198_v49 = vsel %vm13358_vm4, %v4196_v31, %v4197_v52  ;;  %v2006_v48 = vshll.u32 %v248_v15, 16  ;;  %v4200_v12 = vrot.slane %v14550_v46, 5  ;;  %v19897_v11 = vshrl.u32 %v13736_v16, 16  ;;  %v12883_v31 = vld [vmem:[%s13070_s25 + $0xd0] sm:$0xf]  ;;  %11744 = vmatmul.mubr.msk.bf16.gmra.mxu1 %vm697_vm1, %v14553_v55 }
  0xd3   : > { %v2003_v23 = vor.u32 %v2002_v38, %v14568_v5  ;;  %v19898_v57 = vshll.u32 %v13736_v16, 16  ;;  %v2020_v37 = vshll.u32 %v12882_v60, 16  ;;  %v1979_v10 = vsel %vm13960_vm7, %v1974_v50, %v14529_v25  ;;  %11747 = vmatprep.mubr.msk.bf16.mxu1 %vm697_vm1, %v14562_v1  ;;  %v14823_v55 = vld [vmem:[%s13070_s25 + $0x110] sm:$0xf] }
  0xd4   : > { %v2013_v6 = vrot.slane %v19897_v11, 4  ;;  %v4199_v44 = vrot.slane %v4197_v52, 4  ;;  %v19900_v14 = vshrl.u32 %v19899_v61, 16  ;;  %v2030_v46 = vshll.u32 %v12883_v31, 16 }
  0xd5   : > { %v2016_v41 = vrot.slane %v19898_v57, 5  ;;  %v1994_v16 = vrot.slane %v1993_v58, 4  ;;  %v14599_v63 = vrot.slane %v2020_v37, 5  ;;  %v4207_v38 = vrot.slane %v12882_v60, 5  ;;  %v19902_v60 = vld [vmem:[#allocation120_spill] sm:$0xff] }
  0xd6   : > { %v2026_v26 = vrot.slane %v19900_v14, 4  ;;  %v1989_v25 = vsel %vm13960_vm7, %v1984_v62, %v1988_v59  ;;  %v14605_v52 = vcombine.low %v4195_v51, %v4198_v49  ;;  %v2008_v50 = vrot.slane %v2006_v48, 5 }
  0xd7   : > { %v2017_v7 = vor.u32 %v2016_v41, %v2013_v6  ;;  %v4203_v11 = vrot.slane %v248_v15, 5  ;;  %v2004_v57 = vrot.slane %v2003_v23, 4  ;;  %v4202_v61 = vrot.slane %v4200_v12, 4  ;;  %v12884_v6 = vld [vmem:[%s13070_s25 + $0xc8] sm:$0xf]  ;;  %v19906_v23 = vld [vmem:[#allocation121_spill] sm:$0xff] }
  0xd8   : > { %19901 = vst [vmem:[#allocation108_spill] sm:$0xff] %v14605_v52  ;;  %v2027_v58 = vor.u32 %v2026_v26, %v14599_v63  ;;  %v10440_v41 = vrot.slane %v12884_v6, 9  ;;  %v2032_v14 = vrot.slane %v2030_v46, 5  ;;  %v19903_v4 = vshrl.u32 %v19902_v60, 16  ;;  %v253_v15 = vld [vmem:[%s13070_s25 + $0xd8] sm:$0x1]  ;;  %v14621_v46 = vpop.f32.mrf.mxu0  ;;  %11878 = vmatmul.mubr.msk.bf16.gmra.mxu0 %vm697_vm1, %v14574_v8 }
  0xd9   : > { %v2018_v37 = vrot.slane %v2017_v7, 4  ;;  %v2040_v36 = vshll.u32 %v12885_v33, 16  ;;  %v14612_v53 = vcombine.low %v1955_v13, %v1965_v42  ;;  %v14614_v59 = vcombine.low %v1979_v10, %v1989_v25  ;;  %11881 = vmatprep.mubr.msk.bf16.mxu0 %vm697_vm1, %v14605_v52 }
  0xda   : > { %v2036_v2 = vrot.slane %v19903_v4, 4  ;;  %v4209_v51 = vrot.slane %v4207_v38, 4  ;;  %v4210_v62 = vrot.slane %v12883_v31, 5  ;;  %v2028_v49 = vrot.slane %v2027_v58, 4 }
  0xdb   : > { %19904 = vst [vmem:[#allocation120_spill] sm:$0xff] %v14612_v53  ;;  %19905 = vst [vmem:[#allocation170_spill] sm:$0xff] %v14614_v59  ;;  %v14617_v48 = vrot.slane %v2040_v36, 5  ;;  %v19907_v26 = vshrl.u32 %v19906_v23, 16  ;;  %v4213_v7 = vrot.slane %v12885_v33, 5  ;;  %v1999_v4 = vsel %vm13960_vm7, %v1994_v16, %v14568_v5  ;;  %v14641_v16 = vpop.f32.mrf.mxu1  ;;  %11748 = vmatmul.mubr.msk.bf16.gmra.mxu1 %vm697_vm1, %v14612_v53 }
  0xdc   : > { %v2009_v13 = vsel %vm13960_vm7, %v2004_v57, %v2008_v50  ;;  %v4201_v36 = vsel %vm13358_vm4, %v4199_v44, %v4200_v12  ;;  %v4204_v42 = vsel %vm13358_vm4, %v4202_v61, %v4203_v11  ;;  %v2023_v33 = vsel %vm13960_vm7, %v2018_v37, %v14599_v63  ;;  %19908 = vst [vmem:[#allocation121_spill] sm:$0xff] %v14641_v16  ;;  %v14645_v12 = vpop.f32.mrf.mxu0  ;;  %v19909_v50 = vld [vmem:[#allocation122_spill] sm:$0xff] }
  0xdd   : > { %v2046_v6 = vrot.slane %v19907_v26, 4  ;;  %v4208_v10 = vsel %vm13358_vm4, %v10440_v41, %v4207_v38  ;;  %v2037_v5 = vor.u32 %v2036_v2, %v2032_v14  ;;  %v2050_v31 = vshll.u32 %v253_v15, 16  ;;  %11751 = vmatprep.mubr.msk.bf16.mxu1 %vm697_vm1, %v14614_v59  ;;  %v14658_v37 = vpop.f32.mrf.mxu1  ;;  %v12886_v23 = vld [vmem:[%s13070_s25 + $0xe0] sm:$0xf] }
  0xde   : > { %v4211_v44 = vsel %vm13358_vm4, %v4209_v51, %v4210_v62  ;;  %v4212_v25 = vrot.slane %v4210_v62, 4  ;;  %v19910_v11 = vshrl.u32 %v19909_v50, 16  ;;  %v19911_v57 = vshll.u32 %v19909_v50, 16  ;;  %19912 = vst [vmem:[#allocation122_spill] sm:$0xff] %v14658_v37  ;;  %v14660_v60 = vpop.f32.mrf.mxu0  ;;  %v19914_v50 = vld [vmem:[#allocation123_spill] sm:$0xff] }
  0xdf   : > { %v2033_v2 = vsel %vm13960_vm7, %v2028_v49, %v2032_v14  ;;  %v2047_v61 = vor.u32 %v2046_v6, %v14617_v48  ;;  %v4215_v58 = vrot.slane %v4213_v7, 4  ;;  %v4216_v41 = vrot.slane %v253_v15, 5  ;;  %v14671_v6 = vpop.f32.mrf.mxu1 }
  0xe0   : > { %v2057_v63 = vrot.slane %v19910_v11, 4  ;;  %v2060_v38 = vrot.slane %v19911_v57, 5  ;;  %v14662_v51 = vcombine.low %v4201_v36, %v4204_v42  ;;  %v2064_v26 = vshll.u32 %v12886_v23, 16  ;;  %19918 = vst [vmem:[#allocation173_spill] sm:$0xff] %v14671_v6  ;;  %v14673_v8 = vpop.f32.mrf.mxu0 }
  0xe1   : > { %v19915_v11 = vshrl.u32 %v19914_v50, 16  ;;  %v14667_v52 = vcombine.low %v1999_v4, %v2009_v13  ;;  %v14669_v14 = vcombine.low %v4208_v10, %v4211_v44  ;;  %v2038_v49 = vrot.slane %v2037_v5, 4  ;;  %19919 = vst [vmem:[#allocation174_spill] sm:$0xff] %v14673_v8  ;;  %v12888_v10 = vld [vmem:[%s13070_s25 + $0xdc] sm:$0xf]  ;;  %v14683_v44 = vpop.f32.mrf.mxu1 }
  0xe2   : > { %19913 = vst [vmem:[#allocation171_spill] sm:$0xff] %v14662_v51  ;;  %v2061_v62 = vor.u32 %v2060_v38, %v2057_v63  ;;  %v2052_v15 = vrot.slane %v2050_v31, 5  ;;  %v14675_v27 = vcombine.low %v2023_v33, %v2033_v2  ;;  %v4214_v36 = vsel %vm13358_vm4, %v4212_v25, %v4213_v7  ;;  %v12887_v63 = vld [vmem:[%s13070_s25 + $0xe4] sm:$0xf]  ;;  %19921 = vst [vmem:[#allocation176_spill] sm:$0xff] %v14683_v44  ;;  %v14685_v50 = vpop.f32.mrf.mxu0 }
  0xe3   : > { %v2070_v57 = vrot.slane %v19915_v11, 4  ;;  %19916 = vst [vmem:[#allocation123_spill] sm:$0xff] %v14667_v52  ;;  %19917 = vst [vmem:[#allocation172_spill] sm:$0xff] %v14669_v14  ;;  %v2066_v42 = vrot.slane %v2064_v26, 5  ;;  %v2074_v38 = vshll.u32 %v12887_v63, 16  ;;  %v2048_v4 = vrot.slane %v2047_v61, 4  ;;  %11882 = vmatmul.mubr.msk.bf16.gmra.mxu0 %vm697_vm1, %v14662_v51  ;;  %v14701_v11 = vpop.f32.mrf.mxu1  ;;  %11752 = vmatmul.mubr.msk.bf16.gmra.mxu1 %vm697_vm1, %v14667_v52 }
  0xe4   : > { %19920 = vst [vmem:[#allocation175_spill] sm:$0xff] %v14675_v27  ;;  %v4217_v13 = vsel %vm13358_vm4, %v4215_v58, %v4216_v41  ;;  %v10441_v5 = vrot.slane %v12888_v10, 9  ;;  %v4220_v31 = vrot.slane %v12886_v23, 5  ;;  %v2062_v7 = vrot.slane %v2061_v62, 4  ;;  %v258_v26 = vld [vmem:[%s13070_s25 + $0xec] sm:$0x1]  ;;  %11885 = vmatprep.mubr.msk.bf16.mxu0 %vm697_vm1, %v14669_v14  ;;  %11755 = vmatprep.mubr.msk.bf16.mxu1 %vm697_vm1, %v14675_v27 }
  0xe5   : > { %v2071_v33 = vor.u32 %v2070_v57, %v2066_v42  ;;  %v2076_v25 = vrot.slane %v2074_v38, 5  ;;  %v4223_v2 = vrot.slane %v12887_v63, 5  ;;  %v14691_v61 = vld [vmem:[%s13070_s25 + $0xf4] sm:$0xf]  ;;  %v2043_v41 = vsel %vm13960_vm7, %v2038_v49, %v14617_v48  ;;  %19922 = vst [vmem:[#allocation177_spill] sm:$0xff] %v14701_v11  ;;  %v14705_v57 = vpop.f32.mrf.mxu0  ;;  %v19923_v38 = vld [vmem:[#allocation131_spill] sm:$0xff]  ;;  %v14720_v32 = vpop.f32.mrf.mxu1 }
  0xe6   : > { %v2112_v58 = vshrl.u32 %v14691_v61, 16  ;;  %v4221_v23 = vsel %vm13358_vm4, %v10441_v5, %v4220_v31  ;;  %v4222_v62 = vrot.slane %v4220_v31, 4  ;;  %v19924_v10 = vshrl.u32 %v19923_v38, 16  ;;  %v12890_v51 = vld [vmem:[%s13070_s25 + $0xe8] sm:$0xf]  ;;  %v19925_v48 = vld [vmem:[#allocation132_spill] sm:$0xff] }
  0xe7   : > { %v2072_v63 = vrot.slane %v2071_v33, 4  ;;  %v2084_v44 = vshll.u32 %v12890_v51, 16  ;;  %v19926_v49 = vshrl.u32 %v19925_v48, 16  ;;  %v2053_v5 = vsel %vm13960_vm7, %v2048_v4, %v2052_v15  ;;  %19928 = vst [vmem:[#allocation132_spill] sm:$0xff] %v14720_v32  ;;  %v14739_v17 = vpop.f32.mrf.mxu1 }
  0xe8   : > { %v2080_v14 = vrot.slane %v19924_v10, 4  ;;  %v14716_v31 = vcombine.low %v4214_v36, %v4217_v13  ;;  %v4224_v33 = vsel %vm13358_vm4, %v4222_v62, %v4223_v2  ;;  %v2094_v38 = vshll.u32 %v258_v26, 16  ;;  %v14722_v10 = vpop.f32.mrf.mxu0  ;;  %v14733_v36 = vld [vmem:[%s13070_s25 + $0xfc] sm:$0xf]  ;;  %19930 = vst [vmem:[#allocation179_spill] sm:$0xff] %v14739_v17 }
  0xe9   : > { %v2090_v56 = vrot.slane %v19926_v49, 4  ;;  %v2067_v48 = vsel %vm13960_vm7, %v2062_v7, %v2066_v42  ;;  %v2077_v49 = vsel %vm13960_vm7, %v2072_v63, %v2076_v25  ;;  %v2086_v8 = vrot.slane %v2084_v44, 5  ;;  %v14747_v27 = vpop.f32.mrf.mxu1 }
  0xea   : > { %19927 = vst [vmem:[#allocation131_spill] sm:$0xff] %v14716_v31  ;;  %v2081_v28 = vor.u32 %v2080_v14, %v2076_v25  ;;  %v2122_v15 = vshrl.u32 %v14729_v39, 16  ;;  %v2128_v4 = vshll.u32 %v14733_v36, 16  ;;  %v2132_v13 = vshrl.u32 %v14733_v36, 16  ;;  %v14741_v42 = vpop.f32.mrf.mxu0  ;;  %19934 = vst [vmem:[#allocation183_spill] sm:$0xff] %v14747_v27 }
  0xeb   : > { %v14737_v62 = vcombine.low %v4221_v23, %v4224_v33  ;;  %19931 = vst [vmem:[#allocation180_spill] sm:$0xff] %v14741_v42  ;;  %v14743_v7 = vcombine.low %v2043_v41, %v2053_v5  ;;  %v2091_v14 = vor.u32 %v2090_v56, %v2086_v8  ;;  %v4225_v44 = vrot.slane %v4223_v2, 4  ;;  %11886 = vmatmul.mubr.msk.bf16.gmra.mxu0 %vm697_vm1, %v14716_v31  ;;  %v19935_v56 = vld [vmem:[#allocation133_spill] sm:$0xff]  ;;  %v14788_v42 = vld [vmem:[%s13070_s25 + $0x104] sm:$0xf] }
  0xec   : > { %v4226_v25 = vrot.slane %v12890_v51, 5  ;;  %v14745_v63 = vcombine.low %v2067_v48, %v2077_v49  ;;  %v2082_v54 = vrot.slane %v2081_v28, 4  ;;  %v2096_v20 = vrot.slane %v2094_v38, 5  ;;  %v14749_v52 = vpop.f32.mrf.mxu0 }
  0xed   : > { %19929 = vst [vmem:[#allocation178_spill] sm:$0xff] %v14737_v62  ;;  %19932 = vst [vmem:[#allocation181_spill] sm:$0xff] %v14743_v7  ;;  %v4229_v3 = vrot.slane %v258_v26, 5  ;;  %v2092_v23 = vrot.slane %v2091_v14, 4  ;;  %v19936_v2 = vshrl.u32 %v19935_v56, 16  ;;  %v14757_v33 = vrot.slane %v2128_v4, 5  ;;  %11889 = vmatprep.mubr.msk.bf16.mxu0 %vm697_vm1, %v14737_v62  ;;  %v14764_v14 = vpop.f32.mrf.mxu1  ;;  %11756 = vmatmul.mubr.msk.bf16.gmra.mxu1 %vm697_vm1, %v14743_v7 }
  0xee   : > { %19933 = vst [vmem:[#allocation182_spill] sm:$0xff] %v14745_v63  ;;  %v4227_v41 = vsel %vm13358_vm4, %v4225_v44, %v4226_v25  ;;  %v4228_v5 = vrot.slane %v4226_v25, 4  ;;  %v2134_v28 = vrot.slane %v2132_v13, 4  ;;  %v19937_v26 = vshll.u32 %v19935_v56, 16  ;;  %19938 = vst [vmem:[#allocation133_spill] sm:$0xff] %v14764_v14  ;;  %v14768_v44 = vpop.f32.mrf.mxu0  ;;  %11759 = vmatprep.mubr.msk.bf16.mxu1 %vm697_vm1, %v14745_v63 }
  0xef   : > { %v2101_v51 = vrot.slane %v19936_v2, 4  ;;  %v2108_v48 = vshll.u32 %v14691_v61, 16  ;;  %v2124_v49 = vrot.slane %v2122_v15, 4  ;;  %v2114_v13 = vrot.slane %v2112_v58, 4  ;;  %v14782_v62 = vpop.f32.mrf.mxu1  ;;  %v14803_v7 = vld [vmem:[%s13070_s25 + $0x108] sm:$0xf] }
  0xf0   : > { %v2104_v38 = vrot.slane %v19937_v26, 5  ;;  %v4230_v4 = vsel %vm13358_vm4, %v4228_v5, %v4229_v3  ;;  %v2118_v25 = vshll.u32 %v14729_v39, 16  ;;  %v4239_v56 = vrot.slane %v14733_v36, 5  ;;  %19940 = vst [vmem:[#allocation185_spill] sm:$0xff] %v14782_v62  ;;  %v14784_v31 = vpop.f32.mrf.mxu0  ;;  %v12893_v36 = vld [vmem:[%s13070_s25 + $0xf0] sm:$0xf] }
  0xf1   : > { %v2087_v15 = vsel %vm13960_vm7, %v2082_v54, %v2086_v8  ;;  %v2097_v2 = vsel %vm13960_vm7, %v2092_v23, %v2096_v20  ;;  %v14780_v26 = vcombine.low %v4227_v41, %v4230_v4  ;;  %v2110_v58 = vrot.slane %v2108_v48, 5  ;;  %v14794_v41 = vpop.f32.mrf.mxu1  ;;  %v14925_v14 = vld [vmem:[%s13070_s25 + $0x124] sm:$0xf] }
  0xf2   : > { %v2105_v3 = vor.u32 %v2104_v38, %v2101_v51  ;;  %v2120_v5 = vrot.slane %v2118_v25, 5  ;;  %v10442_v27 = vrot.slane %v12893_v36, 9  ;;  %v2143_v54 = vshrl.u32 %v14788_v42, 16  ;;  %19941 = vst [vmem:[#allocation186_spill] sm:$0xff] %v14794_v41  ;;  %v14796_v4 = vpop.f32.mrf.mxu0  ;;  %v263_v36 = vld [vmem:[%s13070_s25 + $0x100] sm:$0x1] }
  0xf3   : > { %19939 = vst [vmem:[#allocation184_spill] sm:$0xff] %v14780_v26  ;;  %v4233_v8 = vrot.slane %v14691_v61, 5  ;;  %v4236_v20 = vrot.slane %v14729_v39, 5  ;;  %v2135_v23 = vor.u32 %v2134_v28, %v14757_v33  ;;  %19942 = vst [vmem:[#allocation187_spill] sm:$0xff] %v14796_v4  ;;  %v14798_v51 = vcombine.low %v2087_v15, %v2097_v2  ;;  %v14808_v59 = vpop.f32.mrf.mxu1  ;;  %11890 = vmatmul.mubr.msk.bf16.gmra.mxu0 %vm697_vm1, %v14780_v26  ;;  %v14817_v4 = vld [vmem:[%s13070_s25 + $0x10c] sm:$0xf] }
  0xf4   : > { %v2106_v38 = vrot.slane %v2105_v3, 4  ;;  %v2115_v48 = vor.u32 %v2114_v13, %v2110_v58  ;;  %v2125_v25 = vor.u32 %v2124_v49, %v2120_v5  ;;  %v2146_v63 = vshll.u32 %v14788_v42, 16  ;;  %19944 = vst [vmem:[#allocation189_spill] sm:$0xff] %v14808_v59  ;;  %v14810_v15 = vpop.f32.mrf.mxu0 }
  0xf5   : > { %19943 = vst [vmem:[#allocation188_spill] sm:$0xff] %v14798_v51  ;;  %v2156_v39 = vshrl.u32 %v14803_v7, 16  ;;  %v4234_v61 = vsel %vm13358_vm4, %v10442_v27, %v4233_v8  ;;  %v4235_v28 = vrot.slane %v4233_v8, 4  ;;  %v4238_v3 = vrot.slane %v4236_v20, 4  ;;  %v14827_v41 = vpop.f32.mrf.mxu1  ;;  %11760 = vmatmul.mubr.msk.bf16.gmra.mxu1 %vm697_vm1, %v14798_v51 }
  0xf6   : > { %v2111_v49 = vsel %vm13960_vm7, %v2106_v38, %v2110_v58  ;;  %v2116_v13 = vrot.slane %v2115_v48, 4  ;;  %v2126_v2 = vrot.slane %v2125_v25, 4  ;;  %v2166_v53 = vshrl.u32 %v14817_v4, 16  ;;  %19945 = vst [vmem:[#allocation190_spill] sm:$0xff] %v14827_v41  ;;  %v14831_v58 = vpop.f32.mrf.mxu0 }
  0xf7   : > { %v4237_v27 = vsel %vm13358_vm4, %v4235_v28, %v4236_v20  ;;  %v2136_v8 = vrot.slane %v2135_v23, 4  ;;  %v2138_v1 = vshll.u32 %v263_v36, 16  ;;  %v2172_v59 = vshll.u32 %v14823_v55, 16  ;;  %v14844_v41 = vpop.f32.mrf.mxu1 }
  0xf8   : > { %v2176_v26 = vshrl.u32 %v14823_v55, 16  ;;  %v2121_v38 = vsel %vm13960_vm7, %v2116_v13, %v2120_v5  ;;  %v14835_v20 = vcombine.low %v4234_v61, %v4237_v27  ;;  %v2131_v48 = vsel %vm13960_vm7, %v2126_v2, %v14757_v33  ;;  %19948 = vst [vmem:[#allocation193_spill] sm:$0xff] %v14844_v41  ;;  %v14846_v51 = vpop.f32.mrf.mxu0  ;;  %v14851_v27 = vld [vmem:[%s13070_s25 + $0x20c] sm:$0xf] }
  0xf9   : > { %v14837_v23 = vcombine.low %v2111_v49, %v2121_v38  ;;  %v2140_v25 = vrot.slane %v2138_v1, 5  ;;  %v4240_v28 = vsel %vm13358_vm4, %v4238_v3, %v4239_v56  ;;  %v4241_v5 = vrot.slane %v4239_v56, 4  ;;  %v14859_v3 = vpop.f32.mrf.mxu1 }
  0xfa   : > { %19946 = vst [vmem:[#allocation191_spill] sm:$0xff] %v14835_v20  ;;  %11893 = vmatprep.mubr.msk.bf16.mxu0 %vm697_vm1, %v14835_v20  ;;  %v4242_v61 = vrot.slane %v263_v36, 5  ;;  %v2145_v13 = vrot.slane %v2143_v54, 4  ;;  %v2148_v49 = vrot.slane %v2146_v63, 5  ;;  %v2168_v33 = vrot.slane %v2166_v53, 4  ;;  %19949 = vst [vmem:[#allocation194_spill] sm:$0xff] %v14859_v3  ;;  %v14861_v56 = vpop.f32.mrf.mxu0 }
  0xfb   : > { %19947 = vst [vmem:[#allocation192_spill] sm:$0xff] %v14837_v23  ;;  %11763 = vmatprep.mubr.msk.bf16.mxu1 %vm697_vm1, %v14837_v23  ;;  %v2141_v1 = vsel %vm13960_vm7, %v2136_v8, %v2140_v25  ;;  %v2152_v2 = vshll.u32 %v14803_v7, 16  ;;  %19950 = vst [vmem:[#allocation195_spill] sm:$0xff] %v14861_v56  ;;  %v2158_v53 = vrot.slane %v2156_v39, 4  ;;  %v14867_v38 = vrot.slane %v2172_v59, 5  ;;  %v14871_v23 = vpop.f32.mrf.mxu1 }
  0xfc   : > { %v14863_v54 = vcombine.low %v2131_v48, %v2141_v1  ;;  %v4243_v63 = vsel %vm13358_vm4, %v4241_v5, %v4242_v61  ;;  %v2149_v36 = vor.u32 %v2148_v49, %v2145_v13  ;;  %v2178_v20 = vrot.slane %v2176_v26, 4  ;;  %19953 = vst [vmem:[#allocation198_spill] sm:$0xff] %v14871_v23  ;;  %v14873_v3 = vpop.f32.mrf.mxu0  ;;  %v14879_v39 = vld [vmem:[%s13070_s25 + $0x210] sm:$0xf]  ;;  %v268_v13 = vld [vmem:[%s13070_s25 + $0x114] sm:$0x1] }
  0xfd   : > { %v14869_v8 = vcombine.low %v4240_v28, %v4243_v63  ;;  %v2154_v25 = vrot.slane %v2152_v2, 5  ;;  %v2162_v48 = vshll.u32 %v14817_v4, 16  ;;  %v10443_v1 = vrot.slane %v14788_v42, 9  ;;  %v14888_v49 = vld [vmem:[%s13070_s25 + $0x118] sm:$0xf]  ;;  %v14891_v42 = vpop.f32.mrf.mxu1 }
  0xfe   : > { %19951 = vst [vmem:[#allocation196_spill] sm:$0xff] %v14863_v54  ;;  %v2150_v56 = vrot.slane %v2149_v36, 4  ;;  %v4246_v5 = vrot.slane %v14803_v7, 5  ;;  %v4252_v26 = vrot.slane %v14823_v55, 5  ;;  %v4249_v61 = vrot.slane %v14817_v4, 5  ;;  %19954 = vst [vmem:[#allocation199_spill] sm:$0xff] %v14891_v42  ;;  %11764 = vmatmul.mubr.msk.bf16.gmra.mxu1 %vm697_vm1, %v14863_v54  ;;  %v14895_v7 = vpop.f32.mrf.mxu0 }
  0xff   : > { %19952 = vst [vmem:[#allocation197_spill] sm:$0xff] %v14869_v8  ;;  %11894 = vmatmul.mubr.msk.bf16.gmra.mxu0 %vm697_vm1, %v14869_v8  ;;  %v2159_v28 = vor.u32 %v2158_v53, %v2154_v25  ;;  %v2187_v2 = vshrl.u32 %v14888_v49, 16  ;;  %v2164_v55 = vrot.slane %v2162_v48, 5  ;;  %v2190_v4 = vshll.u32 %v14888_v49, 16  ;;  %v14902_v42 = vpop.f32.mrf.mxu1 }
 0x100   : > { %v4247_v63 = vsel %vm13358_vm4, %v10443_v1, %v4246_v5  ;;  %v4248_v36 = vrot.slane %v4246_v5, 4  ;;  %v2155_v53 = vsel %vm13960_vm7, %v2150_v56, %v2154_v25  ;;  %v4251_v8 = vrot.slane %v4249_v61, 4  ;;  %19955 = vst [vmem:[#allocation200_spill] sm:$0xff] %v14902_v42  ;;  %v14904_v23 = vpop.f32.mrf.mxu0  ;;  %v12901_v5 = vld [vmem:[%s13070_s25 + $0x11c] sm:$0xf] }
 0x101   : > { %v2160_v59 = vrot.slane %v2159_v28, 4  ;;  %v2169_v54 = vor.u32 %v2168_v33, %v2164_v55  ;;  %v2179_v41 = vor.u32 %v2178_v20, %v14867_v38  ;;  %v2182_v1 = vshll.u32 %v268_v13, 16  ;;  %v14918_v42 = vpop.f32.mrf.mxu1 }
 0x102   : > { %v4250_v48 = vsel %vm13358_vm4, %v4248_v36, %v4249_v61  ;;  %v2200_v62 = vshrl.u32 %v12901_v5, 16  ;;  %v2210_v56 = vshrl.u32 %v14911_v45, 16  ;;  %19957 = vst [vmem:[#allocation202_spill] sm:$0xff] %v14918_v42  ;;  %v14920_v33 = vpop.f32.mrf.mxu0  ;;  %v2216_v30 = vshll.u32 %v14925_v14, 16 }
 0x103   : > { %v2165_v25 = vsel %vm13960_vm7, %v2160_v59, %v2164_v55  ;;  %v14916_v28 = vcombine.low %v4247_v63, %v4250_v48  ;;  %19958 = vst [vmem:[#allocation203_spill] sm:$0xff] %v14920_v33  ;;  %v2170_v19 = vrot.slane %v2169_v54, 4  ;;  %v2180_v20 = vrot.slane %v2179_v41, 4  ;;  %v14933_v63 = vpop.f32.mrf.mxu1 }
 0x104   : > { %v14922_v61 = vcombine.low %v2155_v53, %v2165_v25  ;;  %v2184_v36 = vrot.slane %v2182_v1, 5  ;;  %v2220_v17 = vshrl.u32 %v14925_v14, 16  ;;  %v4253_v59 = vsel %vm13358_vm4, %v4251_v8, %v4252_v26  ;;  %19960 = vst [vmem:[#allocation205_spill] sm:$0xff] %v14933_v63  ;;  %v14937_v41 = vpop.f32.mrf.mxu0  ;;  %v14945_v25 = vld [vmem:[%s13070_s25 + $0x214] sm:$0xf] }
 0x105   : > { %19956 = vst [vmem:[#allocation201_spill] sm:$0xff] %v14916_v28  ;;  %11897 = vmatprep.mubr.msk.bf16.mxu0 %vm697_vm1, %v14916_v28  ;;  %v4254_v55 = vrot.slane %v4252_v26, 4  ;;  %v2175_v54 = vsel %vm13960_vm7, %v2170_v19, %v14867_v38  ;;  %v4255_v48 = vrot.slane %v268_v13, 5  ;;  %v2189_v1 = vrot.slane %v2187_v2, 4 }
 0x106   : > { %19959 = vst [vmem:[#allocation204_spill] sm:$0xff] %v14922_v61  ;;  %11767 = vmatprep.mubr.msk.bf16.mxu1 %vm697_vm1, %v14922_v61  ;;  %v2185_v53 = vsel %vm13960_vm7, %v2180_v20, %v2184_v36  ;;  %v2212_v26 = vrot.slane %v2210_v56, 4  ;;  %v2192_v33 = vrot.slane %v2190_v4, 5  ;;  %v14950_v61 = vpop.f32.mrf.mxu1  ;;  %v14954_v42 = vpop.f32.mrf.mxu0  ;;  %v2196_v19 = vshll.u32 %v12901_v5, 16 }
 0x107   : > { %v14948_v28 = vcombine.low %v2175_v54, %v2185_v53  ;;  %19962 = vst [vmem:[#allocation207_spill] sm:$0xff] %v14950_v61  ;;  %v4256_v63 = vsel %vm13358_vm4, %v4254_v55, %v4255_v48  ;;  %v2202_v38 = vrot.slane %v2200_v62, 4  ;;  %v2206_v13 = vshll.u32 %v14911_v45, 16  ;;  %v14996_v61 = vld [vmem:[%s13070_s25 + $0x134] sm:$0xf] }
 0x108   : > { %v14957_v2 = vrot.slane %v2216_v30, 5  ;;  %v2222_v20 = vrot.slane %v2220_v17, 4  ;;  %v14961_v56 = vcombine.low %v4253_v59, %v4256_v63  ;;  %v2193_v4 = vor.u32 %v2192_v33, %v2189_v1  ;;  %v14963_v36 = vpop.f32.mrf.mxu1  ;;  %v14965_v54 = vpop.f32.mrf.mxu0  ;;  %v273_v30 = vld [vmem:[%s13070_s25 + $0x128] sm:$0x1] }
 0x109   : > { %19961 = vst [vmem:[#allocation206_spill] sm:$0xff] %v14948_v28  ;;  %11768 = vmatmul.mubr.msk.bf16.gmra.mxu1 %vm697_vm1, %v14948_v28  ;;  %19964 = vst [vmem:[#allocation209_spill] sm:$0xff] %v14963_v36  ;;  %v2198_v55 = vrot.slane %v2196_v19, 5  ;;  %v2208_v53 = vrot.slane %v2206_v13, 5  ;;  %v10444_v62 = vrot.slane %v14888_v49, 9  ;;  %v4259_v48 = vrot.slane %v12901_v5, 5 }
 0x10a   : > { %19963 = vst [vmem:[#allocation208_spill] sm:$0xff] %v14961_v56  ;;  %v4265_v17 = vrot.slane %v14925_v14, 5  ;;  %11898 = vmatmul.mubr.msk.bf16.gmra.mxu0 %vm697_vm1, %v14961_v56  ;;  %v2194_v59 = vrot.slane %v2193_v4, 4  ;;  %v4262_v33 = vrot.slane %v14911_v45, 5  ;;  %v14973_v63 = vpop.f32.mrf.mxu1  ;;  %v14975_v1 = vpop.f32.mrf.mxu0  ;;  %v14981_v14 = vld [vmem:[%s13070_s25 + $0x12c] sm:$0xf]  ;;  %v2223_v28 = vor.u32 %v2222_v20, %v14957_v2 }
 0x10b   : > { %19965 = vst [vmem:[#allocation210_spill] sm:$0xff] %v14973_v63  ;;  %19966 = vst [vmem:[#allocation211_spill] sm:$0xff] %v14975_v1  ;;  %v2203_v19 = vor.u32 %v2202_v38, %v2198_v55  ;;  %v2213_v13 = vor.u32 %v2212_v26, %v2208_v53  ;;  %v4260_v49 = vsel %vm13358_vm4, %v10444_v62, %v4259_v48  ;;  %v4261_v5 = vrot.slane %v4259_v48, 4  ;;  %v12906_v63 = vld [vmem:[%s13070_s25 + $0x130] sm:$0xf] }
 0x10c   : > { %v2231_v8 = vshrl.u32 %v14981_v14, 16  ;;  %v2234_v45 = vshll.u32 %v14981_v14, 16  ;;  %v2199_v4 = vsel %vm13960_vm7, %v2194_v59, %v2198_v55  ;;  %v4264_v56 = vrot.slane %v4262_v33, 4  ;;  %v14987_v38 = vpop.f32.mrf.mxu1  ;;  %v14991_v48 = vpop.f32.mrf.mxu0  ;;  %v15002_v59 = vld [vmem:[%s13070_s25 + $0x138] sm:$0xf] }
 0x10d   : > { %19967 = vst [vmem:[#allocation212_spill] sm:$0xff] %v14987_v38  ;;  %v2204_v26 = vrot.slane %v2203_v19, 4  ;;  %v2214_v1 = vrot.slane %v2213_v13, 4  ;;  %v4263_v62 = vsel %vm13358_vm4, %v4261_v5, %v4262_v33  ;;  %v2244_v36 = vshrl.u32 %v12906_v63, 16 }
 0x10e   : > { %v2254_v0 = vshrl.u32 %v14996_v61, 16  ;;  %v14999_v32 = vcombine.low %v4260_v49, %v4263_v62  ;;  %v2226_v55 = vshll.u32 %v273_v30, 16  ;;  %v2260_v19 = vshll.u32 %v15002_v59, 16  ;;  %v15008_v5 = vpop.f32.mrf.mxu1  ;;  %v15010_v38 = vpop.f32.mrf.mxu0 }
 0x10f   : > { %v2264_v13 = vshrl.u32 %v15002_v59, 16  ;;  %v2209_v33 = vsel %vm13960_vm7, %v2204_v26, %v2208_v53  ;;  %19969 = vst [vmem:[#allocation214_spill] sm:$0xff] %v15008_v5  ;;  %v2224_v20 = vrot.slane %v2223_v28, 4  ;;  %v2219_v49 = vsel %vm13960_vm7, %v2214_v1, %v14957_v2 }
 0x110   : > { %19968 = vst [vmem:[#allocation213_spill] sm:$0xff] %v14999_v32  ;;  %v15012_v11 = vcombine.low %v2199_v4, %v2209_v33  ;;  %11901 = vmatprep.mubr.msk.bf16.mxu0 %vm697_vm1, %v14999_v32  ;;  %v2228_v62 = vrot.slane %v2226_v55, 5  ;;  %v4267_v47 = vrot.slane %v4265_v17, 4  ;;  %v4266_v29 = vsel %vm13358_vm4, %v4264_v56, %v4265_v17  ;;  %v15021_v26 = vpop.f32.mrf.mxu1  ;;  %v15023_v28 = vpop.f32.mrf.mxu0 }
 0x111   : > { %v4268_v53 = vrot.slane %v273_v30, 5  ;;  %19971 = vst [vmem:[#allocation216_spill] sm:$0xff] %v15021_v26  ;;  %v2233_v5 = vrot.slane %v2231_v8, 4  ;;  %v2236_v4 = vrot.slane %v2234_v45, 5  ;;  %v2256_v33 = vrot.slane %v2254_v0, 4  ;;  %v20000_v26 = vld [vmem:[#allocation2_spill] sm:$0xff] }
 0x112   : > { %19970 = vst [vmem:[#allocation215_spill] sm:$0xff] %v15012_v11  ;;  %v4278_v6 = vrot.slane %v15002_v59, 5  ;;  %11771 = vmatprep.mubr.msk.bf16.mxu1 %vm697_vm1, %v15012_v11  ;;  %v2229_v2 = vsel %vm13960_vm7, %v2224_v20, %v2228_v62  ;;  %v2240_v1 = vshll.u32 %v12906_v63, 16  ;;  %v15034_v30 = vpop.f32.mrf.mxu1  ;;  %v15036_v17 = vpop.f32.mrf.mxu0  ;;  %v2246_v0 = vrot.slane %v2244_v36, 4 }
 0x113   : > { %v15030_v55 = vcombine.low %v2219_v49, %v2229_v2  ;;  %v4269_v56 = vsel %vm13358_vm4, %v4267_v47, %v4268_v53  ;;  %19973 = vst [vmem:[#allocation218_spill] sm:$0xff] %v15034_v30  ;;  %19974 = vst [vmem:[#allocation219_spill] sm:$0xff] %v15036_v17  ;;  %v2237_v8 = vor.u32 %v2236_v4, %v2233_v5  ;;  %v2262_v45 = vrot.slane %v2260_v19, 5  ;;  %v278_v4 = vld [vmem:[%s13070_s25 + $0x13c] sm:$0x1] }
 0x114   : > { %v2266_v59 = vrot.slane %v2264_v13, 4  ;;  %v15038_v32 = vcombine.low %v4266_v29, %v4269_v56  ;;  %v2242_v11 = vrot.slane %v2240_v1, 5  ;;  %v15042_v20 = vpop.f32.mrf.mxu1  ;;  %v2250_v47 = vshll.u32 %v14996_v61, 16  ;;  %v15046_v2 = vpop.f32.mrf.mxu0 }
 0x115   : > { %19972 = vst [vmem:[#allocation217_spill] sm:$0xff] %v15030_v55  ;;  %11772 = vmatmul.mubr.msk.bf16.gmra.mxu1 %vm697_vm1, %v15030_v55  ;;  %19976 = vst [vmem:[#allocation221_spill] sm:$0xff] %v15042_v20  ;;  %v2238_v49 = vrot.slane %v2237_v8, 4  ;;  %v10445_v62 = vrot.slane %v14981_v14, 9  ;;  %v4272_v53 = vrot.slane %v12906_v63, 5  ;;  %v19977_v36 = vshrl.u32 %v14879_v39, 16 }
 0x116   : > { %19975 = vst [vmem:[#allocation220_spill] sm:$0xff] %v15038_v32  ;;  %11902 = vmatmul.mubr.msk.bf16.gmra.mxu0 %vm697_vm1, %v15038_v32  ;;  %v2247_v13 = vor.u32 %v2246_v0, %v2242_v11  ;;  %v4275_v5 = vrot.slane %v14996_v61, 5  ;;  %v19978_v1 = vshll.u32 %v14945_v25, 16  ;;  %v2252_v63 = vrot.slane %v2250_v47, 5  ;;  %v15063_v8 = vpop.f32.mrf.mxu1 }
 0x117   : > { %v15050_v19 = vrot.slane %v19977_v36, 4  ;;  %v4273_v14 = vsel %vm13358_vm4, %v10445_v62, %v4272_v53  ;;  %v4274_v39 = vrot.slane %v4272_v53, 4  ;;  %19979 = vst [vmem:[#allocation222_spill] sm:$0xff] %v15063_v8  ;;  %v15065_v36 = vpop.f32.mrf.mxu0  ;;  %v2243_v29 = vsel %vm13960_vm7, %v2238_v49, %v2242_v11 }
 0x118   : > { %v15059_v56 = vrot.slane %v19978_v1, 5  ;;  %v2248_v0 = vrot.slane %v2247_v13, 4  ;;  %v4277_v32 = vrot.slane %v4275_v5, 4  ;;  %v2267_v61 = vor.u32 %v2266_v59, %v2262_v45  ;;  %v15071_v20 = vpop.f32.mrf.mxu1 }
 0x119   : > { %v2257_v17 = vor.u32 %v2256_v33, %v2252_v63  ;;  %v4276_v1 = vsel %vm13358_vm4, %v4274_v39, %v4275_v5  ;;  %v2270_v47 = vshll.u32 %v278_v4, 16  ;;  %v4280_v55 = vrot.slane %v4278_v6, 4  ;;  %19980 = vst [vmem:[#allocation223_spill] sm:$0xff] %v15071_v20  ;;  %v15073_v62 = vpop.f32.mrf.mxu0 }
 0x11a   : > { %19981 = vst [vmem:[#allocation224_spill] sm:$0xff] %v15073_v62  ;;  %v2253_v53 = vsel %vm13960_vm7, %v2248_v0, %v2252_v63  ;;  %v15077_v8 = vcombine.low %v4273_v14, %v4276_v1  ;;  %v2268_v11 = vrot.slane %v2267_v61, 4  ;;  %v4279_v33 = vsel %vm13358_vm4, %v4277_v32, %v4278_v6  ;;  %v15083_v39 = vpop.f32.mrf.mxu1  ;;  %v15092_v14 = vld [vmem:[%s13070_s25 + $0x21c] sm:$0xf]  ;;  %v15097_v6 = vld [vmem:[%s13070_s25 + $0x220] sm:$0xf] }
 0x11b   : > { %v2258_v59 = vrot.slane %v2257_v17, 4  ;;  %v15081_v49 = vcombine.low %v2243_v29, %v2253_v53  ;;  %v2272_v13 = vrot.slane %v2270_v47, 5  ;;  %v4281_v5 = vrot.slane %v278_v4, 5  ;;  %19984 = vst [vmem:[#allocation227_spill] sm:$0xff] %v15083_v39  ;;  %v15085_v20 = vpop.f32.mrf.mxu0  ;;  %19987 = vst [vmem:[#allocation229_spill] sm:$0xff] %v15092_v14 }
 0x11c   : > { %19982 = vst [vmem:[#allocation225_spill] sm:$0xff] %v15077_v8  ;;  %19985 = vst [vmem:[#allocation228_spill] sm:$0xff] %v15085_v20  ;;  %v19986_v30 = vshrl.u32 %v14945_v25, 16  ;;  %11905 = vmatprep.mubr.msk.bf16.mxu0 %vm697_vm1, %v15077_v8  ;;  %v12911_v29 = vld [vmem:[%s13070_s25 + $0x224] sm:$0xf]  ;;  %v15111_v47 = vpop.f32.mrf.mxu1  ;;  %v19994_v8 = vld [vmem:[#allocation25_spill] sm:$0xff] }
 0x11d   : > { %19983 = vst [vmem:[#allocation226_spill] sm:$0xff] %v15081_v49  ;;  %19988 = vst [vmem:[#allocation230_spill] sm:$0xff] %v15097_v6  ;;  %v2782_v4 = vshrl.u32 %v12911_v29, 16  ;;  %11775 = vmatprep.mubr.msk.bf16.mxu1 %vm697_vm1, %v15081_v49  ;;  %v2273_v61 = vsel %vm13960_vm7, %v2268_v11, %v2272_v13  ;;  %v4282_v1 = vsel %vm13358_vm4, %v4280_v55, %v4281_v5  ;;  %v15113_v53 = vpop.f32.mrf.mxu0  ;;  %v15116_v17 = vld [vmem:[%s13070_s25 + $0x228] sm:$0xf]  ;;  %v19996_v11 = vld [vmem:[#allocation33_spill] sm:$0xff] }
 0x11e   : > { %v15089_v63 = vrot.slane %v19986_v30, 4  ;;  %v2263_v30 = vsel %vm13960_vm7, %v2258_v59, %v2262_v45  ;;  %19989 = vst [vmem:[#allocation231_spill] sm:$0xff] %v15111_v47  ;;  %19990 = vst [vmem:[#allocation232_spill] sm:$0xff] %v15113_v53  ;;  %v2788_v29 = vshll.u32 %v15116_v17, 16  ;;  %v15121_v0 = vcombine.low %v4279_v33, %v4282_v1  ;;  %v19995_v45 = vld [vmem:[#allocation28_spill] sm:$0xff]  ;;  %v19998_v47 = vld [vmem:[#allocation3_spill] sm:$0xff] }
 0x11f   : > { %19991 = vst [vmem:[#allocation233_spill] sm:$0xff] %v15116_v17  ;;  %v15119_v32 = vcombine.low %v2263_v30, %v2273_v61  ;;  %v2281_v59 = vor.u32 %v19995_v45, %v19994_v8  ;;  %v283_v20 = vld [vmem:[%s13070_s25 + $0x150] sm:$0x1]  ;;  %v12913_v55 = vld [vmem:[%s13070_s25 + $0x148] sm:$0xf]  ;;  %v19999_v39 = vrot.slane %v19998_v47, 5  ;;  %v15137_v61 = vpop.f32.mrf.mxu1  ;;  %v15139_v1 = vpop.f32.mrf.mxu0 }
 0x120   : > { %19993 = vst [vmem:[#allocation235_spill] sm:$0xff] %v15121_v0  ;;  %v19997_v13 = vld [vmem:[#allocation36_spill] sm:$0xff]  ;;  %v2294_v5 = vshll.u32 %v12913_v55, 16  ;;  %v20001_v37 = vrot.slane %v20000_v26, 9  ;;  %20003 = vst [vmem:[#allocation25_spill] sm:$0xff] %v15137_v61  ;;  %v2792_v8 = vshrl.u32 %v15116_v17, 16  ;;  %11906 = vmatmul.mubr.msk.bf16.gmra.mxu0 %vm697_vm1, %v15121_v0 }
 0x121   : > { %19992 = vst [vmem:[#allocation234_spill] sm:$0xff] %v15119_v32  ;;  %v2291_v49 = vor.u32 %v19997_v13, %v19996_v11  ;;  %v20002_v30 = vmov %v19999_v39  ;;  %20004 = vst [vmem:[#allocation28_spill] sm:$0xff] %v15139_v1  ;;  %11776 = vmatmul.mubr.msk.bf16.gmra.mxu1 %vm697_vm1, %v15119_v32  ;;  %v2282_v26 = vrot.slane %v2281_v59, 4  ;;  %v4288_v13 = vrot.slane %v12913_v55, 5  ;;  %v20005_v47 = vld [vmem:[#allocation39_spill] sm:$0xff]  ;;  %v15149_v40 = vpop.f32.mrf.mxu1  ;;  %v15151_v18 = vpop.f32.mrf.mxu0  ;;  %v20009_v59 = vld [vmem:[#allocation5_spill] sm:$0xff] }
 0x122   : > { %v4286_v16 = vsel %vm13358_vm4, %v20001_v37, %v19999_v39  ;;  %v4287_v33 = vrot.slane %v20002_v30, 4  ;;  %v2296_v39 = vrot.slane %v2294_v5, 5  ;;  %v20006_v30 = vld [vmem:[#allocation42_spill] sm:$0xff]  ;;  %v2314_v61 = vshll.u32 %v283_v20, 16  ;;  %20007 = vst [vmem:[#allocation33_spill] sm:$0xff] %v15149_v40  ;;  %20008 = vst [vmem:[#allocation36_spill] sm:$0xff] %v15151_v18 }
 0x123   : > { %v2292_v37 = vrot.slane %v2291_v49, 4  ;;  %v2311_v22 = vor.u32 %v20006_v30, %v20005_v47  ;;  %v2287_v45 = vsel %vm13960_vm7, %v2282_v26, %v19996_v11  ;;  %v4290_v0 = vrot.slane %v4288_v13, 4  ;;  %v20011_v30 = vld [vmem:[#allocation38_spill] sm:$0xff]  ;;  %v15165_v21 = vpop.f32.mrf.mxu1  ;;  %v15167_v9 = vpop.f32.mrf.mxu0  ;;  %v20039_v18 = vld [vmem:[#allocation60_spill] sm:$0xff] }
 0x124   : > { %v4289_v32 = vsel %vm13358_vm4, %v4287_v33, %v4288_v13  ;;  %v20010_v55 = vrot.slane %v20009_v59, 5  ;;  %v2301_v24 = vor.u32 %v20011_v30, %v2296_v39  ;;  %20013 = vst [vmem:[#allocation2_spill] sm:$0xff] %v15165_v21  ;;  %20014 = vst [vmem:[#allocation39_spill] sm:$0xff] %v15167_v9  ;;  %v2316_v33 = vrot.slane %v2314_v61, 5  ;;  %v20025_v30 = vld [vmem:[#allocation7_spill] sm:$0xff] }
 0x125   : > { %v2297_v5 = vsel %vm13960_vm7, %v2292_v37, %v2296_v39  ;;  %v15163_v40 = vcombine.low %v4286_v16, %v4289_v32  ;;  %v2312_v34 = vrot.slane %v2311_v22, 4  ;;  %v4294_v37 = vrot.slane %v283_v20, 5  ;;  %v15183_v32 = vpop.f32.mrf.mxu1  ;;  %v15185_v61 = vpop.f32.mrf.mxu0  ;;  %v12918_v9 = vld [vmem:[%s13070_s25 + $0x154] sm:$0xf] }
 0x126   : > { %v4293_v49 = vrot.slane %v20010_v55, 4  ;;  %v15169_v11 = vcombine.low %v2287_v45, %v2297_v5  ;;  %v20016_v26 = vmov %v20010_v55  ;;  %v15175_v55 = vrot.slane %v2782_v4, 4  ;;  %20020 = vst [vmem:[#allocation237_spill] sm:$0xff] %v15183_v32  ;;  %20021 = vst [vmem:[#allocation238_spill] sm:$0xff] %v15185_v61  ;;  %v15188_v45 = vld [vmem:[%s13070_s25 + $0x230] sm:$0xf] }
 0x127   : > { %20012 = vst [vmem:[#allocation3_spill] sm:$0xff] %v15163_v40  ;;  %v4292_v13 = vsel %vm13358_vm4, %v4290_v0, %v20016_v26  ;;  %v15177_v39 = vrot.slane %v2788_v29, 5  ;;  %v15179_v16 = vrot.slane %v2792_v8, 4  ;;  %v2302_v22 = vrot.slane %v2301_v24, 4  ;;  %11909 = vmatprep.mubr.msk.bf16.mxu0 %vm697_vm1, %v15163_v40  ;;  %20022 = vst [vmem:[#allocation239_spill] sm:$0xff] %v15188_v45  ;;  %v15209_v0 = vpop.f32.mrf.mxu1  ;;  %v20038_v45 = vld [vmem:[#allocation55_spill] sm:$0xff] }
 0x128   : > { %20015 = vst [vmem:[#allocation42_spill] sm:$0xff] %v15169_v11  ;;  %20017 = vst [vmem:[#allocation5_spill] sm:$0xff] %v15175_v55  ;;  %11779 = vmatprep.mubr.msk.bf16.mxu1 %vm697_vm1, %v15169_v11  ;;  %v2317_v24 = vsel %vm13960_vm7, %v2312_v34, %v2316_v33  ;;  %v4295_v4 = vsel %vm13358_vm4, %v4293_v49, %v4294_v37  ;;  %v15199_v29 = vld [vmem:[%s13070_s25 + $0x234] sm:$0xf]  ;;  %v20026_v26 = vshrl.u32 %v20025_v30, 16  ;;  %v15211_v34 = vpop.f32.mrf.mxu0  ;;  %v20030_v33 = vshll.u32 %v20025_v30, 16 }
 0x129   : > { %20018 = vst [vmem:[#allocation38_spill] sm:$0xff] %v15177_v39  ;;  %20019 = vst [vmem:[#allocation236_spill] sm:$0xff] %v15179_v16  ;;  %v2307_v59 = vsel %vm13960_vm7, %v2302_v22, %v20005_v47  ;;  %v15205_v5 = vcombine.low %v4292_v13, %v4295_v4  ;;  %v12916_v8 = vld [vmem:[%s13070_s25 + $0x158] sm:$0xf]  ;;  %v20031_v47 = vld [vmem:[#allocation8_spill] sm:$0xff]  ;;  %v2355_v1 = vor.u32 %v20039_v18, %v20038_v45 }
 0x12a   : > { %20023 = vst [vmem:[#allocation240_spill] sm:$0xff] %v15199_v29  ;;  %v2321_v20 = vrot.slane %v20026_v26, 4  ;;  %20027 = vst [vmem:[#allocation7_spill] sm:$0xff] %v15209_v0  ;;  %v15213_v49 = vcombine.low %v2307_v59, %v2317_v24  ;;  %v2324_v37 = vrot.slane %v20030_v33, 5  ;;  %v2328_v40 = vshll.u32 %v12916_v8, 16  ;;  %v15225_v59 = vpop.f32.mrf.mxu1  ;;  %v15227_v30 = vpop.f32.mrf.mxu0 }
 0x12b   : > { %20024 = vst [vmem:[#allocation241_spill] sm:$0xff] %v15205_v5  ;;  %20028 = vst [vmem:[#allocation242_spill] sm:$0xff] %v15211_v34  ;;  %v20032_v13 = vshrl.u32 %v20031_v47, 16  ;;  %11910 = vmatmul.mubr.msk.bf16.gmra.mxu0 %vm697_vm1, %v15205_v5  ;;  %v12917_v4 = vld [vmem:[%s13070_s25 + $0x15c] sm:$0xf]  ;;  %v10447_v0 = vrot.slane %v12918_v9, 9 }
 0x12c   : > { %20029 = vst [vmem:[#allocation243_spill] sm:$0xff] %v15213_v49  ;;  %v2338_v26 = vshll.u32 %v12917_v4, 16  ;;  %v4298_v11 = vrot.slane %v12916_v8, 5  ;;  %v4301_v32 = vrot.slane %v12917_v4, 5  ;;  %v288_v24 = vld [vmem:[%s13070_s25 + $0x164] sm:$0x1]  ;;  %11780 = vmatmul.mubr.msk.bf16.gmra.mxu1 %vm697_vm1, %v15213_v49 }
 0x12d   : > { %v2334_v22 = vrot.slane %v20032_v13, 4  ;;  %20033 = vst [vmem:[#allocation8_spill] sm:$0xff] %v15225_v59  ;;  %20034 = vst [vmem:[#allocation244_spill] sm:$0xff] %v15227_v30  ;;  %v12919_v33 = vld [vmem:[%s13070_s25 + $0x238] sm:$0xf]  ;;  %v2325_v13 = vor.u32 %v2324_v37, %v2321_v20  ;;  %v2330_v5 = vrot.slane %v2328_v40, 5  ;;  %v15238_v59 = vpop.f32.mrf.mxu1  ;;  %v15240_v30 = vpop.f32.mrf.mxu0 }
 0x12e   : > { %v2826_v21 = vshrl.u32 %v12919_v33, 16  ;;  %v15231_v34 = vld [vmem:[%s13070_s25 + $0x23c] sm:$0xf]  ;;  %v2340_v61 = vrot.slane %v2338_v26, 5  ;;  %v4299_v9 = vsel %vm13358_vm4, %v10447_v0, %v4298_v11  ;;  %v4300_v8 = vrot.slane %v4298_v11, 4  ;;  %20036 = vst [vmem:[#allocation246_spill] sm:$0xff] %v15238_v59 }
 0x12f   : > { %20035 = vst [vmem:[#allocation245_spill] sm:$0xff] %v15231_v34  ;;  %v2832_v47 = vshll.u32 %v15231_v34, 16  ;;  %v4303_v4 = vrot.slane %v4301_v32, 4  ;;  %20037 = vst [vmem:[#allocation247_spill] sm:$0xff] %v15240_v30  ;;  %v2326_v33 = vrot.slane %v2325_v13, 4  ;;  %v2335_v29 = vor.u32 %v2334_v22, %v2330_v5  ;;  %v20040_v20 = vld [vmem:[#allocation54_spill] sm:$0xff]  ;;  %v15250_v55 = vpop.f32.mrf.mxu1  ;;  %v15252_v59 = vpop.f32.mrf.mxu0 }
 0x130   : > { %v2358_v17 = vshll.u32 %v288_v24, 16  ;;  %v2836_v49 = vshrl.u32 %v15231_v34, 16  ;;  %v2345_v40 = vor.u32 %v20040_v20, %v2340_v61  ;;  %v4302_v37 = vsel %vm13358_vm4, %v4300_v8, %v4301_v32  ;;  %v20041_v0 = vld [vmem:[#allocation11_spill] sm:$0xff]  ;;  %20043 = vst [vmem:[#allocation55_spill] sm:$0xff] %v15250_v55  ;;  %20044 = vst [vmem:[#allocation60_spill] sm:$0xff] %v15252_v59 }
 0x131   : > { %v20042_v11 = vrot.slane %v20041_v0, 5  ;;  %v2331_v22 = vsel %vm13960_vm7, %v2326_v33, %v2330_v5  ;;  %v2336_v13 = vrot.slane %v2335_v29, 4  ;;  %v15256_v18 = vcombine.low %v4299_v9, %v4302_v37  ;;  %v15264_v55 = vpop.f32.mrf.mxu0  ;;  %v15291_v33 = vld [vmem:[%s13070_s25 + $0x244] sm:$0xf] }
 0x132   : > { %v2356_v30 = vrot.slane %v2355_v1, 4  ;;  %v2346_v16 = vrot.slane %v2345_v40, 4  ;;  %v2360_v39 = vrot.slane %v2358_v17, 5  ;;  %v4307_v8 = vrot.slane %v288_v24, 5  ;;  %20048 = vst [vmem:[#allocation248_spill] sm:$0xff] %v15264_v55  ;;  %20055 = vst [vmem:[#allocation255_spill] sm:$0xff] %v15291_v33 }
 0x133   : > { %v4306_v26 = vrot.slane %v20042_v11, 4  ;;  %20045 = vst [vmem:[#allocation54_spill] sm:$0xff] %v15256_v18  ;;  %v20046_v20 = vmov %v20042_v11  ;;  %v15262_v11 = vpop.f32.mrf.mxu1  ;;  %v15266_v59 = vrot.slane %v2826_v21, 4  ;;  %v15268_v5 = vrot.slane %v2832_v47, 5  ;;  %11913 = vmatprep.mubr.msk.bf16.mxu0 %vm697_vm1, %v15256_v18  ;;  %v293_v40 = vld [vmem:[%s13070_s25 + $0x178] sm:$0x1] }
 0x134   : > { %v4305_v32 = vsel %vm13358_vm4, %v4303_v4, %v20046_v20  ;;  %20047 = vst [vmem:[#allocation11_spill] sm:$0xff] %v15262_v11  ;;  %v2341_v17 = vsel %vm13960_vm7, %v2336_v13, %v2340_v61  ;;  %v2351_v24 = vsel %vm13960_vm7, %v2346_v16, %v20038_v45  ;;  %v2361_v21 = vsel %vm13960_vm7, %v2356_v30, %v2360_v39  ;;  %v15286_v4 = vpop.f32.mrf.mxu0  ;;  %v20058_v39 = vld [vmem:[#allocation15_spill] sm:$0xff]  ;;  %v20061_v13 = vld [vmem:[#allocation16_spill] sm:$0xff] }
 0x135   : > { %20049 = vst [vmem:[#allocation249_spill] sm:$0xff] %v15266_v59  ;;  %20050 = vst [vmem:[#allocation250_spill] sm:$0xff] %v15268_v5  ;;  %v15275_v1 = vcombine.low %v2331_v22, %v2341_v17  ;;  %v4308_v47 = vsel %vm13358_vm4, %v4306_v26, %v4307_v8  ;;  %v15284_v9 = vpop.f32.mrf.mxu1  ;;  %v15288_v61 = vrot.slane %v2836_v49, 4  ;;  %v15294_v37 = vcombine.low %v2351_v24, %v2361_v21  ;;  %v12922_v26 = vld [vmem:[%s13070_s25 + $0x16c] sm:$0xf] }
 0x136   : > { %20052 = vst [vmem:[#allocation252_spill] sm:$0xff] %v15284_v9  ;;  %20053 = vst [vmem:[#allocation253_spill] sm:$0xff] %v15286_v4  ;;  %v15296_v16 = vcombine.low %v4305_v32, %v4308_v47  ;;  %v20059_v45 = vshrl.u32 %v20058_v39, 16  ;;  %v20060_v0 = vshll.u32 %v20058_v39, 16  ;;  %v2372_v22 = vshll.u32 %v12922_v26, 16  ;;  %v15309_v32 = vpop.f32.mrf.mxu0  ;;  %v20068_v4 = vld [vmem:[#allocation70_spill] sm:$0xff] }
 0x137   : > { %20051 = vst [vmem:[#allocation251_spill] sm:$0xff] %v15275_v1  ;;  %20054 = vst [vmem:[#allocation254_spill] sm:$0xff] %v15288_v61  ;;  %11783 = vmatprep.mubr.msk.bf16.mxu1 %vm697_vm1, %v15275_v1  ;;  %v20062_v20 = vshrl.u32 %v20061_v13, 16  ;;  %v15307_v17 = vpop.f32.mrf.mxu1  ;;  %v12923_v24 = vld [vmem:[%s13070_s25 + $0x170] sm:$0xf]  ;;  %v20067_v1 = vld [vmem:[#allocation69_spill] sm:$0xff] }
 0x138   : > { %20056 = vst [vmem:[#allocation256_spill] sm:$0xff] %v15294_v37  ;;  %20057 = vst [vmem:[#allocation257_spill] sm:$0xff] %v15296_v16  ;;  %v2365_v30 = vrot.slane %v20059_v45, 4  ;;  %v2368_v49 = vrot.slane %v20060_v0, 5  ;;  %11784 = vmatmul.mubr.msk.bf16.gmra.mxu1 %vm697_vm1, %v15294_v37  ;;  %11914 = vmatmul.mubr.msk.bf16.gmra.mxu0 %vm697_vm1, %v15296_v16  ;;  %v2382_v21 = vshll.u32 %v12923_v24, 16  ;;  %v4311_v45 = vrot.slane %v12922_v26, 5  ;;  %v15322_v9 = vpop.f32.mrf.mxu0 }
 0x139   : > { %v2378_v8 = vrot.slane %v20062_v20, 4  ;;  %20063 = vst [vmem:[#allocation15_spill] sm:$0xff] %v15307_v17  ;;  %20064 = vst [vmem:[#allocation16_spill] sm:$0xff] %v15309_v32  ;;  %v12924_v47 = vld [vmem:[%s13070_s25 + $0x168] sm:$0xf]  ;;  %v4314_v0 = vrot.slane %v12923_v24, 5  ;;  %v15320_v17 = vpop.f32.mrf.mxu1  ;;  %v2399_v13 = vor.u32 %v20068_v4, %v20067_v1 }
 0x13a   : > { %v10448_v39 = vrot.slane %v12924_v47, 9  ;;  %v12925_v20 = vld [vmem:[%s13070_s25 + $0x24c] sm:$0xf]  ;;  %v2369_v18 = vor.u32 %v2368_v49, %v2365_v30  ;;  %v2374_v32 = vrot.slane %v2372_v22, 5  ;;  %20065 = vst [vmem:[#allocation258_spill] sm:$0xff] %v15320_v17  ;;  %20066 = vst [vmem:[#allocation259_spill] sm:$0xff] %v15322_v9  ;;  %v15330_v30 = vpop.f32.mrf.mxu0 }
 0x13b   : > { %v2870_v29 = vshrl.u32 %v12925_v20, 16  ;;  %v2384_v37 = vrot.slane %v2382_v21, 5  ;;  %v4313_v11 = vrot.slane %v4311_v45, 4  ;;  %v4316_v47 = vrot.slane %v4314_v0, 4  ;;  %v15328_v33 = vpop.f32.mrf.mxu1  ;;  %20070 = vst [vmem:[#allocation70_spill] sm:$0xff] %v15330_v30  ;;  %v20072_v21 = vld [vmem:[#allocation67_spill] sm:$0xff] }
 0x13c   : > { %v4312_v16 = vsel %vm13358_vm4, %v10448_v39, %v4311_v45  ;;  %v2370_v26 = vrot.slane %v2369_v18, 4  ;;  %v2379_v24 = vor.u32 %v2378_v8, %v2374_v32  ;;  %v2402_v55 = vshll.u32 %v293_v40, 16  ;;  %20069 = vst [vmem:[#allocation69_spill] sm:$0xff] %v15328_v33  ;;  %v15333_v49 = vld [vmem:[%s13070_s25 + $0x250] sm:$0xf]  ;;  %v20073_v18 = vld [vmem:[#allocation18_spill] sm:$0xff]  ;;  %v15347_v34 = vpop.f32.mrf.mxu0 }
 0x13d   : > { %20071 = vst [vmem:[#allocation260_spill] sm:$0xff] %v15333_v49  ;;  %v2876_v22 = vshll.u32 %v15333_v49, 16  ;;  %v2389_v20 = vor.u32 %v20072_v21, %v2384_v37  ;;  %v4315_v39 = vsel %vm13358_vm4, %v4313_v11, %v4314_v0  ;;  %v20074_v8 = vrot.slane %v20073_v18, 5  ;;  %v15345_v9 = vpop.f32.mrf.mxu1  ;;  %20077 = vst [vmem:[#allocation261_spill] sm:$0xff] %v15347_v34 }
 0x13e   : > { %v2375_v4 = vsel %vm13960_vm7, %v2370_v26, %v2374_v32  ;;  %v2380_v17 = vrot.slane %v2379_v24, 4  ;;  %v15343_v33 = vcombine.low %v4312_v16, %v4315_v39  ;;  %v2400_v30 = vrot.slane %v2399_v13, 4  ;;  %20076 = vst [vmem:[#allocation18_spill] sm:$0xff] %v15345_v9  ;;  %v15366_v24 = vpop.f32.mrf.mxu0 }
 0x13f   : > { %v4319_v45 = vrot.slane %v20074_v8, 4  ;;  %v2390_v59 = vrot.slane %v2389_v20, 4  ;;  %v2404_v61 = vrot.slane %v2402_v55, 5  ;;  %v20078_v21 = vmov %v20074_v8  ;;  %v15354_v8 = vld [vmem:[%s13070_s25 + $0x248] sm:$0xf]  ;;  %v15364_v55 = vpop.f32.mrf.mxu1  ;;  %20082 = vst [vmem:[#allocation265_spill] sm:$0xff] %v15366_v24 }
 0x140   : > { %20075 = vst [vmem:[#allocation67_spill] sm:$0xff] %v15343_v33  ;;  %v4318_v11 = vsel %vm13358_vm4, %v4316_v47, %v20078_v21  ;;  %v4320_v0 = vrot.slane %v293_v40, 5  ;;  %20079 = vst [vmem:[#allocation262_spill] sm:$0xff] %v15354_v8  ;;  %v15357_v26 = vrot.slane %v2870_v29, 4  ;;  %v2880_v16 = vshrl.u32 %v15333_v49, 16  ;;  %11917 = vmatprep.mubr.msk.bf16.mxu0 %vm697_vm1, %v15343_v33 }
 0x141   : > { %v2385_v13 = vsel %vm13960_vm7, %v2380_v17, %v2384_v37  ;;  %20081 = vst [vmem:[#allocation264_spill] sm:$0xff] %v15364_v55  ;;  %v2395_v29 = vsel %vm13960_vm7, %v2390_v59, %v20067_v1  ;;  %v2405_v47 = vsel %vm13960_vm7, %v2400_v30, %v2404_v61  ;;  %v15377_v17 = vrot.slane %v2876_v22, 5  ;;  %v15386_v59 = vpop.f32.mrf.mxu0  ;;  %v20089_v1 = vld [vmem:[#allocation21_spill] sm:$0xff]  ;;  %v12928_v21 = vld [vmem:[%s13070_s25 + $0x180] sm:$0xf] }
 0x142   : > { %20080 = vst [vmem:[#allocation263_spill] sm:$0xff] %v15357_v26  ;;  %v15368_v40 = vcombine.low %v2375_v4, %v2385_v13  ;;  %v4321_v37 = vsel %vm13358_vm4, %v4319_v45, %v4320_v0  ;;  %v15380_v39 = vcombine.low %v2395_v29, %v2405_v47  ;;  %v15384_v4 = vpop.f32.mrf.mxu1  ;;  %20088 = vst [vmem:[#allocation271_spill] sm:$0xff] %v15386_v59  ;;  %v20090_v61 = vshrl.u32 %v20089_v1, 16  ;;  %v20092_v13 = vld [vmem:[#allocation23_spill] sm:$0xff]  ;;  %v12929_v47 = vld [vmem:[%s13070_s25 + $0x184] sm:$0xf] }
 0x143   : > { %20084 = vst [vmem:[#allocation267_spill] sm:$0xff] %v15377_v17  ;;  %v15382_v18 = vcombine.low %v4318_v11, %v4321_v37  ;;  %20087 = vst [vmem:[#allocation270_spill] sm:$0xff] %v15384_v4  ;;  %v20091_v22 = vshll.u32 %v20089_v1, 16  ;;  %v2416_v0 = vshll.u32 %v12928_v21, 16  ;;  %v20093_v11 = vshrl.u32 %v20092_v13, 16  ;;  %v15406_v24 = vpop.f32.mrf.mxu0  ;;  %v20101_v59 = vld [vmem:[#allocation80_spill] sm:$0xff] }
 0x144   : > { %20083 = vst [vmem:[#allocation266_spill] sm:$0xff] %v15368_v40  ;;  %20085 = vst [vmem:[#allocation268_spill] sm:$0xff] %v15380_v39  ;;  %11787 = vmatprep.mubr.msk.bf16.mxu1 %vm697_vm1, %v15368_v40  ;;  %v2409_v30 = vrot.slane %v20090_v61, 4  ;;  %v2426_v37 = vshll.u32 %v12929_v47, 16  ;;  %v12930_v20 = vld [vmem:[%s13070_s25 + $0x17c] sm:$0xf] }
 0x145   : > { %20086 = vst [vmem:[#allocation269_spill] sm:$0xff] %v15382_v18  ;;  %v2412_v45 = vrot.slane %v20091_v22, 5  ;;  %v2422_v29 = vrot.slane %v20093_v11, 4  ;;  %11788 = vmatmul.mubr.msk.bf16.gmra.mxu1 %vm697_vm1, %v15380_v39  ;;  %11918 = vmatmul.mubr.msk.bf16.gmra.mxu0 %vm697_vm1, %v15382_v18  ;;  %v10449_v32 = vrot.slane %v12930_v20, 9  ;;  %v4324_v61 = vrot.slane %v12928_v21, 5  ;;  %v15404_v22 = vpop.f32.mrf.mxu1  ;;  %20095 = vst [vmem:[#allocation23_spill] sm:$0xff] %v15406_v24  ;;  %v15418_v40 = vpop.f32.mrf.mxu0 }
 0x146   : > { %v4327_v33 = vrot.slane %v12929_v47, 5  ;;  %v298_v1 = vld [vmem:[%s13070_s25 + $0x18c] sm:$0x1]  ;;  %20094 = vst [vmem:[#allocation21_spill] sm:$0xff] %v15404_v22  ;;  %v15408_v4 = vrot.slane %v2880_v16, 4  ;;  %v2418_v9 = vrot.slane %v2416_v0, 5 }
 0x147   : > { %v15411_v13 = vld [vmem:[%s13070_s25 + $0x258] sm:$0xf]  ;;  %v2413_v55 = vor.u32 %v2412_v45, %v2409_v30  ;;  %v2428_v18 = vrot.slane %v2426_v37, 5  ;;  %v4325_v39 = vsel %vm13358_vm4, %v10449_v32, %v4324_v61  ;;  %v4326_v20 = vrot.slane %v4324_v61, 4  ;;  %v15416_v47 = vpop.f32.mrf.mxu1  ;;  %20099 = vst [vmem:[#allocation275_spill] sm:$0xff] %v15418_v40  ;;  %v20100_v16 = vld [vmem:[#allocation78_spill] sm:$0xff] }
 0x148   : > { %20096 = vst [vmem:[#allocation272_spill] sm:$0xff] %v15408_v4  ;;  %20097 = vst [vmem:[#allocation273_spill] sm:$0xff] %v15411_v13  ;;  %v4329_v21 = vrot.slane %v4327_v33, 4  ;;  %v2423_v24 = vor.u32 %v2422_v29, %v2418_v9  ;;  %v2443_v34 = vor.u32 %v20101_v59, %v20100_v16  ;;  %v2446_v49 = vshll.u32 %v298_v1, 16  ;;  %v20102_v30 = vld [vmem:[#allocation77_spill] sm:$0xff] }
 0x149   : > { %20098 = vst [vmem:[#allocation274_spill] sm:$0xff] %v15416_v47  ;;  %v2414_v22 = vrot.slane %v2413_v55, 4  ;;  %v2433_v45 = vor.u32 %v20102_v30, %v2428_v18  ;;  %v4328_v32 = vsel %vm13358_vm4, %v4326_v20, %v4327_v33  ;;  %v20103_v0 = vld [vmem:[#allocation29_spill] sm:$0xff]  ;;  %v15428_v47 = vpop.f32.mrf.mxu1  ;;  %v15430_v55 = vpop.f32.mrf.mxu0 }
 0x14a   : > { %v20104_v37 = vrot.slane %v20103_v0, 5  ;;  %20105 = vst [vmem:[#allocation78_spill] sm:$0xff] %v15428_v47  ;;  %20106 = vst [vmem:[#allocation80_spill] sm:$0xff] %v15430_v55  ;;  %v2424_v29 = vrot.slane %v2423_v24, 4  ;;  %v15434_v11 = vcombine.low %v4325_v39, %v4328_v32  ;;  %v2444_v40 = vrot.slane %v2443_v34, 4 }
 0x14b   : > { %v2419_v59 = vsel %vm13960_vm7, %v2414_v22, %v2418_v9  ;;  %v2434_v30 = vrot.slane %v2433_v45, 4  ;;  %v2448_v13 = vrot.slane %v2446_v49, 5  ;;  %v15440_v26 = vpop.f32.mrf.mxu1  ;;  %v15442_v47 = vpop.f32.mrf.mxu0  ;;  %v15445_v55 = vld [vmem:[%s13070_s25 + $0x25c] sm:$0xf]  ;;  %v12933_v24 = vld [vmem:[%s13070_s25 + $0x260] sm:$0xf] }
 0x14c   : > { %v4332_v61 = vrot.slane %v20104_v37, 4  ;;  %20107 = vst [vmem:[#allocation77_spill] sm:$0xff] %v15434_v11  ;;  %v20108_v33 = vmov %v20104_v37  ;;  %v4333_v37 = vrot.slane %v298_v1, 5  ;;  %20109 = vst [vmem:[#allocation29_spill] sm:$0xff] %v15440_v26  ;;  %v2914_v39 = vshrl.u32 %v12933_v24, 16  ;;  %11921 = vmatprep.mubr.msk.bf16.mxu0 %vm697_vm1, %v15434_v11  ;;  %v20121_v9 = vld [vmem:[#allocation32_spill] sm:$0xff] }
 0x14d   : > { %v4331_v20 = vsel %vm13358_vm4, %v4329_v21, %v20108_v33  ;;  %20110 = vst [vmem:[#allocation276_spill] sm:$0xff] %v15442_v47  ;;  %20111 = vst [vmem:[#allocation277_spill] sm:$0xff] %v15445_v55  ;;  %v15450_v22 = vld [vmem:[%s13070_s25 + $0x264] sm:$0xf]  ;;  %v2429_v49 = vsel %vm13960_vm7, %v2424_v29, %v2428_v18  ;;  %v2439_v21 = vsel %vm13960_vm7, %v2434_v30, %v20100_v16  ;;  %v15466_v0 = vpop.f32.mrf.mxu1  ;;  %v15468_v33 = vpop.f32.mrf.mxu0  ;;  %v20122_v11 = vshrl.u32 %v20121_v9, 16 }
 0x14e   : > { %20112 = vst [vmem:[#allocation278_spill] sm:$0xff] %v15450_v22  ;;  %v2920_v34 = vshll.u32 %v15450_v22, 16  ;;  %v15457_v1 = vcombine.low %v2419_v59, %v2429_v49  ;;  %v2449_v45 = vsel %vm13960_vm7, %v2444_v40, %v2448_v13  ;;  %v4334_v32 = vsel %vm13358_vm4, %v4332_v61, %v4333_v37  ;;  %20114 = vst [vmem:[#allocation280_spill] sm:$0xff] %v15466_v0  ;;  %v20118_v40 = vld [vmem:[#allocation31_spill] sm:$0xff]  ;;  %v12935_v37 = vld [vmem:[%s13070_s25 + $0x194] sm:$0xf] }
 0x14f   : > { %20115 = vst [vmem:[#allocation281_spill] sm:$0xff] %v15468_v33  ;;  %v2924_v18 = vshrl.u32 %v15450_v22, 16  ;;  %v15472_v29 = vcombine.low %v2439_v21, %v2449_v45  ;;  %v15474_v24 = vcombine.low %v4331_v20, %v4334_v32  ;;  %v20119_v13 = vshrl.u32 %v20118_v40, 16  ;;  %v15485_v59 = vpop.f32.mrf.mxu1  ;;  %v15487_v21 = vpop.f32.mrf.mxu0  ;;  %v12936_v20 = vld [vmem:[%s13070_s25 + $0x198] sm:$0xf]  ;;  %v20129_v22 = vld [vmem:[#allocation91_spill] sm:$0xff] }
 0x150   : > { %20113 = vst [vmem:[#allocation279_spill] sm:$0xff] %v15457_v1  ;;  %11791 = vmatprep.mubr.msk.bf16.mxu1 %vm697_vm1, %v15457_v1  ;;  %v20120_v61 = vshll.u32 %v20118_v40, 16  ;;  %v2460_v49 = vshll.u32 %v12935_v37, 16  ;;  %v2466_v0 = vrot.slane %v20122_v11, 4  ;;  %20123 = vst [vmem:[#allocation31_spill] sm:$0xff] %v15485_v59  ;;  %v2470_v45 = vshll.u32 %v12936_v20, 16 }
 0x151   : > { %20116 = vst [vmem:[#allocation282_spill] sm:$0xff] %v15472_v29  ;;  %20117 = vst [vmem:[#allocation283_spill] sm:$0xff] %v15474_v24  ;;  %v2453_v16 = vrot.slane %v20119_v13, 4  ;;  %11792 = vmatmul.mubr.msk.bf16.gmra.mxu1 %vm697_vm1, %v15472_v29  ;;  %11922 = vmatmul.mubr.msk.bf16.gmra.mxu0 %vm697_vm1, %v15474_v24  ;;  %v12937_v32 = vld [vmem:[%s13070_s25 + $0x190] sm:$0xf]  ;;  %v4337_v13 = vrot.slane %v12935_v37, 5  ;;  %v15502_v29 = vpop.f32.mrf.mxu0 }
 0x152   : > { %v2456_v30 = vrot.slane %v20120_v61, 5  ;;  %20124 = vst [vmem:[#allocation32_spill] sm:$0xff] %v15487_v21  ;;  %v10450_v40 = vrot.slane %v12937_v32, 9  ;;  %v4340_v61 = vrot.slane %v12936_v20, 5  ;;  %v303_v26 = vld [vmem:[%s13070_s25 + $0x1a0] sm:$0x1]  ;;  %v15500_v21 = vpop.f32.mrf.mxu1 }
 0x153   : > { %v15496_v1 = vrot.slane %v2914_v39, 4  ;;  %v15498_v11 = vrot.slane %v2920_v34, 5  ;;  %v2462_v59 = vrot.slane %v2460_v49, 5  ;;  %20127 = vst [vmem:[#allocation286_spill] sm:$0xff] %v15500_v21  ;;  %20128 = vst [vmem:[#allocation287_spill] sm:$0xff] %v15502_v29  ;;  %v2472_v33 = vrot.slane %v2470_v45, 5 }
 0x154   : > { %v2457_v9 = vor.u32 %v2456_v30, %v2453_v16  ;;  %v4338_v24 = vsel %vm13358_vm4, %v10450_v40, %v4337_v13  ;;  %v4339_v47 = vrot.slane %v4337_v13, 4  ;;  %v4342_v32 = vrot.slane %v4340_v61, 4  ;;  %v20130_v39 = vld [vmem:[#allocation92_spill] sm:$0xff]  ;;  %v15508_v34 = vpop.f32.mrf.mxu1  ;;  %v15510_v16 = vpop.f32.mrf.mxu0  ;;  %v20133_v21 = vld [vmem:[#allocation90_spill] sm:$0xff]  ;;  %v20134_v40 = vld [vmem:[#allocation45_spill] sm:$0xff] }
 0x155   : > { %20125 = vst [vmem:[#allocation284_spill] sm:$0xff] %v15496_v1  ;;  %20126 = vst [vmem:[#allocation285_spill] sm:$0xff] %v15498_v11  ;;  %v2467_v20 = vor.u32 %v2466_v0, %v2462_v59  ;;  %v2487_v1 = vor.u32 %v20130_v39, %v20129_v22  ;;  %v2490_v55 = vshll.u32 %v303_v26, 16  ;;  %v12938_v30 = vld [vmem:[%s13070_s25 + $0x274] sm:$0xf]  ;;  %v2477_v29 = vor.u32 %v20133_v21, %v2472_v33 }
 0x156   : > { %v2458_v37 = vrot.slane %v2457_v9, 4  ;;  %20131 = vst [vmem:[#allocation91_spill] sm:$0xff] %v15508_v34  ;;  %20132 = vst [vmem:[#allocation92_spill] sm:$0xff] %v15510_v16  ;;  %v2958_v49 = vshrl.u32 %v12938_v30, 16  ;;  %v4341_v45 = vsel %vm13358_vm4, %v4339_v47, %v4340_v61  ;;  %v20135_v13 = vrot.slane %v20134_v40, 5  ;;  %v15522_v4 = vpop.f32.mrf.mxu1  ;;  %v15524_v16 = vpop.f32.mrf.mxu0 }
 0x157   : > { %v2468_v39 = vrot.slane %v2467_v20, 4  ;;  %v15520_v11 = vcombine.low %v4338_v24, %v4341_v45  ;;  %v2488_v34 = vrot.slane %v2487_v1, 4  ;;  %20137 = vst [vmem:[#allocation45_spill] sm:$0xff] %v15522_v4  ;;  %20138 = vst [vmem:[#allocation288_spill] sm:$0xff] %v15524_v16  ;;  %v10726_v21 = vld [vmem:[%s19140_s1 + $0xa] sm:$0x3] }
 0x158   : > { %v4345_v9 = vrot.slane %v20135_v13, 4  ;;  %v2463_v0 = vsel %vm13960_vm7, %v2458_v37, %v2462_v59  ;;  %v2478_v30 = vrot.slane %v2477_v29, 4  ;;  %v2492_v47 = vrot.slane %v2490_v55, 5  ;;  %12761 = vmatprep.subr.msk.bf16.mxu1 %vm890_vm0, %v10726_v21  ;;  %v15537_v24 = vld [vmem:[%s13070_s25 + $0x26c] sm:$0xf]  ;;  %v15545_v29 = vpop.f32.mrf.mxu1 }
 0x159   : > { %20136 = vst [vmem:[#allocation90_spill] sm:$0xff] %v15520_v11  ;;  %v20139_v61 = vmov %v20135_v13  ;;  %v4346_v37 = vrot.slane %v303_v26, 5  ;;  %v15534_v1 = vrot.slane %v2924_v18, 4  ;;  %20141 = vst [vmem:[#allocation290_spill] sm:$0xff] %v15537_v24  ;;  %v2473_v55 = vsel %vm13960_vm7, %v2468_v39, %v2472_v33  ;;  %11925 = vmatprep.mubr.msk.bf16.mxu0 %vm697_vm1, %v15520_v11  ;;  %v15547_v26 = vpop.f32.mrf.mxu0  ;;  %v15559_v13 = vld [vmem:[%s13070_s25 + $0x270] sm:$0xf] }
 0x15a   : > { %v4344_v59 = vsel %vm13358_vm4, %v4342_v32, %v20139_v61  ;;  %20142 = vst [vmem:[#allocation291_spill] sm:$0xff] %v15545_v29  ;;  %20143 = vst [vmem:[#allocation292_spill] sm:$0xff] %v15547_v26  ;;  %v15549_v32 = vcombine.low %v2463_v0, %v2473_v55  ;;  %v2483_v18 = vsel %vm13960_vm7, %v2478_v30, %v20129_v22  ;;  %v15562_v21 = vrot.slane %v2958_v49, 4  ;;  %v15568_v55 = vpop.f32.mrf.mxu1  ;;  %v12942_v39 = vld [vmem:[%s13070_s25 + $0x1ac] sm:$0xf] }
 0x15b   : > { %20140 = vst [vmem:[#allocation289_spill] sm:$0xff] %v15534_v1  ;;  %v2493_v40 = vsel %vm13960_vm7, %v2488_v34, %v2492_v47  ;;  %v4347_v33 = vsel %vm13358_vm4, %v4345_v9, %v4346_v37  ;;  %20145 = vst [vmem:[#allocation294_spill] sm:$0xff] %v15559_v13  ;;  %v15570_v22 = vpop.f32.mrf.mxu0  ;;  %v20151_v34 = vld [vmem:[#allocation48_spill] sm:$0xff]  ;;  %v12941_v37 = vld [vmem:[%s13070_s25 + $0x1a8] sm:$0xf]  ;;  %v2514_v45 = vshll.u32 %v12942_v39, 16 }
 0x15c   : > { %20144 = vst [vmem:[#allocation293_spill] sm:$0xff] %v15549_v32  ;;  %20146 = vst [vmem:[#allocation295_spill] sm:$0xff] %v15562_v21  ;;  %v15564_v0 = vcombine.low %v2483_v18, %v2493_v40  ;;  %v15566_v61 = vcombine.low %v4344_v59, %v4347_v33  ;;  %11795 = vmatprep.mubr.msk.bf16.mxu1 %vm697_vm1, %v15549_v32  ;;  %v20152_v9 = vshrl.u32 %v20151_v34, 16  ;;  %v20153_v47 = vshll.u32 %v20151_v34, 16  ;;  %v20154_v40 = vld [vmem:[#allocation49_spill] sm:$0xff]  ;;  %v20162_v13 = vld [vmem:[#allocation99_spill] sm:$0xff] }
 0x15d   : > { %20149 = vst [vmem:[#allocation298_spill] sm:$0xff] %v15568_v55  ;;  %20150 = vst [vmem:[#allocation299_spill] sm:$0xff] %v15570_v22  ;;  %v2504_v18 = vshll.u32 %v12941_v37, 16  ;;  %v20155_v59 = vshrl.u32 %v20154_v40, 16  ;;  %v12943_v20 = vld [vmem:[%s13070_s25 + $0x1a4] sm:$0xf]  ;;  %v15588_v55 = vpop.f32.mrf.mxu1 }
 0x15e   : > { %20147 = vst [vmem:[#allocation296_spill] sm:$0xff] %v15564_v0  ;;  %20148 = vst [vmem:[#allocation297_spill] sm:$0xff] %v15566_v61  ;;  %v2497_v30 = vrot.slane %v20152_v9, 4  ;;  %v2500_v49 = vrot.slane %v20153_v47, 5  ;;  %11796 = vmatmul.mubr.msk.bf16.gmra.mxu1 %vm697_vm1, %v15564_v0  ;;  %11926 = vmatmul.mubr.msk.bf16.gmra.mxu0 %vm697_vm1, %v15566_v61  ;;  %v10451_v11 = vrot.slane %v12943_v20, 9  ;;  %v4350_v9 = vrot.slane %v12941_v37, 5  ;;  %v15590_v47 = vpop.f32.mrf.mxu0 }
 0x15f   : > { %v2510_v33 = vrot.slane %v20155_v59, 4  ;;  %v4353_v22 = vrot.slane %v12942_v39, 5  ;;  %v308_v34 = vld [vmem:[%s13070_s25 + $0x1b4] sm:$0x1]  ;;  %20156 = vst [vmem:[#allocation48_spill] sm:$0xff] %v15588_v55  ;;  %20157 = vst [vmem:[#allocation49_spill] sm:$0xff] %v15590_v47  ;;  %v15599_v39 = vpop.f32.mrf.mxu1 }
 0x160   : > { %v15593_v29 = vld [vmem:[%s13070_s25 + $0x278] sm:$0xf]  ;;  %v2501_v4 = vor.u32 %v2500_v49, %v2497_v30  ;;  %v2506_v0 = vrot.slane %v2504_v18, 5  ;;  %v2516_v61 = vrot.slane %v2514_v45, 5  ;;  %v4351_v32 = vsel %vm13358_vm4, %v10451_v11, %v4350_v9  ;;  %20159 = vst [vmem:[#allocation301_spill] sm:$0xff] %v15599_v39  ;;  %v15601_v26 = vpop.f32.mrf.mxu0  ;;  %v20163_v45 = vld [vmem:[#allocation96_spill] sm:$0xff] }
 0x161   : > { %20158 = vst [vmem:[#allocation300_spill] sm:$0xff] %v15593_v29  ;;  %v2964_v40 = vshll.u32 %v15593_v29, 16  ;;  %v2968_v59 = vshrl.u32 %v15593_v29, 16  ;;  %v4352_v20 = vrot.slane %v4350_v9, 4  ;;  %v4355_v37 = vrot.slane %v4353_v22, 4  ;;  %20160 = vst [vmem:[#allocation302_spill] sm:$0xff] %v15601_v26  ;;  %v15615_v1 = vpop.f32.mrf.mxu1 }
 0x162   : > { %v10793_v55 = vld [vmem:[%s19140_s1 + $0xc] sm:$0x3]  ;;  %v2502_v47 = vrot.slane %v2501_v4, 4  ;;  %v2511_v16 = vor.u32 %v2510_v33, %v2506_v0  ;;  %v20161_v21 = vld [vmem:[#allocation97_spill] sm:$0xff]  ;;  %v2534_v49 = vshll.u32 %v308_v34, 16  ;;  %v2521_v18 = vor.u32 %v20163_v45, %v2516_v61  ;;  %v15617_v4 = vpop.f32.mrf.mxu0 }
 0x163   : > { %v2531_v30 = vor.u32 %v20162_v13, %v20161_v21  ;;  %12762 = vmatprep.subr.msk.bf16.mxu0 %vm890_vm0, %v10793_v55  ;;  %v4354_v9 = vsel %vm13358_vm4, %v4352_v20, %v4353_v22  ;;  %v20164_v39 = vld [vmem:[#allocation61_spill] sm:$0xff]  ;;  %20166 = vst [vmem:[#allocation97_spill] sm:$0xff] %v15615_v1  ;;  %20167 = vst [vmem:[#allocation99_spill] sm:$0xff] %v15617_v4  ;;  %v15626_v45 = vld [vmem:[%s19141_s2] ss:$0 sm:$0xff]  ;;  %v4359_v1 = vrot.slane %v308_v34, 5  ;;  %v15632_v4 = vpop.f32.mrf.mxu1 }
 0x164   : > { %v20165_v26 = vrot.slane %v20164_v39, 5  ;;  %v2507_v13 = vsel %vm13960_vm7, %v2502_v47, %v2506_v0  ;;  %v2512_v33 = vrot.slane %v2511_v16, 4  ;;  %v15621_v17 = vcombine.low %v4351_v32, %v4354_v9  ;;  %20169 = vst [vmem:[#allocation61_spill] sm:$0xff] %v15632_v4  ;;  %v15634_v0 = vpop.f32.mrf.mxu0  ;;  %v20183_v29 = vld [vmem:[#allocation109_spill] sm:$0xff] }
 0x165   : > { %v2532_v55 = vrot.slane %v2531_v30, 4  ;;  %v2522_v22 = vrot.slane %v2521_v18, 4  ;;  %v2536_v20 = vrot.slane %v2534_v49, 5  ;;  %20170 = vst [vmem:[#allocation303_spill] sm:$0xff] %v15634_v0  ;;  %v15636_v16 = vrot.slane %v2964_v40, 5 }
 0x166   : > { %v4358_v24 = vrot.slane %v20165_v26, 4  ;;  %20168 = vst [vmem:[#allocation96_spill] sm:$0xff] %v15621_v17  ;;  %v4357_v11 = vsel %vm13358_vm4, %v4355_v37, %v20165_v26  ;;  %v15638_v32 = vrot.slane %v2968_v59, 4  ;;  %v15642_v47 = vadd.f32 %v14621_v46, %v15626_v45  ;;  %11929 = vmatprep.mubr.msk.bf16.mxu0 %vm697_vm1, %v15621_v17  ;;  %v15657_v37 = vpop.f32.mrf.mxu1  ;;  %v15659_v30 = vpop.f32.mrf.mxu0 }
 0x167   : > { %20171 = vst [vmem:[#allocation304_spill] sm:$0xff] %v15636_v16  ;;  %v2517_v39 = vsel %vm13960_vm7, %v2512_v33, %v2516_v61  ;;  %v2527_v40 = vsel %vm13960_vm7, %v2522_v22, %v20161_v21  ;;  %v2537_v59 = vsel %vm13960_vm7, %v2532_v55, %v2536_v20  ;;  %20174 = vst [vmem:[#allocation307_spill] sm:$0xff] %v15657_v37  ;;  %v12945_v33 = vld [vmem:[%s13070_s25 + $0x1bc] sm:$0xf]  ;;  %v20180_v22 = vld [vmem:[#allocation64_spill] sm:$0xff] }
 0x168   : > { %20172 = vst [vmem:[#allocation305_spill] sm:$0xff] %v15638_v32  ;;  %v15648_v34 = vcombine.low %v2507_v13, %v2517_v39  ;;  %v4360_v46 = vsel %vm13358_vm4, %v4358_v24, %v4359_v1  ;;  %v15663_v61 = vadd.f32 %v15626_v45, %v14645_v12  ;;  %v15667_v49 = vadd.f32 %v14660_v60, %v15626_v45  ;;  %v20177_v1 = vld [vmem:[#allocation63_spill] sm:$0xff]  ;;  %v15682_v26 = vpop.f32.mrf.mxu1  ;;  %v15684_v39 = vpop.f32.mrf.mxu0 }
 0x169   : > { %v15669_v21 = vcombine.low %v2527_v40, %v2537_v59  ;;  %v15671_v18 = vcombine.low %v4357_v11, %v4360_v46  ;;  %v20178_v24 = vshrl.u32 %v20177_v1, 16  ;;  %v20179_v13 = vshll.u32 %v20177_v1, 16  ;;  %v12946_v11 = vld [vmem:[%s13070_s25 + $0x1c0] sm:$0xf]  ;;  %v12947_v59 = vld [vmem:[%s13070_s25 + $0x1b8] sm:$0xf] }
 0x16a   : > { %20173 = vst [vmem:[#allocation306_spill] sm:$0xff] %v15648_v34  ;;  %11799 = vmatprep.mubr.msk.bf16.mxu1 %vm697_vm1, %v15648_v34  ;;  %v2548_v55 = vshll.u32 %v12945_v33, 16  ;;  %v20181_v20 = vshrl.u32 %v20180_v22, 16  ;;  %v2558_v40 = vshll.u32 %v12946_v11, 16  ;;  %v10452_v46 = vrot.slane %v12947_v59, 9  ;;  %v15701_v37 = vpop.f32.mrf.mxu1 }
 0x16b   : > { %20175 = vst [vmem:[#allocation308_spill] sm:$0xff] %v15669_v21  ;;  %20176 = vst [vmem:[#allocation309_spill] sm:$0xff] %v15671_v18  ;;  %v2541_v9 = vrot.slane %v20178_v24, 4  ;;  %v2544_v12 = vrot.slane %v20179_v13, 5  ;;  %11800 = vmatmul.mubr.msk.bf16.gmra.mxu1 %vm697_vm1, %v15669_v21  ;;  %11930 = vmatmul.mubr.msk.bf16.gmra.mxu0 %vm697_vm1, %v15671_v18  ;;  %v4363_v1 = vrot.slane %v12945_v33, 5  ;;  %v4366_v24 = vrot.slane %v12946_v11, 5  ;;  %v15703_v18 = vpop.f32.mrf.mxu0 }
 0x16c   : > { %v2554_v60 = vrot.slane %v20181_v20, 4  ;;  %v313_v13 = vld [vmem:[%s13070_s25 + $0x1c8] sm:$0x1]  ;;  %v15695_v22 = vadd.f32 %v14685_v50, %v15626_v45  ;;  %v15699_v20 = vadd.f32 %v15626_v45, %v14705_v57  ;;  %v2550_v0 = vrot.slane %v2548_v55, 5  ;;  %v15709_v57 = vpop.f32.mrf.mxu1  ;;  %v20185_v55 = vld [vmem:[#allocation106_spill] sm:$0xff] }
 0x16d   : > { %v2545_v17 = vor.u32 %v2544_v12, %v2541_v9  ;;  %v2560_v4 = vrot.slane %v2558_v40, 5  ;;  %v4364_v33 = vsel %vm13358_vm4, %v10452_v46, %v4363_v1  ;;  %v4365_v11 = vrot.slane %v4363_v1, 4  ;;  %v20182_v50 = vld [vmem:[#allocation107_spill] sm:$0xff]  ;;  %v15711_v9 = vpop.f32.mrf.mxu0  ;;  %v20186_v1 = vld [vmem:[#allocation72_spill] sm:$0xff] }
 0x16e   : > { %v4368_v59 = vrot.slane %v4366_v24, 4  ;;  %v2555_v34 = vor.u32 %v2554_v60, %v2550_v0  ;;  %v2575_v32 = vor.u32 %v20183_v29, %v20182_v50  ;;  %v2578_v16 = vshll.u32 %v313_v13, 16  ;;  %20184 = vst [vmem:[#allocation63_spill] sm:$0xff] %v15711_v9  ;;  %v15726_v9 = vpop.f32.mrf.mxu1 }
 0x16f   : > { %v2546_v21 = vrot.slane %v2545_v17, 4  ;;  %v15715_v12 = vadd.f32 %v14722_v10, %v15626_v45  ;;  %v2565_v40 = vor.u32 %v20185_v55, %v2560_v4  ;;  %v4367_v46 = vsel %vm13358_vm4, %v4365_v11, %v4366_v24  ;;  %20189 = vst [vmem:[#allocation107_spill] sm:$0xff] %v15726_v9  ;;  %v15728_v14 = vpop.f32.mrf.mxu0 }
 0x170   : > { %v20187_v17 = vrot.slane %v20186_v1, 5  ;;  %v2556_v8 = vrot.slane %v2555_v34, 4  ;;  %v15724_v5 = vcombine.low %v4364_v33, %v4367_v46  ;;  %v2576_v6 = vrot.slane %v2575_v32, 4  ;;  %v15750_v34 = vpop.f32.mrf.mxu1 }
 0x171   : > { %v2551_v29 = vsel %vm13960_vm7, %v2546_v21, %v2550_v0  ;;  %v2566_v10 = vrot.slane %v2565_v40, 4  ;;  %v2580_v53 = vrot.slane %v2578_v16, 5  ;;  %v4372_v11 = vrot.slane %v313_v13, 5  ;;  %v15752_v21 = vpop.f32.mrf.mxu0 }
 0x172   : > { %v4371_v60 = vrot.slane %v20187_v17, 4  ;;  %20188 = vst [vmem:[#allocation64_spill] sm:$0xff] %v15724_v5  ;;  %v20190_v55 = vmov %v20187_v17  ;;  %v15736_v17 = vadd.f32 %v14749_v52, %v15626_v45  ;;  %v15740_v0 = vadd.f32 %v15626_v45, %v14768_v44  ;;  %11933 = vmatprep.mubr.msk.bf16.mxu0 %vm697_vm1, %v15724_v5 }
 0x173   : > { %v4370_v24 = vsel %vm13358_vm4, %v4368_v59, %v20190_v55  ;;  %v15744_v32 = vadd.f32 %v14784_v31, %v15626_v45  ;;  %v2561_v16 = vsel %vm13960_vm7, %v2556_v8, %v2560_v4  ;;  %v2571_v44 = vsel %vm13960_vm7, %v2566_v10, %v20182_v50  ;;  %v15775_v50 = vpop.f32.mrf.mxu1 }
 0x174   : > { %20191 = vst [vmem:[#allocation109_spill] sm:$0xff] %v15740_v0  ;;  %v15754_v52 = vcombine.low %v2551_v29, %v2561_v16  ;;  %v2581_v31 = vsel %vm13960_vm7, %v2576_v6, %v2580_v53  ;;  %v4373_v8 = vsel %vm13358_vm4, %v4371_v60, %v4372_v11  ;;  %v15765_v4 = vadd.f32 %v14810_v15, %v15626_v45  ;;  %v15777_v6 = vpop.f32.mrf.mxu0  ;;  %v20198_v53 = vld [vmem:[#allocation74_spill] sm:$0xff]  ;;  %v20201_v29 = vld [vmem:[#allocation75_spill] sm:$0xff] }
 0x175   : > { %20192 = vst [vmem:[#allocation106_spill] sm:$0xff] %v15744_v32  ;;  %v15769_v13 = vadd.f32 %v15626_v45, %v14831_v58  ;;  %v15771_v33 = vcombine.low %v2571_v44, %v2581_v31  ;;  %v15773_v59 = vcombine.low %v4370_v24, %v4373_v8  ;;  %v20199_v15 = vshrl.u32 %v20198_v53, 16  ;;  %v12948_v58 = vld [vmem:[%s13070_s25 + $0x1d0] sm:$0xf]  ;;  %v12949_v24 = vld [vmem:[%s13070_s25 + $0x1d4] sm:$0xf] }
 0x176   : > { %20193 = vst [vmem:[#allocation72_spill] sm:$0xff] %v15754_v52  ;;  %20194 = vst [vmem:[#allocation310_spill] sm:$0xff] %v15765_v4  ;;  %11803 = vmatprep.mubr.msk.bf16.mxu1 %vm697_vm1, %v15754_v52  ;;  %v20200_v46 = vshll.u32 %v20198_v53, 16  ;;  %v2592_v60 = vshll.u32 %v12948_v58, 16  ;;  %v20202_v10 = vshrl.u32 %v20201_v29, 16  ;;  %v2602_v11 = vshll.u32 %v12949_v24, 16  ;;  %v15795_v53 = vpop.f32.mrf.mxu1 }
 0x177   : > { %20195 = vst [vmem:[#allocation311_spill] sm:$0xff] %v15769_v13  ;;  %20196 = vst [vmem:[#allocation312_spill] sm:$0xff] %v15771_v33  ;;  %v2585_v40 = vrot.slane %v20199_v15, 4  ;;  %11804 = vmatmul.mubr.msk.bf16.gmra.mxu1 %vm697_vm1, %v15771_v33  ;;  %11934 = vmatmul.mubr.msk.bf16.gmra.mxu0 %vm697_vm1, %v15773_v59  ;;  %v12950_v16 = vld [vmem:[%s13070_s25 + $0x1cc] sm:$0xf]  ;;  %v4376_v31 = vrot.slane %v12948_v58, 5  ;;  %v15801_v29 = vadd.f32 %v14846_v51, %v15626_v45 }
 0x178   : > { %20197 = vst [vmem:[#allocation313_spill] sm:$0xff] %v15773_v59  ;;  %v2588_v1 = vrot.slane %v20200_v46, 5  ;;  %v2598_v55 = vrot.slane %v20202_v10, 4  ;;  %v10453_v44 = vrot.slane %v12950_v16, 9  ;;  %v4379_v8 = vrot.slane %v12949_v24, 5  ;;  %v15797_v46 = vpop.f32.mrf.mxu0  ;;  %v15809_v33 = vpop.f32.mrf.mxu1  ;;  %v20207_v51 = vld [vmem:[#allocation118_spill] sm:$0xff] }
 0x179   : > { %v318_v15 = vld [vmem:[%s13070_s25 + $0x1dc] sm:$0x1]  ;;  %20203 = vst [vmem:[#allocation74_spill] sm:$0xff] %v15797_v46  ;;  %20204 = vst [vmem:[#allocation75_spill] sm:$0xff] %v15801_v29  ;;  %v15805_v10 = vadd.f32 %v14873_v3, %v15626_v45  ;;  %v2594_v5 = vrot.slane %v2592_v60, 5  ;;  %v2604_v9 = vrot.slane %v2602_v11, 5  ;;  %v15817_v3 = vadd.f32 %v15626_v45, %v14895_v7 }
 0x17a   : > { %v2589_v59 = vor.u32 %v2588_v1, %v2585_v40  ;;  %v4377_v58 = vsel %vm13358_vm4, %v10453_v44, %v4376_v31  ;;  %v4378_v24 = vrot.slane %v4376_v31, 4  ;;  %v4381_v16 = vrot.slane %v4379_v8, 4  ;;  %20206 = vst [vmem:[#allocation315_spill] sm:$0xff] %v15809_v33  ;;  %v15811_v52 = vpop.f32.mrf.mxu0  ;;  %v20208_v29 = vld [vmem:[#allocation119_spill] sm:$0xff]  ;;  %v20210_v40 = vld [vmem:[#allocation117_spill] sm:$0xff]  ;;  %v20211_v11 = vld [vmem:[#allocation86_spill] sm:$0xff]  ;;  %v15824_v33 = vpop.f32.mrf.mxu1 }
 0x17b   : > { %20205 = vst [vmem:[#allocation314_spill] sm:$0xff] %v15805_v10  ;;  %v2599_v13 = vor.u32 %v2598_v55, %v2594_v5  ;;  %v2619_v4 = vor.u32 %v20208_v29, %v20207_v51  ;;  %v2622_v32 = vshll.u32 %v318_v15, 16  ;;  %20209 = vst [vmem:[#allocation118_spill] sm:$0xff] %v15817_v3  ;;  %v2609_v1 = vor.u32 %v20210_v40, %v2604_v9 }
 0x17c   : > { %v2590_v46 = vrot.slane %v2589_v59, 4  ;;  %v4380_v60 = vsel %vm13358_vm4, %v4378_v24, %v4379_v8  ;;  %v20212_v44 = vrot.slane %v20211_v11, 5  ;;  %v15826_v59 = vpop.f32.mrf.mxu0  ;;  %v4385_v24 = vrot.slane %v318_v15, 5  ;;  %v12951_v11 = vld [vmem:[%s13070_s25 + $0x1e4] sm:$0xf] }
 0x17d   : > { %20213 = vst [vmem:[#allocation119_spill] sm:$0xff] %v15826_v59  ;;  %v2600_v29 = vrot.slane %v2599_v13, 4  ;;  %v15830_v10 = vcombine.low %v4377_v58, %v4380_v60  ;;  %v2620_v7 = vrot.slane %v2619_v4, 4  ;;  %v2610_v3 = vrot.slane %v2609_v1, 4 }
 0x17e   : > { %v4384_v31 = vrot.slane %v20212_v44, 4  ;;  %v2595_v55 = vsel %vm13960_vm7, %v2590_v46, %v2594_v5  ;;  %v2624_v62 = vrot.slane %v2622_v32, 5  ;;  %v20215_v40 = vmov %v20212_v44  ;;  %v15836_v44 = vpop.f32.mrf.mxu1  ;;  %v15838_v0 = vpop.f32.mrf.mxu0 }
 0x17f   : > { %20214 = vst [vmem:[#allocation117_spill] sm:$0xff] %v15830_v10  ;;  %v4383_v8 = vsel %vm13358_vm4, %v4381_v16, %v20215_v40  ;;  %v15842_v59 = vadd.f32 %v14904_v23, %v15626_v45  ;;  %v15846_v5 = vadd.f32 %v14937_v41, %v15626_v45  ;;  %v15850_v32 = vadd.f32 %v15626_v45, %v14954_v42 }
 0x180   : > { %v2605_v4 = vsel %vm13960_vm7, %v2600_v29, %v2604_v9  ;;  %11937 = vmatprep.mubr.msk.bf16.mxu0 %vm697_vm1, %v15830_v10  ;;  %v2615_v23 = vsel %vm13960_vm7, %v2610_v3, %v20207_v51  ;;  %v2625_v41 = vsel %vm13960_vm7, %v2620_v7, %v2624_v62  ;;  %v4386_v42 = vsel %vm13358_vm4, %v4384_v31, %v4385_v24  ;;  %v15865_v15 = vpop.f32.mrf.mxu1  ;;  %v15867_v46 = vpop.f32.mrf.mxu0  ;;  %v20225_v51 = vld [vmem:[#allocation88_spill] sm:$0xff]  ;;  %v20232_v10 = vld [vmem:[#allocation130_spill] sm:$0xff] }
 0x181   : > { %20216 = vst [vmem:[#allocation86_spill] sm:$0xff] %v15842_v59  ;;  %20217 = vst [vmem:[#allocation316_spill] sm:$0xff] %v15846_v5  ;;  %v15856_v13 = vcombine.low %v2595_v55, %v2605_v4  ;;  %v15871_v9 = vadd.f32 %v14965_v54, %v15626_v45  ;;  %v15875_v58 = vadd.f32 %v14991_v48, %v15626_v45  ;;  %v20226_v3 = vshrl.u32 %v20225_v51, 16  ;;  %v20228_v55 = vld [vmem:[#allocation89_spill] sm:$0xff]  ;;  %v12953_v4 = vld [vmem:[%s13070_s25 + $0x1e0] sm:$0xf] }
 0x182   : > { %20218 = vst [vmem:[#allocation317_spill] sm:$0xff] %v15850_v32  ;;  %20220 = vst [vmem:[#allocation319_spill] sm:$0xff] %v15867_v46  ;;  %v15877_v16 = vcombine.low %v2615_v23, %v2625_v41  ;;  %v15879_v62 = vcombine.low %v4383_v8, %v4386_v42  ;;  %v20227_v60 = vshll.u32 %v20225_v51, 16  ;;  %v2636_v31 = vshll.u32 %v12951_v11, 16  ;;  %v15890_v7 = vpop.f32.mrf.mxu1  ;;  %v15892_v40 = vpop.f32.mrf.mxu0  ;;  %v12952_v8 = vld [vmem:[%s13070_s25 + $0x1e8] sm:$0xf] }
 0x183   : > { %20219 = vst [vmem:[#allocation318_spill] sm:$0xff] %v15856_v13  ;;  %20221 = vst [vmem:[#allocation320_spill] sm:$0xff] %v15871_v9  ;;  %11807 = vmatprep.mubr.msk.bf16.mxu1 %vm697_vm1, %v15856_v13  ;;  %v2629_v1 = vrot.slane %v20226_v3, 4  ;;  %v20229_v29 = vshrl.u32 %v20228_v55, 16  ;;  %v2646_v24 = vshll.u32 %v12952_v8, 16  ;;  %v10454_v23 = vrot.slane %v12953_v4, 9 }
 0x184   : > { %20222 = vst [vmem:[#allocation321_spill] sm:$0xff] %v15875_v58  ;;  %20223 = vst [vmem:[#allocation322_spill] sm:$0xff] %v15877_v16  ;;  %v2632_v54 = vrot.slane %v20227_v60, 5  ;;  %11808 = vmatmul.mubr.msk.bf16.gmra.mxu1 %vm697_vm1, %v15877_v16  ;;  %11938 = vmatmul.mubr.msk.bf16.gmra.mxu0 %vm697_vm1, %v15879_v62  ;;  %v4389_v41 = vrot.slane %v12951_v11, 5  ;;  %v4392_v42 = vrot.slane %v12952_v8, 5  ;;  %v2638_v60 = vrot.slane %v2636_v31, 5  ;;  %v15907_v16 = vpop.f32.mrf.mxu0 }
 0x185   : > { %20224 = vst [vmem:[#allocation323_spill] sm:$0xff] %v15879_v62  ;;  %v2642_v48 = vrot.slane %v20229_v29, 4  ;;  %20230 = vst [vmem:[#allocation88_spill] sm:$0xff] %v15890_v7  ;;  %v323_v51 = vld [vmem:[%s13070_s25 + $0x1f0] sm:$0x1]  ;;  %v3914_v55 = vadd.f32 %v15682_v26, %v15642_v47  ;;  %v20231_v29 = vld [vmem:[#allocation129_spill] sm:$0xff]  ;;  %v15905_v7 = vpop.f32.mrf.mxu1 }
 0x186   : > { %v2633_v3 = vor.u32 %v2632_v54, %v2629_v1  ;;  %v2663_v46 = vor.u32 %v20232_v10, %v20231_v29  ;;  %v2648_v62 = vrot.slane %v2646_v24, 5  ;;  %v4390_v13 = vsel %vm13358_vm4, %v10454_v23, %v4389_v41  ;;  %v15913_v47 = vpop.f32.mrf.mxu0  ;;  %v20233_v26 = vld [vmem:[#allocation128_spill] sm:$0xff]  ;;  %v20235_v32 = vld [vmem:[#allocation98_spill] sm:$0xff] }
 0x187   : > { %v4391_v4 = vrot.slane %v4389_v41, 4  ;;  %v4394_v11 = vrot.slane %v4392_v42, 4  ;;  %v2643_v58 = vor.u32 %v2642_v48, %v2638_v60  ;;  %v2666_v54 = vshll.u32 %v323_v51, 16  ;;  %v15911_v31 = vpop.f32.mrf.mxu1 }
 0x188   : > { %v2634_v8 = vrot.slane %v2633_v3, 4  ;;  %v2664_v1 = vrot.slane %v2663_v46, 4  ;;  %v2653_v10 = vor.u32 %v20233_v26, %v2648_v62  ;;  %v15919_v24 = vadd.f32 %v15659_v30, %v3914_v55  ;;  %v15931_v26 = vpop.f32.mrf.mxu0 }
 0x189   : > { %v4393_v9 = vsel %vm13358_vm4, %v4391_v4, %v4392_v42  ;;  %v20236_v23 = vrot.slane %v20235_v32, 5  ;;  %v2644_v48 = vrot.slane %v2643_v58, 4  ;;  %v2668_v5 = vrot.slane %v2666_v54, 5  ;;  %v15929_v59 = vpop.f32.mrf.mxu1  ;;  %20238 = vst [vmem:[#allocation130_spill] sm:$0xff] %v15931_v26 }
 0x18a   : > { %20234 = vst [vmem:[#allocation89_spill] sm:$0xff] %v15919_v24  ;;  %v2639_v46 = vsel %vm13960_vm7, %v2634_v8, %v2638_v60  ;;  %v15927_v3 = vcombine.low %v4390_v13, %v4393_v9  ;;  %v2654_v42 = vrot.slane %v2653_v10, 4  ;;  %v4398_v4 = vrot.slane %v323_v51, 5 }
 0x18b   : > { %v4396_v41 = vsel %vm13358_vm4, %v4394_v11, %v20236_v23  ;;  %v20239_v30 = vmov %v20236_v23  ;;  %v3912_v24 = vadd.f32 %v15701_v37, %v15663_v61  ;;  %v15939_v11 = vadd.f32 %v15626_v45, %v15010_v38  ;;  %v15949_v58 = vpop.f32.mrf.mxu1  ;;  %v15951_v37 = vpop.f32.mrf.mxu0 }
 0x18c   : > { %20237 = vst [vmem:[#allocation129_spill] sm:$0xff] %v15927_v3  ;;  %v4397_v55 = vrot.slane %v20239_v30, 4  ;;  %v2649_v13 = vsel %vm13960_vm7, %v2644_v48, %v2648_v62  ;;  %11941 = vmatprep.mubr.msk.bf16.mxu0 %vm697_vm1, %v15927_v3  ;;  %v2669_v9 = vsel %vm13960_vm7, %v2664_v1, %v2668_v5  ;;  %v3915_v32 = vadd.f32 %v15709_v57, %v15667_v49  ;;  %v12955_v48 = vld [vmem:[%s13070_s25 + $0x1fc] sm:$0xf]  ;;  %v12956_v30 = vld [vmem:[%s13070_s25 + $0x1f4] sm:$0xf] }
 0x18d   : > { %20240 = vst [vmem:[#allocation128_spill] sm:$0xff] %v15949_v58  ;;  %v15953_v61 = vcombine.low %v2639_v46, %v2649_v13  ;;  %v2659_v38 = vsel %vm13960_vm7, %v2654_v42, %v20231_v29  ;;  %v15961_v5 = vadd.f32 %v15684_v39, %v3912_v24  ;;  %v15965_v49 = vadd.f32 %v15023_v28, %v15626_v45  ;;  %v15974_v29 = vpop.f32.mrf.mxu1  ;;  %v15976_v8 = vpop.f32.mrf.mxu0  ;;  %v20246_v39 = vld [vmem:[#allocation101_spill] sm:$0xff] }
 0x18e   : > { %v4399_v62 = vsel %vm13358_vm4, %v4397_v55, %v4398_v4  ;;  %v15967_v57 = vcombine.low %v2659_v38, %v2669_v9  ;;  %v15972_v60 = vadd.f32 %v15703_v18, %v3915_v32  ;;  %v20247_v1 = vshrl.u32 %v20246_v39, 16  ;;  %v12954_v24 = vld [vmem:[%s13070_s25 + $0x1f8] sm:$0xf]  ;;  %v328_v9 = vld [vmem:[%s13070_s25 + $0x204] sm:$0x1] }
 0x18f   : > { %20241 = vst [vmem:[#allocation98_spill] sm:$0xff] %v15953_v61  ;;  %20242 = vst [vmem:[#allocation324_spill] sm:$0xff] %v15961_v5  ;;  %v15969_v51 = vcombine.low %v4396_v41, %v4399_v62  ;;  %11811 = vmatprep.mubr.msk.bf16.mxu1 %vm697_vm1, %v15953_v61  ;;  %v20248_v54 = vshll.u32 %v20246_v39, 16  ;;  %v2680_v23 = vshll.u32 %v12954_v24, 16  ;;  %v20249_v41 = vld [vmem:[#allocation102_spill] sm:$0xff]  ;;  %v2690_v42 = vshll.u32 %v12955_v48, 16  ;;  %v15994_v32 = vpop.f32.mrf.mxu1  ;;  %v15996_v38 = vpop.f32.mrf.mxu0 }
 0x190   : > { %20243 = vst [vmem:[#allocation325_spill] sm:$0xff] %v15967_v57  ;;  %20245 = vst [vmem:[#allocation327_spill] sm:$0xff] %v15972_v60  ;;  %v2673_v28 = vrot.slane %v20247_v1, 4  ;;  %v20250_v46 = vshrl.u32 %v20249_v41, 16  ;;  %11812 = vmatmul.mubr.msk.bf16.gmra.mxu1 %vm697_vm1, %v15967_v57  ;;  %v10455_v55 = vrot.slane %v12956_v30, 9  ;;  %v4402_v4 = vrot.slane %v12954_v24, 5 }
 0x191   : > { %20244 = vst [vmem:[#allocation326_spill] sm:$0xff] %v15969_v51  ;;  %v2676_v10 = vrot.slane %v20248_v54, 5  ;;  %11942 = vmatmul.mubr.msk.bf16.gmra.mxu0 %vm697_vm1, %v15969_v51  ;;  %v4405_v13 = vrot.slane %v12955_v48, 5  ;;  %v2682_v39 = vrot.slane %v2680_v23, 5  ;;  %v3918_v1 = vadd.f32 %v15750_v34, %v15695_v22  ;;  %v20251_v54 = vld [vmem:[#allocation138_spill] sm:$0xff]  ;;  %v20252_v41 = vld [vmem:[#allocation140_spill] sm:$0xff]  ;;  %v16004_v48 = vpop.f32.mrf.mxu1  ;;  %v16006_v26 = vpop.f32.mrf.mxu0 }
 0x192   : > { %v2686_v18 = vrot.slane %v20250_v46, 4  ;;  %v2707_v46 = vor.u32 %v20252_v41, %v20251_v54  ;;  %v2692_v51 = vrot.slane %v2690_v42, 5  ;;  %v4403_v3 = vsel %vm13358_vm4, %v10455_v55, %v4402_v4  ;;  %20253 = vst [vmem:[#allocation101_spill] sm:$0xff] %v16006_v26  ;;  %v20254_v23 = vld [vmem:[#allocation137_spill] sm:$0xff]  ;;  %v20256_v42 = vld [vmem:[#allocation110_spill] sm:$0xff] }
 0x193   : > { %v2677_v62 = vor.u32 %v2676_v10, %v2673_v28  ;;  %v4404_v30 = vrot.slane %v4402_v4, 4  ;;  %v4407_v24 = vrot.slane %v4405_v13, 4  ;;  %v2710_v10 = vshll.u32 %v328_v9, 16  ;;  %v16018_v41 = vpop.f32.mrf.mxu1  ;;  %v16020_v26 = vpop.f32.mrf.mxu0 }
 0x194   : > { %v2687_v60 = vor.u32 %v2686_v18, %v2682_v39  ;;  %v2708_v28 = vrot.slane %v2707_v46, 4  ;;  %v2697_v5 = vor.u32 %v20254_v23, %v2692_v51  ;;  %v16012_v34 = vadd.f32 %v15728_v14, %v3918_v1  ;;  %20258 = vst [vmem:[#allocation138_spill] sm:$0xff] %v16018_v41 }
 0x195   : > { %v2678_v58 = vrot.slane %v2677_v62, 4  ;;  %v4406_v22 = vsel %vm13358_vm4, %v4404_v30, %v4405_v13  ;;  %v20257_v55 = vrot.slane %v20256_v42, 5  ;;  %v2712_v23 = vrot.slane %v2710_v10, 5 }
 0x196   : > { %20255 = vst [vmem:[#allocation102_spill] sm:$0xff] %v16012_v34  ;;  %v2688_v62 = vrot.slane %v2687_v60, 4  ;;  %v16024_v46 = vcombine.low %v4403_v3, %v4406_v22  ;;  %v2698_v13 = vrot.slane %v2697_v5, 4  ;;  %v4411_v30 = vrot.slane %v328_v9, 5 }
 0x197   : > { %v4409_v4 = vsel %vm13358_vm4, %v4407_v24, %v20257_v55  ;;  %v2683_v18 = vsel %vm13960_vm7, %v2678_v58, %v2682_v39  ;;  %v20260_v14 = vmov %v20257_v55  ;;  %v3916_v34 = vadd.f32 %v15775_v50, %v15699_v20  ;;  %v16030_v24 = vpop.f32.mrf.mxu1  ;;  %v16032_v55 = vpop.f32.mrf.mxu0 }
 0x198   : > { %20259 = vst [vmem:[#allocation140_spill] sm:$0xff] %v16024_v46  ;;  %v4410_v1 = vrot.slane %v20260_v14, 4  ;;  %v16036_v41 = vadd.f32 %v15046_v2, %v15626_v45  ;;  %v2693_v3 = vsel %vm13960_vm7, %v2688_v62, %v2692_v51  ;;  %11945 = vmatprep.mubr.msk.bf16.mxu0 %vm697_vm1, %v16024_v46  ;;  %v2713_v58 = vsel %vm13960_vm7, %v2708_v28, %v2712_v23  ;;  %v12959_v14 = vld [vmem:[%s13070_s25 + $0x208] sm:$0xf] }
 0x199   : > { %v3919_v20 = vadd.f32 %v15795_v53, %v15715_v12  ;;  %v16046_v50 = vcombine.low %v2683_v18, %v2693_v3  ;;  %v2703_v2 = vsel %vm13960_vm7, %v2698_v13, %v20251_v54  ;;  %v16054_v51 = vadd.f32 %v15752_v21, %v3916_v34  ;;  %v16056_v60 = vpop.f32.mrf.mxu1  ;;  %v16058_v9 = vpop.f32.mrf.mxu0  ;;  %v20266_v21 = vld [vmem:[#allocation112_spill] sm:$0xff] }
 0x19a   : > { %v4412_v5 = vsel %vm13358_vm4, %v4410_v1, %v4411_v30  ;;  %v16062_v12 = vadd.f32 %v15626_v45, %v15065_v36  ;;  %v16064_v53 = vcombine.low %v2703_v2, %v2713_v58  ;;  %v20267_v28 = vshrl.u32 %v20266_v21, 16  ;;  %v12957_v36 = vld [vmem:[%s13070_s25 + $0x20c] sm:$0xf]  ;;  %v333_v58 = vld [vmem:[%s13070_s25 + $0x218] sm:$0x1] }
 0x19b   : > { %20261 = vst [vmem:[#allocation137_spill] sm:$0xff] %v16046_v50  ;;  %20262 = vst [vmem:[#allocation110_spill] sm:$0xff] %v16054_v51  ;;  %v16066_v39 = vcombine.low %v4409_v4, %v4412_v5  ;;  %v16069_v54 = vadd.f32 %v15777_v6, %v3919_v20  ;;  %11815 = vmatprep.mubr.msk.bf16.mxu1 %vm697_vm1, %v16046_v50  ;;  %v20268_v22 = vshll.u32 %v20266_v21, 16  ;;  %v2724_v42 = vshll.u32 %v12957_v36, 16  ;;  %v16080_v4 = vpop.f32.mrf.mxu1  ;;  %v16082_v23 = vpop.f32.mrf.mxu0  ;;  %v12958_v6 = vld [vmem:[%s13070_s25 + $0x210] sm:$0xf] }
 0x19c   : > { %20263 = vst [vmem:[#allocation328_spill] sm:$0xff] %v16064_v53  ;;  %v2717_v10 = vrot.slane %v20267_v28, 4  ;;  %v20269_v18 = vshrl.u32 %v14851_v27, 16  ;;  %20270 = vst [vmem:[#allocation112_spill] sm:$0xff] %v16082_v23  ;;  %11816 = vmatmul.mubr.msk.bf16.gmra.mxu1 %vm697_vm1, %v16064_v53  ;;  %v2734_v13 = vshll.u32 %v12958_v6, 16  ;;  %v10456_v1 = vrot.slane %v12959_v14, 9 }
 0x19d   : > { %20264 = vst [vmem:[#allocation329_spill] sm:$0xff] %v16066_v39  ;;  %20265 = vst [vmem:[#allocation330_spill] sm:$0xff] %v16069_v54  ;;  %v2720_v34 = vrot.slane %v20268_v22, 5  ;;  %11946 = vmatmul.mubr.msk.bf16.gmra.mxu0 %vm697_vm1, %v16066_v39  ;;  %v4415_v30 = vrot.slane %v12957_v36, 5  ;;  %v4418_v3 = vrot.slane %v12958_v6, 5  ;;  %v2726_v27 = vrot.slane %v2724_v42, 5  ;;  %v16095_v21 = vpop.f32.mrf.mxu1  ;;  %v16097_v28 = vpop.f32.mrf.mxu0 }
 0x19e   : > { %v2730_v62 = vrot.slane %v20269_v18, 4  ;;  %v3922_v2 = vadd.f32 %v15824_v33, %v15736_v17  ;;  %v2751_v5 = vor.u32 %v15089_v63, %v15059_v56  ;;  %20271 = vst [vmem:[#allocation331_spill] sm:$0xff] %v16095_v21  ;;  %v2736_v22 = vrot.slane %v2734_v13, 5  ;;  %v20276_v21 = vld [vmem:[#allocation109_spill] sm:$0xff] }
 0x19f   : > { %v2721_v20 = vor.u32 %v2720_v34, %v2717_v10  ;;  %v4416_v18 = vsel %vm13358_vm4, %v10456_v1, %v4415_v30  ;;  %v4417_v14 = vrot.slane %v4415_v30, 4  ;;  %v4420_v36 = vrot.slane %v4418_v3, 4  ;;  %v16101_v42 = vpop.f32.mrf.mxu1  ;;  %v16103_v17 = vpop.f32.mrf.mxu0 }
 0x1a0   : > { %v2731_v39 = vor.u32 %v2730_v62, %v2726_v27  ;;  %v2752_v10 = vrot.slane %v2751_v5, 4  ;;  %v2754_v34 = vshll.u32 %v333_v58, 16  ;;  %v2741_v63 = vor.u32 %v15050_v19, %v2736_v22 }
 0x1a1   : > { %v2722_v6 = vrot.slane %v2721_v20, 4  ;;  %v4419_v33 = vsel %vm13358_vm4, %v4417_v14, %v4418_v3  ;;  %v16109_v13 = vadd.f32 %v15811_v52, %v3922_v2  ;;  %v20273_v1 = vrot.slane %v14945_v25, 5  ;;  %v16119_v23 = vpop.f32.mrf.mxu1  ;;  %v16121_v19 = vpop.f32.mrf.mxu0 }
 0x1a2   : > { %v2732_v20 = vrot.slane %v2731_v39, 4  ;;  %v16117_v5 = vcombine.low %v4416_v18, %v4419_v33  ;;  %v2756_v46 = vrot.slane %v2754_v34, 5  ;;  %v2742_v3 = vrot.slane %v2741_v63, 4  ;;  %v20278_v18 = vld [vmem:[#allocation106_spill] sm:$0xff]  ;;  %v20281_v34 = vld [vmem:[#allocation119_spill] sm:$0xff] }
 0x1a3   : > { %20272 = vst [vmem:[#allocation332_spill] sm:$0xff] %v16109_v13  ;;  %v4422_v30 = vsel %vm13358_vm4, %v4420_v36, %v20273_v1  ;;  %v2727_v62 = vsel %vm13960_vm7, %v2722_v6, %v2726_v27  ;;  %v20275_v52 = vmov %v20273_v1  ;;  %v4424_v14 = vrot.slane %v333_v58, 5  ;;  %v20277_v36 = vld [vmem:[#allocation224_spill] sm:$0xff]  ;;  %v16139_v58 = vpop.f32.mrf.mxu1 }
 0x1a4   : > { %20274 = vst [vmem:[#allocation333_spill] sm:$0xff] %v16117_v5  ;;  %v4423_v2 = vrot.slane %v20275_v52, 4  ;;  %v3920_v13 = vadd.f32 %v15836_v44, %v20276_v21  ;;  %v16129_v1 = vadd.f32 %v20277_v36, %v15626_v45  ;;  %v2737_v39 = vsel %vm13960_vm7, %v2732_v20, %v2736_v22  ;;  %11949 = vmatprep.mubr.msk.bf16.mxu0 %vm697_vm1, %v16117_v5  ;;  %v16141_v44 = vpop.f32.mrf.mxu0  ;;  %v12960_v36 = vld [vmem:[%s13070_s25 + $0x220] sm:$0xf] }
 0x1a5   : > { %v2757_v27 = vsel %vm13960_vm7, %v2752_v10, %v2756_v46  ;;  %v3923_v25 = vadd.f32 %v15865_v15, %v20278_v18  ;;  %20279 = vst [vmem:[#allocation109_spill] sm:$0xff] %v16141_v44  ;;  %v16143_v21 = vcombine.low %v2727_v62, %v2737_v39  ;;  %v2747_v22 = vsel %vm13960_vm7, %v2742_v3, %v15059_v56  ;;  %v20283_v15 = vld [vmem:[#allocation232_spill] sm:$0xff]  ;;  %v16164_v56 = vpop.f32.mrf.mxu1  ;;  %v20291_v39 = vld [vmem:[#allocation230_spill] sm:$0xff] }
 0x1a6   : > { %v4425_v6 = vsel %vm13358_vm4, %v4423_v2, %v4424_v14  ;;  %v16151_v46 = vadd.f32 %v20281_v34, %v3920_v13  ;;  %v16155_v10 = vadd.f32 %v20283_v15, %v15626_v45  ;;  %v16157_v63 = vcombine.low %v2747_v22, %v2757_v27  ;;  %20287 = vst [vmem:[#allocation335_spill] sm:$0xff] %v16164_v56  ;;  %v16166_v20 = vpop.f32.mrf.mxu0  ;;  %v20288_v13 = vld [vmem:[#allocation229_spill] sm:$0xff]  ;;  %v12961_v18 = vld [vmem:[%s13070_s25 + $0x224] sm:$0xf] }
 0x1a7   : > { %20280 = vst [vmem:[#allocation224_spill] sm:$0xff] %v16143_v21  ;;  %v16159_v33 = vcombine.low %v4422_v30, %v4425_v6  ;;  %v16162_v62 = vadd.f32 %v15838_v0, %v3923_v25  ;;  %11819 = vmatprep.mubr.msk.bf16.mxu1 %vm697_vm1, %v16143_v21  ;;  %v20289_v3 = vshrl.u32 %v20288_v13, 16  ;;  %v20290_v2 = vshll.u32 %v20288_v13, 16  ;;  %v12962_v22 = vld [vmem:[%s13070_s25 + $0x21c] sm:$0xf]  ;;  %v16184_v13 = vpop.f32.mrf.mxu1  ;;  %v20294_v56 = vld [vmem:[#allocation38_spill] sm:$0xff] }
 0x1a8   : > { %20282 = vst [vmem:[#allocation106_spill] sm:$0xff] %v16151_v46  ;;  %20284 = vst [vmem:[#allocation119_spill] sm:$0xff] %v16157_v63  ;;  %v2768_v30 = vshll.u32 %v12960_v36, 16  ;;  %v20292_v27 = vshrl.u32 %v20291_v39, 16  ;;  %11820 = vmatmul.mubr.msk.bf16.gmra.mxu1 %vm697_vm1, %v16157_v63  ;;  %v2778_v25 = vshll.u32 %v12961_v18, 16  ;;  %v10457_v6 = vrot.slane %v12962_v22, 9 }
 0x1a9   : > { %20285 = vst [vmem:[#allocation232_spill] sm:$0xff] %v16159_v33  ;;  %20286 = vst [vmem:[#allocation334_spill] sm:$0xff] %v16162_v62  ;;  %v2761_v52 = vrot.slane %v20289_v3, 4  ;;  %v2764_v14 = vrot.slane %v20290_v2, 5  ;;  %11950 = vmatmul.mubr.msk.bf16.gmra.mxu0 %vm697_vm1, %v16159_v33  ;;  %v4428_v34 = vrot.slane %v12960_v36, 5  ;;  %v4431_v15 = vrot.slane %v12961_v18, 5  ;;  %v16186_v2 = vpop.f32.mrf.mxu0  ;;  %v16194_v18 = vpop.f32.mrf.mxu1 }
 0x1aa   : > { %v2774_v0 = vrot.slane %v20292_v27, 4  ;;  %v338_v3 = vld [vmem:[%s13070_s25 + $0x22c] sm:$0x1]  ;;  %v2770_v39 = vrot.slane %v2768_v30, 5  ;;  %v20293_v27 = vld [vmem:[#allocation310_spill] sm:$0xff]  ;;  %v20295_v62 = vld [vmem:[#allocation236_spill] sm:$0xff] }
 0x1ab   : > { %v2765_v5 = vor.u32 %v2764_v14, %v2761_v52  ;;  %v3926_v44 = vadd.f32 %v15905_v7, %v20293_v27  ;;  %v2795_v46 = vor.u32 %v20295_v62, %v20294_v56  ;;  %v2780_v33 = vrot.slane %v2778_v25, 5  ;;  %v16196_v51 = vpop.f32.mrf.mxu0  ;;  %v20296_v30 = vld [vmem:[#allocation5_spill] sm:$0xff]  ;;  %v16208_v27 = vpop.f32.mrf.mxu1 }
 0x1ac   : > { %v4429_v54 = vsel %vm13358_vm4, %v10457_v6, %v4428_v34  ;;  %v4430_v22 = vrot.slane %v4428_v34, 4  ;;  %v4433_v36 = vrot.slane %v4431_v15, 4  ;;  %v2775_v21 = vor.u32 %v2774_v0, %v2770_v39  ;;  %v20298_v25 = vld [vmem:[#allocation233_spill] sm:$0xff] }
 0x1ad   : > { %v2766_v63 = vrot.slane %v2765_v5, 4  ;;  %v2796_v52 = vrot.slane %v2795_v46, 4  ;;  %v2798_v14 = vshll.u32 %v338_v3, 16  ;;  %v2785_v53 = vor.u32 %v20296_v30, %v2780_v33  ;;  %v16210_v50 = vpop.f32.mrf.mxu0 }
 0x1ae   : > { %v4432_v7 = vsel %vm13358_vm4, %v4430_v22, %v4431_v15  ;;  %v16202_v62 = vadd.f32 %v15892_v40, %v3926_v44  ;;  %v20299_v6 = vrot.slane %v20298_v25, 5  ;;  %20300 = vst [vmem:[#allocation230_spill] sm:$0xff] %v16210_v50  ;;  %v2776_v46 = vrot.slane %v2775_v21, 4  ;;  %v20305_v50 = vld [vmem:[#allocation28_spill] sm:$0xff]  ;;  %v20306_v21 = vld [vmem:[#allocation75_spill] sm:$0xff] }
 0x1af   : > { %v2771_v5 = vsel %vm13960_vm7, %v2766_v63, %v2770_v39  ;;  %v16214_v0 = vcombine.low %v4429_v54, %v4432_v7  ;;  %v2800_v30 = vrot.slane %v2798_v14, 5  ;;  %v2786_v15 = vrot.slane %v2785_v53, 4 }
 0x1b0   : > { %20297 = vst [vmem:[#allocation229_spill] sm:$0xff] %v16202_v62  ;;  %v4435_v34 = vsel %vm13358_vm4, %v4433_v36, %v20299_v6  ;;  %v20302_v40 = vmov %v20299_v6  ;;  %v4437_v22 = vrot.slane %v338_v3, 5  ;;  %v20303_v62 = vld [vmem:[#allocation311_spill] sm:$0xff]  ;;  %v16220_v36 = vpop.f32.mrf.mxu1  ;;  %v16222_v6 = vpop.f32.mrf.mxu0  ;;  %v16226_v61 = vadd.f32 %v15626_v45, %v20305_v50 }
 0x1b1   : > { %20301 = vst [vmem:[#allocation310_spill] sm:$0xff] %v16214_v0  ;;  %v4436_v44 = vrot.slane %v20302_v40, 4  ;;  %v3924_v57 = vadd.f32 %v15911_v31, %v20303_v62  ;;  %20304 = vst [vmem:[#allocation38_spill] sm:$0xff] %v16220_v36  ;;  %v2781_v54 = vsel %vm13960_vm7, %v2776_v46, %v2780_v33  ;;  %11953 = vmatprep.mubr.msk.bf16.mxu0 %vm697_vm1, %v16214_v0  ;;  %v20317_v40 = vld [vmem:[#allocation240_spill] sm:$0xff]  ;;  %v20322_v0 = vld [vmem:[#allocation254_spill] sm:$0xff] }
 0x1b2   : > { %v2801_v53 = vsel %vm13960_vm7, %v2796_v52, %v2800_v30  ;;  %v3927_v31 = vadd.f32 %v15929_v59, %v20306_v21  ;;  %v16236_v63 = vcombine.low %v2771_v5, %v2781_v54  ;;  %v2791_v50 = vsel %vm13960_vm7, %v2786_v15, %v20294_v56  ;;  %v16246_v39 = vpop.f32.mrf.mxu1  ;;  %v16248_v14 = vpop.f32.mrf.mxu0  ;;  %v20310_v52 = vld [vmem:[#allocation36_spill] sm:$0xff] }
 0x1b3   : > { %v4438_v3 = vsel %vm13358_vm4, %v4436_v44, %v4437_v22  ;;  %v16244_v33 = vadd.f32 %v15907_v16, %v3924_v57  ;;  %20309 = vst [vmem:[#allocation233_spill] sm:$0xff] %v16248_v14  ;;  %v16252_v59 = vadd.f32 %v20310_v52, %v15626_v45  ;;  %v16254_v7 = vcombine.low %v2791_v50, %v2801_v53  ;;  %v20314_v16 = vld [vmem:[#allocation239_spill] sm:$0xff]  ;;  %v12963_v30 = vld [vmem:[%s13070_s25 + $0x234] sm:$0xf]  ;;  %v12965_v21 = vld [vmem:[%s13070_s25 + $0x230] sm:$0xf] }
 0x1b4   : > { %20307 = vst [vmem:[#allocation236_spill] sm:$0xff] %v16236_v63  ;;  %v16256_v62 = vcombine.low %v4435_v34, %v4438_v3  ;;  %v16259_v56 = vadd.f32 %v15913_v47, %v3927_v31  ;;  %11823 = vmatprep.mubr.msk.bf16.mxu1 %vm697_vm1, %v16236_v63  ;;  %v20315_v57 = vshrl.u32 %v20314_v16, 16  ;;  %v20316_v5 = vshll.u32 %v20314_v16, 16  ;;  %v16270_v34 = vpop.f32.mrf.mxu1  ;;  %v16272_v54 = vpop.f32.mrf.mxu0  ;;  %v12964_v47 = vld [vmem:[%s13070_s25 + $0x238] sm:$0xf] }
 0x1b5   : > { %20308 = vst [vmem:[#allocation5_spill] sm:$0xff] %v16244_v33  ;;  %20311 = vst [vmem:[#allocation311_spill] sm:$0xff] %v16254_v7  ;;  %v2812_v15 = vshll.u32 %v12963_v30, 16  ;;  %v20318_v44 = vshrl.u32 %v20317_v40, 16  ;;  %11824 = vmatmul.mubr.msk.bf16.gmra.mxu1 %vm697_vm1, %v16254_v7  ;;  %v2822_v53 = vshll.u32 %v12964_v47, 16  ;;  %v10458_v31 = vrot.slane %v12965_v21, 9 }
 0x1b6   : > { %20312 = vst [vmem:[#allocation28_spill] sm:$0xff] %v16256_v62  ;;  %20313 = vst [vmem:[#allocation75_spill] sm:$0xff] %v16259_v56  ;;  %v2805_v25 = vrot.slane %v20315_v57, 4  ;;  %v2808_v46 = vrot.slane %v20316_v5, 5  ;;  %11954 = vmatmul.mubr.msk.bf16.gmra.mxu0 %vm697_vm1, %v16256_v62  ;;  %v4441_v50 = vrot.slane %v12963_v30, 5  ;;  %v4444_v3 = vrot.slane %v12964_v47, 5  ;;  %v16285_v56 = vpop.f32.mrf.mxu1  ;;  %v16287_v33 = vpop.f32.mrf.mxu0 }
 0x1b7   : > { %v2818_v22 = vrot.slane %v20318_v44, 4  ;;  %20319 = vst [vmem:[#allocation36_spill] sm:$0xff] %v16272_v54  ;;  %v343_v52 = vld [vmem:[%s13070_s25 + $0x240] sm:$0x1]  ;;  %v2814_v57 = vrot.slane %v2812_v15, 5  ;;  %20323 = vst [vmem:[#allocation239_spill] sm:$0xff] %v16287_v33 }
 0x1b8   : > { %v2809_v16 = vor.u32 %v2808_v46, %v2805_v25  ;;  %v20320_v5 = vld [vmem:[#allocation314_spill] sm:$0xff]  ;;  %v2824_v62 = vrot.slane %v2822_v53, 5  ;;  %v4442_v7 = vsel %vm13358_vm4, %v10458_v31, %v4441_v50  ;;  %v4443_v21 = vrot.slane %v4441_v50, 4  ;;  %v16291_v15 = vpop.f32.mrf.mxu1  ;;  %v20328_v33 = vld [vmem:[#allocation245_spill] sm:$0xff] }
 0x1b9   : > { %v3930_v40 = vadd.f32 %v15974_v29, %v20320_v5  ;;  %v20321_v44 = vld [vmem:[#allocation250_spill] sm:$0xff]  ;;  %v4446_v30 = vrot.slane %v4444_v3, 4  ;;  %v2819_v63 = vor.u32 %v2818_v22, %v2814_v57  ;;  %v2842_v46 = vshll.u32 %v343_v52, 16  ;;  %20324 = vst [vmem:[#allocation240_spill] sm:$0xff] %v16291_v15  ;;  %v16293_v29 = vpop.f32.mrf.mxu0  ;;  %v20326_v5 = vld [vmem:[#allocation249_spill] sm:$0xff] }
 0x1ba   : > { %v2839_v36 = vor.u32 %v20322_v0, %v20321_v44  ;;  %v2810_v47 = vrot.slane %v2809_v16, 4  ;;  %20325 = vst [vmem:[#allocation314_spill] sm:$0xff] %v16293_v29  ;;  %v2829_v0 = vor.u32 %v20326_v5, %v2824_v62  ;;  %v4445_v54 = vsel %vm13358_vm4, %v4443_v21, %v4444_v3  ;;  %v16309_v29 = vpop.f32.mrf.mxu1 }
 0x1bb   : > { %v16299_v53 = vadd.f32 %v15951_v37, %v3930_v40  ;;  %v20329_v31 = vrot.slane %v20328_v33, 5  ;;  %v2820_v22 = vrot.slane %v2819_v63, 4  ;;  %v16307_v16 = vcombine.low %v4442_v7, %v4445_v54  ;;  %v16311_v5 = vpop.f32.mrf.mxu0  ;;  %v20334_v54 = vld [vmem:[#allocation86_spill] sm:$0xff] }
 0x1bc   : > { %v2840_v25 = vrot.slane %v2839_v36, 4  ;;  %v2815_v36 = vsel %vm13960_vm7, %v2810_v47, %v2814_v57  ;;  %v2844_v15 = vrot.slane %v2842_v46, 5  ;;  %v2830_v3 = vrot.slane %v2829_v0, 4  ;;  %v20338_v46 = vld [vmem:[#allocation242_spill] sm:$0xff] }
 0x1bd   : > { %20327 = vst [vmem:[#allocation250_spill] sm:$0xff] %v16299_v53  ;;  %v4448_v50 = vsel %vm13358_vm4, %v4446_v30, %v20329_v31  ;;  %20330 = vst [vmem:[#allocation254_spill] sm:$0xff] %v16307_v16  ;;  %v20331_v37 = vmov %v20329_v31  ;;  %v4450_v21 = vrot.slane %v343_v52, 5  ;;  %v20332_v53 = vld [vmem:[#allocation118_spill] sm:$0xff]  ;;  %v2825_v63 = vsel %vm13960_vm7, %v2820_v22, %v2824_v62  ;;  %11957 = vmatprep.mubr.msk.bf16.mxu0 %vm697_vm1, %v16307_v16  ;;  %v16329_v52 = vpop.f32.mrf.mxu1 }
 0x1be   : > { %v4449_v40 = vrot.slane %v20331_v37, 4  ;;  %v3928_v14 = vadd.f32 %v15994_v32, %v20332_v53  ;;  %v20333_v30 = vld [vmem:[#allocation238_spill] sm:$0xff]  ;;  %v2845_v7 = vsel %vm13960_vm7, %v2840_v25, %v2844_v15  ;;  %v3931_v33 = vadd.f32 %v16004_v48, %v20334_v54  ;;  %v16331_v32 = vpop.f32.mrf.mxu0 }
 0x1bf   : > { %v16319_v31 = vadd.f32 %v20333_v30, %v15626_v45  ;;  %20335 = vst [vmem:[#allocation249_spill] sm:$0xff] %v16331_v32  ;;  %v16333_v57 = vcombine.low %v2815_v36, %v2825_v63  ;;  %v2835_v62 = vsel %vm13960_vm7, %v2830_v3, %v20321_v44  ;;  %v16345_v48 = vadd.f32 %v15626_v45, %v20338_v46  ;;  %v16354_v44 = vpop.f32.mrf.mxu1  ;;  %v12967_v63 = vld [vmem:[%s13070_s25 + $0x24c] sm:$0xf]  ;;  %v12968_v54 = vld [vmem:[%s13070_s25 + $0x244] sm:$0xf] }
 0x1c0   : > { %v4451_v47 = vsel %vm13358_vm4, %v4449_v40, %v4450_v21  ;;  %v16341_v25 = vadd.f32 %v15976_v8, %v3928_v14  ;;  %v16347_v15 = vcombine.low %v2835_v62, %v2845_v7  ;;  %v16352_v53 = vadd.f32 %v15996_v38, %v3931_v33  ;;  %v16356_v36 = vpop.f32.mrf.mxu0  ;;  %v20343_v8 = vld [vmem:[#allocation255_spill] sm:$0xff]  ;;  %v20346_v21 = vld [vmem:[#allocation262_spill] sm:$0xff]  ;;  %v348_v46 = vld [vmem:[%s13070_s25 + $0x254] sm:$0x1] }
 0x1c1   : > { %20336 = vst [vmem:[#allocation245_spill] sm:$0xff] %v16333_v57  ;;  %v16349_v0 = vcombine.low %v4448_v50, %v4451_v47  ;;  %20342 = vst [vmem:[#allocation336_spill] sm:$0xff] %v16356_v36  ;;  %11827 = vmatprep.mubr.msk.bf16.mxu1 %vm697_vm1, %v16333_v57  ;;  %v20344_v14 = vshrl.u32 %v20343_v8, 16  ;;  %v20345_v3 = vshll.u32 %v20343_v8, 16  ;;  %v12966_v40 = vld [vmem:[%s13070_s25 + $0x248] sm:$0xf]  ;;  %v16374_v8 = vpop.f32.mrf.mxu1 }
 0x1c2   : > { %20337 = vst [vmem:[#allocation118_spill] sm:$0xff] %v16341_v25  ;;  %20339 = vst [vmem:[#allocation238_spill] sm:$0xff] %v16347_v15  ;;  %v2856_v50 = vshll.u32 %v12966_v40, 16  ;;  %v20347_v30 = vshrl.u32 %v20346_v21, 16  ;;  %11828 = vmatmul.mubr.msk.bf16.gmra.mxu1 %vm697_vm1, %v16347_v15  ;;  %v2866_v7 = vshll.u32 %v12967_v63, 16  ;;  %v10459_v33 = vrot.slane %v12968_v54, 9 }
 0x1c3   : > { %20340 = vst [vmem:[#allocation86_spill] sm:$0xff] %v16349_v0  ;;  %20341 = vst [vmem:[#allocation242_spill] sm:$0xff] %v16352_v53  ;;  %v2849_v22 = vrot.slane %v20344_v14, 4  ;;  %v2852_v37 = vrot.slane %v20345_v3, 5  ;;  %11958 = vmatmul.mubr.msk.bf16.gmra.mxu0 %vm697_vm1, %v16349_v0  ;;  %v4454_v62 = vrot.slane %v12966_v40, 5  ;;  %v4457_v47 = vrot.slane %v12967_v63, 5  ;;  %v16376_v14 = vpop.f32.mrf.mxu0  ;;  %v16384_v63 = vpop.f32.mrf.mxu1 }
 0x1c4   : > { %v2862_v38 = vrot.slane %v20347_v30, 4  ;;  %20348 = vst [vmem:[#allocation255_spill] sm:$0xff] %v16374_v8  ;;  %20349 = vst [vmem:[#allocation262_spill] sm:$0xff] %v16376_v14  ;;  %v2858_v21 = vrot.slane %v2856_v50, 5  ;;  %v20350_v30 = vld [vmem:[#allocation316_spill] sm:$0xff]  ;;  %v20351_v36 = vld [vmem:[#allocation267_spill] sm:$0xff] }
 0x1c5   : > { %v2853_v3 = vor.u32 %v2852_v37, %v2849_v22  ;;  %v3934_v16 = vadd.f32 %v16030_v24, %v20350_v30  ;;  %v20352_v53 = vld [vmem:[#allocation272_spill] sm:$0xff]  ;;  %v2868_v0 = vrot.slane %v2866_v7, 5  ;;  %v4455_v15 = vsel %vm13358_vm4, %v10459_v33, %v4454_v62  ;;  %20353 = vst [vmem:[#allocation316_spill] sm:$0xff] %v16384_v63  ;;  %v16386_v57 = vpop.f32.mrf.mxu0  ;;  %v20355_v50 = vld [vmem:[#allocation263_spill] sm:$0xff]  ;;  %v16398_v30 = vpop.f32.mrf.mxu1 }
 0x1c6   : > { %v2883_v25 = vor.u32 %v20352_v53, %v20351_v36  ;;  %v4456_v54 = vrot.slane %v4454_v62, 4  ;;  %v4459_v40 = vrot.slane %v4457_v47, 4  ;;  %20354 = vst [vmem:[#allocation267_spill] sm:$0xff] %v16386_v57  ;;  %v2863_v14 = vor.u32 %v2862_v38, %v2858_v21  ;;  %v20357_v7 = vld [vmem:[#allocation260_spill] sm:$0xff]  ;;  %20359 = vst [vmem:[#allocation263_spill] sm:$0xff] %v16398_v30 }
 0x1c7   : > { %v2854_v8 = vrot.slane %v2853_v3, 4  ;;  %v2886_v37 = vshll.u32 %v348_v46, 16  ;;  %v2873_v32 = vor.u32 %v20355_v50, %v2868_v0  ;;  %v16392_v53 = vadd.f32 %v16020_v26, %v3934_v16  ;;  %v16400_v57 = vpop.f32.mrf.mxu0 }
 0x1c8   : > { %v2884_v22 = vrot.slane %v2883_v25, 4  ;;  %v4458_v24 = vsel %vm13358_vm4, %v4456_v54, %v4457_v47  ;;  %v20358_v33 = vrot.slane %v20357_v7, 5  ;;  %20360 = vst [vmem:[#allocation260_spill] sm:$0xff] %v16400_v57  ;;  %v2864_v38 = vrot.slane %v2863_v14, 4  ;;  %v20365_v57 = vld [vmem:[#allocation244_spill] sm:$0xff] }
 0x1c9   : > { %20356 = vst [vmem:[#allocation272_spill] sm:$0xff] %v16392_v53  ;;  %v2859_v25 = vsel %vm13960_vm7, %v2854_v8, %v2858_v21  ;;  %v16404_v3 = vcombine.low %v4455_v15, %v4458_v24  ;;  %v2888_v50 = vrot.slane %v2886_v37, 5  ;;  %v2874_v47 = vrot.slane %v2873_v32, 4  ;;  %v20363_v53 = vld [vmem:[#allocation317_spill] sm:$0xff] }
 0x1ca   : > { %v4461_v62 = vsel %vm13358_vm4, %v4459_v40, %v20358_v33  ;;  %v20362_v26 = vmov %v20358_v33  ;;  %v4463_v54 = vrot.slane %v348_v46, 5  ;;  %v3932_v63 = vadd.f32 %v16056_v60, %v20363_v53  ;;  %v16410_v40 = vpop.f32.mrf.mxu1  ;;  %v16412_v33 = vpop.f32.mrf.mxu0  ;;  %v20366_v46 = vld [vmem:[#allocation320_spill] sm:$0xff] }
 0x1cb   : > { %20361 = vst [vmem:[#allocation337_spill] sm:$0xff] %v16404_v3  ;;  %v4462_v16 = vrot.slane %v20362_v26, 4  ;;  %20364 = vst [vmem:[#allocation317_spill] sm:$0xff] %v16412_v33  ;;  %v16416_v30 = vadd.f32 %v20365_v57, %v15626_v45  ;;  %v2869_v15 = vsel %vm13960_vm7, %v2864_v38, %v2868_v0  ;;  %11961 = vmatprep.mubr.msk.bf16.mxu0 %vm697_vm1, %v16404_v3 }
 0x1cc   : > { %v2889_v32 = vsel %vm13960_vm7, %v2884_v22, %v2888_v50  ;;  %v3935_v60 = vadd.f32 %v16080_v4, %v20366_v46  ;;  %v16426_v8 = vcombine.low %v2859_v25, %v2869_v15  ;;  %v2879_v57 = vsel %vm13960_vm7, %v2874_v47, %v20351_v36  ;;  %v16436_v21 = vpop.f32.mrf.mxu1  ;;  %v16438_v37 = vpop.f32.mrf.mxu0  ;;  %v20370_v22 = vld [vmem:[#allocation60_spill] sm:$0xff]  ;;  %v20377_v47 = vld [vmem:[#allocation277_spill] sm:$0xff] }
 0x1cd   : > { %v4464_v14 = vsel %vm13358_vm4, %v4462_v16, %v4463_v54  ;;  %v16434_v0 = vadd.f32 %v16032_v55, %v3932_v63  ;;  %20369 = vst [vmem:[#allocation338_spill] sm:$0xff] %v16436_v21  ;;  %v16442_v4 = vadd.f32 %v20370_v22, %v15626_v45  ;;  %v16444_v24 = vcombine.low %v2879_v57, %v2889_v32  ;;  %v20374_v55 = vld [vmem:[#allocation273_spill] sm:$0xff] }
 0x1ce   : > { %20367 = vst [vmem:[#allocation244_spill] sm:$0xff] %v16426_v8  ;;  %v16446_v53 = vcombine.low %v4461_v62, %v4464_v14  ;;  %v16449_v36 = vadd.f32 %v16058_v9, %v3935_v60  ;;  %11831 = vmatprep.mubr.msk.bf16.mxu1 %vm697_vm1, %v16426_v8  ;;  %v20375_v63 = vshrl.u32 %v20374_v55, 16  ;;  %v20376_v25 = vshll.u32 %v20374_v55, 16  ;;  %v12969_v45 = vld [vmem:[%s13070_s25 + $0x25c] sm:$0xf]  ;;  %v16460_v62 = vpop.f32.mrf.mxu1  ;;  %v16462_v54 = vpop.f32.mrf.mxu0  ;;  %v20386_v8 = vld [vmem:[#allocation278_spill] sm:$0xff] }
 0x1cf   : > { %20368 = vst [vmem:[#allocation320_spill] sm:$0xff] %v16434_v0  ;;  %20371 = vst [vmem:[#allocation60_spill] sm:$0xff] %v16444_v24  ;;  %v2900_v50 = vshll.u32 %v12969_v45, 16  ;;  %v20378_v26 = vshrl.u32 %v20377_v47, 16  ;;  %11832 = vmatmul.mubr.msk.bf16.gmra.mxu1 %vm697_vm1, %v16444_v24  ;;  %v12970_v9 = vld [vmem:[%s13070_s25 + $0x260] sm:$0xf] }
 0x1d0   : > { %20372 = vst [vmem:[#allocation339_spill] sm:$0xff] %v16446_v53  ;;  %20373 = vst [vmem:[#allocation340_spill] sm:$0xff] %v16449_v36  ;;  %v2893_v7 = vrot.slane %v20375_v63, 4  ;;  %v2896_v38 = vrot.slane %v20376_v25, 5  ;;  %11962 = vmatmul.mubr.msk.bf16.gmra.mxu0 %vm697_vm1, %v16446_v53  ;;  %v2910_v15 = vshll.u32 %v12970_v9, 16  ;;  %v4467_v60 = vrot.slane %v12969_v45, 5  ;;  %v16475_v33 = vpop.f32.mrf.mxu1  ;;  %v16477_v21 = vpop.f32.mrf.mxu0 }
 0x1d1   : > { %v2906_v16 = vrot.slane %v20378_v26, 4  ;;  %v12971_v32 = vld [vmem:[%s13070_s25 + $0x258] sm:$0xf]  ;;  %v4470_v57 = vrot.slane %v12970_v9, 5  ;;  %v353_v14 = vld [vmem:[%s13070_s25 + $0x268] sm:$0x1] }
 0x1d2   : > { %v10460_v46 = vrot.slane %v12971_v32, 9  ;;  %v2897_v22 = vor.u32 %v2896_v38, %v2893_v7  ;;  %v2902_v55 = vrot.slane %v2900_v50, 5  ;;  %v20379_v63 = vld [vmem:[#allocation321_spill] sm:$0xff]  ;;  %20382 = vst [vmem:[#allocation273_spill] sm:$0xff] %v16477_v21  ;;  %v2912_v53 = vrot.slane %v2910_v15, 5  ;;  %v16481_v50 = vpop.f32.mrf.mxu1 }
 0x1d3   : > { %v3938_v25 = vadd.f32 %v16101_v42, %v20379_v63  ;;  %v20380_v47 = vld [vmem:[#allocation285_spill] sm:$0xff]  ;;  %v4469_v32 = vrot.slane %v4467_v60, 4  ;;  %v4472_v45 = vrot.slane %v4470_v57, 4  ;;  %v2930_v38 = vshll.u32 %v353_v14, 16  ;;  %v16483_v42 = vpop.f32.mrf.mxu0  ;;  %v20384_v63 = vld [vmem:[#allocation284_spill] sm:$0xff] }
 0x1d4   : > { %v20381_v26 = vld [vmem:[#allocation289_spill] sm:$0xff]  ;;  %v4468_v36 = vsel %vm13358_vm4, %v10460_v46, %v4467_v60  ;;  %v2898_v9 = vrot.slane %v2897_v22, 4  ;;  %v2907_v0 = vor.u32 %v2906_v16, %v2902_v55  ;;  %20383 = vst [vmem:[#allocation277_spill] sm:$0xff] %v16483_v42  ;;  %v20387_v46 = vrot.slane %v20386_v8, 5  ;;  %v16499_v21 = vpop.f32.mrf.mxu1 }
 0x1d5   : > { %v2927_v3 = vor.u32 %v20381_v26, %v20380_v47  ;;  %v2917_v26 = vor.u32 %v20384_v63, %v2912_v53  ;;  %v4471_v24 = vsel %vm13358_vm4, %v4469_v32, %v4470_v57  ;;  %v16489_v15 = vadd.f32 %v16097_v28, %v3938_v25  ;;  %20389 = vst [vmem:[#allocation289_spill] sm:$0xff] %v16499_v21 }
 0x1d6   : > { %v4474_v60 = vsel %vm13358_vm4, %v4472_v45, %v20387_v46  ;;  %v2908_v16 = vrot.slane %v2907_v0, 4  ;;  %v16497_v22 = vcombine.low %v4468_v36, %v4471_v24  ;;  %v2932_v42 = vrot.slane %v2930_v38, 5  ;;  %v20391_v0 = vld [vmem:[#allocation248_spill] sm:$0xff]  ;;  %v16524_v8 = vpop.f32.mrf.mxu1  ;;  %v20394_v38 = vld [vmem:[#allocation253_spill] sm:$0xff] }
 0x1d7   : > { %v2928_v7 = vrot.slane %v2927_v3, 4  ;;  %20385 = vst [vmem:[#allocation321_spill] sm:$0xff] %v16489_v15  ;;  %v2903_v3 = vsel %vm13960_vm7, %v2898_v9, %v2902_v55  ;;  %v2918_v63 = vrot.slane %v2917_v26, 4  ;;  %v20390_v57 = vmov %v20387_v46  ;;  %v16505_v15 = vpop.f32.mrf.mxu0  ;;  %v16510_v55 = vld [vmem:[%s19141_s2] ss:$0 sm:$0xff] }
 0x1d8   : > { %20388 = vst [vmem:[#allocation285_spill] sm:$0xff] %v16497_v22  ;;  %v4475_v32 = vrot.slane %v20390_v57, 4  ;;  %v4476_v28 = vrot.slane %v353_v14, 5  ;;  %v3936_v25 = vadd.f32 %v16119_v23, %v15939_v11  ;;  %v16514_v24 = vadd.f32 %v16510_v55, %v20391_v0  ;;  %11965 = vmatprep.mubr.msk.bf16.mxu0 %vm697_vm1, %v16497_v22  ;;  %v16549_v26 = vpop.f32.mrf.mxu1  ;;  %v12973_v57 = vld [vmem:[%s13070_s25 + $0x270] sm:$0xf]  ;;  %v20405_v22 = vld [vmem:[#allocation305_spill] sm:$0xff] }
 0x1d9   : > { %v2913_v36 = vsel %vm13960_vm7, %v2908_v16, %v2912_v53  ;;  %v2933_v11 = vsel %vm13960_vm7, %v2928_v7, %v2932_v42  ;;  %v3939_v23 = vadd.f32 %v16139_v58, %v15965_v49  ;;  %v2923_v45 = vsel %vm13960_vm7, %v2918_v63, %v20380_v47  ;;  %v16536_v7 = vpop.f32.mrf.mxu0 }
 0x1da   : > { %v16526_v14 = vcombine.low %v2903_v3, %v2913_v36  ;;  %v4477_v53 = vsel %vm13358_vm4, %v4475_v32, %v4476_v28  ;;  %v16534_v9 = vadd.f32 %v16103_v17, %v3936_v25  ;;  %v16540_v49 = vadd.f32 %v16510_v55, %v20394_v38  ;;  %v20398_v17 = vld [vmem:[#allocation290_spill] sm:$0xff]  ;;  %v358_v38 = vld [vmem:[%s13070_s25 + $0x27c] sm:$0x1] }
 0x1db   : > { %v16542_v58 = vcombine.low %v2923_v45, %v2933_v11  ;;  %v16544_v42 = vcombine.low %v4474_v60, %v4477_v53  ;;  %v16547_v47 = vadd.f32 %v16121_v19, %v3939_v23  ;;  %v20399_v46 = vshrl.u32 %v20398_v17, 16  ;;  %v20401_v28 = vld [vmem:[#allocation294_spill] sm:$0xff]  ;;  %v16560_v0 = vpop.f32.mrf.mxu0  ;;  %v12974_v19 = vld [vmem:[%s13070_s25 + $0x274] sm:$0xf]  ;;  %v12975_v11 = vld [vmem:[%s13070_s25 + $0x26c] sm:$0xf] }
 0x1dc   : > { %20392 = vst [vmem:[#allocation284_spill] sm:$0xff] %v16526_v14  ;;  %20393 = vst [vmem:[#allocation278_spill] sm:$0xff] %v16534_v9  ;;  %11835 = vmatprep.mubr.msk.bf16.mxu1 %vm697_vm1, %v16526_v14  ;;  %v20400_v16 = vshll.u32 %v20398_v17, 16  ;;  %v2944_v32 = vshll.u32 %v12973_v57, 16  ;;  %v20402_v60 = vshrl.u32 %v20401_v28, 16  ;;  %v2954_v36 = vshll.u32 %v12974_v19, 16  ;;  %v16569_v17 = vpop.f32.mrf.mxu1 }
 0x1dd   : > { %20395 = vst [vmem:[#allocation248_spill] sm:$0xff] %v16542_v58  ;;  %20396 = vst [vmem:[#allocation253_spill] sm:$0xff] %v16544_v42  ;;  %v2937_v3 = vrot.slane %v20399_v46, 4  ;;  %11836 = vmatmul.mubr.msk.bf16.gmra.mxu1 %vm697_vm1, %v16542_v58  ;;  %11966 = vmatmul.mubr.msk.bf16.gmra.mxu0 %vm697_vm1, %v16544_v42  ;;  %v10461_v23 = vrot.slane %v12975_v11, 9  ;;  %v4480_v45 = vrot.slane %v12973_v57, 5  ;;  %v4483_v53 = vrot.slane %v12974_v19, 5 }
 0x1de   : > { %20397 = vst [vmem:[#allocation341_spill] sm:$0xff] %v16547_v47  ;;  %v2940_v63 = vrot.slane %v20400_v16, 5  ;;  %v2950_v25 = vrot.slane %v20402_v60, 4  ;;  %20403 = vst [vmem:[#allocation290_spill] sm:$0xff] %v16560_v0  ;;  %v2946_v16 = vrot.slane %v2944_v32, 5  ;;  %v3942_v28 = vadd.f32 %v16184_v13, %v16036_v41  ;;  %v20404_v60 = vld [vmem:[#allocation304_spill] sm:$0xff]  ;;  %v16577_v11 = vpop.f32.mrf.mxu1 }
 0x1df   : > { %v2971_v21 = vor.u32 %v20405_v22, %v20404_v60  ;;  %v2956_v47 = vrot.slane %v2954_v36, 5  ;;  %v4481_v42 = vsel %vm13358_vm4, %v10461_v23, %v4480_v45  ;;  %v4482_v9 = vrot.slane %v4480_v45, 4  ;;  %20406 = vst [vmem:[#allocation294_spill] sm:$0xff] %v16577_v11  ;;  %v20409_v22 = vld [vmem:[#allocation300_spill] sm:$0xff]  ;;  %v20413_v11 = vld [vmem:[#allocation259_spill] sm:$0xff] }
 0x1e0   : > { %v2941_v46 = vor.u32 %v2940_v63, %v2937_v3  ;;  %v4485_v58 = vrot.slane %v4483_v53, 4  ;;  %v2951_v19 = vor.u32 %v2950_v25, %v2946_v16  ;;  %v2974_v0 = vshll.u32 %v358_v38, 16  ;;  %v16579_v3 = vpop.f32.mrf.mxu0  ;;  %v20408_v63 = vld [vmem:[#allocation295_spill] sm:$0xff] }
 0x1e1   : > { %v2972_v14 = vrot.slane %v2971_v21, 4  ;;  %20407 = vst [vmem:[#allocation304_spill] sm:$0xff] %v16579_v3  ;;  %v2961_v32 = vor.u32 %v20408_v63, %v2956_v47  ;;  %v4484_v41 = vsel %vm13358_vm4, %v4482_v9, %v4483_v53  ;;  %v16585_v13 = vadd.f32 %v16166_v20, %v3942_v28  ;;  %v16595_v3 = vpop.f32.mrf.mxu1 }
 0x1e2   : > { %v2942_v57 = vrot.slane %v2941_v46, 4  ;;  %v20410_v36 = vrot.slane %v20409_v22, 5  ;;  %v2952_v21 = vrot.slane %v2951_v19, 4  ;;  %v16593_v45 = vcombine.low %v4481_v42, %v4484_v41  ;;  %v20418_v22 = vld [vmem:[#allocation261_spill] sm:$0xff] }
 0x1e3   : > { %v2976_v46 = vrot.slane %v2974_v0, 5  ;;  %v2962_v63 = vrot.slane %v2961_v32, 4  ;;  %v4489_v20 = vrot.slane %v358_v38, 5  ;;  %v3940_v28 = vadd.f32 %v16194_v18, %v16062_v12  ;;  %v16613_v38 = vpop.f32.mrf.mxu1 }
 0x1e4   : > { %v4487_v23 = vsel %vm13358_vm4, %v4485_v58, %v20410_v36  ;;  %v2947_v25 = vsel %vm13960_vm7, %v2942_v57, %v2946_v16  ;;  %20411 = vst [vmem:[#allocation305_spill] sm:$0xff] %v16593_v45  ;;  %v20412_v9 = vmov %v20410_v36  ;;  %v1485_v58 = vadd.f32 %v16510_v55, %v20413_v11  ;;  %11969 = vmatprep.mubr.msk.bf16.mxu0 %vm697_vm1, %v16593_v45  ;;  %v16611_v57 = vpop.f32.mrf.mxu0  ;;  %v20419_v36 = vld [vmem:[#allocation271_spill] sm:$0xff]  ;;  %v20488_v45 = vld [vmem:[#allocation62_spill] sm:$0xff] }
 0x1e5   : > { %v4488_v53 = vrot.slane %v20412_v9, 4  ;;  %v2957_v16 = vsel %vm13960_vm7, %v2952_v21, %v2956_v47  ;;  %v2977_v42 = vsel %vm13960_vm7, %v2972_v14, %v2976_v46  ;;  %v3943_v0 = vadd.f32 %v16208_v27, %v16129_v1  ;;  %v20415_v14 = vld [vmem:[#allocation70_spill] sm:$0xff]  ;;  %v11770_v21 = vpop.f32.mrf.mxu1 }
 0x1e6   : > { %v16615_v12 = vcombine.low %v2947_v25, %v2957_v16  ;;  %v2967_v18 = vsel %vm13960_vm7, %v2962_v63, %v20404_v60  ;;  %v16623_v11 = vadd.f32 %v16186_v2, %v3940_v28  ;;  %v1483_v19 = vadd.f32 %v16510_v55, %v20415_v14  ;;  %v16634_v41 = vpop.f32.mrf.mxu0  ;;  %v20426_v16 = vld [vmem:[#allocation314_spill] sm:$0xff]  ;;  %v20429_v14 = vld [vmem:[#allocation263_spill] sm:$0xff] }
 0x1e7   : > { %v4490_v47 = vsel %vm13358_vm4, %v4488_v53, %v4489_v20  ;;  %v16627_v1 = vcombine.low %v2967_v18, %v2977_v42  ;;  %v16632_v32 = vadd.f32 %v16196_v51, %v3943_v0  ;;  %v1486_v60 = vadd.f32 %v16510_v55, %v20418_v22  ;;  %v20420_v51 = vld [vmem:[#allocation23_spill] sm:$0xff]  ;;  %v20423_v53 = vld [vmem:[#allocation233_spill] sm:$0xff] }
 0x1e8   : > { %20414 = vst [vmem:[#allocation295_spill] sm:$0xff] %v16615_v12  ;;  %v16629_v27 = vcombine.low %v4487_v23, %v4490_v47  ;;  %v1489_v25 = vadd.f32 %v16510_v55, %v20419_v36  ;;  %11839 = vmatprep.mubr.msk.bf16.mxu1 %vm697_vm1, %v16615_v12  ;;  %v3946_v2 = vadd.f32 %v16246_v39, %v16155_v10  ;;  %v11900_v10 = vpop.f32.mrf.mxu0  ;;  %v20421_v39 = vld [vmem:[#allocation9_spill] sm:$0xff]  ;;  %v16687_v36 = vpop.f32.mrf.mxu1  ;;  %v20807_v43 = vld [vmem:[#allocation304_spill] sm:$0xff] }
 0x1e9   : > { %20416 = vst [vmem:[#allocation300_spill] sm:$0xff] %v16627_v1  ;;  %v3944_v23 = vadd.f32 %v16270_v34, %v16226_v61  ;;  %v1487_v46 = vadd.f32 %v16510_v55, %v20420_v51  ;;  %11840 = vmatmul.mubr.msk.bf16.gmra.mxu1 %vm697_vm1, %v16627_v1  ;;  %v3947_v63 = vadd.f32 %v16285_v56, %v16252_v59  ;;  %v20422_v61 = vld [vmem:[#allocation147_spill] sm:$0xff]  ;;  %20430 = vst [vmem:[#allocation70_spill] sm:$0xff] %v16687_v36  ;;  %v20432_v51 = vld [vmem:[#allocation249_spill] sm:$0xff] }
 0x1ea   : > { %20417 = vst [vmem:[#allocation259_spill] sm:$0xff] %v16629_v27  ;;  %11970 = vmatmul.mubr.msk.bf16.gmra.mxu0 %vm697_vm1, %v16629_v27  ;;  %v3950_v9 = vadd.f32 %v16309_v29, %v16319_v31  ;;  %11975 = vmatprep.mubr.msk.bf16.mxu1 %vm697_vm1, %v20421_v39  ;;  %v16661_v34 = vadd.f32 %v16222_v6, %v3946_v2  ;;  %v20424_v59 = vld [vmem:[#allocation275_spill] sm:$0xff]  ;;  %v20425_v29 = vld [vmem:[#allocation36_spill] sm:$0xff]  ;;  %v20431_v2 = vld [vmem:[#allocation281_spill] sm:$0xff] }
 0x1eb   : > { %12105 = vmatprep.mubr.msk.bf16.mxu0 %vm697_vm1, %v20422_v61  ;;  %v16664_v20 = vadd.f32 %v20423_v53, %v3944_v23  ;;  %v3948_v28 = vadd.f32 %v16329_v52, %v16345_v48  ;;  %v1490_v56 = vadd.f32 %v16510_v55, %v20424_v59  ;;  %v16671_v31 = vadd.f32 %v20425_v29, %v3947_v63  ;;  %v20427_v6 = vld [vmem:[#allocation276_spill] sm:$0xff]  ;;  %v20435_v61 = vld [vmem:[#allocation267_spill] sm:$0xff]  ;;  %v20742_v36 = vld [vmem:[#allocation138_spill] sm:$0xff] }
 0x1ec   : > { %v16674_v42 = vadd.f32 %v20426_v16, %v3950_v9  ;;  %v3951_v0 = vadd.f32 %v16354_v44, %v16416_v30  ;;  %v1493_v18 = vadd.f32 %v16510_v55, %v20427_v6  ;;  %v20428_v52 = vld [vmem:[#allocation316_spill] sm:$0xff]  ;;  %v3952_v22 = vadd.f32 %v20429_v14, %v16514_v24  ;;  %v16697_v30 = vpop.f32.mrf.mxu0  ;;  %v20434_v9 = vld [vmem:[#allocation262_spill] sm:$0xff] }
 0x1ed   : > { %v16681_v47 = vadd.f32 %v16311_v5, %v3948_v28  ;;  %v3954_v48 = vadd.f32 %v20428_v52, %v16442_v4  ;;  %v1491_v23 = vadd.f32 %v16510_v55, %v20431_v2  ;;  %v3955_v44 = vadd.f32 %v16410_v40, %v16540_v49  ;;  %20433 = vst [vmem:[#allocation261_spill] sm:$0xff] %v16697_v30  ;;  %v12976_v4 = vld [vmem:[%s19140_s1 + $0xa] sm:$0x3]  ;;  %v12977_v40 = vld [vmem:[%s19140_s1 + $0xc] sm:$0x3]  ;;  %v20436_v49 = vld [vmem:[#allocation260_spill] sm:$0xff]  ;;  %v11773_v52 = vpop.f32.mrf.mxu1 }
 0x1ee   : > { %v16692_v63 = vadd.f32 %v20432_v51, %v3951_v0  ;;  %v3958_v5 = vadd.f32 %v16460_v62, %v1485_v58  ;;  %v7010_v24 = vsel %vm890_vm0, %v12976_v4, 0  ;;  %v16707_v53 = vadd.f32 %v20435_v61, %v3952_v22  ;;  %v20437_v16 = vld [vmem:[#allocation32_spill] sm:$0xff]  ;;  %v11903_v2 = vpop.f32.mrf.mxu0  ;;  %v20446_v4 = vld [vmem:[#allocation14_spill] sm:$0xff]  ;;  %v17351_v30 = vld [vmem:[%s13070_s25 + $0x288] sm:$0xf] }
 0x1ef   : > { %v16704_v39 = vadd.f32 %v20434_v9, %v3954_v48  ;;  %v3956_v28 = vadd.f32 %v16475_v33, %v1483_v19  ;;  %v7704_v62 = vsel %vm890_vm0, %v12977_v40, 0  ;;  %v16715_v58 = vadd.f32 %v20436_v49, %v3955_v44  ;;  %v20438_v48 = vld [vmem:[#allocation92_spill] sm:$0xff] }
 0x1f0   : > { %v16718_v59 = vadd.f32 %v16438_v37, %v3958_v5  ;;  %v3959_v29 = vadd.f32 %v16481_v50, %v1486_v60  ;;  %v1494_v0 = vadd.f32 %v16510_v55, %v20437_v16  ;;  %v3962_v33 = vadd.f32 %v16524_v8, %v1489_v25  ;;  %v20439_v22 = vld [vmem:[#allocation12_spill] sm:$0xff]  ;;  %v20440_v37 = vld [vmem:[#allocation158_spill] sm:$0xff]  ;;  %v20441_v50 = vld [vmem:[#allocation273_spill] sm:$0xff] }
 0x1f1   : > { %v16724_v6 = vadd.f32 %v16462_v54, %v3956_v28  ;;  %v3960_v19 = vadd.f32 %v16549_v26, %v1487_v46  ;;  %v1497_v14 = vadd.f32 %v16510_v55, %v20438_v48  ;;  %11976 = vmatmul.mubr.msk.bf16.vlgmr.msra.gmra.mxu1 %vm697_vm1, %v20439_v22  ;;  %v3963_v54 = vadd.f32 %v16569_v17, %v1490_v56  ;;  %v20442_v51 = vld [vmem:[#allocation288_spill] sm:$0xff]  ;;  %v3625_v46 = vpop.f32.mrf.mxu1  ;;  %v20448_v56 = vld [vmem:[#allocation290_spill] sm:$0xff] }
 0x1f2   : > { %12106 = vmatmul.mubr.msk.bf16.vlgmr.msra.gmra.mxu0 %vm697_vm1, %v20440_v37  ;;  %v16735_v60 = vadd.f32 %v20441_v50, %v3959_v29  ;;  %v1495_v8 = vadd.f32 %v16510_v55, %v20442_v51  ;;  %12234 = vmatpush3.bf16.msra.mxu1 %v7010_v24  ;;  %v16741_v26 = vadd.f32 %v16505_v15, %v3962_v33  ;;  %v20445_v44 = vld [vmem:[#allocation292_spill] sm:$0xff]  ;;  %v5138_v15 = vpop.f32.mrf.mxu0  ;;  %v20463_v37 = vld [vmem:[#allocation302_spill] sm:$0xff] }
 0x1f3   : > { %12364 = vmatpush3.bf16.msra.mxu0 %v7704_v62  ;;  %v16744_v25 = vadd.f32 %v16536_v7, %v3960_v19  ;;  %v1498_v5 = vadd.f32 %v16510_v55, %v20445_v44  ;;  %11979 = vmatprep.mubr.msk.bf16.mxu1 %vm697_vm1, %v20446_v4  ;;  %v20447_v17 = vld [vmem:[#allocation160_spill] sm:$0xff]  ;;  %v16753_v9 = vadd.f32 %v20448_v56, %v3963_v54  ;;  %v11774_v40 = vpop.f32.mrf.mxu1 }
 0x1f4   : > { %20443 = vst [vmem:[#allocation271_spill] sm:$0xff] %v16741_v26  ;;  %12109 = vmatprep.mubr.msk.bf16.mxu0 %vm697_vm1, %v20447_v17  ;;  %v3966_v24 = vadd.f32 %v16595_v3, %v1493_v18  ;;  %v3964_v61 = vadd.f32 %v16613_v38, %v1491_v23  ;;  %v3967_v7 = vadd.f32 %v11770_v21, %v1494_v0  ;;  %v11904_v16 = vpop.f32.mrf.mxu0  ;;  %v20459_v23 = vld [vmem:[#allocation26_spill] sm:$0xff]  ;;  %v20461_v0 = vld [vmem:[#allocation20_spill] sm:$0xff] }
 0x1f5   : > { %20444 = vst [vmem:[#allocation23_spill] sm:$0xff] %v16744_v25  ;;  %20449 = vst [vmem:[#allocation9_spill] sm:$0xff] %v16753_v9  ;;  %v3970_v28 = vadd.f32 %v11773_v52, %v1497_v14  ;;  %v3968_v49 = vadd.f32 %v3625_v46, %v1495_v8  ;;  %v3971_v29 = vadd.f32 %v11774_v40, %v1498_v5  ;;  %v16771_v38 = vpop.f32.mrf.mxu1  ;;  %v20462_v52 = vld [vmem:[#allocation40_spill] sm:$0xff]  ;;  %v20464_v8 = vld [vmem:[#allocation99_spill] sm:$0xff] }
 0x1f6   : > { %v16758_v62 = vadd.f32 %v16611_v57, %v3966_v24  ;;  %v16761_v33 = vadd.f32 %v16634_v41, %v3964_v61  ;;  %v16763_v19 = vadd.f32 %v11900_v10, %v3967_v7  ;;  %20456 = vst [vmem:[#allocation316_spill] sm:$0xff] %v16771_v38  ;;  %v16773_v21 = vpop.f32.mrf.mxu0  ;;  %v20458_v57 = vld [vmem:[#allocation19_spill] sm:$0xff]  ;;  %v20460_v41 = vld [vmem:[#allocation49_spill] sm:$0xff]  ;;  %v1499_v50 = vadd.f32 %v16510_v55, %v20463_v37  ;;  %v20467_v7 = vld [vmem:[#allocation30_spill] sm:$0xff] }
 0x1f7   : > { %v16765_v48 = vadd.f32 %v11903_v2, %v3970_v28  ;;  %v16767_v3 = vadd.f32 %v5138_v15, %v3968_v49  ;;  %v16769_v18 = vadd.f32 %v11904_v16, %v3971_v29  ;;  %20457 = vst [vmem:[#allocation263_spill] sm:$0xff] %v16773_v21  ;;  %v1501_v10 = vadd.f32 %v16510_v55, %v20460_v41  ;;  %v11777_v14 = vpop.f32.mrf.mxu1  ;;  %v20468_v28 = vld [vmem:[#allocation43_spill] sm:$0xff]  ;;  %v20471_v29 = vld [vmem:[#allocation34_spill] sm:$0xff]  ;;  %v20472_v16 = vld [vmem:[#allocation56_spill] sm:$0xff] }
 0x1f8   : > { %20450 = vst [vmem:[#allocation147_spill] sm:$0xff] %v16758_v62  ;;  %20451 = vst [vmem:[#allocation233_spill] sm:$0xff] %v16761_v33  ;;  %v11907_v22 = vpop.f32.mrf.mxu0  ;;  %v1502_v46 = vadd.f32 %v16510_v55, %v20464_v8  ;;  %v20487_v17 = vld [vmem:[#allocation132_spill] sm:$0xff]  ;;  %v20636_v38 = vld [vmem:[#allocation51_spill] sm:$0xff] }
 0x1f9   : > { %20452 = vst [vmem:[#allocation275_spill] sm:$0xff] %v16763_v19  ;;  %20453 = vst [vmem:[#allocation36_spill] sm:$0xff] %v16765_v48  ;;  %11980 = vmatmul.mubr.msk.bf16.gmra.mxu1 %vm697_vm1, %v20458_v57  ;;  %v3974_v54 = vadd.f32 %v11777_v14, %v1501_v10  ;;  %v3641_v2 = vpop.f32.mrf.mxu1  ;;  %v20474_v10 = vld [vmem:[#allocation121_spill] sm:$0xff]  ;;  %v1507_v27 = vadd.f32 %v16510_v55, %v20487_v17  ;;  %v20527_v21 = vld [vmem:[#allocation200_spill] sm:$0xff] }
 0x1fa   : > { %20454 = vst [vmem:[#allocation314_spill] sm:$0xff] %v16767_v3  ;;  %20455 = vst [vmem:[#allocation276_spill] sm:$0xff] %v16769_v18  ;;  %12110 = vmatmul.mubr.msk.bf16.gmra.mxu0 %vm697_vm1, %v20459_v23  ;;  %11983 = vmatprep.mubr.msk.bf16.mxu1 %vm697_vm1, %v20461_v0  ;;  %v5154_v51 = vpop.f32.mrf.mxu0  ;;  %v3972_v5 = vadd.f32 %v3641_v2, %v1499_v50  ;;  %v1505_v14 = vadd.f32 %v16510_v55, %v20474_v10  ;;  %v20475_v50 = vld [vmem:[#allocation122_spill] sm:$0xff] }
 0x1fb   : > { %12113 = vmatprep.mubr.msk.bf16.mxu0 %vm697_vm1, %v20462_v52  ;;  %v16789_v44 = vadd.f32 %v11907_v22, %v3974_v54  ;;  %v11778_v56 = vpop.f32.mrf.mxu1  ;;  %v1503_v54 = vadd.f32 %v16510_v55, %v20475_v50  ;;  %v20480_v52 = vld [vmem:[#allocation50_spill] sm:$0xff]  ;;  %v1519_v3 = vadd.f32 %v16510_v55, %v20527_v21 }
 0x1fc   : > { %v11908_v24 = vpop.f32.mrf.mxu0  ;;  %v16791_v15 = vadd.f32 %v5154_v51, %v3972_v5  ;;  %v3975_v61 = vadd.f32 %v11778_v56, %v1502_v46  ;;  %v20476_v46 = vld [vmem:[#allocation173_spill] sm:$0xff]  ;;  %v20635_v48 = vld [vmem:[#allocation274_spill] sm:$0xff] }
 0x1fd   : > { %20465 = vst [vmem:[#allocation281_spill] sm:$0xff] %v16789_v44  ;;  %v16797_v40 = vpop.f32.mrf.mxu1  ;;  %v1506_v5 = vadd.f32 %v16510_v55, %v20476_v46  ;;  %v20508_v44 = vld [vmem:[#allocation87_spill] sm:$0xff]  ;;  %v20751_v9 = vld [vmem:[#allocation242_spill] sm:$0xff] }
 0x1fe   : > { %20466 = vst [vmem:[#allocation249_spill] sm:$0xff] %v16791_v15  ;;  %20469 = vst [vmem:[#allocation262_spill] sm:$0xff] %v16797_v40  ;;  %v16799_v49 = vpop.f32.mrf.mxu0  ;;  %v16805_v41 = vadd.f32 %v11908_v24, %v3975_v61  ;;  %v20478_v24 = vld [vmem:[#allocation47_spill] sm:$0xff]  ;;  %v20479_v61 = vld [vmem:[#allocation58_spill] sm:$0xff] }
 0x1ff   : > { %20470 = vst [vmem:[#allocation267_spill] sm:$0xff] %v16799_v49  ;;  %v11781_v37 = vpop.f32.mrf.mxu1 }
 0x200   : > { %20473 = vst [vmem:[#allocation260_spill] sm:$0xff] %v16805_v41  ;;  %v11911_v22 = vpop.f32.mrf.mxu0  ;;  %v3978_v2 = vadd.f32 %v11781_v37, %v1505_v14  ;;  %v20481_v14 = vld [vmem:[#allocation59_spill] sm:$0xff]  ;;  %v20499_v41 = vld [vmem:[#allocation73_spill] sm:$0xff] }
 0x201   : > { %11984 = vmatmul.mubr.msk.bf16.gmra.mxu1 %vm697_vm1, %v20467_v7  ;;  %v3657_v8 = vpop.f32.mrf.mxu1 }
 0x202   : > { %12114 = vmatmul.mubr.msk.bf16.gmra.mxu0 %vm697_vm1, %v20468_v28  ;;  %11987 = vmatprep.mubr.msk.bf16.mxu1 %vm697_vm1, %v20471_v29  ;;  %v5170_v51 = vpop.f32.mrf.mxu0  ;;  %v16813_v56 = vadd.f32 %v11911_v22, %v3978_v2  ;;  %v3976_v28 = vadd.f32 %v3657_v8, %v1503_v54  ;;  %v20486_v8 = vld [vmem:[#allocation177_spill] sm:$0xff] }
 0x203   : > { %12117 = vmatprep.mubr.msk.bf16.mxu0 %vm697_vm1, %v20472_v16  ;;  %v11782_v10 = vpop.f32.mrf.mxu1  ;;  %v1509_v46 = vadd.f32 %v16510_v55, %v20486_v8  ;;  %v20492_v8 = vld [vmem:[#allocation82_spill] sm:$0xff] }
 0x204   : > { %20477 = vst [vmem:[#allocation32_spill] sm:$0xff] %v16813_v56  ;;  %v11912_v16 = vpop.f32.mrf.mxu0  ;;  %v16823_v37 = vadd.f32 %v5170_v51, %v3976_v28  ;;  %v3979_v50 = vadd.f32 %v11782_v10, %v1506_v5  ;;  %v20489_v28 = vld [vmem:[#allocation71_spill] sm:$0xff] }
 0x205   : > { %v16825_v22 = vpop.f32.mrf.mxu1  ;;  %v20490_v10 = vld [vmem:[#allocation179_spill] sm:$0xff] }
 0x206   : > { %20482 = vst [vmem:[#allocation92_spill] sm:$0xff] %v16823_v37  ;;  %20483 = vst [vmem:[#allocation12_spill] sm:$0xff] %v16825_v22  ;;  %v16827_v54 = vpop.f32.mrf.mxu0  ;;  %v16829_v2 = vadd.f32 %v11912_v16, %v3979_v50  ;;  %v1510_v16 = vadd.f32 %v16510_v55, %v20490_v10  ;;  %v20491_v50 = vld [vmem:[#allocation65_spill] sm:$0xff] }
 0x207   : > { %20484 = vst [vmem:[#allocation158_spill] sm:$0xff] %v16827_v54  ;;  %v20498_v10 = vld [vmem:[#allocation133_spill] sm:$0xff] }
 0x208   : > { %20485 = vst [vmem:[#allocation273_spill] sm:$0xff] %v16829_v2  ;;  %v11915_v23 = vpop.f32.mrf.mxu0  ;;  %v1513_v22 = vadd.f32 %v16510_v55, %v20498_v10  ;;  %v20504_v10 = vld [vmem:[#allocation186_spill] sm:$0xff] }
 0x209   : > { %11988 = vmatmul.mubr.msk.bf16.gmra.mxu1 %vm697_vm1, %v20478_v24 }
 0x20a   : > { %12118 = vmatmul.mubr.msk.bf16.gmra.mxu0 %vm697_vm1, %v20479_v61  ;;  %11991 = vmatprep.mubr.msk.bf16.mxu1 %vm697_vm1, %v20480_v52  ;;  %v11785_v61 = vpop.f32.mrf.mxu1  ;;  %v5186_v5 = vpop.f32.mrf.mxu0 }
 0x20b   : > { %12121 = vmatprep.mubr.msk.bf16.mxu0 %vm697_vm1, %v20481_v14  ;;  %v3982_v35 = vadd.f32 %v11785_v61, %v1509_v46 }
 0x20c   : > { %v3673_v51 = vpop.f32.mrf.mxu1  ;;  %v11916_v46 = vpop.f32.mrf.mxu0 }
 0x20d   : > { %v16845_v14 = vadd.f32 %v11915_v23, %v3982_v35  ;;  %v3980_v17 = vadd.f32 %v3673_v51, %v1507_v27  ;;  %v20500_v35 = vld [vmem:[#allocation163_spill] sm:$0xff]  ;;  %v20501_v27 = vld [vmem:[#allocation76_spill] sm:$0xff]  ;;  %v20502_v23 = vld [vmem:[#allocation85_spill] sm:$0xff] }
 0x20e   : > { %v11786_v61 = vpop.f32.mrf.mxu1  ;;  %v16853_v56 = vpop.f32.mrf.mxu0 }
 0x20f   : > { %20493 = vst [vmem:[#allocation288_spill] sm:$0xff] %v16845_v14  ;;  %v16847_v2 = vadd.f32 %v5186_v5, %v3980_v17  ;;  %v3983_v54 = vadd.f32 %v11786_v61, %v1510_v16  ;;  %20497 = vst [vmem:[#allocation19_spill] sm:$0xff] %v16853_v56  ;;  %v20503_v5 = vld [vmem:[#allocation185_spill] sm:$0xff] }
 0x210   : > { %v16851_v37 = vpop.f32.mrf.mxu1  ;;  %v11919_v51 = vpop.f32.mrf.mxu0  ;;  %v1511_v16 = vadd.f32 %v16510_v55, %v20503_v5  ;;  %v20506_v14 = vld [vmem:[#allocation189_spill] sm:$0xff] }
 0x211   : > { %11992 = vmatmul.mubr.msk.bf16.gmra.mxu1 %vm697_vm1, %v20488_v45  ;;  %20494 = vst [vmem:[#allocation292_spill] sm:$0xff] %v16847_v2  ;;  %20496 = vst [vmem:[#allocation290_spill] sm:$0xff] %v16851_v37  ;;  %v1512_v37 = vadd.f32 %v16510_v55, %v20506_v14 }
 0x212   : > { %12122 = vmatmul.mubr.msk.bf16.gmra.mxu0 %vm697_vm1, %v20489_v28  ;;  %11995 = vmatprep.mubr.msk.bf16.mxu1 %vm697_vm1, %v20491_v50  ;;  %v16849_v28 = vadd.f32 %v11916_v46, %v3983_v54  ;;  %v11789_v54 = vpop.f32.mrf.mxu1  ;;  %v5202_v46 = vpop.f32.mrf.mxu0 }
 0x213   : > { %12125 = vmatprep.mubr.msk.bf16.mxu0 %vm697_vm1, %v20492_v8  ;;  %v3986_v17 = vadd.f32 %v11789_v54, %v1513_v22  ;;  %v1514_v8 = vadd.f32 %v16510_v55, %v20504_v10  ;;  %v20509_v22 = vld [vmem:[#allocation165_spill] sm:$0xff] }
 0x214   : > { %20495 = vst [vmem:[#allocation14_spill] sm:$0xff] %v16849_v28  ;;  %v3689_v61 = vpop.f32.mrf.mxu1  ;;  %v11920_v2 = vpop.f32.mrf.mxu0 }
 0x215   : > { %v16869_v28 = vadd.f32 %v11919_v51, %v3986_v17  ;;  %v20512_v17 = vld [vmem:[#allocation168_spill] sm:$0xff] }
 0x216   : > { %v11790_v56 = vpop.f32.mrf.mxu1  ;;  %v5205_v5 = vpop.f32.mrf.mxu0 }
 0x217   : > { %20505 = vst [vmem:[#allocation49_spill] sm:$0xff] %v16869_v28  ;;  %v3987_v49 = vadd.f32 %v11790_v56, %v1514_v8  ;;  %v20514_v56 = vld [vmem:[#allocation190_spill] sm:$0xff]  ;;  %v20526_v28 = vld [vmem:[#allocation199_spill] sm:$0xff] }
 0x218   : > { %v3692_v15 = vpop.f32.mrf.mxu1  ;;  %v1517_v8 = vadd.f32 %v16510_v55, %v20514_v56  ;;  %v1521_v40 = vadd.f32 %v16510_v55, %v20526_v28 }
 0x219   : > { %11996 = vmatmul.mubr.msk.bf16.gmra.mxu1 %vm697_vm1, %v20499_v41  ;;  %v16879_v54 = vadd.f32 %v11920_v2, %v3987_v49  ;;  %v3985_v51 = vadd.f32 %v3692_v15, %v1512_v37  ;;  %v20516_v37 = vld [vmem:[#allocation194_spill] sm:$0xff] }
 0x21a   : > { %12126 = vmatmul.mubr.msk.bf16.gmra.mxu0 %vm697_vm1, %v20500_v35  ;;  %11999 = vmatprep.mubr.msk.bf16.mxu1 %vm697_vm1, %v20501_v27  ;;  %v3984_v35 = vadd.f32 %v3689_v61, %v1511_v16  ;;  %v20511_v16 = vld [vmem:[#allocation93_spill] sm:$0xff]  ;;  %v11923_v61 = vpop.f32.mrf.mxu0  ;;  %v363_v27 = vld [vmem:[%s13070_s25 + $0x290] sm:$0x1] }
 0x21b   : > { %12129 = vmatprep.mubr.msk.bf16.mxu0 %vm697_vm1, %v20502_v23  ;;  %20510 = vst [vmem:[#allocation302_spill] sm:$0xff] %v16879_v54  ;;  %v16885_v14 = vadd.f32 %v5205_v5, %v3985_v51  ;;  %v20519_v51 = vld [vmem:[#allocation120_spill] sm:$0xff] }
 0x21c   : > { %v16873_v23 = vadd.f32 %v5202_v46, %v3984_v35  ;;  %v11793_v35 = vpop.f32.mrf.mxu1  ;;  %v20515_v46 = vld [vmem:[#allocation193_spill] sm:$0xff]  ;;  %v5218_v15 = vpop.f32.mrf.mxu0 }
 0x21d   : > { %20513 = vst [vmem:[#allocation99_spill] sm:$0xff] %v16885_v14  ;;  %v1515_v10 = vadd.f32 %v16510_v55, %v20515_v46  ;;  %v3990_v49 = vadd.f32 %v11793_v35, %v1517_v8  ;;  %v20520_v14 = vld [vmem:[#allocation198_spill] sm:$0xff]  ;;  %v20521_v8 = vld [vmem:[#allocation103_spill] sm:$0xff] }
 0x21e   : > { %20507 = vst [vmem:[#allocation20_spill] sm:$0xff] %v16873_v23  ;;  %v3705_v2 = vpop.f32.mrf.mxu1  ;;  %v11924_v56 = vpop.f32.mrf.mxu0  ;;  %v1516_v46 = vadd.f32 %v16510_v55, %v20520_v14  ;;  %v20522_v35 = vld [vmem:[#allocation170_spill] sm:$0xff] }
 0x21f   : > { %v16893_v54 = vadd.f32 %v11923_v61, %v3990_v49  ;;  %v3988_v23 = vadd.f32 %v3705_v2, %v1515_v10 }
 0x220   : > { %v11794_v5 = vpop.f32.mrf.mxu1 }
 0x221   : > { %12000 = vmatmul.mubr.msk.bf16.gmra.mxu1 %vm697_vm1, %v20508_v44  ;;  %20517 = vst [vmem:[#allocation30_spill] sm:$0xff] %v16893_v54  ;;  %v16905_v61 = vadd.f32 %v5218_v15, %v3988_v23  ;;  %v5221_v54 = vpop.f32.mrf.mxu0  ;;  %v20529_v23 = vld [vmem:[#allocation123_spill] sm:$0xff]  ;;  %v20530_v15 = vld [vmem:[#allocation114_spill] sm:$0xff] }
 0x222   : > { %12130 = vmatmul.mubr.msk.bf16.gmra.mxu0 %vm697_vm1, %v20509_v22  ;;  %12003 = vmatprep.mubr.msk.bf16.mxu1 %vm697_vm1, %v20511_v16  ;;  %v1518_v22 = vadd.f32 %v16510_v55, %v20516_v37  ;;  %v3708_v49 = vpop.f32.mrf.mxu1 }
 0x223   : > { %12133 = vmatprep.mubr.msk.bf16.mxu0 %vm697_vm1, %v20512_v17  ;;  %v20518_v17 = vld [vmem:[#allocation100_spill] sm:$0xff]  ;;  %20523 = vst [vmem:[#allocation34_spill] sm:$0xff] %v16905_v61  ;;  %v3989_v37 = vadd.f32 %v3708_v49, %v1516_v46  ;;  %v11927_v18 = vpop.f32.mrf.mxu0 }
 0x224   : > { %v3991_v10 = vadd.f32 %v11794_v5, %v1518_v22  ;;  %v11797_v14 = vpop.f32.mrf.mxu1 }
 0x225   : > { %v3994_v22 = vadd.f32 %v11797_v14, %v1521_v40  ;;  %v5234_v28 = vpop.f32.mrf.mxu0 }
 0x226   : > { %v16907_v2 = vadd.f32 %v11924_v56, %v3991_v10  ;;  %v3721_v5 = vpop.f32.mrf.mxu1  ;;  %v20532_v56 = vld [vmem:[#allocation202_spill] sm:$0xff] }
 0x227   : > { %v1522_v46 = vadd.f32 %v16510_v55, %v20532_v56  ;;  %v16925_v10 = vadd.f32 %v11927_v18, %v3994_v22  ;;  %v3992_v21 = vadd.f32 %v3721_v5, %v1519_v3  ;;  %v20538_v56 = vld [vmem:[#allocation181_spill] sm:$0xff]  ;;  %v20540_v18 = vld [vmem:[#allocation207_spill] sm:$0xff]  ;;  %v20542_v5 = vld [vmem:[#allocation182_spill] sm:$0xff] }
 0x228   : > { %20524 = vst [vmem:[#allocation121_spill] sm:$0xff] %v16907_v2  ;;  %v11798_v49 = vpop.f32.mrf.mxu1  ;;  %v1525_v22 = vadd.f32 %v16510_v55, %v20540_v18 }
 0x229   : > { %12004 = vmatmul.mubr.msk.bf16.gmra.mxu1 %vm697_vm1, %v20518_v17  ;;  %20533 = vst [vmem:[#allocation173_spill] sm:$0xff] %v16925_v10  ;;  %v16929_v40 = vadd.f32 %v5234_v28, %v3992_v21  ;;  %v3995_v14 = vadd.f32 %v11798_v49, %v1522_v46  ;;  %v20740_v17 = vld [vmem:[#allocation75_spill] sm:$0xff] }
 0x22a   : > { %12134 = vmatmul.mubr.msk.bf16.gmra.mxu0 %vm697_vm1, %v20519_v51  ;;  %12007 = vmatprep.mubr.msk.bf16.mxu1 %vm697_vm1, %v20521_v8  ;;  %v16909_v51 = vadd.f32 %v5221_v54, %v3989_v37  ;;  %v20528_v8 = vld [vmem:[#allocation111_spill] sm:$0xff]  ;;  %v11928_v37 = vpop.f32.mrf.mxu0 }
 0x22b   : > { %12137 = vmatprep.mubr.msk.bf16.mxu0 %vm697_vm1, %v20522_v35  ;;  %v20531_v54 = vld [vmem:[#allocation175_spill] sm:$0xff]  ;;  %v20534_v35 = vld [vmem:[#allocation205_spill] sm:$0xff]  ;;  %20535 = vst [vmem:[#allocation47_spill] sm:$0xff] %v16929_v40  ;;  %v16931_v2 = vadd.f32 %v11928_v37, %v3995_v14  ;;  %v20544_v14 = vld [vmem:[#allocation210_spill] sm:$0xff] }
 0x22c   : > { %20525 = vst [vmem:[#allocation122_spill] sm:$0xff] %v16909_v51  ;;  %v3724_v51 = vpop.f32.mrf.mxu1  ;;  %v5237_v61 = vpop.f32.mrf.mxu0 }
 0x22d   : > { %20536 = vst [vmem:[#allocation50_spill] sm:$0xff] %v16931_v2  ;;  %v20546_v2 = vld [vmem:[#allocation212_spill] sm:$0xff] }
 0x22e   : > { %v11801_v28 = vpop.f32.mrf.mxu1  ;;  %v1524_v40 = vadd.f32 %v16510_v55, %v20546_v2 }
 0x22f   : > { %v3998_v21 = vadd.f32 %v11801_v28, %v1525_v22  ;;  %v20549_v22 = vld [vmem:[#allocation188_spill] sm:$0xff] }
 0x230   : > { %v3737_v49 = vpop.f32.mrf.mxu1 }
 0x231   : > { %12008 = vmatmul.mubr.msk.bf16.gmra.mxu1 %vm697_vm1, %v20528_v8  ;;  %v20606_v8 = vld [vmem:[#allocation11_spill] sm:$0xff] }
 0x232   : > { %12138 = vmatmul.mubr.msk.bf16.gmra.mxu0 %vm697_vm1, %v20529_v23  ;;  %12011 = vmatprep.mubr.msk.bf16.mxu1 %vm697_vm1, %v20530_v15  ;;  %v1520_v23 = vadd.f32 %v16510_v55, %v20534_v35  ;;  %v20537_v15 = vld [vmem:[#allocation124_spill] sm:$0xff]  ;;  %v20541_v35 = vld [vmem:[#allocation125_spill] sm:$0xff] }
 0x233   : > { %12141 = vmatprep.mubr.msk.bf16.mxu0 %vm697_vm1, %v20531_v54 }
 0x234   : > { %v3993_v54 = vadd.f32 %v3724_v51, %v1520_v23  ;;  %v11931_v51 = vpop.f32.mrf.mxu0  ;;  %v20543_v23 = vld [vmem:[#allocation209_spill] sm:$0xff] }
 0x235   : > { %v1523_v46 = vadd.f32 %v16510_v55, %v20543_v23  ;;  %v20550_v23 = vld [vmem:[#allocation135_spill] sm:$0xff] }
 0x236   : > { %v16937_v3 = vadd.f32 %v5237_v61, %v3993_v54  ;;  %v5250_v37 = vpop.f32.mrf.mxu0  ;;  %v1526_v61 = vadd.f32 %v16510_v55, %v20544_v14  ;;  %v16949_v54 = vadd.f32 %v11931_v51, %v3998_v21  ;;  %v20551_v51 = vld [vmem:[#allocation192_spill] sm:$0xff] }
 0x237   : > { %v3996_v18 = vadd.f32 %v3737_v49, %v1523_v46 }
 0x238   : > { %20539 = vst [vmem:[#allocation177_spill] sm:$0xff] %v16937_v3  ;;  %20545 = vst [vmem:[#allocation132_spill] sm:$0xff] %v16949_v54  ;;  %v11932_v3 = vpop.f32.mrf.mxu0 }
 0x239   : > { %12012 = vmatmul.mubr.msk.bf16.gmra.mxu1 %vm697_vm1, %v20537_v15 }
 0x23a   : > { %12142 = vmatmul.mubr.msk.bf16.gmra.mxu0 %vm697_vm1, %v20538_v56  ;;  %12015 = vmatprep.mubr.msk.bf16.mxu1 %vm697_vm1, %v20541_v35  ;;  %v11802_v56 = vpop.f32.mrf.mxu1  ;;  %v20548_v35 = vld [vmem:[#allocation134_spill] sm:$0xff]  ;;  %v5253_v2 = vpop.f32.mrf.mxu0 }
 0x23b   : > { %12145 = vmatprep.mubr.msk.bf16.mxu0 %vm697_vm1, %v20542_v5  ;;  %v16953_v5 = vadd.f32 %v5250_v37, %v3996_v18  ;;  %v3999_v10 = vadd.f32 %v11802_v56, %v1526_v61  ;;  %v20554_v56 = vld [vmem:[#allocation214_spill] sm:$0xff]  ;;  %v20555_v18 = vld [vmem:[#allocation216_spill] sm:$0xff] }
 0x23c   : > { %v3740_v28 = vpop.f32.mrf.mxu1  ;;  %v1529_v37 = vadd.f32 %v16510_v55, %v20554_v56  ;;  %v11935_v61 = vpop.f32.mrf.mxu0 }
 0x23d   : > { %20547 = vst [vmem:[#allocation62_spill] sm:$0xff] %v16953_v5  ;;  %v16963_v46 = vadd.f32 %v11932_v3, %v3999_v10  ;;  %v3997_v21 = vadd.f32 %v3740_v28, %v1524_v40  ;;  %v20557_v10 = vld [vmem:[#allocation141_spill] sm:$0xff]  ;;  %v20558_v40 = vld [vmem:[#allocation196_spill] sm:$0xff] }
 0x23e   : > { %v11805_v14 = vpop.f32.mrf.mxu1 }
 0x23f   : > { %20552 = vst [vmem:[#allocation179_spill] sm:$0xff] %v16963_v46  ;;  %v16965_v49 = vadd.f32 %v5253_v2, %v3997_v21  ;;  %v4002_v5 = vadd.f32 %v11805_v14, %v1529_v37  ;;  %v20560_v21 = vld [vmem:[#allocation142_spill] sm:$0xff]  ;;  %v20561_v2 = vld [vmem:[#allocation204_spill] sm:$0xff]  ;;  %v20562_v14 = vld [vmem:[#allocation221_spill] sm:$0xff] }
 0x240   : > { %v3753_v54 = vpop.f32.mrf.mxu1 }
 0x241   : > { %12016 = vmatmul.mubr.msk.bf16.gmra.mxu1 %vm697_vm1, %v20548_v35  ;;  %20553 = vst [vmem:[#allocation65_spill] sm:$0xff] %v16965_v49  ;;  %v20556_v35 = vld [vmem:[#allocation218_spill] sm:$0xff]  ;;  %v16977_v3 = vadd.f32 %v11935_v61, %v4002_v5 }
 0x242   : > { %12146 = vmatmul.mubr.msk.bf16.gmra.mxu0 %vm697_vm1, %v20549_v22  ;;  %12019 = vmatprep.mubr.msk.bf16.mxu1 %vm697_vm1, %v20550_v23  ;;  %v1527_v22 = vadd.f32 %v16510_v55, %v20555_v18  ;;  %v5266_v23 = vpop.f32.mrf.mxu0  ;;  %v11806_v56 = vpop.f32.mrf.mxu1 }
 0x243   : > { %12149 = vmatprep.mubr.msk.bf16.mxu0 %vm697_vm1, %v20551_v51  ;;  %v1530_v51 = vadd.f32 %v16510_v55, %v20556_v35  ;;  %20559 = vst [vmem:[#allocation133_spill] sm:$0xff] %v16977_v3  ;;  %v1528_v35 = vadd.f32 %v16510_v55, %v20562_v14  ;;  %v20567_v3 = vld [vmem:[#allocation146_spill] sm:$0xff] }
 0x244   : > { %v4000_v28 = vadd.f32 %v3753_v54, %v1527_v22  ;;  %v11936_v37 = vpop.f32.mrf.mxu0  ;;  %v3756_v46 = vpop.f32.mrf.mxu1  ;;  %v20566_v22 = vld [vmem:[#allocation222_spill] sm:$0xff] }
 0x245   : > { %v4003_v49 = vadd.f32 %v11806_v56, %v1530_v51  ;;  %v4001_v5 = vadd.f32 %v3756_v46, %v1528_v35  ;;  %v20571_v46 = vld [vmem:[#allocation215_spill] sm:$0xff] }
 0x246   : > { %v16985_v18 = vadd.f32 %v5266_v23, %v4000_v28  ;;  %v5269_v61 = vpop.f32.mrf.mxu0  ;;  %v11809_v14 = vpop.f32.mrf.mxu1  ;;  %v20569_v28 = vld [vmem:[#allocation223_spill] sm:$0xff] }
 0x247   : > { %v16989_v54 = vadd.f32 %v5269_v61, %v4001_v5  ;;  %v1531_v51 = vadd.f32 %v16510_v55, %v20569_v28  ;;  %v20572_v5 = vld [vmem:[#allocation227_spill] sm:$0xff] }
 0x248   : > { %20563 = vst [vmem:[#allocation185_spill] sm:$0xff] %v16985_v18  ;;  %v11939_v23 = vpop.f32.mrf.mxu0  ;;  %v1534_v61 = vadd.f32 %v16510_v55, %v20572_v5  ;;  %v20574_v18 = vld [vmem:[#allocation231_spill] sm:$0xff]  ;;  %v20578_v5 = vld [vmem:[#allocation217_spill] sm:$0xff] }
 0x249   : > { %12020 = vmatmul.mubr.msk.bf16.gmra.mxu1 %vm697_vm1, %v20557_v10  ;;  %v16987_v10 = vadd.f32 %v11936_v37, %v4003_v49  ;;  %20565 = vst [vmem:[#allocation189_spill] sm:$0xff] %v16989_v54  ;;  %v20570_v49 = vld [vmem:[#allocation148_spill] sm:$0xff]  ;;  %v3769_v37 = vpop.f32.mrf.mxu1  ;;  %v1532_v28 = vadd.f32 %v16510_v55, %v20574_v18  ;;  %v20582_v18 = vld [vmem:[#allocation25_spill] sm:$0xff] }
 0x24a   : > { %12150 = vmatmul.mubr.msk.bf16.gmra.mxu0 %vm697_vm1, %v20558_v40  ;;  %12023 = vmatprep.mubr.msk.bf16.mxu1 %vm697_vm1, %v20560_v21  ;;  %v1533_v40 = vadd.f32 %v16510_v55, %v20566_v22  ;;  %v5282_v35 = vpop.f32.mrf.mxu0 }
 0x24b   : > { %12153 = vmatprep.mubr.msk.bf16.mxu0 %vm697_vm1, %v20561_v2  ;;  %20564 = vst [vmem:[#allocation186_spill] sm:$0xff] %v16987_v10  ;;  %v20568_v2 = vld [vmem:[#allocation206_spill] sm:$0xff]  ;;  %v11810_v54 = vpop.f32.mrf.mxu1 }
 0x24c   : > { %v4006_v56 = vadd.f32 %v11809_v14, %v1533_v40  ;;  %v11940_v10 = vpop.f32.mrf.mxu0 }
 0x24d   : > { %v3772_v21 = vpop.f32.mrf.mxu1 }
 0x24e   : > { %v17005_v22 = vadd.f32 %v11939_v23, %v4006_v56  ;;  %v4005_v40 = vadd.f32 %v3772_v21, %v1532_v28  ;;  %v5285_v14 = vpop.f32.mrf.mxu0  ;;  %v20579_v23 = vld [vmem:[#allocation153_spill] sm:$0xff]  ;;  %v20584_v28 = vld [vmem:[#allocation2_spill] sm:$0xff] }
 0x250   : > { %20573 = vst [vmem:[#allocation190_spill] sm:$0xff] %v17005_v22  ;;  %v20588_v22 = vld [vmem:[#allocation234_spill] sm:$0xff] }
 0x251   : > { %12024 = vmatmul.mubr.msk.bf16.gmra.mxu1 %vm697_vm1, %v20567_v3  ;;  %v11943_v21 = vpop.f32.mrf.mxu0 }
 0x252   : > { %12154 = vmatmul.mubr.msk.bf16.gmra.mxu0 %vm697_vm1, %v20568_v2  ;;  %12027 = vmatprep.mubr.msk.bf16.mxu1 %vm697_vm1, %v20570_v49  ;;  %v4004_v2 = vadd.f32 %v3769_v37, %v1531_v51  ;;  %v4007_v49 = vadd.f32 %v11810_v54, %v1534_v61  ;;  %v20580_v51 = vld [vmem:[#allocation226_spill] sm:$0xff]  ;;  %v11813_v54 = vpop.f32.mrf.mxu1 }
 0x253   : > { %12157 = vmatprep.mubr.msk.bf16.mxu0 %vm697_vm1, %v20571_v46  ;;  %v20577_v46 = vld [vmem:[#allocation151_spill] sm:$0xff]  ;;  %v5298_v61 = vpop.f32.mrf.mxu0 }
 0x254   : > { %v17009_v3 = vadd.f32 %v5282_v35, %v4004_v2  ;;  %v17011_v15 = vadd.f32 %v11940_v10, %v4007_v49  ;;  %v17021_v2 = vadd.f32 %v5285_v14, %v4005_v40  ;;  %v1537_v10 = vadd.f32 %v16510_v55, %v20582_v18  ;;  %v20583_v49 = vld [vmem:[#allocation33_spill] sm:$0xff]  ;;  %v3785_v35 = vpop.f32.mrf.mxu1  ;;  %v20587_v18 = vld [vmem:[#allocation155_spill] sm:$0xff] }
 0x255   : > { %v1535_v56 = vadd.f32 %v16510_v55, %v20583_v49  ;;  %v11944_v40 = vpop.f32.mrf.mxu0  ;;  %v20586_v14 = vld [vmem:[#allocation237_spill] sm:$0xff]  ;;  %v20590_v49 = vld [vmem:[#allocation4_spill] sm:$0xff] }
 0x256   : > { %20575 = vst [vmem:[#allocation193_spill] sm:$0xff] %v17009_v3  ;;  %20576 = vst [vmem:[#allocation194_spill] sm:$0xff] %v17011_v15  ;;  %v4010_v37 = vadd.f32 %v11813_v54, %v1537_v10 }
 0x257   : > { %20581 = vst [vmem:[#allocation198_spill] sm:$0xff] %v17021_v2  ;;  %v4008_v3 = vadd.f32 %v3785_v35, %v1535_v56  ;;  %v1536_v2 = vadd.f32 %v16510_v55, %v20586_v14 }
 0x258   : > { %v17029_v15 = vadd.f32 %v11943_v21, %v4010_v37  ;;  %v20591_v21 = vld [vmem:[#allocation42_spill] sm:$0xff] }
 0x259   : > { %12028 = vmatmul.mubr.msk.bf16.gmra.mxu1 %vm697_vm1, %v20577_v46  ;;  %v17037_v10 = vadd.f32 %v5298_v61, %v4008_v3  ;;  %v20595_v61 = vld [vmem:[#allocation8_spill] sm:$0xff] }
 0x25a   : > { %12158 = vmatmul.mubr.msk.bf16.gmra.mxu0 %vm697_vm1, %v20578_v5  ;;  %12031 = vmatprep.mubr.msk.bf16.mxu1 %vm697_vm1, %v20579_v23  ;;  %v1538_v5 = vadd.f32 %v16510_v55, %v20584_v28  ;;  %20585 = vst [vmem:[#allocation199_spill] sm:$0xff] %v17029_v15  ;;  %v5301_v28 = vpop.f32.mrf.mxu0  ;;  %v20594_v15 = vld [vmem:[#allocation7_spill] sm:$0xff] }
 0x25b   : > { %12161 = vmatprep.mubr.msk.bf16.mxu0 %vm697_vm1, %v20580_v51  ;;  %v11814_v51 = vpop.f32.mrf.mxu1  ;;  %20589 = vst [vmem:[#allocation200_spill] sm:$0xff] %v17037_v10  ;;  %v20596_v10 = vld [vmem:[#allocation6_spill] sm:$0xff] }
 0x25c   : > { %v4011_v54 = vadd.f32 %v11814_v51, %v1538_v5  ;;  %v1539_v5 = vadd.f32 %v16510_v55, %v20595_v61 }
 0x25d   : > { %v3788_v56 = vpop.f32.mrf.mxu1  ;;  %v11947_v3 = vpop.f32.mrf.mxu0 }
 0x25e   : > { %v17043_v37 = vadd.f32 %v11944_v40, %v4011_v54  ;;  %v4009_v35 = vadd.f32 %v3788_v56, %v1536_v2  ;;  %v20598_v54 = vld [vmem:[#allocation246_spill] sm:$0xff] }
 0x25f   : > { %v5314_v2 = vpop.f32.mrf.mxu0  ;;  %v1542_v56 = vadd.f32 %v16510_v55, %v20598_v54 }
 0x260   : > { %20592 = vst [vmem:[#allocation202_spill] sm:$0xff] %v17043_v37  ;;  %v17045_v14 = vadd.f32 %v5301_v28, %v4009_v35  ;;  %v20599_v35 = vld [vmem:[#allocation10_spill] sm:$0xff] }
 0x261   : > { %12032 = vmatmul.mubr.msk.bf16.gmra.mxu1 %vm697_vm1, %v20587_v18  ;;  %v1541_v18 = vadd.f32 %v16510_v55, %v20594_v15  ;;  %v20600_v15 = vld [vmem:[#allocation251_spill] sm:$0xff]  ;;  %v11948_v61 = vpop.f32.mrf.mxu0 }
 0x262   : > { %12162 = vmatmul.mubr.msk.bf16.gmra.mxu0 %vm697_vm1, %v20588_v22  ;;  %12035 = vmatprep.mubr.msk.bf16.mxu1 %vm697_vm1, %v20590_v49  ;;  %20593 = vst [vmem:[#allocation205_spill] sm:$0xff] %v17045_v14  ;;  %v11817_v22 = vpop.f32.mrf.mxu1  ;;  %v20602_v14 = vld [vmem:[#allocation55_spill] sm:$0xff] }
 0x263   : > { %12165 = vmatprep.mubr.msk.bf16.mxu0 %vm697_vm1, %v20591_v21  ;;  %v4014_v51 = vadd.f32 %v11817_v22, %v1541_v18  ;;  %v20597_v21 = vld [vmem:[#allocation243_spill] sm:$0xff]  ;;  %v1540_v37 = vadd.f32 %v16510_v55, %v20602_v14  ;;  %v5317_v46 = vpop.f32.mrf.mxu0  ;;  %v20609_v14 = vld [vmem:[#allocation17_spill] sm:$0xff] }
 0x264   : > { %v3801_v40 = vpop.f32.mrf.mxu1 }
 0x265   : > { %v17061_v28 = vadd.f32 %v11947_v3, %v4014_v51  ;;  %v4012_v22 = vadd.f32 %v3801_v40, %v1539_v5  ;;  %v1545_v3 = vadd.f32 %v16510_v55, %v20606_v8  ;;  %v20607_v51 = vld [vmem:[#allocation13_spill] sm:$0xff]  ;;  %v20608_v5 = vld [vmem:[#allocation256_spill] sm:$0xff]  ;;  %v20610_v40 = vld [vmem:[#allocation266_spill] sm:$0xff] }
 0x266   : > { %v11818_v18 = vpop.f32.mrf.mxu1  ;;  %v20611_v8 = vld [vmem:[#allocation252_spill] sm:$0xff] }
 0x267   : > { %20601 = vst [vmem:[#allocation207_spill] sm:$0xff] %v17061_v28  ;;  %v20616_v28 = vld [vmem:[#allocation22_spill] sm:$0xff] }
 0x268   : > { %v3804_v49 = vpop.f32.mrf.mxu1 }
 0x269   : > { %12036 = vmatmul.mubr.msk.bf16.gmra.mxu1 %vm697_vm1, %v20596_v10  ;;  %v4015_v10 = vadd.f32 %v11818_v18, %v1542_v56  ;;  %v4013_v54 = vadd.f32 %v3804_v49, %v1540_v37  ;;  %v11951_v49 = vpop.f32.mrf.mxu0  ;;  %v1543_v37 = vadd.f32 %v16510_v55, %v20611_v8  ;;  %v17093_v18 = vld [vmem:[%s19140_s1 + $0x10] sm:$0x3]  ;;  %v20614_v8 = vld [vmem:[#allocation258_spill] sm:$0xff] }
 0x26a   : > { %12166 = vmatmul.mubr.msk.bf16.gmra.mxu0 %vm697_vm1, %v20597_v21  ;;  %12039 = vmatprep.mubr.msk.bf16.mxu1 %vm697_vm1, %v20599_v35  ;;  %v17065_v21 = vadd.f32 %v5314_v2, %v4012_v22 }
 0x26b   : > { %12169 = vmatprep.mubr.msk.bf16.mxu0 %vm697_vm1, %v20600_v15  ;;  %v17067_v23 = vadd.f32 %v11948_v61, %v4015_v10  ;;  %v17069_v35 = vadd.f32 %v5317_v46, %v4013_v54  ;;  %v11821_v10 = vpop.f32.mrf.mxu1  ;;  %v17084_v46 = vld [vmem:[%s19140_s1 + $0xe] sm:$0x3]  ;;  %v5330_v22 = vpop.f32.mrf.mxu0  ;;  %12764 = vmatprep.subr.msk.bf16.mxu0 %vm890_vm0, %v17093_v18  ;;  %v1544_v15 = vadd.f32 %v16510_v55, %v20614_v8 }
 0x26c   : > { %20603 = vst [vmem:[#allocation209_spill] sm:$0xff] %v17065_v21  ;;  %v4018_v2 = vadd.f32 %v11821_v10, %v1545_v3  ;;  %12763 = vmatprep.subr.msk.bf16.mxu1 %vm890_vm0, %v17084_v46  ;;  %v20612_v61 = vld [vmem:[#allocation15_spill] sm:$0xff] }
 0x26d   : > { %20604 = vst [vmem:[#allocation210_spill] sm:$0xff] %v17067_v23  ;;  %20605 = vst [vmem:[#allocation212_spill] sm:$0xff] %v17069_v35  ;;  %v3817_v56 = vpop.f32.mrf.mxu1  ;;  %v1546_v54 = vadd.f32 %v16510_v55, %v20612_v61  ;;  %v11952_v10 = vpop.f32.mrf.mxu0  ;;  %v20620_v61 = vld [vmem:[#allocation279_spill] sm:$0xff] }
 0x26f   : > { %v11822_v3 = vpop.f32.mrf.mxu1 }
 0x270   : > { %v4019_v23 = vadd.f32 %v11822_v3, %v1546_v54 }
 0x271   : > { %12040 = vmatmul.mubr.msk.bf16.gmra.mxu1 %vm697_vm1, %v20607_v51  ;;  %v3820_v21 = vpop.f32.mrf.mxu1 }
 0x272   : > { %12170 = vmatmul.mubr.msk.bf16.gmra.mxu0 %vm697_vm1, %v20608_v5  ;;  %12043 = vmatprep.mubr.msk.bf16.mxu1 %vm697_vm1, %v20609_v14  ;;  %v4016_v5 = vadd.f32 %v3817_v56, %v1543_v37  ;;  %v20617_v14 = vld [vmem:[#allocation268_spill] sm:$0xff]  ;;  %v4017_v37 = vadd.f32 %v3820_v21, %v1544_v15 }
 0x273   : > { %12173 = vmatprep.mubr.msk.bf16.mxu0 %vm697_vm1, %v20610_v40  ;;  %v17097_v40 = vadd.f32 %v11951_v49, %v4018_v2  ;;  %v17109_v49 = vadd.f32 %v11952_v10, %v4019_v23  ;;  %v5333_v2 = vpop.f32.mrf.mxu0  ;;  %v20619_v56 = vld [vmem:[#allocation24_spill] sm:$0xff] }
 0x274   : > { %v17103_v35 = vadd.f32 %v5330_v22, %v4016_v5  ;;  %v17115_v5 = vadd.f32 %v5333_v2, %v4017_v37  ;;  %v20622_v22 = vld [vmem:[#allocation69_spill] sm:$0xff]  ;;  %v20624_v15 = vld [vmem:[#allocation264_spill] sm:$0xff]  ;;  %v20627_v37 = vld [vmem:[#allocation282_spill] sm:$0xff] }
 0x275   : > { %20613 = vst [vmem:[#allocation214_spill] sm:$0xff] %v17097_v40  ;;  %20618 = vst [vmem:[#allocation218_spill] sm:$0xff] %v17109_v49  ;;  %v1549_v54 = vadd.f32 %v16510_v55, %v20622_v22  ;;  %v11825_v3 = vpop.f32.mrf.mxu1  ;;  %v1550_v49 = vadd.f32 %v16510_v55, %v20624_v15 }
 0x276   : > { %20615 = vst [vmem:[#allocation216_spill] sm:$0xff] %v17103_v35  ;;  %20621 = vst [vmem:[#allocation221_spill] sm:$0xff] %v17115_v5  ;;  %v11955_v8 = vpop.f32.mrf.mxu0  ;;  %v20623_v35 = vld [vmem:[#allocation18_spill] sm:$0xff] }
 0x277   : > { %v4022_v23 = vadd.f32 %v11825_v3, %v1549_v54  ;;  %v3833_v10 = vpop.f32.mrf.mxu1  ;;  %v20628_v5 = vld [vmem:[#allocation270_spill] sm:$0xff]  ;;  %v20629_v54 = vld [vmem:[#allocation37_spill] sm:$0xff] }
 0x278   : > { %v5346_v21 = vpop.f32.mrf.mxu0  ;;  %v20630_v3 = vld [vmem:[#allocation293_spill] sm:$0xff] }
 0x279   : > { %12044 = vmatmul.mubr.msk.bf16.gmra.mxu1 %vm697_vm1, %v20616_v28  ;;  %v17123_v40 = vadd.f32 %v11955_v8, %v4022_v23  ;;  %v11826_v2 = vpop.f32.mrf.mxu1 }
 0x27a   : > { %12174 = vmatmul.mubr.msk.bf16.gmra.mxu0 %vm697_vm1, %v20617_v14  ;;  %12047 = vmatprep.mubr.msk.bf16.mxu1 %vm697_vm1, %v20619_v56  ;;  %v1547_v14 = vadd.f32 %v16510_v55, %v20623_v35  ;;  %v11956_v22 = vpop.f32.mrf.mxu0  ;;  %v1548_v35 = vadd.f32 %v16510_v55, %v20628_v5 }
 0x27b   : > { %12177 = vmatprep.mubr.msk.bf16.mxu0 %vm697_vm1, %v20620_v61  ;;  %20625 = vst [vmem:[#allocation222_spill] sm:$0xff] %v17123_v40  ;;  %v20626_v61 = vld [vmem:[#allocation35_spill] sm:$0xff]  ;;  %v3836_v23 = vpop.f32.mrf.mxu1 }
 0x27c   : > { %v4020_v56 = vadd.f32 %v3833_v10, %v1547_v14  ;;  %v4023_v14 = vadd.f32 %v11826_v2, %v1550_v49  ;;  %v4021_v15 = vadd.f32 %v3836_v23, %v1548_v35  ;;  %v5349_v40 = vpop.f32.mrf.mxu0 }
 0x27e   : > { %v17135_v8 = vadd.f32 %v5346_v21, %v4020_v56  ;;  %v17137_v10 = vadd.f32 %v11956_v22, %v4023_v14  ;;  %v20637_v56 = vld [vmem:[#allocation296_spill] sm:$0xff]  ;;  %v20638_v21 = vld [vmem:[#allocation53_spill] sm:$0xff]  ;;  %v20640_v22 = vld [vmem:[#allocation78_spill] sm:$0xff] }
 0x27f   : > { %v1554_v35 = vadd.f32 %v16510_v55, %v20640_v22  ;;  %v20646_v22 = vld [vmem:[#allocation308_spill] sm:$0xff] }
 0x280   : > { %20631 = vst [vmem:[#allocation223_spill] sm:$0xff] %v17135_v8  ;;  %20632 = vst [vmem:[#allocation227_spill] sm:$0xff] %v17137_v10 }
 0x281   : > { %12048 = vmatmul.mubr.msk.bf16.gmra.mxu1 %vm697_vm1, %v20626_v61  ;;  %v20634_v61 = vld [vmem:[#allocation21_spill] sm:$0xff] }
 0x282   : > { %12178 = vmatmul.mubr.msk.bf16.gmra.mxu0 %vm697_vm1, %v20627_v37  ;;  %12051 = vmatprep.mubr.msk.bf16.mxu1 %vm697_vm1, %v20629_v54  ;;  %v17139_v37 = vadd.f32 %v5349_v40, %v4021_v15  ;;  %v1553_v28 = vadd.f32 %v16510_v55, %v20634_v61  ;;  %v11829_v5 = vpop.f32.mrf.mxu1  ;;  %v1551_v54 = vadd.f32 %v16510_v55, %v20635_v48  ;;  %v20639_v40 = vld [vmem:[#allocation306_spill] sm:$0xff] }
 0x283   : > { %12181 = vmatprep.mubr.msk.bf16.mxu0 %vm697_vm1, %v20630_v3  ;;  %v11959_v51 = vpop.f32.mrf.mxu0  ;;  %v20642_v3 = vld [vmem:[#allocation29_spill] sm:$0xff] }
 0x284   : > { %20633 = vst [vmem:[#allocation231_spill] sm:$0xff] %v17139_v37  ;;  %v4026_v49 = vadd.f32 %v11829_v5, %v1553_v28  ;;  %v3849_v2 = vpop.f32.mrf.mxu1 }
 0x285   : > { %v5362_v61 = vpop.f32.mrf.mxu0  ;;  %v4024_v48 = vadd.f32 %v3849_v2, %v1551_v54  ;;  %v20648_v54 = vld [vmem:[#allocation280_spill] sm:$0xff] }
 0x286   : > { %v17155_v14 = vadd.f32 %v11959_v51, %v4026_v49  ;;  %v11830_v23 = vpop.f32.mrf.mxu1  ;;  %v1557_v49 = vadd.f32 %v16510_v55, %v20648_v54  ;;  %v20650_v2 = vld [vmem:[#allocation72_spill] sm:$0xff] }
 0x287   : > { %v11960_v15 = vpop.f32.mrf.mxu0  ;;  %v17159_v28 = vadd.f32 %v5362_v61, %v4024_v48  ;;  %v4027_v5 = vadd.f32 %v11830_v23, %v1554_v35 }
 0x288   : > { %20641 = vst [vmem:[#allocation25_spill] sm:$0xff] %v17155_v14  ;;  %v3852_v37 = vpop.f32.mrf.mxu1 }
 0x289   : > { %12052 = vmatmul.mubr.msk.bf16.gmra.mxu1 %vm697_vm1, %v20636_v38  ;;  %20643 = vst [vmem:[#allocation33_spill] sm:$0xff] %v17159_v28  ;;  %v17161_v10 = vadd.f32 %v11960_v15, %v4027_v5  ;;  %v5365_v8 = vpop.f32.mrf.mxu0 }
 0x28a   : > { %12182 = vmatmul.mubr.msk.bf16.gmra.mxu0 %vm697_vm1, %v20637_v56  ;;  %12055 = vmatprep.mubr.msk.bf16.mxu1 %vm697_vm1, %v20638_v21  ;;  %v1552_v56 = vadd.f32 %v16510_v55, %v20642_v3  ;;  %v20645_v21 = vld [vmem:[#allocation66_spill] sm:$0xff]  ;;  %v20649_v3 = vld [vmem:[#allocation68_spill] sm:$0xff] }
 0x28b   : > { %12185 = vmatprep.mubr.msk.bf16.mxu0 %vm697_vm1, %v20639_v40  ;;  %20644 = vst [vmem:[#allocation2_spill] sm:$0xff] %v17161_v10  ;;  %v20654_v10 = vld [vmem:[#allocation91_spill] sm:$0xff] }
 0x28c   : > { %v4025_v40 = vadd.f32 %v3852_v37, %v1552_v56  ;;  %v20651_v56 = vld [vmem:[#allocation31_spill] sm:$0xff] }
 0x28d   : > { %v1555_v35 = vadd.f32 %v16510_v55, %v20651_v56  ;;  %v20657_v56 = vld [vmem:[#allocation312_spill] sm:$0xff] }
 0x28e   : > { %v17167_v51 = vadd.f32 %v5365_v8, %v4025_v40  ;;  %v17180_v8 = vld [vmem:[%s19141_s2] ss:$0 sm:$0xff] }
 0x28f   : > { %v11833_v61 = vpop.f32.mrf.mxu1  ;;  %v20652_v40 = vld [vmem:[#allocation286_spill] sm:$0xff]  ;;  %v1556_v28 = vadd.f32 %v17180_v8, %v20654_v10 }
 0x290   : > { %20647 = vst [vmem:[#allocation237_spill] sm:$0xff] %v17167_v51  ;;  %v11963_v37 = vpop.f32.mrf.mxu0  ;;  %v4030_v48 = vadd.f32 %v11833_v61, %v1557_v49  ;;  %v1558_v5 = vadd.f32 %v17180_v8, %v20652_v40  ;;  %v20656_v61 = vld [vmem:[#allocation79_spill] sm:$0xff] }
 0x291   : > { %12056 = vmatmul.mubr.msk.bf16.gmra.mxu1 %vm697_vm1, %v20645_v21  ;;  %v3865_v23 = vpop.f32.mrf.mxu1  ;;  %v20675_v21 = vld [vmem:[#allocation104_spill] sm:$0xff] }
 0x292   : > { %12186 = vmatmul.mubr.msk.bf16.gmra.mxu0 %vm697_vm1, %v20646_v22  ;;  %12059 = vmatprep.mubr.msk.bf16.mxu1 %vm697_vm1, %v20649_v3  ;;  %v5378_v15 = vpop.f32.mrf.mxu0  ;;  %v17184_v54 = vadd.f32 %v11963_v37, %v4030_v48  ;;  %v4028_v22 = vadd.f32 %v3865_v23, %v1555_v35  ;;  %v20659_v35 = vld [vmem:[#allocation81_spill] sm:$0xff]  ;;  %v20660_v23 = vld [vmem:[#allocation318_spill] sm:$0xff] }
 0x293   : > { %12189 = vmatprep.mubr.msk.bf16.mxu0 %vm697_vm1, %v20650_v2  ;;  %v11834_v2 = vpop.f32.mrf.mxu1 }
 0x294   : > { %20653 = vst [vmem:[#allocation7_spill] sm:$0xff] %v17184_v54  ;;  %v11964_v51 = vpop.f32.mrf.mxu0  ;;  %v17188_v55 = vadd.f32 %v5378_v15, %v4028_v22  ;;  %v4031_v49 = vadd.f32 %v11834_v2, %v1558_v5  ;;  %v20662_v22 = vld [vmem:[#allocation45_spill] sm:$0xff]  ;;  %v20663_v5 = vld [vmem:[#allocation291_spill] sm:$0xff]  ;;  %v20666_v54 = vld [vmem:[#allocation94_spill] sm:$0xff] }
 0x295   : > { %v3868_v14 = vpop.f32.mrf.mxu1  ;;  %v1561_v2 = vadd.f32 %v17180_v8, %v20662_v22 }
 0x296   : > { %20655 = vst [vmem:[#allocation8_spill] sm:$0xff] %v17188_v55  ;;  %v17194_v3 = vadd.f32 %v11964_v51, %v4031_v49  ;;  %v4029_v37 = vadd.f32 %v3868_v14, %v1556_v28  ;;  %v5381_v48 = vpop.f32.mrf.mxu0  ;;  %v20664_v28 = vld [vmem:[#allocation298_spill] sm:$0xff] }
 0x298   : > { %20658 = vst [vmem:[#allocation246_spill] sm:$0xff] %v17194_v3  ;;  %v17200_v10 = vadd.f32 %v5381_v48, %v4029_v37  ;;  %v1562_v3 = vadd.f32 %v17180_v8, %v20664_v28  ;;  %v20667_v37 = vld [vmem:[#allocation322_spill] sm:$0xff] }
 0x299   : > { %12060 = vmatmul.mubr.msk.bf16.gmra.mxu1 %vm697_vm1, %v20656_v61 }
 0x29a   : > { %12190 = vmatmul.mubr.msk.bf16.gmra.mxu0 %vm697_vm1, %v20657_v56  ;;  %12063 = vmatprep.mubr.msk.bf16.mxu1 %vm697_vm1, %v20659_v35  ;;  %20661 = vst [vmem:[#allocation55_spill] sm:$0xff] %v17200_v10  ;;  %v1559_v56 = vadd.f32 %v17180_v8, %v20663_v5  ;;  %v20668_v10 = vld [vmem:[#allocation95_spill] sm:$0xff] }
 0x29b   : > { %12193 = vmatprep.mubr.msk.bf16.mxu0 %vm697_vm1, %v20660_v23 }
 0x29d   : > { %v11837_v15 = vpop.f32.mrf.mxu1  ;;  %v11967_v40 = vpop.f32.mrf.mxu0 }
 0x29e   : > { %v4034_v51 = vadd.f32 %v11837_v15, %v1561_v2  ;;  %v20669_v2 = vld [vmem:[#allocation98_spill] sm:$0xff]  ;;  %v20670_v15 = vld [vmem:[#allocation48_spill] sm:$0xff] }
 0x29f   : > { %v3881_v49 = vpop.f32.mrf.mxu1  ;;  %v5394_v14 = vpop.f32.mrf.mxu0  ;;  %v1560_v5 = vadd.f32 %v17180_v8, %v20670_v15  ;;  %v20680_v15 = vld [vmem:[#allocation61_spill] sm:$0xff] }
 0x2a0   : > { %v17208_v55 = vadd.f32 %v11967_v40, %v4034_v51  ;;  %v4032_v48 = vadd.f32 %v3881_v49, %v1559_v56  ;;  %v20674_v49 = vld [vmem:[#allocation301_spill] sm:$0xff] }
 0x2a1   : > { %12064 = vmatmul.mubr.msk.bf16.gmra.mxu1 %vm697_vm1, %v20666_v54  ;;  %v11838_v22 = vpop.f32.mrf.mxu1  ;;  %v11968_v23 = vpop.f32.mrf.mxu0  ;;  %v1565_v35 = vadd.f32 %v17180_v8, %v20674_v49 }
 0x2a2   : > { %20665 = vst [vmem:[#allocation11_spill] sm:$0xff] %v17208_v55  ;;  %12194 = vmatmul.mubr.msk.bf16.gmra.mxu0 %vm697_vm1, %v20667_v37  ;;  %12067 = vmatprep.mubr.msk.bf16.mxu1 %vm697_vm1, %v20668_v10  ;;  %v17220_v40 = vadd.f32 %v5394_v14, %v4032_v48  ;;  %v4035_v51 = vadd.f32 %v11838_v22, %v1562_v3  ;;  %v20677_v14 = vld [vmem:[#allocation97_spill] sm:$0xff] }
 0x2a3   : > { %12197 = vmatprep.mubr.msk.bf16.mxu0 %vm697_vm1, %v20669_v2  ;;  %v3884_v28 = vpop.f32.mrf.mxu1  ;;  %v5397_v37 = vpop.f32.mrf.mxu0  ;;  %v20676_v2 = vld [vmem:[#allocation325_spill] sm:$0xff]  ;;  %v1563_v3 = vadd.f32 %v17180_v8, %v20677_v14 }
 0x2a4   : > { %20671 = vst [vmem:[#allocation252_spill] sm:$0xff] %v17220_v40  ;;  %v17222_v55 = vadd.f32 %v11968_v23, %v4035_v51  ;;  %v4033_v54 = vadd.f32 %v3884_v28, %v1560_v5  ;;  %v20678_v48 = vld [vmem:[#allocation105_spill] sm:$0xff]  ;;  %v1566_v5 = vadd.f32 %v17180_v8, %v20680_v15 }
 0x2a6   : > { %20672 = vst [vmem:[#allocation15_spill] sm:$0xff] %v17222_v55  ;;  %v17224_v56 = vadd.f32 %v5397_v37, %v4033_v54  ;;  %v20679_v54 = vld [vmem:[#allocation137_spill] sm:$0xff] }
 0x2a8   : > { %20673 = vst [vmem:[#allocation258_spill] sm:$0xff] %v17224_v56  ;;  %v20682_v56 = vld [vmem:[#allocation307_spill] sm:$0xff] }
 0x2a9   : > { %v11841_v10 = vpop.f32.mrf.mxu1  ;;  %12068 = vmatmul.mubr.msk.bf16.gmra.mxu1 %vm697_vm1, %v20675_v21  ;;  %v1564_v14 = vadd.f32 %v17180_v8, %v20682_v56  ;;  %v20688_v56 = vld [vmem:[#allocation107_spill] sm:$0xff] }
 0x2aa   : > { %v11971_v61 = vpop.f32.mrf.mxu0  ;;  %12198 = vmatmul.mubr.msk.bf16.gmra.mxu0 %vm697_vm1, %v20676_v2  ;;  %v4038_v23 = vadd.f32 %v11841_v10, %v1565_v35  ;;  %12071 = vmatprep.mubr.msk.bf16.mxu1 %vm697_vm1, %v20678_v48  ;;  %v20684_v48 = vld [vmem:[#allocation174_spill] sm:$0xff] }
 0x2ab   : > { %12201 = vmatprep.mubr.msk.bf16.mxu0 %vm697_vm1, %v20679_v54  ;;  %v3897_v37 = vpop.f32.mrf.mxu1  ;;  %v1440_v54 = vadd.f32 %v17180_v8, %v20684_v48 }
 0x2ac   : > { %v5410_v22 = vpop.f32.mrf.mxu0  ;;  %v17240_v51 = vadd.f32 %v11971_v61, %v4038_v23  ;;  %v4036_v28 = vadd.f32 %v3897_v37, %v1563_v3  ;;  %v20686_v61 = vld [vmem:[#allocation115_spill] sm:$0xff]  ;;  %v20687_v23 = vld [vmem:[#allocation328_spill] sm:$0xff] }
 0x2ad   : > { %v11842_v49 = vpop.f32.mrf.mxu1  ;;  %v3913_v37 = vadd.f32 %v20688_v56, %v1440_v54 }
 0x2ae   : > { %20681 = vst [vmem:[#allocation69_spill] sm:$0xff] %v17240_v51  ;;  %v11972_v2 = vpop.f32.mrf.mxu0  ;;  %v17244_v35 = vadd.f32 %v5410_v22, %v4036_v28  ;;  %v4039_v10 = vadd.f32 %v11842_v49, %v1566_v5  ;;  %v20690_v5 = vld [vmem:[#allocation89_spill] sm:$0xff]  ;;  %v20691_v49 = vld [vmem:[#allocation116_spill] sm:$0xff]  ;;  %v20695_v51 = vld [vmem:[#allocation63_spill] sm:$0xff] }
 0x2af   : > { %v3900_v55 = vpop.f32.mrf.mxu1  ;;  %v5426_v54 = vadd.f32 %v20695_v51, %v3913_v37 }
 0x2b0   : > { %20683 = vst [vmem:[#allocation18_spill] sm:$0xff] %v17244_v35  ;;  %v5413_v40 = vpop.f32.mrf.mxu0  ;;  %v17248_v21 = vadd.f32 %v11972_v2, %v4039_v10  ;;  %v4037_v38 = vadd.f32 %v3900_v55, %v1564_v14  ;;  %v20692_v2 = vld [vmem:[#allocation224_spill] sm:$0xff] }
 0x2b1   : > { %v11977_v15 = vpop.f32.mrf.mxu1  ;;  %12072 = vmatmul.mubr.msk.bf16.gmra.mxu1 %vm697_vm1, %v20686_v61  ;;  %v20694_v10 = vld [vmem:[#allocation324_spill] sm:$0xff] }
 0x2b2   : > { %20685 = vst [vmem:[#allocation264_spill] sm:$0xff] %v17248_v21  ;;  %v12107_v3 = vpop.f32.mrf.mxu0  ;;  %12202 = vmatmul.mubr.msk.bf16.gmra.mxu0 %vm697_vm1, %v20687_v23  ;;  %v17255_v22 = vadd.f32 %v5413_v40, %v4037_v38  ;;  %v6121_v28 = vadd.f32 %v11977_v15, %v20690_v5  ;;  %12075 = vmatprep.mubr.msk.bf16.mxu1 %vm697_vm1, %v20691_v49  ;;  %v20697_v40 = vld [vmem:[#allocation327_spill] sm:$0xff] }
 0x2b3   : > { %12205 = vmatprep.mubr.msk.bf16.mxu0 %vm697_vm1, %v20692_v2  ;;  %v5608_v55 = vpop.f32.mrf.mxu1 }
 0x2b4   : > { %20689 = vst [vmem:[#allocation270_spill] sm:$0xff] %v17255_v22  ;;  %v6342_v48 = vpop.f32.mrf.mxu0  ;;  %v17262_v14 = vadd.f32 %v12107_v3, %v6121_v28  ;;  %v6119_v21 = vadd.f32 %v5608_v55, %v20694_v10  ;;  %v20698_v22 = vld [vmem:[#allocation180_spill] sm:$0xff]  ;;  %v20700_v28 = vld [vmem:[#allocation126_spill] sm:$0xff]  ;;  %v20701_v10 = vld [vmem:[#allocation119_spill] sm:$0xff] }
 0x2b5   : > { %v11978_v35 = vpop.f32.mrf.mxu1  ;;  %v1444_v49 = vadd.f32 %v17180_v8, %v20698_v22 }
 0x2b6   : > { %20693 = vst [vmem:[#allocation21_spill] sm:$0xff] %v17262_v14  ;;  %v12108_v23 = vpop.f32.mrf.mxu0  ;;  %v17266_v38 = vadd.f32 %v6342_v48, %v6119_v21  ;;  %v6122_v15 = vadd.f32 %v11978_v35, %v20697_v40  ;;  %v20702_v21 = vld [vmem:[#allocation315_spill] sm:$0xff]  ;;  %v20704_v35 = vld [vmem:[#allocation102_spill] sm:$0xff] }
 0x2b7   : > { %v5611_v56 = vpop.f32.mrf.mxu1  ;;  %v3917_v51 = vadd.f32 %v20702_v21, %v1444_v49  ;;  %v20705_v40 = vld [vmem:[#allocation127_spill] sm:$0xff]  ;;  %v20709_v14 = vld [vmem:[#allocation74_spill] sm:$0xff] }
 0x2b8   : > { %20696 = vst [vmem:[#allocation274_spill] sm:$0xff] %v17266_v38  ;;  %v6345_v5 = vpop.f32.mrf.mxu0  ;;  %v17271_v2 = vadd.f32 %v12108_v23, %v6122_v15  ;;  %v6120_v61 = vadd.f32 %v5611_v56, %v5426_v54  ;;  %v20706_v23 = vld [vmem:[#allocation236_spill] sm:$0xff]  ;;  %v20708_v56 = vld [vmem:[#allocation110_spill] sm:$0xff] }
 0x2b9   : > { %v11981_v3 = vpop.f32.mrf.mxu1  ;;  %12076 = vmatmul.mubr.msk.bf16.gmra.mxu1 %vm697_vm1, %v20700_v28  ;;  %v5430_v49 = vadd.f32 %v20709_v14, %v3917_v51 }
 0x2ba   : > { %20699 = vst [vmem:[#allocation78_spill] sm:$0xff] %v17271_v2  ;;  %v12111_v55 = vpop.f32.mrf.mxu0  ;;  %12206 = vmatmul.mubr.msk.bf16.gmra.mxu0 %vm697_vm1, %v20701_v10  ;;  %v17278_v37 = vadd.f32 %v6345_v5, %v6120_v61  ;;  %v6125_v48 = vadd.f32 %v11981_v3, %v20704_v35  ;;  %12079 = vmatprep.mubr.msk.bf16.mxu1 %vm697_vm1, %v20705_v40  ;;  %v20711_v5 = vld [vmem:[#allocation330_spill] sm:$0xff] }
 0x2bb   : > { %12209 = vmatprep.mubr.msk.bf16.mxu0 %vm697_vm1, %v20706_v23  ;;  %v5624_v22 = vpop.f32.mrf.mxu1 }
 0x2bc   : > { %20703 = vst [vmem:[#allocation29_spill] sm:$0xff] %v17278_v37  ;;  %v6358_v54 = vpop.f32.mrf.mxu0  ;;  %v17285_v15 = vadd.f32 %v12111_v55, %v6125_v48  ;;  %v6123_v2 = vadd.f32 %v5624_v22, %v20708_v56  ;;  %v20712_v37 = vld [vmem:[#allocation187_spill] sm:$0xff]  ;;  %v20714_v48 = vld [vmem:[#allocation136_spill] sm:$0xff] }
 0x2bd   : > { %v11982_v38 = vpop.f32.mrf.mxu1  ;;  %v1448_v40 = vadd.f32 %v17180_v8, %v20712_v37  ;;  %v20715_v56 = vld [vmem:[#allocation311_spill] sm:$0xff] }
 0x2be   : > { %20707 = vst [vmem:[#allocation280_spill] sm:$0xff] %v17285_v15  ;;  %v12112_v10 = vpop.f32.mrf.mxu0  ;;  %v17289_v61 = vadd.f32 %v6358_v54, %v6123_v2  ;;  %v6126_v3 = vadd.f32 %v11982_v38, %v20711_v5  ;;  %v20716_v2 = vld [vmem:[#allocation88_spill] sm:$0xff]  ;;  %v20719_v5 = vld [vmem:[#allocation139_spill] sm:$0xff] }
 0x2bf   : > { %v5627_v21 = vpop.f32.mrf.mxu1  ;;  %v3921_v14 = vadd.f32 %v20716_v2, %v1448_v40  ;;  %v20718_v38 = vld [vmem:[#allocation332_spill] sm:$0xff] }
 0x2c0   : > { %20710 = vst [vmem:[#allocation31_spill] sm:$0xff] %v17289_v61  ;;  %v6361_v35 = vpop.f32.mrf.mxu0  ;;  %v17294_v23 = vadd.f32 %v12112_v10, %v6126_v3  ;;  %v6124_v28 = vadd.f32 %v5627_v21, %v5430_v49  ;;  %v20720_v10 = vld [vmem:[#allocation245_spill] sm:$0xff]  ;;  %v20722_v21 = vld [vmem:[#allocation106_spill] sm:$0xff] }
 0x2c1   : > { %v11985_v55 = vpop.f32.mrf.mxu1  ;;  %12080 = vmatmul.mubr.msk.bf16.gmra.mxu1 %vm697_vm1, %v20714_v48 }
 0x2c2   : > { %20713 = vst [vmem:[#allocation286_spill] sm:$0xff] %v17294_v23  ;;  %v12115_v22 = vpop.f32.mrf.mxu0  ;;  %12210 = vmatmul.mubr.msk.bf16.gmra.mxu0 %vm697_vm1, %v20715_v56  ;;  %v17301_v51 = vadd.f32 %v6361_v35, %v6124_v28  ;;  %v6129_v54 = vadd.f32 %v11985_v55, %v20718_v38  ;;  %12083 = vmatprep.mubr.msk.bf16.mxu1 %vm697_vm1, %v20719_v5  ;;  %v20723_v28 = vld [vmem:[#allocation319_spill] sm:$0xff]  ;;  %v20725_v55 = vld [vmem:[#allocation334_spill] sm:$0xff] }
 0x2c3   : > { %12213 = vmatprep.mubr.msk.bf16.mxu0 %vm697_vm1, %v20720_v10  ;;  %v5640_v37 = vpop.f32.mrf.mxu1  ;;  %v5434_v35 = vadd.f32 %v20723_v28, %v3921_v14  ;;  %v20726_v5 = vld [vmem:[#allocation195_spill] sm:$0xff]  ;;  %v20729_v14 = vld [vmem:[#allocation238_spill] sm:$0xff] }
 0x2c4   : > { %20717 = vst [vmem:[#allocation91_spill] sm:$0xff] %v17301_v51  ;;  %v6374_v49 = vpop.f32.mrf.mxu0  ;;  %v17308_v3 = vadd.f32 %v12115_v22, %v6129_v54  ;;  %v6127_v56 = vadd.f32 %v5640_v37, %v20722_v21  ;;  %v1452_v10 = vadd.f32 %v17180_v8, %v20726_v5  ;;  %v17320_v22 = vld [vmem:[%s13070_s25 + $0x280] sm:$0xf]  ;;  %v17323_v54 = vld [vmem:[%s13070_s25 + $0x284] sm:$0xf]  ;;  %v20728_v21 = vld [vmem:[#allocation143_spill] sm:$0xff] }
 0x2c5   : > { %v11986_v23 = vpop.f32.mrf.mxu1  ;;  %v20732_v5 = vld [vmem:[#allocation229_spill] sm:$0xff] }
 0x2c6   : > { %20721 = vst [vmem:[#allocation45_spill] sm:$0xff] %v17308_v3  ;;  %v12116_v40 = vpop.f32.mrf.mxu0  ;;  %v17312_v2 = vadd.f32 %v6374_v49, %v6127_v56  ;;  %v6130_v38 = vadd.f32 %v11986_v23, %v20725_v55  ;;  %v20730_v23 = vld [vmem:[#allocation128_spill] sm:$0xff] }
 0x2c7   : > { %v5643_v51 = vpop.f32.mrf.mxu1  ;;  %v3925_v49 = vadd.f32 %v20730_v23, %v1452_v10  ;;  %v20733_v55 = vld [vmem:[#allocation144_spill] sm:$0xff]  ;;  %v20736_v10 = vld [vmem:[#allocation5_spill] sm:$0xff] }
 0x2c8   : > { %20724 = vst [vmem:[#allocation291_spill] sm:$0xff] %v17312_v2  ;;  %v6377_v61 = vpop.f32.mrf.mxu0  ;;  %v17317_v15 = vadd.f32 %v12116_v40, %v6130_v38  ;;  %v6128_v48 = vadd.f32 %v5643_v51, %v5434_v35  ;;  %v20734_v51 = vld [vmem:[#allocation244_spill] sm:$0xff]  ;;  %v6251_v2 = vshll.u32 %v17320_v22, 16 }
 0x2c9   : > { %v11989_v37 = vpop.f32.mrf.mxu1  ;;  %12084 = vmatmul.mubr.msk.bf16.gmra.mxu1 %vm697_vm1, %v20728_v21 }
 0x2ca   : > { %20727 = vst [vmem:[#allocation298_spill] sm:$0xff] %v17317_v15  ;;  %v12119_v56 = vpop.f32.mrf.mxu0  ;;  %12214 = vmatmul.mubr.msk.bf16.gmra.mxu0 %vm697_vm1, %v20729_v14  ;;  %v17330_v28 = vadd.f32 %v6377_v61, %v6128_v48  ;;  %v6133_v40 = vadd.f32 %v11989_v37, %v20732_v5  ;;  %12087 = vmatprep.mubr.msk.bf16.mxu1 %vm697_vm1, %v20733_v55  ;;  %v6248_v15 = vshrl.u32 %v17320_v22, 16  ;;  %v6261_v14 = vshrl.u32 %v17323_v54, 16  ;;  %v20738_v55 = vld [vmem:[#allocation130_spill] sm:$0xff] }
 0x2cb   : > { %12217 = vmatprep.mubr.msk.bf16.mxu0 %vm697_vm1, %v20734_v51  ;;  %v5656_v35 = vpop.f32.mrf.mxu1  ;;  %v6257_v61 = vshll.u32 %v17323_v54, 16  ;;  %v5438_v3 = vadd.f32 %v20738_v55, %v3925_v49 }
 0x2cc   : > { %20731 = vst [vmem:[#allocation48_spill] sm:$0xff] %v17330_v28  ;;  %v6390_v38 = vpop.f32.mrf.mxu0  ;;  %v17341_v48 = vadd.f32 %v12119_v56, %v6133_v40  ;;  %v6131_v37 = vadd.f32 %v5656_v35, %v20736_v10  ;;  %v20737_v28 = vld [vmem:[#allocation203_spill] sm:$0xff]  ;;  %v6250_v62 = vrot.slane %v6248_v15, 4  ;;  %v6253_v56 = vrot.slane %v6251_v2, 5 }
 0x2cd   : > { %v11990_v23 = vpop.f32.mrf.mxu1  ;;  %v1456_v51 = vadd.f32 %v17180_v8, %v20737_v28  ;;  %v17353_v40 = vrot.slane %v6257_v61, 5  ;;  %v6263_v35 = vrot.slane %v6261_v14, 4  ;;  %v17356_v10 = vld [vmem:[%s13070_s25 + $0x28c] sm:$0xf]  ;;  %v6267_v15 = vshll.u32 %v17351_v30, 16  ;;  %v20746_v61 = vld [vmem:[#allocation250_spill] sm:$0xff] }
 0x2ce   : > { %20735 = vst [vmem:[#allocation301_spill] sm:$0xff] %v17341_v48  ;;  %v12120_v5 = vpop.f32.mrf.mxu0  ;;  %v17347_v21 = vadd.f32 %v6390_v38, %v6131_v37  ;;  %v6134_v19 = vadd.f32 %v11990_v23, %v20740_v17  ;;  %v20743_v38 = vld [vmem:[#allocation149_spill] sm:$0xff]  ;;  %v20744_v37 = vld [vmem:[#allocation60_spill] sm:$0xff]  ;;  %v6271_v2 = vshrl.u32 %v17351_v30, 16  ;;  %v20747_v23 = vld [vmem:[#allocation150_spill] sm:$0xff] }
 0x2cf   : > { %v5659_v33 = vpop.f32.mrf.mxu1  ;;  %v3929_v49 = vadd.f32 %v20742_v36, %v1456_v51  ;;  %v20748_v36 = vld [vmem:[#allocation284_spill] sm:$0xff] }
 0x2d0   : > { %20739 = vst [vmem:[#allocation97_spill] sm:$0xff] %v17347_v21  ;;  %v6393_v16 = vpop.f32.mrf.mxu0  ;;  %v17358_v48 = vadd.f32 %v12120_v5, %v6134_v19  ;;  %v6132_v28 = vadd.f32 %v5659_v33, %v5438_v3  ;;  %v6281_v33 = vshrl.u32 %v17356_v10, 16  ;;  %v6277_v3 = vshll.u32 %v17356_v10, 16 }
 0x2d1   : > { %v11993_v55 = vpop.f32.mrf.mxu1  ;;  %12088 = vmatmul.mubr.msk.bf16.gmra.mxu1 %vm697_vm1, %v20743_v38  ;;  %v6269_v38 = vrot.slane %v6267_v15, 5 }
 0x2d2   : > { %20741 = vst [vmem:[#allocation61_spill] sm:$0xff] %v17358_v48  ;;  %v12123_v17 = vpop.f32.mrf.mxu0  ;;  %12218 = vmatmul.mubr.msk.bf16.gmra.mxu0 %vm697_vm1, %v20744_v37  ;;  %v17367_v14 = vadd.f32 %v6393_v16, %v6132_v28  ;;  %v6137_v19 = vadd.f32 %v11993_v55, %v20746_v61  ;;  %12091 = vmatprep.mubr.msk.bf16.mxu1 %vm697_vm1, %v20747_v23  ;;  %v20749_v28 = vld [vmem:[#allocation118_spill] sm:$0xff]  ;;  %v20750_v61 = vld [vmem:[#allocation101_spill] sm:$0xff]  ;;  %v6279_v26 = vrot.slane %v6277_v3, 5  ;;  %v6283_v41 = vrot.slane %v6281_v33, 4 }
 0x2d3   : > { %12221 = vmatprep.mubr.msk.bf16.mxu0 %vm697_vm1, %v20748_v36  ;;  %v5672_v51 = vpop.f32.mrf.mxu1  ;;  %v6254_v37 = vor.u32 %v6253_v56, %v6250_v62  ;;  %v6264_v48 = vor.u32 %v6263_v35, %v17353_v40  ;;  %v6273_v36 = vrot.slane %v6271_v2, 4  ;;  %v20752_v62 = vld [vmem:[#allocation211_spill] sm:$0xff]  ;;  %v6287_v3 = vshll.u32 %v363_v27, 16 }
 0x2d4   : > { %20745 = vst [vmem:[#allocation307_spill] sm:$0xff] %v17367_v14  ;;  %v6406_v5 = vpop.f32.mrf.mxu0  ;;  %v17377_v16 = vadd.f32 %v12123_v17, %v6137_v19  ;;  %v6135_v55 = vadd.f32 %v5672_v51, %v20749_v28  ;;  %v5442_v14 = vadd.f32 %v20750_v61, %v3929_v49  ;;  %v1460_v56 = vadd.f32 %v17180_v8, %v20752_v62  ;;  %v20754_v61 = vld [vmem:[#allocation331_spill] sm:$0xff]  ;;  %v20758_v62 = vld [vmem:[#allocation272_spill] sm:$0xff] }
 0x2d5   : > { %v11994_v21 = vpop.f32.mrf.mxu1  ;;  %v6255_v19 = vrot.slane %v6254_v37, 4  ;;  %v6265_v51 = vrot.slane %v6264_v48, 4  ;;  %v6274_v33 = vor.u32 %v6273_v36, %v6269_v38  ;;  %v20759_v48 = vld [vmem:[#allocation154_spill] sm:$0xff] }
 0x2d6   : > { %v12124_v23 = vpop.f32.mrf.mxu0  ;;  %v17381_v44 = vadd.f32 %v6406_v5, %v6135_v55  ;;  %v6138_v25 = vadd.f32 %v11994_v21, %v20751_v9  ;;  %v3933_v15 = vadd.f32 %v20754_v61, %v1460_v56  ;;  %v20755_v5 = vld [vmem:[#allocation152_spill] sm:$0xff] }
 0x2d7   : > { %v5675_v35 = vpop.f32.mrf.mxu1  ;;  %v20756_v21 = vld [vmem:[#allocation248_spill] sm:$0xff]  ;;  %v6260_v56 = vsel %vm13960_vm7, %v6255_v19, %v17353_v40  ;;  %v6270_v27 = vsel %vm13960_vm7, %v6265_v51, %v6269_v38  ;;  %v20764_v51 = vld [vmem:[#allocation219_spill] sm:$0xff] }
 0x2d8   : > { %v6409_v17 = vpop.f32.mrf.mxu0  ;;  %v17387_v28 = vadd.f32 %v12124_v23, %v6138_v25  ;;  %v6136_v49 = vadd.f32 %v5675_v35, %v5442_v14  ;;  %v6284_v25 = vor.u32 %v6283_v41, %v6279_v26  ;;  %v20760_v35 = vld [vmem:[#allocation320_spill] sm:$0xff]  ;;  %v17412_v41 = vcombine.low %v17320_v22, %v17323_v54 }
 0x2d9   : > { %v11997_v2 = vpop.f32.mrf.mxu1  ;;  %12092 = vmatmul.mubr.msk.bf16.gmra.mxu1 %vm697_vm1, %v20755_v5  ;;  %v20762_v40 = vld [vmem:[#allocation340_spill] sm:$0xff] }
 0x2da   : > { %20753 = vst [vmem:[#allocation174_spill] sm:$0xff] %v17387_v28  ;;  %v12127_v9 = vpop.f32.mrf.mxu0  ;;  %12222 = vmatmul.mubr.msk.bf16.gmra.mxu0 %vm697_vm1, %v20756_v21  ;;  %v17394_v55 = vadd.f32 %v6409_v17, %v6136_v49  ;;  %v6141_v37 = vadd.f32 %v11997_v2, %v20758_v62  ;;  %12095 = vmatprep.mubr.msk.bf16.mxu1 %vm697_vm1, %v20759_v48  ;;  %v20761_v49 = vld [vmem:[#allocation112_spill] sm:$0xff]  ;;  %v6289_v21 = vrot.slane %v6287_v3, 5  ;;  %v6285_v38 = vrot.slane %v6284_v25, 4 }
 0x2db   : > { %12225 = vmatprep.mubr.msk.bf16.mxu0 %vm697_vm1, %v16615_v12  ;;  %v5688_v14 = vpop.f32.mrf.mxu1  ;;  %v5446_v61 = vadd.f32 %v20761_v49, %v3933_v15  ;;  %v6275_v12 = vrot.slane %v6274_v33, 4  ;;  %v17417_v28 = vcombine.low %v6260_v56, %v6270_v27  ;;  %v20765_v49 = vld [vmem:[#allocation335_spill] sm:$0xff]  ;;  %v20766_v33 = vld [vmem:[#allocation156_spill] sm:$0xff]  ;;  %v20767_v56 = vld [vmem:[#allocation321_spill] sm:$0xff] }
 0x2dc   : > { %20757 = vst [vmem:[#allocation107_spill] sm:$0xff] %v17394_v55  ;;  %v6422_v23 = vpop.f32.mrf.mxu0  ;;  %v17406_v36 = vadd.f32 %v12127_v9, %v6141_v37  ;;  %v6139_v17 = vadd.f32 %v5688_v14, %v20760_v35  ;;  %v1464_v9 = vadd.f32 %v17180_v8, %v20764_v51  ;;  %v17444_v51 = vcombine.low %v17351_v30, %v17356_v10  ;;  %v20773_v10 = vld [vmem:[#allocation38_spill] sm:$0xff] }
 0x2dd   : > { %v11998_v2 = vpop.f32.mrf.mxu1  ;;  %20763 = vst [vmem:[#allocation89_spill] sm:$0xff] %v17417_v28  ;;  %v6280_v25 = vsel %vm13960_vm7, %v6275_v12, %v6279_v26 }
 0x2de   : > { %v12128_v62 = vpop.f32.mrf.mxu0  ;;  %v17414_v55 = vadd.f32 %v6422_v23, %v6139_v17  ;;  %v6142_v19 = vadd.f32 %v11998_v2, %v20762_v40  ;;  %v3937_v22 = vadd.f32 %v20765_v49, %v1464_v9  ;;  %v6290_v17 = vsel %vm13960_vm7, %v6285_v38, %v6289_v21  ;;  %v20768_v40 = vld [vmem:[#allocation278_spill] sm:$0xff]  ;;  %v20771_v49 = vld [vmem:[#allocation341_spill] sm:$0xff] }
 0x2df   : > { %v5691_v37 = vpop.f32.mrf.mxu1  ;;  %v17446_v9 = vcombine.low %v6280_v25, %v6290_v17 }
 0x2e0   : > { %v6425_v15 = vpop.f32.mrf.mxu0  ;;  %v17421_v14 = vadd.f32 %v12128_v62, %v6142_v19  ;;  %v6140_v35 = vadd.f32 %v5691_v37, %v5446_v61  ;;  %v20770_v37 = vld [vmem:[#allocation109_spill] sm:$0xff] }
 0x2e1   : > { %v12001_v54 = vpop.f32.mrf.mxu1  ;;  %12096 = vmatmul.mubr.msk.bf16.gmra.mxu1 %vm697_vm1, %v20766_v33  ;;  %20769 = vst [vmem:[#allocation324_spill] sm:$0xff] %v17446_v9 }
 0x2e2   : > { %v12131_v3 = vpop.f32.mrf.mxu0  ;;  %12226 = vmatmul.mubr.msk.bf16.gmra.mxu0 %vm697_vm1, %v16627_v1  ;;  %v17430_v23 = vadd.f32 %v6425_v15, %v6140_v35  ;;  %v6145_v27 = vadd.f32 %v12001_v54, %v20767_v56  ;;  %12099 = vmatprep.mubr.msk.bf16.mxu1 %vm697_vm1, %v17412_v41  ;;  %v5450_v15 = vadd.f32 %v20770_v37, %v3937_v22  ;;  %v20810_v1 = vld [vmem:[#allocation287_spill] sm:$0xff] }
 0x2e3   : > { %12229 = vmatprep.mubr.msk.bf16.mxu0 %vm697_vm1, %v17417_v28  ;;  %v5704_v61 = vpop.f32.mrf.mxu1 }
 0x2e4   : > { %v6438_v2 = vpop.f32.mrf.mxu0  ;;  %v17439_v62 = vadd.f32 %v12131_v3, %v6145_v27  ;;  %v6143_v19 = vadd.f32 %v5704_v61, %v20768_v40  ;;  %v20772_v3 = vld [vmem:[#allocation228_spill] sm:$0xff] }
 0x2e5   : > { %v12002_v12 = vpop.f32.mrf.mxu1  ;;  %v1468_v56 = vadd.f32 %v17180_v8, %v20772_v3 }
 0x2e6   : > { %v12132_v26 = vpop.f32.mrf.mxu0  ;;  %v17449_v35 = vadd.f32 %v6438_v2, %v6143_v19  ;;  %v6146_v21 = vadd.f32 %v12002_v12, %v20771_v49  ;;  %v20774_v2 = vld [vmem:[#allocation113_spill] sm:$0xff] }
 0x2e7   : > { %v5707_v38 = vpop.f32.mrf.mxu1  ;;  %v3941_v22 = vadd.f32 %v20773_v10, %v1468_v56 }
 0x2e8   : > { %v6441_v54 = vpop.f32.mrf.mxu0  ;;  %v17454_v27 = vadd.f32 %v12132_v26, %v6146_v21  ;;  %v6144_v61 = vadd.f32 %v5707_v38, %v5450_v15  ;;  %v20775_v21 = vld [vmem:[#allocation230_spill] sm:$0xff] }
 0x2e9   : > { %v12005_v40 = vpop.f32.mrf.mxu1  ;;  %12100 = vmatmul.mubr.msk.bf16.gmra.mxu1 %vm697_vm1, %v17444_v51  ;;  %v5454_v38 = vadd.f32 %v20775_v21, %v3941_v22 }
 0x2ea   : > { %v12135_v30 = vpop.f32.mrf.mxu0  ;;  %12230 = vmatmul.mubr.msk.bf16.gmra.mxu0 %vm697_vm1, %v17446_v9  ;;  %v17461_v25 = vadd.f32 %v6441_v54, %v6144_v61  ;;  %v6149_v17 = vadd.f32 %v12005_v40, %v16585_v13  ;;  %12235 = vmatprep.mubr.msk.bf16.mxu1 %vm697_vm1, %v20774_v2  ;;  %v8438_v61 = vsel %vm890_vm0, %v17084_v46, 0  ;;  %v20776_v40 = vld [vmem:[#allocation39_spill] sm:$0xff]  ;;  %v20777_v2 = vld [vmem:[#allocation157_spill] sm:$0xff]  ;;  %v20798_v9 = vld [vmem:[#allocation162_spill] sm:$0xff] }
 0x2eb   : > { %12365 = vmatprep.mubr.msk.bf16.mxu0 %vm697_vm1, %v20446_v4  ;;  %v5720_v19 = vpop.f32.mrf.mxu1  ;;  %v9142_v4 = vsel %vm890_vm0, %v17093_v18, 0 }
 0x2ec   : > { %v6454_v12 = vpop.f32.mrf.mxu0  ;;  %v17468_v26 = vadd.f32 %v12135_v30, %v6149_v17  ;;  %v6147_v37 = vadd.f32 %v5720_v19, %v16623_v11  ;;  %v1472_v30 = vadd.f32 %v17180_v8, %v20776_v40  ;;  %v20781_v40 = vld [vmem:[#allocation247_spill] sm:$0xff] }
 0x2ed   : > { %v12006_v15 = vpop.f32.mrf.mxu1 }
 0x2ee   : > { %v12136_v49 = vpop.f32.mrf.mxu0  ;;  %v17472_v54 = vadd.f32 %v6454_v12, %v6147_v37  ;;  %v6150_v13 = vadd.f32 %v12006_v15, %v16632_v32  ;;  %v20778_v32 = vld [vmem:[#allocation240_spill] sm:$0xff]  ;;  %v20779_v15 = vld [vmem:[#allocation159_spill] sm:$0xff] }
 0x2ef   : > { %v5723_v3 = vpop.f32.mrf.mxu1  ;;  %v3945_v19 = vadd.f32 %v20778_v32, %v1472_v30  ;;  %v1476_v30 = vadd.f32 %v17180_v8, %v20781_v40  ;;  %v20786_v40 = vld [vmem:[#allocation16_spill] sm:$0xff] }
 0x2f0   : > { %v6457_v56 = vpop.f32.mrf.mxu0  ;;  %v17481_v11 = vadd.f32 %v12136_v49, %v6150_v13  ;;  %v6148_v10 = vadd.f32 %v5723_v3, %v5454_v38  ;;  %v20780_v13 = vld [vmem:[#allocation239_spill] sm:$0xff] }
 0x2f1   : > { %v12009_v17 = vpop.f32.mrf.mxu1  ;;  %12236 = vmatmul.mubr.msk.bf16.vlgmr.msra.gmra.mxu1 %vm697_vm1, %v20777_v2  ;;  %v5458_v3 = vadd.f32 %v20780_v13, %v3945_v19  ;;  %v20782_v2 = vld [vmem:[#allocation52_spill] sm:$0xff] }
 0x2f2   : > { %v12139_v22 = vpop.f32.mrf.mxu0  ;;  %12366 = vmatmul.mubr.msk.bf16.vlgmr.msra.gmra.mxu0 %vm697_vm1, %v20458_v57  ;;  %v17488_v46 = vadd.f32 %v6457_v56, %v6148_v10  ;;  %v6153_v18 = vadd.f32 %v12009_v17, %v16661_v34  ;;  %12494 = vmatpush3.bf16.msra.mxu1 %v8438_v61  ;;  %v20785_v13 = vld [vmem:[#allocation336_spill] sm:$0xff] }
 0x2f3   : > { %12624 = vmatpush3.bf16.msra.mxu0 %v9142_v4  ;;  %v5736_v12 = vpop.f32.mrf.mxu1  ;;  %12239 = vmatprep.mubr.msk.bf16.mxu1 %vm697_vm1, %v20779_v15 }
 0x2f4   : > { %v6470_v37 = vpop.f32.mrf.mxu0  ;;  %12369 = vmatprep.mubr.msk.bf16.mxu0 %vm697_vm1, %v20461_v0  ;;  %v17495_v49 = vadd.f32 %v12139_v22, %v6153_v18  ;;  %v6151_v57 = vadd.f32 %v5736_v12, %v16664_v20  ;;  %v20783_v20 = vld [vmem:[#allocation255_spill] sm:$0xff] }
 0x2f5   : > { %v12010_v21 = vpop.f32.mrf.mxu1  ;;  %v3949_v32 = vadd.f32 %v20783_v20, %v1476_v30  ;;  %v20784_v18 = vld [vmem:[#allocation27_spill] sm:$0xff]  ;;  %v1480_v30 = vadd.f32 %v17180_v8, %v20786_v40  ;;  %v20787_v20 = vld [vmem:[#allocation41_spill] sm:$0xff] }
 0x2f6   : > { %v12140_v38 = vpop.f32.mrf.mxu0  ;;  %v17499_v56 = vadd.f32 %v6470_v37, %v6151_v57  ;;  %v6154_v34 = vadd.f32 %v12010_v21, %v16671_v31 }
 0x2f7   : > { %v5739_v61 = vpop.f32.mrf.mxu1 }
 0x2f8   : > { %v6473_v4 = vpop.f32.mrf.mxu0  ;;  %v17504_v10 = vadd.f32 %v12140_v38, %v6154_v34  ;;  %v6152_v0 = vadd.f32 %v5739_v61, %v5458_v3  ;;  %v5462_v3 = vadd.f32 %v20785_v13, %v3949_v32 }
 0x2f9   : > { %v12013_v17 = vpop.f32.mrf.mxu1  ;;  %12240 = vmatmul.mubr.msk.bf16.gmra.mxu1 %vm697_vm1, %v20782_v2 }
 0x2fa   : > { %v12143_v22 = vpop.f32.mrf.mxu0  ;;  %12370 = vmatmul.mubr.msk.bf16.gmra.mxu0 %vm697_vm1, %v20467_v7  ;;  %v17511_v19 = vadd.f32 %v6473_v4, %v6152_v0  ;;  %v6157_v31 = vadd.f32 %v12013_v17, %v16674_v42  ;;  %12243 = vmatprep.mubr.msk.bf16.mxu1 %vm697_vm1, %v20784_v18 }
 0x2fb   : > { %12373 = vmatprep.mubr.msk.bf16.mxu0 %vm697_vm1, %v20471_v29  ;;  %v5752_v12 = vpop.f32.mrf.mxu1 }
 0x2fc   : > { %v6486_v37 = vpop.f32.mrf.mxu0  ;;  %v17518_v57 = vadd.f32 %v12143_v22, %v6157_v31  ;;  %v6155_v21 = vadd.f32 %v5752_v12, %v16681_v47  ;;  %v20788_v47 = vld [vmem:[#allocation338_spill] sm:$0xff]  ;;  %v20789_v12 = vld [vmem:[#allocation44_spill] sm:$0xff] }
 0x2fd   : > { %v12014_v38 = vpop.f32.mrf.mxu1  ;;  %v3953_v32 = vadd.f32 %v20788_v47, %v1480_v30  ;;  %v20791_v30 = vld [vmem:[#allocation265_spill] sm:$0xff] }
 0x2fe   : > { %v12144_v7 = vpop.f32.mrf.mxu0  ;;  %v17522_v34 = vadd.f32 %v6486_v37, %v6155_v21  ;;  %v6158_v42 = vadd.f32 %v12014_v38, %v16692_v63 }
 0x2ff   : > { %v5755_v61 = vpop.f32.mrf.mxu1 }
 0x300   : > { %v6489_v4 = vpop.f32.mrf.mxu0  ;;  %v17527_v29 = vadd.f32 %v12144_v7, %v6158_v42  ;;  %v6156_v0 = vadd.f32 %v5755_v61, %v5462_v3  ;;  %v20790_v3 = vld [vmem:[#allocation317_spill] sm:$0xff] }
 0x301   : > { %v12017_v17 = vpop.f32.mrf.mxu1  ;;  %12244 = vmatmul.mubr.msk.bf16.gmra.mxu1 %vm697_vm1, %v20787_v20  ;;  %v5466_v42 = vadd.f32 %v20790_v3, %v3953_v32 }
 0x302   : > { %v12147_v22 = vpop.f32.mrf.mxu0  ;;  %12374 = vmatmul.mubr.msk.bf16.gmra.mxu0 %vm697_vm1, %v20478_v24  ;;  %v17534_v31 = vadd.f32 %v6489_v4, %v6156_v0  ;;  %v6161_v63 = vadd.f32 %v12017_v17, %v16704_v39  ;;  %12247 = vmatprep.mubr.msk.bf16.mxu1 %vm697_vm1, %v20789_v12  ;;  %v1484_v0 = vadd.f32 %v17180_v8, %v20791_v30 }
 0x303   : > { %12377 = vmatprep.mubr.msk.bf16.mxu0 %vm697_vm1, %v20480_v52  ;;  %v5768_v37 = vpop.f32.mrf.mxu1 }
 0x304   : > { %v6502_v21 = vpop.f32.mrf.mxu0  ;;  %v17541_v38 = vadd.f32 %v12147_v22, %v6161_v63  ;;  %v6159_v7 = vadd.f32 %v5768_v37, %v16707_v53  ;;  %v20792_v63 = vld [vmem:[#allocation57_spill] sm:$0xff] }
 0x305   : > { %v12018_v13 = vpop.f32.mrf.mxu1  ;;  %v20793_v53 = vld [vmem:[#allocation289_spill] sm:$0xff] }
 0x306   : > { %v12148_v24 = vpop.f32.mrf.mxu0  ;;  %v17545_v61 = vadd.f32 %v6502_v21, %v6159_v7  ;;  %v6162_v39 = vadd.f32 %v12018_v13, %v16715_v58  ;;  %v3957_v32 = vadd.f32 %v20793_v53, %v1484_v0  ;;  %v20794_v21 = vld [vmem:[#allocation161_spill] sm:$0xff] }
 0x307   : > { %v5771_v4 = vpop.f32.mrf.mxu1 }
 0x308   : > { %v6505_v40 = vpop.f32.mrf.mxu0  ;;  %v17550_v52 = vadd.f32 %v12148_v24, %v6162_v39  ;;  %v6160_v17 = vadd.f32 %v5771_v4, %v5466_v42  ;;  %v20795_v39 = vld [vmem:[#allocation277_spill] sm:$0xff] }
 0x309   : > { %v12021_v22 = vpop.f32.mrf.mxu1  ;;  %12248 = vmatmul.mubr.msk.bf16.gmra.mxu1 %vm697_vm1, %v20792_v63  ;;  %v5470_v4 = vadd.f32 %v20795_v39, %v3957_v32  ;;  %v20800_v32 = vld [vmem:[#allocation294_spill] sm:$0xff] }
 0x30a   : > { %v12151_v47 = vpop.f32.mrf.mxu0  ;;  %12378 = vmatmul.mubr.msk.bf16.gmra.mxu0 %vm697_vm1, %v20488_v45  ;;  %v17557_v37 = vadd.f32 %v6505_v40, %v6160_v17  ;;  %v6165_v58 = vadd.f32 %v12021_v22, %v16718_v59  ;;  %12251 = vmatprep.mubr.msk.bf16.mxu1 %vm697_vm1, %v20794_v21  ;;  %v20796_v17 = vld [vmem:[#allocation80_spill] sm:$0xff] }
 0x30b   : > { %12381 = vmatprep.mubr.msk.bf16.mxu0 %vm697_vm1, %v20491_v50  ;;  %v5784_v7 = vpop.f32.mrf.mxu1  ;;  %v1488_v22 = vadd.f32 %v17180_v8, %v20796_v17 }
 0x30c   : > { %v6518_v13 = vpop.f32.mrf.mxu0  ;;  %v17564_v24 = vadd.f32 %v12151_v47, %v6165_v58  ;;  %v6163_v3 = vadd.f32 %v5784_v7, %v16724_v6  ;;  %v20799_v6 = vld [vmem:[#allocation73_spill] sm:$0xff] }
 0x30d   : > { %v12022_v42 = vpop.f32.mrf.mxu1  ;;  %v3961_v7 = vadd.f32 %v20800_v32, %v1488_v22 }
 0x30e   : > { %v12152_v45 = vpop.f32.mrf.mxu0  ;;  %v17568_v40 = vadd.f32 %v6518_v13, %v6163_v3  ;;  %v6166_v59 = vadd.f32 %v12022_v42, %v16735_v60  ;;  %v20802_v60 = vld [vmem:[#allocation271_spill] sm:$0xff] }
 0x30f   : > { %v5787_v30 = vpop.f32.mrf.mxu1  ;;  %v20803_v42 = vld [vmem:[#allocation83_spill] sm:$0xff]  ;;  %v5474_v22 = vadd.f32 %v20807_v43, %v3961_v7  ;;  %v20814_v43 = vld [vmem:[#allocation70_spill] sm:$0xff] }
 0x310   : > { %v6521_v0 = vpop.f32.mrf.mxu0  ;;  %v17573_v50 = vadd.f32 %v12152_v45, %v6166_v59  ;;  %v6164_v53 = vadd.f32 %v5787_v30, %v5470_v4  ;;  %v20804_v45 = vld [vmem:[#allocation76_spill] sm:$0xff]  ;;  %v20806_v30 = vld [vmem:[#allocation23_spill] sm:$0xff] }
 0x311   : > { %v12025_v47 = vpop.f32.mrf.mxu1  ;;  %12252 = vmatmul.mubr.msk.bf16.gmra.mxu1 %vm697_vm1, %v20798_v9 }
 0x312   : > { %20797 = vst [vmem:[#allocation63_spill] sm:$0xff] %v17573_v50  ;;  %v12155_v58 = vpop.f32.mrf.mxu0  ;;  %12382 = vmatmul.mubr.msk.bf16.gmra.mxu0 %vm697_vm1, %v20799_v6  ;;  %v17580_v13 = vadd.f32 %v6521_v0, %v6164_v53  ;;  %v6169_v3 = vadd.f32 %v12025_v47, %v20802_v60  ;;  %12255 = vmatprep.mubr.msk.bf16.mxu1 %vm697_vm1, %v20803_v42  ;;  %v20809_v53 = vld [vmem:[#allocation9_spill] sm:$0xff] }
 0x313   : > { %12385 = vmatprep.mubr.msk.bf16.mxu0 %vm697_vm1, %v20804_v45  ;;  %v5800_v39 = vpop.f32.mrf.mxu1 }
 0x314   : > { %20801 = vst [vmem:[#allocation327_spill] sm:$0xff] %v17580_v13  ;;  %v6534_v4 = vpop.f32.mrf.mxu0  ;;  %v17587_v59 = vadd.f32 %v12155_v58, %v6169_v3  ;;  %v6167_v17 = vadd.f32 %v5800_v39, %v20806_v30  ;;  %v1492_v13 = vadd.f32 %v17180_v8, %v20810_v1  ;;  %v20813_v39 = vld [vmem:[#allocation87_spill] sm:$0xff]  ;;  %v20818_v1 = vld [vmem:[#allocation93_spill] sm:$0xff] }
 0x315   : > { %v12026_v28 = vpop.f32.mrf.mxu1 }
 0x316   : > { %20805 = vst [vmem:[#allocation180_spill] sm:$0xff] %v17587_v59  ;;  %v12156_v6 = vpop.f32.mrf.mxu0  ;;  %v17591_v0 = vadd.f32 %v6534_v4, %v6167_v17  ;;  %v6170_v47 = vadd.f32 %v12026_v28, %v20809_v53  ;;  %v20812_v59 = vld [vmem:[#allocation164_spill] sm:$0xff]  ;;  %v3965_v7 = vadd.f32 %v20814_v43, %v1492_v13  ;;  %v20816_v28 = vld [vmem:[#allocation147_spill] sm:$0xff] }
 0x317   : > { %v5803_v32 = vpop.f32.mrf.mxu1  ;;  %v20817_v17 = vld [vmem:[#allocation84_spill] sm:$0xff] }
 0x318   : > { %20808 = vst [vmem:[#allocation315_spill] sm:$0xff] %v17591_v0  ;;  %v6537_v60 = vpop.f32.mrf.mxu0  ;;  %v17596_v45 = vadd.f32 %v12156_v6, %v6170_v47  ;;  %v6168_v50 = vadd.f32 %v5803_v32, %v5474_v22  ;;  %v20820_v47 = vld [vmem:[#allocation233_spill] sm:$0xff] }
 0x319   : > { %v12029_v58 = vpop.f32.mrf.mxu1  ;;  %12256 = vmatmul.mubr.msk.bf16.gmra.mxu1 %vm697_vm1, %v20812_v59  ;;  %v20821_v0 = vld [vmem:[#allocation261_spill] sm:$0xff] }
 0x31a   : > { %20811 = vst [vmem:[#allocation102_spill] sm:$0xff] %v17596_v45  ;;  %v12159_v3 = vpop.f32.mrf.mxu0  ;;  %12386 = vmatmul.mubr.msk.bf16.gmra.mxu0 %vm697_vm1, %v20813_v39  ;;  %v17603_v4 = vadd.f32 %v6537_v60, %v6168_v50  ;;  %v6173_v30 = vadd.f32 %v12029_v58, %v20816_v28  ;;  %12259 = vmatprep.mubr.msk.bf16.mxu1 %vm697_vm1, %v20817_v17  ;;  %v20823_v60 = vld [vmem:[#allocation275_spill] sm:$0xff] }
 0x31b   : > { %12389 = vmatprep.mubr.msk.bf16.mxu0 %vm697_vm1, %v20818_v1  ;;  %v5816_v6 = vpop.f32.mrf.mxu1  ;;  %v5478_v13 = vadd.f32 %v20821_v0, %v3965_v7  ;;  %v20828_v0 = vld [vmem:[#allocation316_spill] sm:$0xff] }
 0x31c   : > { %20815 = vst [vmem:[#allocation110_spill] sm:$0xff] %v17603_v4  ;;  %v6550_v22 = vpop.f32.mrf.mxu0  ;;  %v17610_v53 = vadd.f32 %v12159_v3, %v6173_v30  ;;  %v6171_v32 = vadd.f32 %v5816_v6, %v20820_v47  ;;  %v20824_v4 = vld [vmem:[#allocation299_spill] sm:$0xff]  ;;  %v20827_v6 = vld [vmem:[#allocation100_spill] sm:$0xff] }
 0x31d   : > { %v12030_v45 = vpop.f32.mrf.mxu1  ;;  %v1496_v17 = vadd.f32 %v17180_v8, %v20824_v4  ;;  %v20832_v4 = vld [vmem:[#allocation103_spill] sm:$0xff] }
 0x31e   : > { %20819 = vst [vmem:[#allocation74_spill] sm:$0xff] %v17610_v53  ;;  %v12160_v39 = vpop.f32.mrf.mxu0  ;;  %v17614_v50 = vadd.f32 %v6550_v22, %v6171_v32  ;;  %v6174_v58 = vadd.f32 %v12030_v45, %v20823_v60  ;;  %v20826_v53 = vld [vmem:[#allocation166_spill] sm:$0xff]  ;;  %v20830_v45 = vld [vmem:[#allocation36_spill] sm:$0xff]  ;;  %v20831_v32 = vld [vmem:[#allocation167_spill] sm:$0xff] }
 0x31f   : > { %v5819_v43 = vpop.f32.mrf.mxu1  ;;  %v3969_v7 = vadd.f32 %v20828_v0, %v1496_v17 }
 0x320   : > { %20822 = vst [vmem:[#allocation330_spill] sm:$0xff] %v17614_v50  ;;  %v6553_v28 = vpop.f32.mrf.mxu0  ;;  %v17619_v1 = vadd.f32 %v12160_v39, %v6174_v58  ;;  %v6172_v59 = vadd.f32 %v5819_v43, %v5478_v13  ;;  %v20834_v58 = vld [vmem:[#allocation314_spill] sm:$0xff]  ;;  %v20835_v50 = vld [vmem:[#allocation263_spill] sm:$0xff] }
 0x321   : > { %v12033_v3 = vpop.f32.mrf.mxu1  ;;  %12260 = vmatmul.mubr.msk.bf16.gmra.mxu1 %vm697_vm1, %v20826_v53  ;;  %v5482_v17 = vadd.f32 %v20835_v50, %v3969_v7  ;;  %v20842_v50 = vld [vmem:[#allocation262_spill] sm:$0xff] }
 0x322   : > { %20825 = vst [vmem:[#allocation187_spill] sm:$0xff] %v17619_v1  ;;  %v12163_v30 = vpop.f32.mrf.mxu0  ;;  %12390 = vmatmul.mubr.msk.bf16.gmra.mxu0 %vm697_vm1, %v20827_v6  ;;  %v17626_v22 = vadd.f32 %v6553_v28, %v6172_v59  ;;  %v6177_v47 = vadd.f32 %v12033_v3, %v20830_v45  ;;  %12263 = vmatprep.mubr.msk.bf16.mxu1 %vm697_vm1, %v20831_v32  ;;  %v20837_v28 = vld [vmem:[#allocation276_spill] sm:$0xff] }
 0x323   : > { %12393 = vmatprep.mubr.msk.bf16.mxu0 %vm697_vm1, %v20832_v4  ;;  %v5832_v39 = vpop.f32.mrf.mxu1 }
 0x324   : > { %20829 = vst [vmem:[#allocation88_spill] sm:$0xff] %v17626_v22  ;;  %v6566_v13 = vpop.f32.mrf.mxu0  ;;  %v17633_v60 = vadd.f32 %v12163_v30, %v6177_v47  ;;  %v6175_v43 = vadd.f32 %v5832_v39, %v20834_v58  ;;  %v20838_v22 = vld [vmem:[#allocation303_spill] sm:$0xff] }
 0x325   : > { %v12034_v1 = vpop.f32.mrf.mxu1  ;;  %v1500_v32 = vadd.f32 %v17180_v8, %v20838_v22  ;;  %v20841_v39 = vld [vmem:[#allocation111_spill] sm:$0xff]  ;;  %v20846_v22 = vld [vmem:[#allocation114_spill] sm:$0xff] }
 0x326   : > { %20833 = vst [vmem:[#allocation332_spill] sm:$0xff] %v17633_v60  ;;  %v12164_v6 = vpop.f32.mrf.mxu0  ;;  %v17637_v59 = vadd.f32 %v6566_v13, %v6175_v43  ;;  %v6178_v3 = vadd.f32 %v12034_v1, %v20837_v28  ;;  %v20840_v60 = vld [vmem:[#allocation169_spill] sm:$0xff]  ;;  %v20845_v43 = vld [vmem:[#allocation108_spill] sm:$0xff] }
 0x327   : > { %v5835_v0 = vpop.f32.mrf.mxu1  ;;  %v3973_v7 = vadd.f32 %v20842_v50, %v1500_v32  ;;  %v20844_v1 = vld [vmem:[#allocation281_spill] sm:$0xff] }
 0x328   : > { %20836 = vst [vmem:[#allocation106_spill] sm:$0xff] %v17637_v59  ;;  %v6569_v45 = vpop.f32.mrf.mxu0  ;;  %v17642_v4 = vadd.f32 %v12164_v6, %v6178_v3  ;;  %v6176_v53 = vadd.f32 %v5835_v0, %v5482_v17  ;;  %v20848_v3 = vld [vmem:[#allocation249_spill] sm:$0xff]  ;;  %v20849_v59 = vld [vmem:[#allocation267_spill] sm:$0xff] }
 0x329   : > { %v12037_v30 = vpop.f32.mrf.mxu1  ;;  %12264 = vmatmul.mubr.msk.bf16.gmra.mxu1 %vm697_vm1, %v20840_v60  ;;  %v5486_v32 = vadd.f32 %v20849_v59, %v3973_v7  ;;  %v20856_v59 = vld [vmem:[#allocation12_spill] sm:$0xff] }
 0x32a   : > { %20839 = vst [vmem:[#allocation319_spill] sm:$0xff] %v17642_v4  ;;  %v12167_v47 = vpop.f32.mrf.mxu0  ;;  %12394 = vmatmul.mubr.msk.bf16.gmra.mxu0 %vm697_vm1, %v20841_v39  ;;  %v17649_v13 = vadd.f32 %v6569_v45, %v6176_v53  ;;  %v6181_v58 = vadd.f32 %v12037_v30, %v20844_v1  ;;  %12267 = vmatprep.mubr.msk.bf16.mxu1 %vm697_vm1, %v20845_v43  ;;  %v20851_v45 = vld [vmem:[#allocation260_spill] sm:$0xff] }
 0x32b   : > { %12397 = vmatprep.mubr.msk.bf16.mxu0 %vm697_vm1, %v20846_v22  ;;  %v5848_v6 = vpop.f32.mrf.mxu1 }
 0x32c   : > { %20843 = vst [vmem:[#allocation334_spill] sm:$0xff] %v17649_v13  ;;  %v6582_v17 = vpop.f32.mrf.mxu0  ;;  %v17656_v28 = vadd.f32 %v12167_v47, %v6181_v58  ;;  %v6179_v0 = vadd.f32 %v5848_v6, %v20848_v3  ;;  %v20852_v13 = vld [vmem:[#allocation176_spill] sm:$0xff] }
 0x32d   : > { %v12038_v4 = vpop.f32.mrf.mxu1  ;;  %v1504_v43 = vadd.f32 %v17180_v8, %v20852_v13  ;;  %v20855_v6 = vld [vmem:[#allocation124_spill] sm:$0xff]  ;;  %v20860_v13 = vld [vmem:[#allocation125_spill] sm:$0xff] }
 0x32e   : > { %20847 = vst [vmem:[#allocation195_spill] sm:$0xff] %v17656_v28  ;;  %v12168_v39 = vpop.f32.mrf.mxu0  ;;  %v17660_v53 = vadd.f32 %v6582_v17, %v6179_v0  ;;  %v6182_v30 = vadd.f32 %v12038_v4, %v20851_v45  ;;  %v20854_v28 = vld [vmem:[#allocation171_spill] sm:$0xff]  ;;  %v20858_v4 = vld [vmem:[#allocation32_spill] sm:$0xff] }
 0x32f   : > { %v5851_v50 = vpop.f32.mrf.mxu1  ;;  %v3977_v7 = vadd.f32 %v20856_v59, %v1504_v43  ;;  %v20859_v0 = vld [vmem:[#allocation172_spill] sm:$0xff] }
 0x330   : > { %20850 = vst [vmem:[#allocation128_spill] sm:$0xff] %v17660_v53  ;;  %v6585_v1 = vpop.f32.mrf.mxu0  ;;  %v17665_v22 = vadd.f32 %v12168_v39, %v6182_v30  ;;  %v6180_v60 = vadd.f32 %v5851_v50, %v5486_v32  ;;  %v20862_v30 = vld [vmem:[#allocation92_spill] sm:$0xff]  ;;  %v20863_v53 = vld [vmem:[#allocation158_spill] sm:$0xff] }
 0x331   : > { %v12041_v47 = vpop.f32.mrf.mxu1  ;;  %12268 = vmatmul.mubr.msk.bf16.gmra.mxu1 %vm697_vm1, %v20854_v28  ;;  %v5490_v43 = vadd.f32 %v20863_v53, %v3977_v7  ;;  %v20870_v53 = vld [vmem:[#allocation290_spill] sm:$0xff] }
 0x332   : > { %20853 = vst [vmem:[#allocation229_spill] sm:$0xff] %v17665_v22  ;;  %v12171_v58 = vpop.f32.mrf.mxu0  ;;  %12398 = vmatmul.mubr.msk.bf16.gmra.mxu0 %vm697_vm1, %v20855_v6  ;;  %v17672_v17 = vadd.f32 %v6585_v1, %v6180_v60  ;;  %v6185_v3 = vadd.f32 %v12041_v47, %v20858_v4  ;;  %12271 = vmatprep.mubr.msk.bf16.mxu1 %vm697_vm1, %v20859_v0  ;;  %v20865_v1 = vld [vmem:[#allocation273_spill] sm:$0xff] }
 0x333   : > { %12401 = vmatprep.mubr.msk.bf16.mxu0 %vm697_vm1, %v20860_v13  ;;  %v5864_v39 = vpop.f32.mrf.mxu1 }
 0x334   : > { %20857 = vst [vmem:[#allocation5_spill] sm:$0xff] %v17672_v17  ;;  %v6598_v32 = vpop.f32.mrf.mxu0  ;;  %v17679_v45 = vadd.f32 %v12171_v58, %v6185_v3  ;;  %v6183_v50 = vadd.f32 %v5864_v39, %v20862_v30  ;;  %v20866_v17 = vld [vmem:[#allocation183_spill] sm:$0xff]  ;;  %v20869_v39 = vld [vmem:[#allocation134_spill] sm:$0xff] }
 0x335   : > { %v12042_v22 = vpop.f32.mrf.mxu1  ;;  %v1508_v0 = vadd.f32 %v17180_v8, %v20866_v17  ;;  %v20874_v8 = vld [vmem:[#allocation135_spill] sm:$0xff] }
 0x336   : > { %20861 = vst [vmem:[#allocation203_spill] sm:$0xff] %v17679_v45  ;;  %v12172_v6 = vpop.f32.mrf.mxu0  ;;  %v17683_v60 = vadd.f32 %v6598_v32, %v6183_v50  ;;  %v6186_v47 = vadd.f32 %v12042_v22, %v20865_v1  ;;  %v20868_v45 = vld [vmem:[#allocation131_spill] sm:$0xff]  ;;  %v20872_v22 = vld [vmem:[#allocation288_spill] sm:$0xff]  ;;  %v20873_v50 = vld [vmem:[#allocation178_spill] sm:$0xff] }
 0x337   : > { %v5867_v59 = vpop.f32.mrf.mxu1  ;;  %v3981_v7 = vadd.f32 %v20870_v53, %v1508_v0  ;;  %v20875_v1 = vld [vmem:[#allocation292_spill] sm:$0xff] }
 0x338   : > { %20864 = vst [vmem:[#allocation130_spill] sm:$0xff] %v17683_v60  ;;  %v6601_v4 = vpop.f32.mrf.mxu0  ;;  %v17688_v13 = vadd.f32 %v12172_v6, %v6186_v47  ;;  %v6184_v28 = vadd.f32 %v5867_v59, %v5490_v43 }
 0x339   : > { %v12045_v58 = vpop.f32.mrf.mxu1  ;;  %12272 = vmatmul.mubr.msk.bf16.gmra.mxu1 %vm697_vm1, %v20868_v45  ;;  %v20880_v45 = vld [vmem:[#allocation184_spill] sm:$0xff] }
 0x33a   : > { %20867 = vst [vmem:[#allocation75_spill] sm:$0xff] %v17688_v13  ;;  %v12175_v3 = vpop.f32.mrf.mxu0  ;;  %12402 = vmatmul.mubr.msk.bf16.gmra.mxu0 %vm697_vm1, %v20869_v39  ;;  %v17695_v32 = vadd.f32 %v6601_v4, %v6184_v28  ;;  %v6189_v30 = vadd.f32 %v12045_v58, %v20872_v22  ;;  %12275 = vmatprep.mubr.msk.bf16.mxu1 %vm697_vm1, %v20873_v50  ;;  %v20876_v13 = vld [vmem:[#allocation19_spill] sm:$0xff]  ;;  %v20878_v4 = vld [vmem:[#allocation14_spill] sm:$0xff] }
 0x33b   : > { %12405 = vmatprep.mubr.msk.bf16.mxu0 %vm697_vm1, %v20874_v8  ;;  %v5880_v17 = vpop.f32.mrf.mxu1  ;;  %v5494_v0 = vadd.f32 %v20876_v13, %v3981_v7  ;;  %v20883_v13 = vld [vmem:[#allocation49_spill] sm:$0xff] }
 0x33c   : > { %20871 = vst [vmem:[#allocation138_spill] sm:$0xff] %v17695_v32  ;;  %v6614_v6 = vpop.f32.mrf.mxu0  ;;  %v17702_v43 = vadd.f32 %v12175_v3, %v6189_v30  ;;  %v6187_v47 = vadd.f32 %v5880_v17, %v20875_v1  ;;  %v20881_v3 = vld [vmem:[#allocation141_spill] sm:$0xff]  ;;  %v20884_v17 = vld [vmem:[#allocation191_spill] sm:$0xff] }
 0x33d   : > { %v12046_v59 = vpop.f32.mrf.mxu1 }
 0x33e   : > { %v12176_v39 = vpop.f32.mrf.mxu0  ;;  %v17706_v28 = vadd.f32 %v6614_v6, %v6187_v47  ;;  %v6190_v58 = vadd.f32 %v12046_v59, %v20878_v4  ;;  %v20885_v6 = vld [vmem:[#allocation142_spill] sm:$0xff] }
 0x33f   : > { %v5883_v53 = vpop.f32.mrf.mxu1 }
 0x340   : > { %20877 = vst [vmem:[#allocation250_spill] sm:$0xff] %v17706_v28  ;;  %v6617_v22 = vpop.f32.mrf.mxu0  ;;  %v17709_v32 = vadd.f32 %v12176_v39, %v6190_v58  ;;  %v6188_v60 = vadd.f32 %v5883_v53, %v5494_v0  ;;  %v20887_v39 = vld [vmem:[#allocation20_spill] sm:$0xff] }
 0x341   : > { %v12049_v8 = vpop.f32.mrf.mxu1  ;;  %12276 = vmatmul.mubr.msk.bf16.gmra.mxu1 %vm697_vm1, %v20880_v45 }
 0x342   : > { %20879 = vst [vmem:[#allocation118_spill] sm:$0xff] %v17709_v32  ;;  %v12179_v50 = vpop.f32.mrf.mxu0  ;;  %12406 = vmatmul.mubr.msk.bf16.gmra.mxu0 %vm697_vm1, %v20881_v3  ;;  %v17715_v30 = vadd.f32 %v6617_v22, %v6188_v60  ;;  %v6193_v7 = vadd.f32 %v12049_v8, %v20883_v13  ;;  %12279 = vmatprep.mubr.msk.bf16.mxu1 %vm697_vm1, %v20884_v17  ;;  %v20889_v60 = vld [vmem:[#allocation302_spill] sm:$0xff]  ;;  %v20892_v17 = vld [vmem:[#allocation197_spill] sm:$0xff] }
 0x343   : > { %12409 = vmatprep.mubr.msk.bf16.mxu0 %vm697_vm1, %v20885_v6  ;;  %v5896_v1 = vpop.f32.mrf.mxu1 }
 0x344   : > { %20882 = vst [vmem:[#allocation101_spill] sm:$0xff] %v17715_v30  ;;  %v6630_v47 = vpop.f32.mrf.mxu0  ;;  %v17722_v59 = vadd.f32 %v12179_v50, %v6193_v7  ;;  %v6191_v0 = vadd.f32 %v5896_v1, %v20887_v39  ;;  %v20891_v30 = vld [vmem:[#allocation99_spill] sm:$0xff]  ;;  %v20893_v50 = vld [vmem:[#allocation146_spill] sm:$0xff]  ;;  %v20896_v39 = vld [vmem:[#allocation201_spill] sm:$0xff] }
 0x345   : > { %v12050_v4 = vpop.f32.mrf.mxu1  ;;  %v20895_v1 = vld [vmem:[#allocation30_spill] sm:$0xff] }
 0x346   : > { %20886 = vst [vmem:[#allocation242_spill] sm:$0xff] %v17722_v59  ;;  %v12180_v58 = vpop.f32.mrf.mxu0  ;;  %v17725_v53 = vadd.f32 %v6630_v47, %v6191_v0  ;;  %v6194_v22 = vadd.f32 %v12050_v4, %v20889_v60  ;;  %v20897_v0 = vld [vmem:[#allocation148_spill] sm:$0xff]  ;;  %v20899_v60 = vld [vmem:[#allocation34_spill] sm:$0xff] }
 0x347   : > { %v5899_v3 = vpop.f32.mrf.mxu1 }
 0x348   : > { %20888 = vst [vmem:[#allocation211_spill] sm:$0xff] %v17725_v53  ;;  %v6633_v8 = vpop.f32.mrf.mxu0  ;;  %v17728_v13 = vadd.f32 %v12180_v58, %v6194_v22  ;;  %v6192_v32 = vadd.f32 %v5899_v3, %v20891_v30 }
 0x349   : > { %v12053_v28 = vpop.f32.mrf.mxu1  ;;  %12280 = vmatmul.mubr.msk.bf16.gmra.mxu1 %vm697_vm1, %v20892_v17  ;;  %v20904_v17 = vld [vmem:[#allocation208_spill] sm:$0xff] }
 0x34a   : > { %20890 = vst [vmem:[#allocation331_spill] sm:$0xff] %v17728_v13  ;;  %v12183_v6 = vpop.f32.mrf.mxu0  ;;  %12410 = vmatmul.mubr.msk.bf16.gmra.mxu0 %vm697_vm1, %v20893_v50  ;;  %v17735_v7 = vadd.f32 %v6633_v8, %v6192_v32  ;;  %v6197_v47 = vadd.f32 %v12053_v28, %v20895_v1  ;;  %12283 = vmatprep.mubr.msk.bf16.mxu1 %vm697_vm1, %v20896_v39  ;;  %v20901_v32 = vld [vmem:[#allocation121_spill] sm:$0xff] }
 0x34b   : > { %12413 = vmatprep.mubr.msk.bf16.mxu0 %vm697_vm1, %v20897_v0  ;;  %v5912_v4 = vpop.f32.mrf.mxu1 }
 0x34c   : > { %20894 = vst [vmem:[#allocation152_spill] sm:$0xff] %v17735_v7  ;;  %v6646_v30 = vpop.f32.mrf.mxu0  ;;  %v17742_v58 = vadd.f32 %v12183_v6, %v6197_v47  ;;  %v6195_v22 = vadd.f32 %v5912_v4, %v20899_v60  ;;  %v20903_v7 = vld [vmem:[#allocation122_spill] sm:$0xff]  ;;  %v20905_v6 = vld [vmem:[#allocation151_spill] sm:$0xff]  ;;  %v20907_v4 = vld [vmem:[#allocation173_spill] sm:$0xff] }
 0x34d   : > { %v12054_v3 = vpop.f32.mrf.mxu1  ;;  %v20908_v60 = vld [vmem:[#allocation213_spill] sm:$0xff] }
 0x34e   : > { %20898 = vst [vmem:[#allocation272_spill] sm:$0xff] %v17742_v58  ;;  %v12184_v13 = vpop.f32.mrf.mxu0  ;;  %v17745_v53 = vadd.f32 %v6646_v30, %v6195_v22  ;;  %v6198_v8 = vadd.f32 %v12054_v3, %v20901_v32  ;;  %v20909_v22 = vld [vmem:[#allocation153_spill] sm:$0xff]  ;;  %v20911_v32 = vld [vmem:[#allocation47_spill] sm:$0xff] }
 0x34f   : > { %v5915_v50 = vpop.f32.mrf.mxu1 }
 0x350   : > { %20900 = vst [vmem:[#allocation154_spill] sm:$0xff] %v17745_v53  ;;  %v6649_v28 = vpop.f32.mrf.mxu0  ;;  %v17748_v1 = vadd.f32 %v12184_v13, %v6198_v8  ;;  %v6196_v39 = vadd.f32 %v5915_v50, %v20903_v7 }
 0x351   : > { %v12057_v59 = vpop.f32.mrf.mxu1  ;;  %12284 = vmatmul.mubr.msk.bf16.gmra.mxu1 %vm697_vm1, %v20904_v17  ;;  %v20916_v17 = vld [vmem:[#allocation220_spill] sm:$0xff] }
 0x352   : > { %20902 = vst [vmem:[#allocation320_spill] sm:$0xff] %v17748_v1  ;;  %v12187_v0 = vpop.f32.mrf.mxu0  ;;  %12414 = vmatmul.mubr.msk.bf16.gmra.mxu0 %vm697_vm1, %v20905_v6  ;;  %v17755_v47 = vadd.f32 %v6649_v28, %v6196_v39  ;;  %v6201_v30 = vadd.f32 %v12057_v59, %v20907_v4  ;;  %12287 = vmatprep.mubr.msk.bf16.mxu1 %vm697_vm1, %v20908_v60  ;;  %v20913_v39 = vld [vmem:[#allocation50_spill] sm:$0xff] }
 0x353   : > { %12417 = vmatprep.mubr.msk.bf16.mxu0 %vm697_vm1, %v20909_v22  ;;  %v5928_v13 = vpop.f32.mrf.mxu1 }
 0x354   : > { %20906 = vst [vmem:[#allocation112_spill] sm:$0xff] %v17755_v47  ;;  %v6662_v7 = vpop.f32.mrf.mxu0  ;;  %v17762_v3 = vadd.f32 %v12187_v0, %v6201_v30  ;;  %v6199_v8 = vadd.f32 %v5928_v13, %v20911_v32  ;;  %v20915_v47 = vld [vmem:[#allocation177_spill] sm:$0xff]  ;;  %v20917_v0 = vld [vmem:[#allocation155_spill] sm:$0xff]  ;;  %v20919_v13 = vld [vmem:[#allocation132_spill] sm:$0xff] }
 0x355   : > { %v12058_v50 = vpop.f32.mrf.mxu1  ;;  %v20920_v32 = vld [vmem:[#allocation225_spill] sm:$0xff] }
 0x356   : > { %20910 = vst [vmem:[#allocation340_spill] sm:$0xff] %v17762_v3  ;;  %v12188_v1 = vpop.f32.mrf.mxu0  ;;  %v17765_v53 = vadd.f32 %v6662_v7, %v6199_v8  ;;  %v6202_v28 = vadd.f32 %v12058_v50, %v20913_v39  ;;  %v20921_v8 = vld [vmem:[#allocation4_spill] sm:$0xff]  ;;  %v20923_v39 = vld [vmem:[#allocation62_spill] sm:$0xff] }
 0x357   : > { %v5931_v6 = vpop.f32.mrf.mxu1 }
 0x358   : > { %20912 = vst [vmem:[#allocation219_spill] sm:$0xff] %v17765_v53  ;;  %v6665_v59 = vpop.f32.mrf.mxu0  ;;  %v17768_v4 = vadd.f32 %v12188_v1, %v6202_v28  ;;  %v6200_v60 = vadd.f32 %v5931_v6, %v20915_v47 }
 0x359   : > { %v12061_v58 = vpop.f32.mrf.mxu1  ;;  %12288 = vmatmul.mubr.msk.bf16.gmra.mxu1 %vm697_vm1, %v20916_v17  ;;  %v20928_v17 = vld [vmem:[#allocation235_spill] sm:$0xff] }
 0x35a   : > { %20914 = vst [vmem:[#allocation335_spill] sm:$0xff] %v17768_v4  ;;  %v12191_v22 = vpop.f32.mrf.mxu0  ;;  %12418 = vmatmul.mubr.msk.bf16.gmra.mxu0 %vm697_vm1, %v20917_v0  ;;  %v17775_v30 = vadd.f32 %v6665_v59, %v6200_v60  ;;  %v6205_v7 = vadd.f32 %v12061_v58, %v20919_v13  ;;  %12291 = vmatprep.mubr.msk.bf16.mxu1 %vm697_vm1, %v20920_v32  ;;  %v20925_v60 = vld [vmem:[#allocation179_spill] sm:$0xff] }
 0x35b   : > { %12421 = vmatprep.mubr.msk.bf16.mxu0 %vm697_vm1, %v20921_v8  ;;  %v5944_v1 = vpop.f32.mrf.mxu1 }
 0x35c   : > { %20918 = vst [vmem:[#allocation156_spill] sm:$0xff] %v17775_v30  ;;  %v6678_v47 = vpop.f32.mrf.mxu0  ;;  %v17782_v50 = vadd.f32 %v12191_v22, %v6205_v7  ;;  %v6203_v28 = vadd.f32 %v5944_v1, %v20923_v39  ;;  %v20927_v30 = vld [vmem:[#allocation65_spill] sm:$0xff]  ;;  %v20929_v22 = vld [vmem:[#allocation6_spill] sm:$0xff]  ;;  %v20932_v39 = vld [vmem:[#allocation3_spill] sm:$0xff] }
 0x35d   : > { %v12062_v6 = vpop.f32.mrf.mxu1  ;;  %v20931_v1 = vld [vmem:[#allocation133_spill] sm:$0xff] }
 0x35e   : > { %20922 = vst [vmem:[#allocation321_spill] sm:$0xff] %v17782_v50  ;;  %v12192_v4 = vpop.f32.mrf.mxu0  ;;  %v17785_v53 = vadd.f32 %v6678_v47, %v6203_v28  ;;  %v6206_v59 = vadd.f32 %v12062_v6, %v20925_v60  ;;  %v20933_v28 = vld [vmem:[#allocation10_spill] sm:$0xff]  ;;  %v20935_v60 = vld [vmem:[#allocation185_spill] sm:$0xff] }
 0x35f   : > { %v5947_v0 = vpop.f32.mrf.mxu1 }
 0x360   : > { %20924 = vst [vmem:[#allocation278_spill] sm:$0xff] %v17785_v53  ;;  %v6681_v58 = vpop.f32.mrf.mxu0  ;;  %v17788_v13 = vadd.f32 %v12192_v4, %v6206_v59  ;;  %v6204_v32 = vadd.f32 %v5947_v0, %v20927_v30 }
 0x361   : > { %v12065_v3 = vpop.f32.mrf.mxu1  ;;  %12292 = vmatmul.mubr.msk.bf16.gmra.mxu1 %vm697_vm1, %v20928_v17  ;;  %v20940_v17 = vld [vmem:[#allocation241_spill] sm:$0xff] }
 0x362   : > { %20926 = vst [vmem:[#allocation109_spill] sm:$0xff] %v17788_v13  ;;  %v12195_v8 = vpop.f32.mrf.mxu0  ;;  %12422 = vmatmul.mubr.msk.bf16.gmra.mxu0 %vm697_vm1, %v20929_v22  ;;  %v17795_v7 = vadd.f32 %v6681_v58, %v6204_v32  ;;  %v6209_v47 = vadd.f32 %v12065_v3, %v20931_v1  ;;  %12295 = vmatprep.mubr.msk.bf16.mxu1 %vm697_vm1, %v20932_v39  ;;  %v20937_v32 = vld [vmem:[#allocation186_spill] sm:$0xff] }
 0x363   : > { %12425 = vmatprep.mubr.msk.bf16.mxu0 %vm697_vm1, %v20933_v28  ;;  %v5960_v4 = vpop.f32.mrf.mxu1 }
 0x364   : > { %20930 = vst [vmem:[#allocation341_spill] sm:$0xff] %v17795_v7  ;;  %v6694_v30 = vpop.f32.mrf.mxu0  ;;  %v17802_v6 = vadd.f32 %v12195_v8, %v6209_v47  ;;  %v6207_v59 = vadd.f32 %v5960_v4, %v20935_v60  ;;  %v20939_v7 = vld [vmem:[#allocation189_spill] sm:$0xff]  ;;  %v20943_v4 = vld [vmem:[#allocation190_spill] sm:$0xff] }
 0x365   : > { %v12066_v0 = vpop.f32.mrf.mxu1  ;;  %v20941_v8 = vld [vmem:[#allocation13_spill] sm:$0xff]  ;;  %v20944_v60 = vld [vmem:[#allocation54_spill] sm:$0xff] }
 0x366   : > { %20934 = vst [vmem:[#allocation228_spill] sm:$0xff] %v17802_v6  ;;  %v12196_v13 = vpop.f32.mrf.mxu0  ;;  %v17805_v53 = vadd.f32 %v6694_v30, %v6207_v59  ;;  %v6210_v58 = vadd.f32 %v12066_v0, %v20937_v32  ;;  %v20945_v59 = vld [vmem:[#allocation17_spill] sm:$0xff] }
 0x367   : > { %v5963_v22 = vpop.f32.mrf.mxu1  ;;  %v20947_v32 = vld [vmem:[#allocation193_spill] sm:$0xff] }
 0x368   : > { %20936 = vst [vmem:[#allocation38_spill] sm:$0xff] %v17805_v53  ;;  %v6697_v3 = vpop.f32.mrf.mxu0  ;;  %v17808_v1 = vadd.f32 %v12196_v13, %v6210_v58  ;;  %v6208_v39 = vadd.f32 %v5963_v22, %v20939_v7 }
 0x369   : > { %v12069_v50 = vpop.f32.mrf.mxu1  ;;  %12296 = vmatmul.mubr.msk.bf16.gmra.mxu1 %vm697_vm1, %v20940_v17  ;;  %v20952_v17 = vld [vmem:[#allocation257_spill] sm:$0xff] }
 0x36a   : > { %20938 = vst [vmem:[#allocation113_spill] sm:$0xff] %v17808_v1  ;;  %v12199_v28 = vpop.f32.mrf.mxu0  ;;  %12426 = vmatmul.mubr.msk.bf16.gmra.mxu0 %vm697_vm1, %v20941_v8  ;;  %v17815_v47 = vadd.f32 %v6697_v3, %v6208_v39  ;;  %v6213_v30 = vadd.f32 %v12069_v50, %v20943_v4  ;;  %12299 = vmatprep.mubr.msk.bf16.mxu1 %vm697_vm1, %v20944_v60  ;;  %v20949_v39 = vld [vmem:[#allocation194_spill] sm:$0xff] }
 0x36b   : > { %12429 = vmatprep.mubr.msk.bf16.mxu0 %vm697_vm1, %v20945_v59  ;;  %v5976_v13 = vpop.f32.mrf.mxu1 }
 0x36c   : > { %20942 = vst [vmem:[#allocation230_spill] sm:$0xff] %v17815_v47  ;;  %v6710_v7 = vpop.f32.mrf.mxu0  ;;  %v17822_v0 = vadd.f32 %v12199_v28, %v6213_v30  ;;  %v6211_v58 = vadd.f32 %v5976_v13, %v20947_v32  ;;  %v20951_v47 = vld [vmem:[#allocation198_spill] sm:$0xff]  ;;  %v20955_v13 = vld [vmem:[#allocation199_spill] sm:$0xff] }
 0x36d   : > { %v12070_v22 = vpop.f32.mrf.mxu1  ;;  %v20953_v28 = vld [vmem:[#allocation22_spill] sm:$0xff]  ;;  %v20956_v32 = vld [vmem:[#allocation67_spill] sm:$0xff] }
 0x36e   : > { %20946 = vst [vmem:[#allocation39_spill] sm:$0xff] %v17822_v0  ;;  %v12200_v1 = vpop.f32.mrf.mxu0  ;;  %v17825_v53 = vadd.f32 %v6710_v7, %v6211_v58  ;;  %v6214_v3 = vadd.f32 %v12070_v22, %v20949_v39  ;;  %v20957_v58 = vld [vmem:[#allocation24_spill] sm:$0xff] }
 0x36f   : > { %v5979_v8 = vpop.f32.mrf.mxu1  ;;  %v20959_v39 = vld [vmem:[#allocation200_spill] sm:$0xff] }
 0x370   : > { %20948 = vst [vmem:[#allocation157_spill] sm:$0xff] %v17825_v53  ;;  %v6713_v50 = vpop.f32.mrf.mxu0  ;;  %v17828_v4 = vadd.f32 %v12200_v1, %v6214_v3  ;;  %v6212_v60 = vadd.f32 %v5979_v8, %v20951_v47 }
 0x371   : > { %v12073_v6 = vpop.f32.mrf.mxu1  ;;  %12300 = vmatmul.mubr.msk.bf16.gmra.mxu1 %vm697_vm1, %v20952_v17  ;;  %v20964_v17 = vld [vmem:[#allocation269_spill] sm:$0xff] }
 0x372   : > { %20950 = vst [vmem:[#allocation240_spill] sm:$0xff] %v17828_v4  ;;  %v12203_v59 = vpop.f32.mrf.mxu0  ;;  %12430 = vmatmul.mubr.msk.bf16.gmra.mxu0 %vm697_vm1, %v20953_v28  ;;  %v17835_v30 = vadd.f32 %v6713_v50, %v6212_v60  ;;  %v6217_v7 = vadd.f32 %v12073_v6, %v20955_v13  ;;  %12303 = vmatprep.mubr.msk.bf16.mxu1 %vm697_vm1, %v20956_v32  ;;  %v20961_v60 = vld [vmem:[#allocation202_spill] sm:$0xff] }
 0x373   : > { %12433 = vmatprep.mubr.msk.bf16.mxu0 %vm697_vm1, %v20957_v58  ;;  %v5992_v1 = vpop.f32.mrf.mxu1 }
 0x374   : > { %20954 = vst [vmem:[#allocation159_spill] sm:$0xff] %v17835_v30  ;;  %v6726_v47 = vpop.f32.mrf.mxu0  ;;  %v17842_v22 = vadd.f32 %v12203_v59, %v6217_v7  ;;  %v6215_v3 = vadd.f32 %v5992_v1, %v20959_v39  ;;  %v20963_v30 = vld [vmem:[#allocation205_spill] sm:$0xff]  ;;  %v20965_v59 = vld [vmem:[#allocation35_spill] sm:$0xff] }
 0x375   : > { %v12074_v8 = vpop.f32.mrf.mxu1  ;;  %v20967_v1 = vld [vmem:[#allocation207_spill] sm:$0xff]  ;;  %v20968_v39 = vld [vmem:[#allocation77_spill] sm:$0xff] }
 0x376   : > { %20958 = vst [vmem:[#allocation239_spill] sm:$0xff] %v17842_v22  ;;  %v12204_v4 = vpop.f32.mrf.mxu0  ;;  %v17845_v53 = vadd.f32 %v6726_v47, %v6215_v3  ;;  %v6218_v50 = vadd.f32 %v12074_v8, %v20961_v60  ;;  %v20969_v3 = vld [vmem:[#allocation37_spill] sm:$0xff] }
 0x377   : > { %v5995_v28 = vpop.f32.mrf.mxu1  ;;  %v20971_v60 = vld [vmem:[#allocation209_spill] sm:$0xff] }
 0x378   : > { %20960 = vst [vmem:[#allocation247_spill] sm:$0xff] %v17845_v53  ;;  %v6729_v6 = vpop.f32.mrf.mxu0  ;;  %v17848_v13 = vadd.f32 %v12204_v4, %v6218_v50  ;;  %v6216_v32 = vadd.f32 %v5995_v28, %v20963_v30 }
 0x379   : > { %v12077_v0 = vpop.f32.mrf.mxu1  ;;  %12304 = vmatmul.mubr.msk.bf16.gmra.mxu1 %vm697_vm1, %v20964_v17  ;;  %v20976_v17 = vld [vmem:[#allocation283_spill] sm:$0xff] }
 0x37a   : > { %20962 = vst [vmem:[#allocation52_spill] sm:$0xff] %v17848_v13  ;;  %v12207_v58 = vpop.f32.mrf.mxu0  ;;  %12434 = vmatmul.mubr.msk.bf16.gmra.mxu0 %vm697_vm1, %v20965_v59  ;;  %v17855_v7 = vadd.f32 %v6729_v6, %v6216_v32  ;;  %v6221_v47 = vadd.f32 %v12077_v0, %v20967_v1  ;;  %12307 = vmatprep.mubr.msk.bf16.mxu1 %vm697_vm1, %v20968_v39  ;;  %v20973_v32 = vld [vmem:[#allocation210_spill] sm:$0xff] }
 0x37b   : > { %12437 = vmatprep.mubr.msk.bf16.mxu0 %vm697_vm1, %v20969_v3  ;;  %v6008_v4 = vpop.f32.mrf.mxu1 }
 0x37c   : > { %20966 = vst [vmem:[#allocation255_spill] sm:$0xff] %v17855_v7  ;;  %v6742_v30 = vpop.f32.mrf.mxu0  ;;  %v17862_v8 = vadd.f32 %v12207_v58, %v6221_v47  ;;  %v6219_v50 = vadd.f32 %v6008_v4, %v20971_v60  ;;  %v20975_v7 = vld [vmem:[#allocation212_spill] sm:$0xff]  ;;  %v20977_v58 = vld [vmem:[#allocation51_spill] sm:$0xff]  ;;  %v20979_v4 = vld [vmem:[#allocation214_spill] sm:$0xff] }
 0x37d   : > { %v12078_v28 = vpop.f32.mrf.mxu1  ;;  %v20980_v60 = vld [vmem:[#allocation90_spill] sm:$0xff] }
 0x37e   : > { %20970 = vst [vmem:[#allocation27_spill] sm:$0xff] %v17862_v8  ;;  %v12208_v13 = vpop.f32.mrf.mxu0  ;;  %v17865_v53 = vadd.f32 %v6742_v30, %v6219_v50  ;;  %v6222_v6 = vadd.f32 %v12078_v28, %v20973_v32  ;;  %v20981_v50 = vld [vmem:[#allocation53_spill] sm:$0xff]  ;;  %v20983_v32 = vld [vmem:[#allocation216_spill] sm:$0xff] }
 0x37f   : > { %v6011_v59 = vpop.f32.mrf.mxu1 }
 0x380   : > { %20972 = vst [vmem:[#allocation336_spill] sm:$0xff] %v17865_v53  ;;  %v6745_v0 = vpop.f32.mrf.mxu0  ;;  %v17868_v1 = vadd.f32 %v12208_v13, %v6222_v6  ;;  %v6220_v39 = vadd.f32 %v6011_v59, %v20975_v7 }
 0x381   : > { %v12081_v22 = vpop.f32.mrf.mxu1  ;;  %12308 = vmatmul.mubr.msk.bf16.gmra.mxu1 %vm697_vm1, %v20976_v17  ;;  %v20988_v17 = vld [vmem:[#allocation297_spill] sm:$0xff] }
 0x382   : > { %20974 = vst [vmem:[#allocation16_spill] sm:$0xff] %v17868_v1  ;;  %v12211_v3 = vpop.f32.mrf.mxu0  ;;  %12438 = vmatmul.mubr.msk.bf16.gmra.mxu0 %vm697_vm1, %v20977_v58  ;;  %v17875_v47 = vadd.f32 %v6745_v0, %v6220_v39  ;;  %v6225_v30 = vadd.f32 %v12081_v22, %v20979_v4  ;;  %12311 = vmatprep.mubr.msk.bf16.mxu1 %vm697_vm1, %v20980_v60  ;;  %v20985_v39 = vld [vmem:[#allocation218_spill] sm:$0xff] }
 0x383   : > { %12441 = vmatprep.mubr.msk.bf16.mxu0 %vm697_vm1, %v20981_v50  ;;  %v6024_v13 = vpop.f32.mrf.mxu1 }
 0x384   : > { %20978 = vst [vmem:[#allocation41_spill] sm:$0xff] %v17875_v47  ;;  %v6758_v7 = vpop.f32.mrf.mxu0  ;;  %v17882_v28 = vadd.f32 %v12211_v3, %v6225_v30  ;;  %v6223_v6 = vadd.f32 %v6024_v13, %v20983_v32  ;;  %v20987_v47 = vld [vmem:[#allocation221_spill] sm:$0xff]  ;;  %v20989_v3 = vld [vmem:[#allocation66_spill] sm:$0xff]  ;;  %v20992_v32 = vld [vmem:[#allocation96_spill] sm:$0xff] }
 0x385   : > { %v12082_v59 = vpop.f32.mrf.mxu1  ;;  %v20991_v13 = vld [vmem:[#allocation222_spill] sm:$0xff] }
 0x386   : > { %20982 = vst [vmem:[#allocation338_spill] sm:$0xff] %v17882_v28  ;;  %v12212_v1 = vpop.f32.mrf.mxu0  ;;  %v17885_v53 = vadd.f32 %v6758_v7, %v6223_v6  ;;  %v6226_v0 = vadd.f32 %v12082_v59, %v20985_v39  ;;  %v20993_v6 = vld [vmem:[#allocation68_spill] sm:$0xff]  ;;  %v20995_v39 = vld [vmem:[#allocation223_spill] sm:$0xff] }
 0x387   : > { %v6027_v58 = vpop.f32.mrf.mxu1 }
 0x388   : > { %20984 = vst [vmem:[#allocation44_spill] sm:$0xff] %v17885_v53  ;;  %v6761_v22 = vpop.f32.mrf.mxu0  ;;  %v17888_v4 = vadd.f32 %v12212_v1, %v6226_v0  ;;  %v6224_v60 = vadd.f32 %v6027_v58, %v20987_v47 }
 0x389   : > { %v12085_v8 = vpop.f32.mrf.mxu1  ;;  %12312 = vmatmul.mubr.msk.bf16.gmra.mxu1 %vm697_vm1, %v20988_v17  ;;  %v21000_v17 = vld [vmem:[#allocation309_spill] sm:$0xff] }
 0x38a   : > { %20986 = vst [vmem:[#allocation317_spill] sm:$0xff] %v17888_v4  ;;  %v12215_v50 = vpop.f32.mrf.mxu0  ;;  %12442 = vmatmul.mubr.msk.bf16.gmra.mxu0 %vm697_vm1, %v20989_v3  ;;  %v17895_v30 = vadd.f32 %v6761_v22, %v6224_v60  ;;  %v6229_v7 = vadd.f32 %v12085_v8, %v20991_v13  ;;  %12315 = vmatprep.mubr.msk.bf16.mxu1 %vm697_vm1, %v20992_v32  ;;  %v20997_v60 = vld [vmem:[#allocation227_spill] sm:$0xff] }
 0x38b   : > { %12445 = vmatprep.mubr.msk.bf16.mxu0 %vm697_vm1, %v20993_v6  ;;  %v6040_v1 = vpop.f32.mrf.mxu1 }
 0x38c   : > { %20990 = vst [vmem:[#allocation265_spill] sm:$0xff] %v17895_v30  ;;  %v6774_v47 = vpop.f32.mrf.mxu0  ;;  %v17902_v59 = vadd.f32 %v12215_v50, %v6229_v7  ;;  %v6227_v0 = vadd.f32 %v6040_v1, %v20995_v39  ;;  %v20999_v30 = vld [vmem:[#allocation231_spill] sm:$0xff]  ;;  %v21003_v1 = vld [vmem:[#allocation25_spill] sm:$0xff]  ;;  %v21004_v39 = vld [vmem:[#allocation64_spill] sm:$0xff] }
 0x38d   : > { %v12086_v58 = vpop.f32.mrf.mxu1  ;;  %v21001_v50 = vld [vmem:[#allocation79_spill] sm:$0xff] }
 0x38e   : > { %20994 = vst [vmem:[#allocation57_spill] sm:$0xff] %v17902_v59  ;;  %v12216_v4 = vpop.f32.mrf.mxu0  ;;  %v17905_v53 = vadd.f32 %v6774_v47, %v6227_v0  ;;  %v6230_v22 = vadd.f32 %v12086_v58, %v20997_v60  ;;  %v21005_v0 = vld [vmem:[#allocation81_spill] sm:$0xff] }
 0x38f   : > { %v6043_v3 = vpop.f32.mrf.mxu1  ;;  %v21007_v60 = vld [vmem:[#allocation33_spill] sm:$0xff] }
 0x390   : > { %20996 = vst [vmem:[#allocation289_spill] sm:$0xff] %v17905_v53  ;;  %v6777_v8 = vpop.f32.mrf.mxu0  ;;  %v17908_v13 = vadd.f32 %v12216_v4, %v6230_v22  ;;  %v6228_v32 = vadd.f32 %v6043_v3, %v20999_v30 }
 0x391   : > { %v12089_v28 = vpop.f32.mrf.mxu1  ;;  %12316 = vmatmul.mubr.msk.bf16.gmra.mxu1 %vm697_vm1, %v21000_v17  ;;  %v21012_v17 = vld [vmem:[#allocation313_spill] sm:$0xff] }
 0x392   : > { %20998 = vst [vmem:[#allocation161_spill] sm:$0xff] %v17908_v13  ;;  %v12219_v6 = vpop.f32.mrf.mxu0  ;;  %12446 = vmatmul.mubr.msk.bf16.gmra.mxu0 %vm697_vm1, %v21001_v50  ;;  %v17915_v7 = vadd.f32 %v6777_v8, %v6228_v32  ;;  %v6233_v47 = vadd.f32 %v12089_v28, %v21003_v1  ;;  %12319 = vmatprep.mubr.msk.bf16.mxu1 %vm697_vm1, %v21004_v39  ;;  %v21009_v32 = vld [vmem:[#allocation2_spill] sm:$0xff] }
 0x393   : > { %12449 = vmatprep.mubr.msk.bf16.mxu0 %vm697_vm1, %v21005_v0  ;;  %v6056_v4 = vpop.f32.mrf.mxu1 }
 0x394   : > { %21002 = vst [vmem:[#allocation277_spill] sm:$0xff] %v17915_v7  ;;  %v6790_v30 = vpop.f32.mrf.mxu0  ;;  %v17922_v58 = vadd.f32 %v12219_v6, %v6233_v47  ;;  %v6231_v22 = vadd.f32 %v6056_v4, %v21007_v60  ;;  %v21011_v7 = vld [vmem:[#allocation237_spill] sm:$0xff]  ;;  %v21013_v6 = vld [vmem:[#allocation94_spill] sm:$0xff]  ;;  %v21015_v4 = vld [vmem:[#allocation7_spill] sm:$0xff] }
 0x395   : > { %v12090_v3 = vpop.f32.mrf.mxu1  ;;  %v21016_v60 = vld [vmem:[#allocation117_spill] sm:$0xff] }
 0x396   : > { %21006 = vst [vmem:[#allocation80_spill] sm:$0xff] %v17922_v58  ;;  %v12220_v13 = vpop.f32.mrf.mxu0  ;;  %v17925_v53 = vadd.f32 %v6790_v30, %v6231_v22  ;;  %v6234_v8 = vadd.f32 %v12090_v3, %v21009_v32  ;;  %v21017_v22 = vld [vmem:[#allocation95_spill] sm:$0xff]  ;;  %v21019_v32 = vld [vmem:[#allocation8_spill] sm:$0xff] }
 0x397   : > { %v6059_v50 = vpop.f32.mrf.mxu1 }
 0x398   : > { %21008 = vst [vmem:[#allocation162_spill] sm:$0xff] %v17925_v53  ;;  %v6793_v28 = vpop.f32.mrf.mxu0  ;;  %v17928_v1 = vadd.f32 %v12220_v13, %v6234_v8  ;;  %v6232_v39 = vadd.f32 %v6059_v50, %v21011_v7 }
 0x399   : > { %v12093_v59 = vpop.f32.mrf.mxu1  ;;  %12320 = vmatmul.mubr.msk.bf16.gmra.mxu1 %vm697_vm1, %v21012_v17  ;;  %v21024_v17 = vld [vmem:[#allocation323_spill] sm:$0xff] }
 0x39a   : > { %21010 = vst [vmem:[#allocation73_spill] sm:$0xff] %v17928_v1  ;;  %v12223_v0 = vpop.f32.mrf.mxu0  ;;  %12450 = vmatmul.mubr.msk.bf16.gmra.mxu0 %vm697_vm1, %v21013_v6  ;;  %v17935_v47 = vadd.f32 %v6793_v28, %v6232_v39  ;;  %v6237_v30 = vadd.f32 %v12093_v59, %v21015_v4  ;;  %12323 = vmatprep.mubr.msk.bf16.mxu1 %vm697_vm1, %v21016_v60  ;;  %v21021_v39 = vld [vmem:[#allocation246_spill] sm:$0xff] }
 0x39b   : > { %12453 = vmatprep.mubr.msk.bf16.mxu0 %vm697_vm1, %v21017_v22  ;;  %v6072_v13 = vpop.f32.mrf.mxu1 }
 0x39c   : > { %21014 = vst [vmem:[#allocation294_spill] sm:$0xff] %v17935_v47  ;;  %v6806_v7 = vpop.f32.mrf.mxu0  ;;  %v17942_v3 = vadd.f32 %v12223_v0, %v6237_v30  ;;  %v6235_v8 = vadd.f32 %v6072_v13, %v21019_v32  ;;  %v21023_v47 = vld [vmem:[#allocation55_spill] sm:$0xff]  ;;  %v21025_v0 = vld [vmem:[#allocation104_spill] sm:$0xff]  ;;  %v21028_v32 = vld [vmem:[#allocation129_spill] sm:$0xff] }
 0x39d   : > { %v12094_v50 = vpop.f32.mrf.mxu1  ;;  %v21027_v13 = vld [vmem:[#allocation11_spill] sm:$0xff] }
 0x39e   : > { %21018 = vst [vmem:[#allocation271_spill] sm:$0xff] %v17942_v3  ;;  %v12224_v1 = vpop.f32.mrf.mxu0  ;;  %v17945_v53 = vadd.f32 %v6806_v7, %v6235_v8  ;;  %v6238_v28 = vadd.f32 %v12094_v50, %v21021_v39  ;;  %v21029_v8 = vld [vmem:[#allocation105_spill] sm:$0xff]  ;;  %v21031_v39 = vld [vmem:[#allocation252_spill] sm:$0xff] }
 0x39f   : > { %v6075_v6 = vpop.f32.mrf.mxu1 }
 0x3a0   : > { %21020 = vst [vmem:[#allocation83_spill] sm:$0xff] %v17945_v53  ;;  %v6809_v59 = vpop.f32.mrf.mxu0  ;;  %v17948_v4 = vadd.f32 %v12224_v1, %v6238_v28  ;;  %v6236_v60 = vadd.f32 %v6075_v6, %v21023_v47 }
 0x3a1   : > { %v12097_v58 = vpop.f32.mrf.mxu1  ;;  %12324 = vmatmul.mubr.msk.bf16.gmra.mxu1 %vm697_vm1, %v21024_v17  ;;  %v21036_v17 = vld [vmem:[#allocation326_spill] sm:$0xff] }
 0x3a2   : > { %21022 = vst [vmem:[#allocation76_spill] sm:$0xff] %v17948_v4  ;;  %v12227_v22 = vpop.f32.mrf.mxu0  ;;  %12454 = vmatmul.mubr.msk.bf16.gmra.mxu0 %vm697_vm1, %v21025_v0  ;;  %v17955_v30 = vadd.f32 %v6809_v59, %v6236_v60  ;;  %v6241_v7 = vadd.f32 %v12097_v58, %v21027_v13  ;;  %12327 = vmatprep.mubr.msk.bf16.mxu1 %vm697_vm1, %v21028_v32  ;;  %v21033_v60 = vld [vmem:[#allocation15_spill] sm:$0xff] }
 0x3a3   : > { %12457 = vmatprep.mubr.msk.bf16.mxu0 %vm697_vm1, %v21029_v8  ;;  %v6088_v1 = vpop.f32.mrf.mxu1 }
 0x3a4   : > { %21026 = vst [vmem:[#allocation23_spill] sm:$0xff] %v17955_v30  ;;  %v6822_v47 = vpop.f32.mrf.mxu0  ;;  %v17962_v50 = vadd.f32 %v12227_v22, %v6241_v7  ;;  %v6239_v28 = vadd.f32 %v6088_v1, %v21031_v39  ;;  %v21035_v30 = vld [vmem:[#allocation258_spill] sm:$0xff]  ;;  %v21037_v22 = vld [vmem:[#allocation115_spill] sm:$0xff]  ;;  %v21039_v1 = vld [vmem:[#allocation69_spill] sm:$0xff] }
 0x3a5   : > { %v12098_v6 = vpop.f32.mrf.mxu1  ;;  %v21040_v39 = vld [vmem:[#allocation140_spill] sm:$0xff] }
 0x3a6   : > { %21030 = vst [vmem:[#allocation304_spill] sm:$0xff] %v17962_v50  ;;  %v12228_v4 = vpop.f32.mrf.mxu0  ;;  %v17965_v53 = vadd.f32 %v6822_v47, %v6239_v28  ;;  %v6242_v59 = vadd.f32 %v12098_v6, %v21033_v60  ;;  %v21041_v28 = vld [vmem:[#allocation116_spill] sm:$0xff]  ;;  %v21043_v60 = vld [vmem:[#allocation18_spill] sm:$0xff] }
 0x3a7   : > { %v6091_v0 = vpop.f32.mrf.mxu1 }
 0x3a8   : > { %21032 = vst [vmem:[#allocation9_spill] sm:$0xff] %v17965_v53  ;;  %v6825_v58 = vpop.f32.mrf.mxu0  ;;  %v17968_v13 = vadd.f32 %v12228_v4, %v6242_v59  ;;  %v6240_v32 = vadd.f32 %v6091_v0, %v21035_v30 }
 0x3a9   : > { %v12101_v3 = vpop.f32.mrf.mxu1  ;;  %12328 = vmatmul.mubr.msk.bf16.gmra.mxu1 %vm697_vm1, %v21036_v17 }
 0x3aa   : > { %21034 = vst [vmem:[#allocation287_spill] sm:$0xff] %v17968_v13  ;;  %v12231_v8 = vpop.f32.mrf.mxu0  ;;  %12458 = vmatmul.mubr.msk.bf16.gmra.mxu0 %vm697_vm1, %v21037_v22  ;;  %v17975_v7 = vadd.f32 %v6825_v58, %v6240_v32  ;;  %v6245_v47 = vadd.f32 %v12101_v3, %v21039_v1  ;;  %12331 = vmatprep.mubr.msk.bf16.mxu1 %vm697_vm1, %v21040_v39  ;;  %v21045_v32 = vld [vmem:[#allocation264_spill] sm:$0xff] }
 0x3ab   : > { %12461 = vmatprep.mubr.msk.bf16.mxu0 %vm697_vm1, %v21041_v28  ;;  %v6104_v4 = vpop.f32.mrf.mxu1  ;;  %v21048_v28 = vld [vmem:[#allocation329_spill] sm:$0xff] }
 0x3ac   : > { %21038 = vst [vmem:[#allocation87_spill] sm:$0xff] %v17975_v7  ;;  %v6838_v30 = vpop.f32.mrf.mxu0  ;;  %v17982_v6 = vadd.f32 %v12231_v8, %v6245_v47  ;;  %v6243_v59 = vadd.f32 %v6104_v4, %v21043_v60  ;;  %v21047_v7 = vld [vmem:[#allocation270_spill] sm:$0xff] }
 0x3ad   : > { %v12102_v0 = vpop.f32.mrf.mxu1  ;;  %v21049_v47 = vld [vmem:[#allocation126_spill] sm:$0xff] }
 0x3ae   : > { %21042 = vst [vmem:[#allocation70_spill] sm:$0xff] %v17982_v6  ;;  %v12232_v13 = vpop.f32.mrf.mxu0  ;;  %v17985_v53 = vadd.f32 %v6838_v30, %v6243_v59  ;;  %v6246_v58 = vadd.f32 %v12102_v0, %v21045_v32  ;;  %v21051_v30 = vld [vmem:[#allocation21_spill] sm:$0xff]  ;;  %v21053_v0 = vld [vmem:[#allocation127_spill] sm:$0xff] }
 0x3af   : > { %v6107_v22 = vpop.f32.mrf.mxu1  ;;  %v21052_v59 = vld [vmem:[#allocation333_spill] sm:$0xff] }
 0x3b0   : > { %21044 = vst [vmem:[#allocation147_spill] sm:$0xff] %v17985_v53  ;;  %v6841_v3 = vpop.f32.mrf.mxu0  ;;  %v17988_v1 = vadd.f32 %v12232_v13, %v6246_v58  ;;  %v6244_v39 = vadd.f32 %v6107_v22, %v21047_v7  ;;  %v21055_v58 = vld [vmem:[#allocation274_spill] sm:$0xff] }
 0x3b1   : > { %v12237_v50 = vpop.f32.mrf.mxu1  ;;  %12332 = vmatmul.mubr.msk.bf16.gmra.mxu1 %vm697_vm1, %v21048_v28 }
 0x3b2   : > { %21046 = vst [vmem:[#allocation93_spill] sm:$0xff] %v17988_v1  ;;  %v12367_v8 = vpop.f32.mrf.mxu0  ;;  %12462 = vmatmul.mubr.msk.bf16.gmra.mxu0 %vm697_vm1, %v21049_v47  ;;  %v17995_v4 = vadd.f32 %v6841_v3, %v6244_v39  ;;  %v7559_v60 = vadd.f32 %v12237_v50, %v21051_v30  ;;  %12335 = vmatprep.mubr.msk.bf16.mxu1 %vm697_vm1, %v21052_v59  ;;  %v21057_v39 = vld [vmem:[#allocation78_spill] sm:$0xff] }
 0x3b3   : > { %12465 = vmatprep.mubr.msk.bf16.mxu0 %vm697_vm1, %v21053_v0  ;;  %v7046_v13 = vpop.f32.mrf.mxu1  ;;  %v21060_v0 = vld [vmem:[#allocation232_spill] sm:$0xff] }
 0x3b4   : > { %21050 = vst [vmem:[#allocation233_spill] sm:$0xff] %v17995_v4  ;;  %v7740_v7 = vpop.f32.mrf.mxu0  ;;  %v18002_v32 = vadd.f32 %v12367_v8, %v7559_v60  ;;  %v7557_v22 = vadd.f32 %v7046_v13, %v21055_v58  ;;  %v21059_v4 = vld [vmem:[#allocation29_spill] sm:$0xff]  ;;  %v21061_v60 = vld [vmem:[#allocation136_spill] sm:$0xff] }
 0x3b5   : > { %v12238_v1 = vpop.f32.mrf.mxu1 }
 0x3b6   : > { %21054 = vst [vmem:[#allocation261_spill] sm:$0xff] %v18002_v32  ;;  %v12368_v53 = vpop.f32.mrf.mxu0  ;;  %v18005_v6 = vadd.f32 %v7740_v7, %v7557_v22  ;;  %v7560_v3 = vadd.f32 %v12238_v1, %v21057_v39  ;;  %v21063_v7 = vld [vmem:[#allocation280_spill] sm:$0xff]  ;;  %v21064_v22 = vld [vmem:[#allocation310_spill] sm:$0xff]  ;;  %v21065_v1 = vld [vmem:[#allocation139_spill] sm:$0xff] }
 0x3b7   : > { %v7049_v47 = vpop.f32.mrf.mxu1 }
 0x3b8   : > { %21056 = vst [vmem:[#allocation275_spill] sm:$0xff] %v18005_v6  ;;  %v7743_v50 = vpop.f32.mrf.mxu0  ;;  %v18008_v30 = vadd.f32 %v12368_v53, %v7560_v3  ;;  %v7558_v59 = vadd.f32 %v7049_v47, %v21059_v4  ;;  %v21067_v3 = vld [vmem:[#allocation31_spill] sm:$0xff] }
 0x3b9   : > { %v12241_v28 = vpop.f32.mrf.mxu1  ;;  %12336 = vmatmul.mubr.msk.bf16.gmra.mxu1 %vm697_vm1, %v21060_v0 }
 0x3ba   : > { %21058 = vst [vmem:[#allocation299_spill] sm:$0xff] %v18008_v30  ;;  %v12371_v8 = vpop.f32.mrf.mxu0  ;;  %12466 = vmatmul.mubr.msk.bf16.gmra.mxu0 %vm697_vm1, %v21061_v60  ;;  %v18015_v13 = vadd.f32 %v7743_v50, %v7558_v59  ;;  %v7563_v58 = vadd.f32 %v12241_v28, %v21063_v7  ;;  %12339 = vmatprep.mubr.msk.bf16.mxu1 %vm697_vm1, %v21064_v22  ;;  %v21069_v59 = vld [vmem:[#allocation286_spill] sm:$0xff] }
 0x3bb   : > { %12469 = vmatprep.mubr.msk.bf16.mxu0 %vm697_vm1, %v21065_v1  ;;  %v7062_v53 = vpop.f32.mrf.mxu1  ;;  %v21072_v1 = vld [vmem:[#allocation28_spill] sm:$0xff] }
 0x3bc   : > { %21062 = vst [vmem:[#allocation100_spill] sm:$0xff] %v18015_v13  ;;  %v7756_v4 = vpop.f32.mrf.mxu0  ;;  %v18022_v39 = vadd.f32 %v12371_v8, %v7563_v58  ;;  %v7561_v47 = vadd.f32 %v7062_v53, %v21067_v3  ;;  %v21071_v13 = vld [vmem:[#allocation91_spill] sm:$0xff] }
 0x3bd   : > { %v12242_v30 = vpop.f32.mrf.mxu1  ;;  %v21073_v58 = vld [vmem:[#allocation143_spill] sm:$0xff] }
 0x3be   : > { %21066 = vst [vmem:[#allocation316_spill] sm:$0xff] %v18022_v39  ;;  %v12372_v32 = vpop.f32.mrf.mxu0  ;;  %v18025_v6 = vadd.f32 %v7756_v4, %v7561_v47  ;;  %v7564_v50 = vadd.f32 %v12242_v30, %v21069_v59  ;;  %v21075_v4 = vld [vmem:[#allocation45_spill] sm:$0xff]  ;;  %v21076_v47 = vld [vmem:[#allocation254_spill] sm:$0xff]  ;;  %v21077_v30 = vld [vmem:[#allocation144_spill] sm:$0xff] }
 0x3bf   : > { %v7065_v60 = vpop.f32.mrf.mxu1 }
 0x3c0   : > { %21068 = vst [vmem:[#allocation36_spill] sm:$0xff] %v18025_v6  ;;  %v7759_v28 = vpop.f32.mrf.mxu0  ;;  %v18028_v7 = vadd.f32 %v12372_v32, %v7564_v50  ;;  %v7562_v22 = vadd.f32 %v7065_v60, %v21071_v13  ;;  %v21079_v50 = vld [vmem:[#allocation291_spill] sm:$0xff] }
 0x3c1   : > { %v12245_v0 = vpop.f32.mrf.mxu1  ;;  %12340 = vmatmul.mubr.msk.bf16.gmra.mxu1 %vm697_vm1, %v21072_v1 }
 0x3c2   : > { %21070 = vst [vmem:[#allocation103_spill] sm:$0xff] %v18028_v7  ;;  %v12375_v8 = vpop.f32.mrf.mxu0  ;;  %12470 = vmatmul.mubr.msk.bf16.gmra.mxu0 %vm697_vm1, %v21073_v58  ;;  %v18035_v53 = vadd.f32 %v7759_v28, %v7562_v22  ;;  %v7567_v3 = vadd.f32 %v12245_v0, %v21075_v4  ;;  %12343 = vmatprep.mubr.msk.bf16.mxu1 %vm697_vm1, %v21076_v47  ;;  %v21081_v22 = vld [vmem:[#allocation298_spill] sm:$0xff] }
 0x3c3   : > { %12473 = vmatprep.mubr.msk.bf16.mxu0 %vm697_vm1, %v21077_v30  ;;  %v7078_v32 = vpop.f32.mrf.mxu1  ;;  %v21084_v30 = vld [vmem:[#allocation86_spill] sm:$0xff] }
 0x3c4   : > { %21074 = vst [vmem:[#allocation314_spill] sm:$0xff] %v18035_v53  ;;  %v7772_v13 = vpop.f32.mrf.mxu0  ;;  %v18042_v59 = vadd.f32 %v12375_v8, %v7567_v3  ;;  %v7565_v60 = vadd.f32 %v7078_v32, %v21079_v50  ;;  %v21083_v53 = vld [vmem:[#allocation48_spill] sm:$0xff]  ;;  %v21085_v3 = vld [vmem:[#allocation149_spill] sm:$0xff] }
 0x3c5   : > { %v12246_v7 = vpop.f32.mrf.mxu1 }
 0x3c6   : > { %21078 = vst [vmem:[#allocation263_spill] sm:$0xff] %v18042_v59  ;;  %v12376_v39 = vpop.f32.mrf.mxu0  ;;  %v18045_v6 = vadd.f32 %v7772_v13, %v7565_v60  ;;  %v7568_v28 = vadd.f32 %v12246_v7, %v21081_v22  ;;  %v21087_v13 = vld [vmem:[#allocation301_spill] sm:$0xff]  ;;  %v21089_v7 = vld [vmem:[#allocation150_spill] sm:$0xff] }
 0x3c7   : > { %v7081_v58 = vpop.f32.mrf.mxu1  ;;  %v21088_v60 = vld [vmem:[#allocation337_spill] sm:$0xff] }
 0x3c8   : > { %21080 = vst [vmem:[#allocation276_spill] sm:$0xff] %v18045_v6  ;;  %v7775_v0 = vpop.f32.mrf.mxu0  ;;  %v18048_v4 = vadd.f32 %v12376_v39, %v7568_v28  ;;  %v7566_v47 = vadd.f32 %v7081_v58, %v21083_v53  ;;  %v21091_v28 = vld [vmem:[#allocation97_spill] sm:$0xff] }
 0x3c9   : > { %v12249_v1 = vpop.f32.mrf.mxu1  ;;  %12344 = vmatmul.mubr.msk.bf16.gmra.mxu1 %vm697_vm1, %v21084_v30  ;;  %v21096_v30 = vld [vmem:[#allocation339_spill] sm:$0xff] }
 0x3ca   : > { %21082 = vst [vmem:[#allocation303_spill] sm:$0xff] %v18048_v4  ;;  %v12379_v8 = vpop.f32.mrf.mxu0  ;;  %12474 = vmatmul.mubr.msk.bf16.gmra.mxu0 %vm697_vm1, %v21085_v3  ;;  %v18055_v32 = vadd.f32 %v7775_v0, %v7566_v47  ;;  %v7571_v50 = vadd.f32 %v12249_v1, %v21087_v13  ;;  %12347 = vmatprep.mubr.msk.bf16.mxu1 %vm697_vm1, %v21088_v60  ;;  %v21093_v47 = vld [vmem:[#allocation61_spill] sm:$0xff] }
 0x3cb   : > { %12477 = vmatprep.mubr.msk.bf16.mxu0 %vm697_vm1, %v21089_v7  ;;  %v7094_v39 = vpop.f32.mrf.mxu1 }
 0x3cc   : > { %21086 = vst [vmem:[#allocation111_spill] sm:$0xff] %v18055_v32  ;;  %v7788_v53 = vpop.f32.mrf.mxu0  ;;  %v18062_v22 = vadd.f32 %v12379_v8, %v7571_v50  ;;  %v7569_v58 = vadd.f32 %v7094_v39, %v21091_v28  ;;  %v21095_v32 = vld [vmem:[#allocation307_spill] sm:$0xff] }
 0x3cd   : > { %v12250_v4 = vpop.f32.mrf.mxu1 }
 0x3ce   : > { %21090 = vst [vmem:[#allocation262_spill] sm:$0xff] %v18062_v22  ;;  %v12380_v59 = vpop.f32.mrf.mxu0  ;;  %v18065_v6 = vadd.f32 %v7788_v53, %v7569_v58  ;;  %v7572_v0 = vadd.f32 %v12250_v4, %v21093_v47  ;;  %v21098_v4 = vld [vmem:[#allocation285_spill] sm:$0xff]  ;;  %v12979_v53 = vld [vmem:[%s13070_s25 + $0x284] sm:$0xf] }
 0x3cf   : > { %v7097_v1 = vpop.f32.mrf.mxu1  ;;  %v6984_v28 = vrot.slane %v12979_v53, 5  ;;  %v12982_v53 = vld [vmem:[%s13070_s25 + $0x28c] sm:$0xf] }
 0x3d0   : > { %21092 = vst [vmem:[#allocation281_spill] sm:$0xff] %v18065_v6  ;;  %v7791_v3 = vpop.f32.mrf.mxu0  ;;  %v18068_v13 = vadd.f32 %v12380_v59, %v7572_v0  ;;  %v7570_v60 = vadd.f32 %v7097_v1, %v21095_v32 }
 0x3d1   : > { %v12253_v7 = vpop.f32.mrf.mxu1  ;;  %12348 = vmatmul.mubr.msk.bf16.gmra.mxu1 %vm697_vm1, %v21096_v30  ;;  %v6986_v22 = vrot.slane %v6984_v28, 4 }
 0x3d2   : > { %21094 = vst [vmem:[#allocation114_spill] sm:$0xff] %v18068_v13  ;;  %v12383_v8 = vpop.f32.mrf.mxu0  ;;  %12478 = vmatmul.mubr.msk.bf16.gmra.mxu0 %vm697_vm1, %v20755_v5  ;;  %v18075_v50 = vadd.f32 %v7791_v3, %v7570_v60  ;;  %v7575_v39 = vadd.f32 %v12253_v7, %v17377_v16  ;;  %12351 = vmatprep.mubr.msk.bf16.mxu1 %vm697_vm1, %v21098_v4  ;;  %v21101_v16 = vld [vmem:[#allocation174_spill] sm:$0xff] }
 0x3d3   : > { %12481 = vmatprep.mubr.msk.bf16.mxu0 %vm697_vm1, %v20759_v48  ;;  %v7110_v59 = vpop.f32.mrf.mxu1  ;;  %v12980_v13 = vld [vmem:[%s13070_s25 + $0x280] sm:$0xf] }
 0x3d4   : > { %21097 = vst [vmem:[#allocation249_spill] sm:$0xff] %v18075_v50  ;;  %v7804_v32 = vpop.f32.mrf.mxu0  ;;  %v18083_v58 = vadd.f32 %v12383_v8, %v7575_v39  ;;  %v7573_v5 = vadd.f32 %v7110_v59, %v17381_v44  ;;  %v10725_v48 = vrot.slane %v12980_v13, 9  ;;  %v12981_v50 = vld [vmem:[%s13070_s25 + $0x288] sm:$0xf]  ;;  %v21104_v59 = vld [vmem:[#allocation253_spill] sm:$0xff] }
 0x3d5   : > { %v12254_v60 = vpop.f32.mrf.mxu1  ;;  %v6987_v6 = vrot.slane %v12981_v50, 5  ;;  %v21103_v8 = vld [vmem:[#allocation107_spill] sm:$0xff] }
 0x3d6   : > { %21099 = vst [vmem:[#allocation267_spill] sm:$0xff] %v18083_v58  ;;  %v12384_v47 = vpop.f32.mrf.mxu0  ;;  %v18086_v0 = vadd.f32 %v7804_v32, %v7573_v5  ;;  %v7576_v1 = vadd.f32 %v12254_v60, %v21101_v16  ;;  %v6990_v5 = vrot.slane %v12982_v53, 5  ;;  %v21106_v60 = vld [vmem:[#allocation305_spill] sm:$0xff] }
 0x3d7   : > { %v7113_v3 = vpop.f32.mrf.mxu1 }
 0x3d8   : > { %21100 = vst [vmem:[#allocation260_spill] sm:$0xff] %v18086_v0  ;;  %v7807_v7 = vpop.f32.mrf.mxu0  ;;  %v18091_v4 = vadd.f32 %v12384_v47, %v7576_v1  ;;  %v7574_v39 = vadd.f32 %v7113_v3, %v21103_v8  ;;  %v6985_v3 = vsel %vm13358_vm4, %v10725_v48, %v6984_v28  ;;  %v364_v8 = vld [vmem:[%s13070_s25 + $0x294] sm:$0xf]  ;;  %v6992_v58 = vrot.slane %v6990_v5, 4 }
 0x3d9   : > { %v12257_v44 = vpop.f32.mrf.mxu1  ;;  %12352 = vmatmul.mubr.msk.bf16.gmra.mxu1 %vm697_vm1, %v21104_v59 }
 0x3da   : > { %21102 = vst [vmem:[#allocation176_spill] sm:$0xff] %v18091_v4  ;;  %v12387_v32 = vpop.f32.mrf.mxu0  ;;  %12482 = vmatmul.mubr.msk.bf16.gmra.mxu0 %vm697_vm1, %v20766_v33  ;;  %v18099_v13 = vadd.f32 %v7807_v7, %v7574_v39  ;;  %v7579_v50 = vadd.f32 %v12257_v44, %v17406_v36  ;;  %12355 = vmatprep.mubr.msk.bf16.mxu1 %vm697_vm1, %v21106_v60  ;;  %v365_v7 = vld [vmem:[%s13070_s25 + $0x298] sm:$0xf]  ;;  %v6989_v4 = vrot.slane %v6987_v6, 4 }
 0x3db   : > { %12485 = vmatprep.mubr.msk.bf16.mxu0 %vm697_vm1, %v17412_v41  ;;  %v7126_v47 = vpop.f32.mrf.mxu1  ;;  %v6988_v33 = vsel %vm13358_vm4, %v6986_v22, %v6987_v6  ;;  %v10794_v22 = vcombine.low %v364_v8, %v365_v7  ;;  %v21108_v6 = vld [vmem:[#allocation259_spill] sm:$0xff] }
 0x3dc   : > { %21105 = vst [vmem:[#allocation124_spill] sm:$0xff] %v18099_v13  ;;  %v7820_v16 = vpop.f32.mrf.mxu0  ;;  %v18112_v39 = vadd.f32 %v12387_v32, %v7579_v50  ;;  %v7577_v36 = vadd.f32 %v7126_v47, %v17414_v55  ;;  %v12983_v13 = vld [vmem:[%s13070_s25 + $0x290] sm:$0x1]  ;;  %v18119_v28 = vcombine.low %v6985_v3, %v6988_v33  ;;  %v367_v33 = vld [vmem:[%s13070_s25 + $0x2a0] sm:$0xf] }
 0x3dd   : > { %v12258_v44 = vpop.f32.mrf.mxu1  ;;  %v6993_v41 = vrot.slane %v12983_v13, 5 }
 0x3de   : > { %v12388_v53 = vpop.f32.mrf.mxu0  ;;  %v18116_v0 = vadd.f32 %v7820_v16, %v7577_v36  ;;  %v7580_v60 = vadd.f32 %v12258_v44, %v17421_v14  ;;  %v6991_v14 = vsel %vm13358_vm4, %v6989_v4, %v6990_v5 }
 0x3df   : > { %v7129_v48 = vpop.f32.mrf.mxu1 }
 0x3e0   : > { %v7823_v32 = vpop.f32.mrf.mxu0  ;;  %v18121_v50 = vadd.f32 %v12388_v53, %v7580_v60  ;;  %v7578_v55 = vadd.f32 %v7129_v48, %v17430_v23  ;;  %v6994_v23 = vsel %vm13358_vm4, %v6992_v58, %v6993_v41  ;;  %v366_v60 = vld [vmem:[%s13070_s25 + $0x29c] sm:$0xf] }
 0x3e1   : > { %v12261_v47 = vpop.f32.mrf.mxu1  ;;  %12356 = vmatmul.mubr.msk.bf16.gmra.mxu1 %vm697_vm1, %v21108_v6  ;;  %v18143_v44 = vcombine.low %v6991_v14, %v6994_v23  ;;  %v21109_v14 = vld [vmem:[#allocation160_spill] sm:$0xff] }
 0x3e2   : > { %v12391_v13 = vpop.f32.mrf.mxu0  ;;  %12486 = vmatmul.mubr.msk.bf16.gmra.mxu0 %vm697_vm1, %v17444_v51  ;;  %v18130_v16 = vadd.f32 %v7823_v32, %v7578_v55  ;;  %v7583_v3 = vadd.f32 %v12261_v47, %v17439_v62  ;;  %12359 = vmatprep.mubr.msk.bf16.mxu1 %vm697_vm1, %v18119_v28  ;;  %v10795_v62 = vcombine.low %v366_v60, %v367_v33 }
 0x3e3   : > { %12489 = vmatprep.mubr.msk.bf16.mxu0 %vm697_vm1, %v10794_v22  ;;  %v7142_v8 = vpop.f32.mrf.mxu1 }
 0x3e4   : > { %v7836_v7 = vpop.f32.mrf.mxu0  ;;  %v18140_v51 = vadd.f32 %v12391_v13, %v7583_v3  ;;  %v7581_v4 = vadd.f32 %v7142_v8, %v17449_v35 }
 0x3e5   : > { %v12262_v5 = vpop.f32.mrf.mxu1 }
 0x3e6   : > { %v12392_v36 = vpop.f32.mrf.mxu0  ;;  %v18145_v53 = vadd.f32 %v7836_v7, %v7581_v4  ;;  %v7584_v22 = vadd.f32 %v12262_v5, %v17454_v27 }
 0x3e7   : > { %v7145_v48 = vpop.f32.mrf.mxu1 }
 0x3e8   : > { %v7839_v32 = vpop.f32.mrf.mxu0  ;;  %v18148_v58 = vadd.f32 %v12392_v36, %v7584_v22  ;;  %v7582_v41 = vadd.f32 %v7145_v48, %v17461_v25  ;;  %v21113_v22 = vld [vmem:[#allocation26_spill] sm:$0xff] }
 0x3e9   : > { %v12265_v55 = vpop.f32.mrf.mxu1  ;;  %12360 = vmatmul.mubr.msk.bf16.gmra.mxu1 %vm697_vm1, %v18143_v44 }
 0x3ea   : > { %v12395_v35 = vpop.f32.mrf.mxu0  ;;  %12490 = vmatmul.mubr.msk.bf16.gmra.mxu0 %vm697_vm1, %v10795_v62  ;;  %v18154_v47 = vadd.f32 %v7839_v32, %v7582_v41  ;;  %v7587_v13 = vadd.f32 %v12265_v55, %v17468_v26  ;;  %12495 = vmatprep.mubr.msk.bf16.mxu1 %vm697_vm1, %v21109_v14  ;;  %v21115_v32 = vld [vmem:[#allocation40_spill] sm:$0xff] }
 0x3eb   : > { %12625 = vmatprep.mubr.msk.bf16.mxu0 %vm697_vm1, %v20779_v15  ;;  %v7158_v27 = vpop.f32.mrf.mxu1 }
 0x3ec   : > { %v7852_v3 = vpop.f32.mrf.mxu0  ;;  %v18161_v25 = vadd.f32 %v12395_v35, %v7587_v13  ;;  %v7585_v23 = vadd.f32 %v7158_v27, %v17472_v54 }
 0x3ed   : > { %v12266_v60 = vpop.f32.mrf.mxu1 }
 0x3ee   : > { %21110 = vst [vmem:[#allocation12_spill] sm:$0xff] %v18161_v25  ;;  %v12396_v33 = vpop.f32.mrf.mxu0  ;;  %v18164_v8 = vadd.f32 %v7852_v3, %v7585_v23  ;;  %v7588_v7 = vadd.f32 %v12266_v60, %v17481_v11 }
 0x3ef   : > { %v7161_v4 = vpop.f32.mrf.mxu1 }
 0x3f0   : > { %21111 = vst [vmem:[#allocation32_spill] sm:$0xff] %v18164_v8  ;;  %v7855_v26 = vpop.f32.mrf.mxu0  ;;  %v18167_v5 = vadd.f32 %v12396_v33, %v7588_v7  ;;  %v7586_v36 = vadd.f32 %v7161_v4, %v17488_v46  ;;  %v21117_v33 = vld [vmem:[#allocation43_spill] sm:$0xff]  ;;  %v21118_v4 = vld [vmem:[#allocation56_spill] sm:$0xff] }
 0x3f1   : > { %v12269_v62 = vpop.f32.mrf.mxu1  ;;  %12496 = vmatmul.mubr.msk.bf16.vlgmr.msra.gmra.mxu1 %vm697_vm1, %v21113_v22 }
 0x3f2   : > { %21112 = vst [vmem:[#allocation125_spill] sm:$0xff] %v18167_v5  ;;  %v12399_v15 = vpop.f32.mrf.mxu0  ;;  %12626 = vmatmul.mubr.msk.bf16.vlgmr.msra.gmra.mxu0 %vm697_vm1, %v20782_v2  ;;  %v18174_v54 = vadd.f32 %v7855_v26, %v7586_v36  ;;  %v7591_v48 = vadd.f32 %v12269_v62, %v17495_v49  ;;  %12499 = vmatprep.mubr.msk.bf16.mxu1 %vm697_vm1, %v21115_v32 }
 0x3f3   : > { %12629 = vmatprep.mubr.msk.bf16.mxu0 %vm697_vm1, %v20784_v18  ;;  %v7174_v11 = vpop.f32.mrf.mxu1 }
 0x3f4   : > { %21114 = vst [vmem:[#allocation92_spill] sm:$0xff] %v18174_v54  ;;  %v7868_v46 = vpop.f32.mrf.mxu0  ;;  %v18181_v41 = vadd.f32 %v12399_v15, %v7591_v48  ;;  %v7589_v55 = vadd.f32 %v7174_v11, %v17499_v56  ;;  %v21402_v54 = vld [vmem:[#allocation111_spill] sm:$0xff] }
 0x3f5   : > { %v12270_v35 = vpop.f32.mrf.mxu1 }
 0x3f6   : > { %v12400_v13 = vpop.f32.mrf.mxu0  ;;  %v18184_v14 = vadd.f32 %v7868_v46, %v7589_v55  ;;  %v7592_v2 = vadd.f32 %v12270_v35, %v17504_v10  ;;  %v21122_v55 = vld [vmem:[#allocation58_spill] sm:$0xff] }
 0x3f7   : > { %v7177_v27 = vpop.f32.mrf.mxu1 }
 0x3f8   : > { %v7871_v49 = vpop.f32.mrf.mxu0  ;;  %v18187_v3 = vadd.f32 %v12400_v13, %v7592_v2  ;;  %v7590_v23 = vadd.f32 %v7177_v27, %v17511_v19  ;;  %v21124_v13 = vld [vmem:[#allocation59_spill] sm:$0xff] }
 0x3f9   : > { %v12273_v60 = vpop.f32.mrf.mxu1  ;;  %12500 = vmatmul.mubr.msk.bf16.gmra.mxu1 %vm697_vm1, %v21117_v33 }
 0x3fa   : > { %21116 = vst [vmem:[#allocation158_spill] sm:$0xff] %v18187_v3  ;;  %v12403_v18 = vpop.f32.mrf.mxu0  ;;  %12630 = vmatmul.mubr.msk.bf16.gmra.mxu0 %vm697_vm1, %v20787_v20  ;;  %v18194_v56 = vadd.f32 %v7871_v49, %v7590_v23  ;;  %v7595_v7 = vadd.f32 %v12273_v60, %v17518_v57  ;;  %12503 = vmatprep.mubr.msk.bf16.mxu1 %vm697_vm1, %v21118_v4  ;;  %v21404_v3 = vld [vmem:[#allocation263_spill] sm:$0xff] }
 0x3fb   : > { %12633 = vmatprep.mubr.msk.bf16.mxu0 %vm697_vm1, %v20789_v12  ;;  %v7190_v10 = vpop.f32.mrf.mxu1 }
 0x3fc   : > { %v7884_v19 = vpop.f32.mrf.mxu0  ;;  %v18201_v26 = vadd.f32 %v12403_v18, %v7595_v7  ;;  %v7593_v36 = vadd.f32 %v7190_v10, %v17522_v34  ;;  %v21128_v10 = vld [vmem:[#allocation71_spill] sm:$0xff] }
 0x3fd   : > { %v12274_v62 = vpop.f32.mrf.mxu1 }
 0x3fe   : > { %21119 = vst [vmem:[#allocation273_spill] sm:$0xff] %v18201_v26  ;;  %v12404_v15 = vpop.f32.mrf.mxu0  ;;  %v18204_v22 = vadd.f32 %v7884_v19, %v7593_v36  ;;  %v7596_v20 = vadd.f32 %v12274_v62, %v17527_v29  ;;  %v21130_v36 = vld [vmem:[#allocation82_spill] sm:$0xff] }
 0x3ff   : > { %v7193_v48 = vpop.f32.mrf.mxu1 }
 0x400   : > { %21120 = vst [vmem:[#allocation183_spill] sm:$0xff] %v18204_v22  ;;  %v7887_v57 = vpop.f32.mrf.mxu0  ;;  %v18207_v32 = vadd.f32 %v12404_v15, %v7596_v20  ;;  %v7594_v11 = vadd.f32 %v7193_v48, %v17534_v31 }
 0x401   : > { %v12277_v46 = vpop.f32.mrf.mxu1  ;;  %12504 = vmatmul.mubr.msk.bf16.gmra.mxu1 %vm697_vm1, %v21122_v55  ;;  %v21135_v55 = vld [vmem:[#allocation327_spill] sm:$0xff] }
 0x402   : > { %21121 = vst [vmem:[#allocation134_spill] sm:$0xff] %v18207_v32  ;;  %v12407_v12 = vpop.f32.mrf.mxu0  ;;  %12634 = vmatmul.mubr.msk.bf16.gmra.mxu0 %vm697_vm1, %v20792_v63  ;;  %v18214_v34 = vadd.f32 %v7887_v57, %v7594_v11  ;;  %v7599_v35 = vadd.f32 %v12277_v46, %v17541_v38  ;;  %12507 = vmatprep.mubr.msk.bf16.mxu1 %vm697_vm1, %v21124_v13  ;;  %v21400_v32 = vld [vmem:[#allocation305_spill] sm:$0xff] }
 0x403   : > { %12637 = vmatprep.mubr.msk.bf16.mxu0 %vm697_vm1, %v20794_v21  ;;  %v7206_v29 = vpop.f32.mrf.mxu1 }
 0x404   : > { %21123 = vst [vmem:[#allocation290_spill] sm:$0xff] %v18214_v34  ;;  %v7900_v31 = vpop.f32.mrf.mxu0  ;;  %v18221_v2 = vadd.f32 %v12407_v12, %v7599_v35  ;;  %v7597_v27 = vadd.f32 %v7206_v29, %v17545_v61  ;;  %v21136_v29 = vld [vmem:[#allocation163_spill] sm:$0xff]  ;;  %v368_v34 = vld [vmem:[%s13070_s25 + $0x2a4] sm:$0x1] }
 0x405   : > { %v12278_v49 = vpop.f32.mrf.mxu1 }
 0x406   : > { %21125 = vst [vmem:[#allocation288_spill] sm:$0xff] %v18221_v2  ;;  %v12408_v23 = vpop.f32.mrf.mxu0  ;;  %v18224_v60 = vadd.f32 %v7900_v31, %v7597_v27  ;;  %v7600_v63 = vadd.f32 %v12278_v49, %v17550_v52  ;;  %v21137_v31 = vld [vmem:[#allocation164_spill] sm:$0xff]  ;;  %v18735_v2 = vld [vmem:[%s13070_s25 + $0x29c] sm:$0xf] }
 0x407   : > { %v7209_v18 = vpop.f32.mrf.mxu1  ;;  %v21139_v27 = vld [vmem:[#allocation180_spill] sm:$0xff] }
 0x408   : > { %21126 = vst [vmem:[#allocation135_spill] sm:$0xff] %v18224_v60  ;;  %v7903_v38 = vpop.f32.mrf.mxu0  ;;  %v18227_v33 = vadd.f32 %v12408_v23, %v7600_v63  ;;  %v7598_v7 = vadd.f32 %v7209_v18, %v17557_v37  ;;  %v21140_v23 = vld [vmem:[#allocation85_spill] sm:$0xff]  ;;  %v21141_v63 = vld [vmem:[#allocation84_spill] sm:$0xff]  ;;  %v21399_v60 = vld [vmem:[#allocation295_spill] sm:$0xff] }
 0x409   : > { %v12281_v4 = vpop.f32.mrf.mxu1  ;;  %12508 = vmatmul.mubr.msk.bf16.gmra.mxu1 %vm697_vm1, %v21128_v10 }
 0x40a   : > { %21127 = vst [vmem:[#allocation292_spill] sm:$0xff] %v18227_v33  ;;  %v12411_v21 = vpop.f32.mrf.mxu0  ;;  %12638 = vmatmul.mubr.msk.bf16.gmra.mxu0 %vm697_vm1, %v20798_v9  ;;  %v18234_v61 = vadd.f32 %v7903_v38, %v7598_v7  ;;  %v7603_v19 = vadd.f32 %v12281_v4, %v17564_v24  ;;  %12511 = vmatprep.mubr.msk.bf16.mxu1 %vm697_vm1, %v21130_v36  ;;  %v21133_v9 = vld [vmem:[#allocation63_spill] sm:$0xff] }
 0x40b   : > { %12641 = vmatprep.mubr.msk.bf16.mxu0 %vm697_vm1, %v20803_v42  ;;  %v7222_v52 = vpop.f32.mrf.mxu1  ;;  %v21143_v4 = vld [vmem:[#allocation315_spill] sm:$0xff] }
 0x40c   : > { %21129 = vst [vmem:[#allocation19_spill] sm:$0xff] %v18234_v61  ;;  %v7916_v37 = vpop.f32.mrf.mxu0  ;;  %v18241_v62 = vadd.f32 %v12411_v21, %v7603_v19  ;;  %v7601_v15 = vadd.f32 %v7222_v52, %v17568_v40  ;;  %v21145_v52 = vld [vmem:[#allocation102_spill] sm:$0xff] }
 0x40d   : > { %v12282_v20 = vpop.f32.mrf.mxu1 }
 0x40e   : > { %21131 = vst [vmem:[#allocation14_spill] sm:$0xff] %v18241_v62  ;;  %v12412_v48 = vpop.f32.mrf.mxu0  ;;  %v18244_v57 = vadd.f32 %v7916_v37, %v7601_v15  ;;  %v7604_v11 = vadd.f32 %v12282_v20, %v21133_v9  ;;  %v21147_v9 = vld [vmem:[#allocation110_spill] sm:$0xff]  ;;  %v21392_v62 = vld [vmem:[#allocation60_spill] sm:$0xff] }
 0x40f   : > { %v7225_v46 = vpop.f32.mrf.mxu1 }
 0x410   : > { %21132 = vst [vmem:[#allocation184_spill] sm:$0xff] %v18244_v57  ;;  %v7919_v24 = vpop.f32.mrf.mxu0  ;;  %v18247_v12 = vadd.f32 %v12412_v48, %v7604_v11  ;;  %v7602_v35 = vadd.f32 %v7225_v46, %v21135_v55  ;;  %v21148_v55 = vld [vmem:[#allocation165_spill] sm:$0xff] }
 0x411   : > { %v12285_v13 = vpop.f32.mrf.mxu1  ;;  %12512 = vmatmul.mubr.msk.bf16.gmra.mxu1 %vm697_vm1, %v21136_v29 }
 0x412   : > { %21134 = vst [vmem:[#allocation141_spill] sm:$0xff] %v18247_v12  ;;  %v12415_v42 = vpop.f32.mrf.mxu0  ;;  %12642 = vmatmul.mubr.msk.bf16.gmra.mxu0 %vm697_vm1, %v21137_v31  ;;  %v18254_v40 = vadd.f32 %v7919_v24, %v7602_v35  ;;  %v7607_v49 = vadd.f32 %v12285_v13, %v21139_v27  ;;  %12515 = vmatprep.mubr.msk.bf16.mxu1 %vm697_vm1, %v21140_v23  ;;  %v21149_v35 = vld [vmem:[#allocation166_spill] sm:$0xff]  ;;  %v21152_v31 = vld [vmem:[#allocation168_spill] sm:$0xff]  ;;  %v21153_v27 = vld [vmem:[#allocation167_spill] sm:$0xff] }
 0x413   : > { %12645 = vmatprep.mubr.msk.bf16.mxu0 %vm697_vm1, %v21141_v63  ;;  %v7238_v18 = vpop.f32.mrf.mxu1  ;;  %v18702_v12 = vld [vmem:[%s13070_s25 + $0x298] sm:$0xf] }
 0x414   : > { %21138 = vst [vmem:[#allocation49_spill] sm:$0xff] %v18254_v40  ;;  %v7932_v38 = vpop.f32.mrf.mxu0  ;;  %v18261_v7 = vadd.f32 %v12415_v42, %v7607_v49  ;;  %v7605_v21 = vadd.f32 %v7238_v18, %v21143_v4  ;;  %v21151_v42 = vld [vmem:[#allocation74_spill] sm:$0xff]  ;;  %v21395_v40 = vld [vmem:[#allocation285_spill] sm:$0xff]  ;;  %v9116_v25 = vrot.slane %v18702_v12, 5 }
 0x415   : > { %v12286_v10 = vpop.f32.mrf.mxu1  ;;  %v21155_v18 = vld [vmem:[#allocation330_spill] sm:$0xff] }
 0x416   : > { %21142 = vst [vmem:[#allocation142_spill] sm:$0xff] %v18261_v7  ;;  %v12416_v19 = vpop.f32.mrf.mxu0  ;;  %v18264_v36 = vadd.f32 %v7932_v38, %v7605_v21  ;;  %v7608_v37 = vadd.f32 %v12286_v10, %v21145_v52 }
 0x417   : > { %v7241_v15 = vpop.f32.mrf.mxu1 }
 0x418   : > { %21144 = vst [vmem:[#allocation20_spill] sm:$0xff] %v18264_v36  ;;  %v7935_v20 = vpop.f32.mrf.mxu0  ;;  %v18267_v48 = vadd.f32 %v12416_v19, %v7608_v37  ;;  %v7606_v11 = vadd.f32 %v7241_v15, %v21147_v9  ;;  %v21157_v19 = vld [vmem:[#allocation187_spill] sm:$0xff]  ;;  %v21159_v9 = vld [vmem:[#allocation88_spill] sm:$0xff] }
 0x419   : > { %v12289_v46 = vpop.f32.mrf.mxu1  ;;  %12516 = vmatmul.mubr.msk.bf16.gmra.mxu1 %vm697_vm1, %v21148_v55  ;;  %v21398_v36 = vld [vmem:[#allocation276_spill] sm:$0xff] }
 0x41a   : > { %21146 = vst [vmem:[#allocation302_spill] sm:$0xff] %v18267_v48  ;;  %v12419_v24 = vpop.f32.mrf.mxu0  ;;  %12646 = vmatmul.mubr.msk.bf16.gmra.mxu0 %vm697_vm1, %v21149_v35  ;;  %v18274_v13 = vadd.f32 %v7935_v20, %v7606_v11  ;;  %v7611_v29 = vadd.f32 %v12289_v46, %v21151_v42  ;;  %12519 = vmatprep.mubr.msk.bf16.mxu1 %vm697_vm1, %v21152_v31  ;;  %v21160_v35 = vld [vmem:[#allocation120_spill] sm:$0xff] }
 0x41b   : > { %12649 = vmatprep.mubr.msk.bf16.mxu0 %vm697_vm1, %v21153_v27  ;;  %v7254_v49 = vpop.f32.mrf.mxu1  ;;  %v21164_v27 = vld [vmem:[#allocation170_spill] sm:$0xff] }
 0x41c   : > { %21150 = vst [vmem:[#allocation99_spill] sm:$0xff] %v18274_v13  ;;  %v7948_v23 = vpop.f32.mrf.mxu0  ;;  %v18281_v63 = vadd.f32 %v12419_v24, %v7611_v29  ;;  %v7609_v38 = vadd.f32 %v7254_v49, %v21155_v18  ;;  %v21161_v24 = vld [vmem:[#allocation169_spill] sm:$0xff]  ;;  %v21163_v29 = vld [vmem:[#allocation332_spill] sm:$0xff]  ;;  %v18739_v13 = vld [vmem:[%s13070_s25 + $0x2a0] sm:$0xf] }
 0x41d   : > { %v12290_v4 = vpop.f32.mrf.mxu1  ;;  %v21165_v49 = vld [vmem:[#allocation108_spill] sm:$0xff]  ;;  %v8413_v61 = vshrl.u32 %v18739_v13, 16 }
 0x41e   : > { %21154 = vst [vmem:[#allocation146_spill] sm:$0xff] %v18281_v63  ;;  %v12420_v21 = vpop.f32.mrf.mxu0  ;;  %v18284_v10 = vadd.f32 %v7948_v23, %v7609_v38  ;;  %v7612_v52 = vadd.f32 %v12290_v4, %v21157_v19  ;;  %v21167_v4 = vld [vmem:[#allocation106_spill] sm:$0xff] }
 0x41f   : > { %v7257_v37 = vpop.f32.mrf.mxu1 }
 0x420   : > { %21156 = vst [vmem:[#allocation30_spill] sm:$0xff] %v18284_v10  ;;  %v7951_v15 = vpop.f32.mrf.mxu0  ;;  %v18287_v20 = vadd.f32 %v12420_v21, %v7612_v52  ;;  %v7610_v11 = vadd.f32 %v7257_v37, %v21159_v9 }
 0x421   : > { %v12293_v46 = vpop.f32.mrf.mxu1  ;;  %12520 = vmatmul.mubr.msk.bf16.gmra.mxu1 %vm697_vm1, %v21160_v35 }
 0x422   : > { %21158 = vst [vmem:[#allocation148_spill] sm:$0xff] %v18287_v20  ;;  %v12423_v55 = vpop.f32.mrf.mxu0  ;;  %12650 = vmatmul.mubr.msk.bf16.gmra.mxu0 %vm697_vm1, %v21161_v24  ;;  %v18294_v42 = vadd.f32 %v7951_v15, %v7610_v11  ;;  %v7615_v31 = vadd.f32 %v12293_v46, %v21163_v29  ;;  %12523 = vmatprep.mubr.msk.bf16.mxu1 %vm697_vm1, %v21164_v27  ;;  %v21169_v15 = vld [vmem:[#allocation319_spill] sm:$0xff]  ;;  %v21171_v24 = vld [vmem:[#allocation334_spill] sm:$0xff] }
 0x423   : > { %12653 = vmatprep.mubr.msk.bf16.mxu0 %vm697_vm1, %v21165_v49  ;;  %v7270_v23 = vpop.f32.mrf.mxu1  ;;  %v21172_v20 = vld [vmem:[#allocation123_spill] sm:$0xff] }
 0x424   : > { %21162 = vst [vmem:[#allocation34_spill] sm:$0xff] %v18294_v42  ;;  %v7964_v18 = vpop.f32.mrf.mxu0  ;;  %v18301_v38 = vadd.f32 %v12423_v55, %v7615_v31  ;;  %v7613_v21 = vadd.f32 %v7270_v23, %v21167_v4  ;;  %v21173_v55 = vld [vmem:[#allocation171_spill] sm:$0xff]  ;;  %v21394_v42 = vld [vmem:[#allocation284_spill] sm:$0xff] }
 0x425   : > { %v12294_v19 = vpop.f32.mrf.mxu1  ;;  %v21175_v23 = vld [vmem:[#allocation195_spill] sm:$0xff] }
 0x426   : > { %21166 = vst [vmem:[#allocation121_spill] sm:$0xff] %v18301_v38  ;;  %v12424_v52 = vpop.f32.mrf.mxu0  ;;  %v18304_v37 = vadd.f32 %v7964_v18, %v7613_v21  ;;  %v7616_v9 = vadd.f32 %v12294_v19, %v21169_v15  ;;  %v21176_v4 = vld [vmem:[#allocation175_spill] sm:$0xff]  ;;  %v21177_v21 = vld [vmem:[#allocation172_spill] sm:$0xff] }
 0x427   : > { %v7273_v11 = vpop.f32.mrf.mxu1 }
 0x428   : > { %21168 = vst [vmem:[#allocation122_spill] sm:$0xff] %v18304_v37  ;;  %v7967_v46 = vpop.f32.mrf.mxu0  ;;  %v18307_v35 = vadd.f32 %v12424_v52, %v7616_v9  ;;  %v7614_v29 = vadd.f32 %v7273_v11, %v21171_v24  ;;  %v21179_v9 = vld [vmem:[#allocation128_spill] sm:$0xff]  ;;  %v21184_v37 = vld [vmem:[#allocation181_spill] sm:$0xff] }
 0x429   : > { %v12297_v27 = vpop.f32.mrf.mxu1  ;;  %12524 = vmatmul.mubr.msk.bf16.gmra.mxu1 %vm697_vm1, %v21172_v20 }
 0x42a   : > { %21170 = vst [vmem:[#allocation151_spill] sm:$0xff] %v18307_v35  ;;  %v12427_v49 = vpop.f32.mrf.mxu0  ;;  %12654 = vmatmul.mubr.msk.bf16.gmra.mxu0 %vm697_vm1, %v21173_v55  ;;  %v18314_v31 = vadd.f32 %v7967_v46, %v7614_v29  ;;  %v7619_v18 = vadd.f32 %v12297_v27, %v21175_v23  ;;  %12527 = vmatprep.mubr.msk.bf16.mxu1 %vm697_vm1, %v21176_v4  ;;  %v21181_v46 = vld [vmem:[#allocation229_spill] sm:$0xff] }
 0x42b   : > { %12657 = vmatprep.mubr.msk.bf16.mxu0 %vm697_vm1, %v21177_v21  ;;  %v7286_v19 = vpop.f32.mrf.mxu1  ;;  %v21183_v4 = vld [vmem:[#allocation5_spill] sm:$0xff] }
 0x42c   : > { %21174 = vst [vmem:[#allocation173_spill] sm:$0xff] %v18314_v31  ;;  %v7980_v52 = vpop.f32.mrf.mxu0  ;;  %v18321_v15 = vadd.f32 %v12427_v49, %v7619_v18  ;;  %v7617_v11 = vadd.f32 %v7286_v19, %v21179_v9  ;;  %v21185_v49 = vld [vmem:[#allocation131_spill] sm:$0xff]  ;;  %v21188_v9 = vld [vmem:[#allocation182_spill] sm:$0xff] }
 0x42d   : > { %v12298_v20 = vpop.f32.mrf.mxu1  ;;  %v21187_v19 = vld [vmem:[#allocation203_spill] sm:$0xff] }
 0x42e   : > { %21178 = vst [vmem:[#allocation153_spill] sm:$0xff] %v18321_v15  ;;  %v12428_v24 = vpop.f32.mrf.mxu0  ;;  %v18324_v35 = vadd.f32 %v7980_v52, %v7617_v11  ;;  %v7620_v29 = vadd.f32 %v12298_v20, %v21181_v46  ;;  %v21189_v11 = vld [vmem:[#allocation178_spill] sm:$0xff] }
 0x42f   : > { %v7289_v55 = vpop.f32.mrf.mxu1 }
 0x430   : > { %21180 = vst [vmem:[#allocation47_spill] sm:$0xff] %v18324_v35  ;;  %v7983_v27 = vpop.f32.mrf.mxu0  ;;  %v18327_v23 = vadd.f32 %v12428_v24, %v7620_v29  ;;  %v7618_v38 = vadd.f32 %v7289_v55, %v21183_v4  ;;  %v21191_v29 = vld [vmem:[#allocation130_spill] sm:$0xff]  ;;  %v21196_v35 = vld [vmem:[#allocation188_spill] sm:$0xff] }
 0x431   : > { %v12301_v31 = vpop.f32.mrf.mxu1  ;;  %12528 = vmatmul.mubr.msk.bf16.gmra.mxu1 %vm697_vm1, %v21184_v37 }
 0x432   : > { %21182 = vst [vmem:[#allocation50_spill] sm:$0xff] %v18327_v23  ;;  %v12431_v21 = vpop.f32.mrf.mxu0  ;;  %12658 = vmatmul.mubr.msk.bf16.gmra.mxu0 %vm697_vm1, %v21185_v49  ;;  %v18334_v18 = vadd.f32 %v7983_v27, %v7618_v38  ;;  %v7623_v52 = vadd.f32 %v12301_v31, %v21187_v19  ;;  %12531 = vmatprep.mubr.msk.bf16.mxu1 %vm697_vm1, %v21188_v9  ;;  %v21193_v38 = vld [vmem:[#allocation75_spill] sm:$0xff]  ;;  %v21195_v9 = vld [vmem:[#allocation138_spill] sm:$0xff] }
 0x433   : > { %12661 = vmatprep.mubr.msk.bf16.mxu0 %vm697_vm1, %v21189_v11  ;;  %v7302_v20 = vpop.f32.mrf.mxu1 }
 0x434   : > { %21186 = vst [vmem:[#allocation177_spill] sm:$0xff] %v18334_v18  ;;  %v7996_v24 = vpop.f32.mrf.mxu0  ;;  %v18341_v46 = vadd.f32 %v12431_v21, %v7623_v52  ;;  %v7621_v55 = vadd.f32 %v7302_v20, %v21191_v29  ;;  %v21198_v20 = vld [vmem:[#allocation192_spill] sm:$0xff] }
 0x435   : > { %v12302_v37 = vpop.f32.mrf.mxu1 }
 0x436   : > { %21190 = vst [vmem:[#allocation155_spill] sm:$0xff] %v18341_v46  ;;  %v12432_v4 = vpop.f32.mrf.mxu0  ;;  %v18344_v23 = vadd.f32 %v7996_v24, %v7621_v55  ;;  %v7624_v27 = vadd.f32 %v12302_v37, %v21193_v38  ;;  %v21199_v24 = vld [vmem:[#allocation191_spill] sm:$0xff]  ;;  %v21206_v46 = vld [vmem:[#allocation196_spill] sm:$0xff] }
 0x437   : > { %v7305_v49 = vpop.f32.mrf.mxu1 }
 0x438   : > { %21192 = vst [vmem:[#allocation132_spill] sm:$0xff] %v18344_v23  ;;  %v7999_v31 = vpop.f32.mrf.mxu0  ;;  %v18347_v19 = vadd.f32 %v12432_v4, %v7624_v27  ;;  %v7622_v15 = vadd.f32 %v7305_v49, %v21195_v9  ;;  %v21201_v4 = vld [vmem:[#allocation250_spill] sm:$0xff]  ;;  %v21205_v9 = vld [vmem:[#allocation101_spill] sm:$0xff] }
 0x439   : > { %v12305_v18 = vpop.f32.mrf.mxu1  ;;  %12532 = vmatmul.mubr.msk.bf16.gmra.mxu1 %vm697_vm1, %v21196_v35 }
 0x43a   : > { %21194 = vst [vmem:[#allocation4_spill] sm:$0xff] %v18347_v19  ;;  %v12435_v11 = vpop.f32.mrf.mxu0  ;;  %12662 = vmatmul.mubr.msk.bf16.gmra.mxu0 %vm697_vm1, %v20880_v45  ;;  %v18354_v21 = vadd.f32 %v7999_v31, %v7622_v15  ;;  %v7627_v52 = vadd.f32 %v12305_v18, %v17702_v43  ;;  %12535 = vmatprep.mubr.msk.bf16.mxu1 %vm697_vm1, %v21198_v20  ;;  %v21203_v45 = vld [vmem:[#allocation118_spill] sm:$0xff] }
 0x43b   : > { %12665 = vmatprep.mubr.msk.bf16.mxu0 %vm697_vm1, %v21199_v24  ;;  %v7318_v29 = vpop.f32.mrf.mxu1 }
 0x43c   : > { %21197 = vst [vmem:[#allocation62_spill] sm:$0xff] %v18354_v21  ;;  %v8012_v55 = vpop.f32.mrf.mxu0  ;;  %v18361_v37 = vadd.f32 %v12435_v11, %v7627_v52  ;;  %v7625_v38 = vadd.f32 %v7318_v29, %v21201_v4  ;;  %v21207_v11 = vld [vmem:[#allocation197_spill] sm:$0xff]  ;;  %v21209_v29 = vld [vmem:[#allocation242_spill] sm:$0xff]  ;;  %v21210_v4 = vld [vmem:[#allocation204_spill] sm:$0xff] }
 0x43d   : > { %v12306_v35 = vpop.f32.mrf.mxu1 }
 0x43e   : > { %21200 = vst [vmem:[#allocation179_spill] sm:$0xff] %v18361_v37  ;;  %v12436_v27 = vpop.f32.mrf.mxu0  ;;  %v18364_v49 = vadd.f32 %v8012_v55, %v7625_v38  ;;  %v7628_v15 = vadd.f32 %v12306_v35, %v21203_v45  ;;  %v21211_v38 = vld [vmem:[#allocation201_spill] sm:$0xff] }
 0x43f   : > { %v7321_v31 = vpop.f32.mrf.mxu1 }
 0x440   : > { %21202 = vst [vmem:[#allocation65_spill] sm:$0xff] %v18364_v49  ;;  %v8015_v43 = vpop.f32.mrf.mxu0  ;;  %v18367_v18 = vadd.f32 %v12436_v27, %v7628_v15  ;;  %v7626_v20 = vadd.f32 %v7321_v31, %v21205_v9  ;;  %v21213_v15 = vld [vmem:[#allocation211_spill] sm:$0xff]  ;;  %v21218_v49 = vld [vmem:[#allocation206_spill] sm:$0xff] }
 0x441   : > { %v12309_v19 = vpop.f32.mrf.mxu1  ;;  %12536 = vmatmul.mubr.msk.bf16.gmra.mxu1 %vm697_vm1, %v21206_v46 }
 0x442   : > { %21204 = vst [vmem:[#allocation6_spill] sm:$0xff] %v18367_v18  ;;  %v12439_v24 = vpop.f32.mrf.mxu0  ;;  %12666 = vmatmul.mubr.msk.bf16.gmra.mxu0 %vm697_vm1, %v21207_v11  ;;  %v18374_v52 = vadd.f32 %v8015_v43, %v7626_v20  ;;  %v7631_v55 = vadd.f32 %v12309_v19, %v21209_v29  ;;  %12539 = vmatprep.mubr.msk.bf16.mxu1 %vm697_vm1, %v21210_v4  ;;  %v21215_v43 = vld [vmem:[#allocation331_spill] sm:$0xff]  ;;  %v21217_v4 = vld [vmem:[#allocation152_spill] sm:$0xff] }
 0x443   : > { %12669 = vmatprep.mubr.msk.bf16.mxu0 %vm697_vm1, %v21211_v38  ;;  %v7334_v35 = vpop.f32.mrf.mxu1 }
 0x444   : > { %21208 = vst [vmem:[#allocation133_spill] sm:$0xff] %v18374_v52  ;;  %v8028_v27 = vpop.f32.mrf.mxu0  ;;  %v18381_v45 = vadd.f32 %v12439_v24, %v7631_v55  ;;  %v7629_v31 = vadd.f32 %v7334_v35, %v21213_v15  ;;  %v21219_v24 = vld [vmem:[#allocation208_spill] sm:$0xff]  ;;  %v21222_v15 = vld [vmem:[#allocation215_spill] sm:$0xff] }
 0x445   : > { %v12310_v46 = vpop.f32.mrf.mxu1  ;;  %v21221_v35 = vld [vmem:[#allocation272_spill] sm:$0xff] }
 0x446   : > { %21212 = vst [vmem:[#allocation10_spill] sm:$0xff] %v18381_v45  ;;  %v12440_v9 = vpop.f32.mrf.mxu0  ;;  %v18384_v18 = vadd.f32 %v8028_v27, %v7629_v31  ;;  %v7632_v20 = vadd.f32 %v12310_v46, %v21215_v43  ;;  %v21223_v31 = vld [vmem:[#allocation213_spill] sm:$0xff] }
 0x447   : > { %v7337_v11 = vpop.f32.mrf.mxu1 }
 0x448   : > { %21214 = vst [vmem:[#allocation185_spill] sm:$0xff] %v18384_v18  ;;  %v8031_v19 = vpop.f32.mrf.mxu0  ;;  %v18387_v29 = vadd.f32 %v12440_v9, %v7632_v20  ;;  %v7630_v37 = vadd.f32 %v7337_v11, %v21217_v4  ;;  %v21225_v20 = vld [vmem:[#allocation154_spill] sm:$0xff]  ;;  %v21230_v18 = vld [vmem:[#allocation217_spill] sm:$0xff] }
 0x449   : > { %v12313_v52 = vpop.f32.mrf.mxu1  ;;  %12540 = vmatmul.mubr.msk.bf16.gmra.mxu1 %vm697_vm1, %v21218_v49 }
 0x44a   : > { %21216 = vst [vmem:[#allocation186_spill] sm:$0xff] %v18387_v29  ;;  %v12443_v38 = vpop.f32.mrf.mxu0  ;;  %12670 = vmatmul.mubr.msk.bf16.gmra.mxu0 %vm697_vm1, %v21219_v24  ;;  %v18394_v55 = vadd.f32 %v8031_v19, %v7630_v37  ;;  %v7635_v27 = vadd.f32 %v12313_v52, %v21221_v35  ;;  %12543 = vmatprep.mubr.msk.bf16.mxu1 %vm697_vm1, %v21222_v15  ;;  %v21227_v37 = vld [vmem:[#allocation320_spill] sm:$0xff] }
 0x44b   : > { %12673 = vmatprep.mubr.msk.bf16.mxu0 %vm697_vm1, %v21223_v31  ;;  %v7350_v46 = vpop.f32.mrf.mxu1  ;;  %v21229_v15 = vld [vmem:[#allocation112_spill] sm:$0xff] }
 0x44c   : > { %21220 = vst [vmem:[#allocation189_spill] sm:$0xff] %v18394_v55  ;;  %v8044_v9 = vpop.f32.mrf.mxu0  ;;  %v18401_v43 = vadd.f32 %v12443_v38, %v7635_v27  ;;  %v7633_v11 = vadd.f32 %v7350_v46, %v21225_v20  ;;  %v21231_v38 = vld [vmem:[#allocation220_spill] sm:$0xff]  ;;  %v21234_v20 = vld [vmem:[#allocation226_spill] sm:$0xff] }
 0x44d   : > { %v12314_v49 = vpop.f32.mrf.mxu1  ;;  %v21233_v46 = vld [vmem:[#allocation340_spill] sm:$0xff] }
 0x44e   : > { %21224 = vst [vmem:[#allocation13_spill] sm:$0xff] %v18401_v43  ;;  %v12444_v4 = vpop.f32.mrf.mxu0  ;;  %v18404_v29 = vadd.f32 %v8044_v9, %v7633_v11  ;;  %v7636_v19 = vadd.f32 %v12314_v49, %v21227_v37  ;;  %v21235_v11 = vld [vmem:[#allocation225_spill] sm:$0xff] }
 0x44f   : > { %v7353_v24 = vpop.f32.mrf.mxu1 }
 0x450   : > { %21226 = vst [vmem:[#allocation190_spill] sm:$0xff] %v18404_v29  ;;  %v8047_v52 = vpop.f32.mrf.mxu0  ;;  %v18407_v35 = vadd.f32 %v12444_v4, %v7636_v19  ;;  %v7634_v45 = vadd.f32 %v7353_v24, %v21229_v15  ;;  %v21237_v19 = vld [vmem:[#allocation219_spill] sm:$0xff]  ;;  %v21242_v29 = vld [vmem:[#allocation234_spill] sm:$0xff] }
 0x451   : > { %v12317_v55 = vpop.f32.mrf.mxu1  ;;  %12544 = vmatmul.mubr.msk.bf16.gmra.mxu1 %vm697_vm1, %v21230_v18 }
 0x452   : > { %21228 = vst [vmem:[#allocation17_spill] sm:$0xff] %v18407_v35  ;;  %v12447_v31 = vpop.f32.mrf.mxu0  ;;  %12674 = vmatmul.mubr.msk.bf16.gmra.mxu0 %vm697_vm1, %v21231_v38  ;;  %v18414_v27 = vadd.f32 %v8047_v52, %v7634_v45  ;;  %v7639_v9 = vadd.f32 %v12317_v55, %v21233_v46  ;;  %12547 = vmatprep.mubr.msk.bf16.mxu1 %vm697_vm1, %v21234_v20  ;;  %v21239_v45 = vld [vmem:[#allocation335_spill] sm:$0xff]  ;;  %v21241_v20 = vld [vmem:[#allocation156_spill] sm:$0xff] }
 0x453   : > { %12677 = vmatprep.mubr.msk.bf16.mxu0 %vm697_vm1, %v21235_v11  ;;  %v7366_v49 = vpop.f32.mrf.mxu1 }
 0x454   : > { %21232 = vst [vmem:[#allocation193_spill] sm:$0xff] %v18414_v27  ;;  %v8060_v4 = vpop.f32.mrf.mxu0  ;;  %v18421_v37 = vadd.f32 %v12447_v31, %v7639_v9  ;;  %v7637_v24 = vadd.f32 %v7366_v49, %v21237_v19  ;;  %v21243_v31 = vld [vmem:[#allocation235_spill] sm:$0xff]  ;;  %v21245_v49 = vld [vmem:[#allocation321_spill] sm:$0xff]  ;;  %v21246_v19 = vld [vmem:[#allocation42_spill] sm:$0xff] }
 0x455   : > { %v12318_v18 = vpop.f32.mrf.mxu1 }
 0x456   : > { %21236 = vst [vmem:[#allocation194_spill] sm:$0xff] %v18421_v37  ;;  %v12448_v15 = vpop.f32.mrf.mxu0  ;;  %v18424_v35 = vadd.f32 %v8060_v4, %v7637_v24  ;;  %v7640_v52 = vadd.f32 %v12318_v18, %v21239_v45  ;;  %v21247_v24 = vld [vmem:[#allocation3_spill] sm:$0xff] }
 0x457   : > { %v7369_v38 = vpop.f32.mrf.mxu1 }
 0x458   : > { %21238 = vst [vmem:[#allocation198_spill] sm:$0xff] %v18424_v35  ;;  %v8063_v55 = vpop.f32.mrf.mxu0  ;;  %v18427_v46 = vadd.f32 %v12448_v15, %v7640_v52  ;;  %v7638_v43 = vadd.f32 %v7369_v38, %v21241_v20  ;;  %v21249_v52 = vld [vmem:[#allocation278_spill] sm:$0xff]  ;;  %v21254_v35 = vld [vmem:[#allocation243_spill] sm:$0xff] }
 0x459   : > { %v12321_v27 = vpop.f32.mrf.mxu1  ;;  %12548 = vmatmul.mubr.msk.bf16.gmra.mxu1 %vm697_vm1, %v21242_v29 }
 0x45a   : > { %21240 = vst [vmem:[#allocation22_spill] sm:$0xff] %v18427_v46  ;;  %v12451_v11 = vpop.f32.mrf.mxu0  ;;  %12678 = vmatmul.mubr.msk.bf16.gmra.mxu0 %vm697_vm1, %v21243_v31  ;;  %v18434_v9 = vadd.f32 %v8063_v55, %v7638_v43  ;;  %v7643_v4 = vadd.f32 %v12321_v27, %v21245_v49  ;;  %12551 = vmatprep.mubr.msk.bf16.mxu1 %vm697_vm1, %v21246_v19  ;;  %v21251_v43 = vld [vmem:[#allocation109_spill] sm:$0xff] }
 0x45b   : > { %12681 = vmatprep.mubr.msk.bf16.mxu0 %vm697_vm1, %v21247_v24  ;;  %v7382_v18 = vpop.f32.mrf.mxu1  ;;  %v21253_v19 = vld [vmem:[#allocation341_spill] sm:$0xff] }
 0x45c   : > { %21244 = vst [vmem:[#allocation199_spill] sm:$0xff] %v18434_v9  ;;  %v8076_v15 = vpop.f32.mrf.mxu0  ;;  %v18441_v45 = vadd.f32 %v12451_v11, %v7643_v4  ;;  %v7641_v38 = vadd.f32 %v7382_v18, %v21249_v52  ;;  %v21255_v11 = vld [vmem:[#allocation241_spill] sm:$0xff]  ;;  %v21257_v18 = vld [vmem:[#allocation228_spill] sm:$0xff]  ;;  %v21258_v52 = vld [vmem:[#allocation251_spill] sm:$0xff] }
 0x45d   : > { %v12322_v29 = vpop.f32.mrf.mxu1 }
 0x45e   : > { %21248 = vst [vmem:[#allocation24_spill] sm:$0xff] %v18441_v45  ;;  %v12452_v20 = vpop.f32.mrf.mxu0  ;;  %v18444_v46 = vadd.f32 %v8076_v15, %v7641_v38  ;;  %v7644_v55 = vadd.f32 %v12322_v29, %v21251_v43  ;;  %v21259_v38 = vld [vmem:[#allocation54_spill] sm:$0xff] }
 0x45f   : > { %v7385_v31 = vpop.f32.mrf.mxu1 }
 0x460   : > { %21250 = vst [vmem:[#allocation200_spill] sm:$0xff] %v18444_v46  ;;  %v8079_v27 = vpop.f32.mrf.mxu0  ;;  %v18447_v49 = vadd.f32 %v12452_v20, %v7644_v55  ;;  %v7642_v37 = vadd.f32 %v7385_v31, %v21253_v19  ;;  %v21261_v55 = vld [vmem:[#allocation38_spill] sm:$0xff]  ;;  %v21266_v46 = vld [vmem:[#allocation256_spill] sm:$0xff] }
 0x461   : > { %v12325_v9 = vpop.f32.mrf.mxu1  ;;  %12552 = vmatmul.mubr.msk.bf16.gmra.mxu1 %vm697_vm1, %v21254_v35 }
 0x462   : > { %21252 = vst [vmem:[#allocation202_spill] sm:$0xff] %v18447_v49  ;;  %v12455_v24 = vpop.f32.mrf.mxu0  ;;  %12682 = vmatmul.mubr.msk.bf16.gmra.mxu0 %vm697_vm1, %v21255_v11  ;;  %v18454_v4 = vadd.f32 %v8079_v27, %v7642_v37  ;;  %v7647_v15 = vadd.f32 %v12325_v9, %v21257_v18  ;;  %12555 = vmatprep.mubr.msk.bf16.mxu1 %vm697_vm1, %v21258_v52  ;;  %v21263_v37 = vld [vmem:[#allocation113_spill] sm:$0xff]  ;;  %v21265_v52 = vld [vmem:[#allocation230_spill] sm:$0xff] }
 0x463   : > { %12685 = vmatprep.mubr.msk.bf16.mxu0 %vm697_vm1, %v21259_v38  ;;  %v7398_v29 = vpop.f32.mrf.mxu1 }
 0x464   : > { %21256 = vst [vmem:[#allocation205_spill] sm:$0xff] %v18454_v4  ;;  %v8092_v20 = vpop.f32.mrf.mxu0  ;;  %v18461_v43 = vadd.f32 %v12455_v24, %v7647_v15  ;;  %v7645_v31 = vadd.f32 %v7398_v29, %v21261_v55  ;;  %v21267_v24 = vld [vmem:[#allocation257_spill] sm:$0xff]  ;;  %v21269_v29 = vld [vmem:[#allocation39_spill] sm:$0xff]  ;;  %v21270_v55 = vld [vmem:[#allocation266_spill] sm:$0xff] }
 0x465   : > { %v12326_v35 = vpop.f32.mrf.mxu1 }
 0x466   : > { %21260 = vst [vmem:[#allocation35_spill] sm:$0xff] %v18461_v43  ;;  %v12456_v19 = vpop.f32.mrf.mxu0  ;;  %v18464_v49 = vadd.f32 %v8092_v20, %v7645_v31  ;;  %v7648_v27 = vadd.f32 %v12326_v35, %v21263_v37  ;;  %v21271_v31 = vld [vmem:[#allocation67_spill] sm:$0xff] }
 0x467   : > { %v7401_v11 = vpop.f32.mrf.mxu1 }
 0x468   : > { %21262 = vst [vmem:[#allocation207_spill] sm:$0xff] %v18464_v49  ;;  %v8095_v9 = vpop.f32.mrf.mxu0  ;;  %v18467_v18 = vadd.f32 %v12456_v19, %v7648_v27  ;;  %v7646_v45 = vadd.f32 %v7401_v11, %v21265_v52  ;;  %v21273_v27 = vld [vmem:[#allocation157_spill] sm:$0xff]  ;;  %v21278_v49 = vld [vmem:[#allocation268_spill] sm:$0xff] }
 0x469   : > { %v12329_v4 = vpop.f32.mrf.mxu1  ;;  %12556 = vmatmul.mubr.msk.bf16.gmra.mxu1 %vm697_vm1, %v21266_v46 }
 0x46a   : > { %21264 = vst [vmem:[#allocation37_spill] sm:$0xff] %v18467_v18  ;;  %v12459_v38 = vpop.f32.mrf.mxu0  ;;  %12686 = vmatmul.mubr.msk.bf16.gmra.mxu0 %vm697_vm1, %v21267_v24  ;;  %v18474_v15 = vadd.f32 %v8095_v9, %v7646_v45  ;;  %v7651_v20 = vadd.f32 %v12329_v4, %v21269_v29  ;;  %12559 = vmatprep.mubr.msk.bf16.mxu1 %vm697_vm1, %v21270_v55  ;;  %v21275_v45 = vld [vmem:[#allocation240_spill] sm:$0xff]  ;;  %v21277_v55 = vld [vmem:[#allocation159_spill] sm:$0xff] }
 0x46b   : > { %12689 = vmatprep.mubr.msk.bf16.mxu0 %vm697_vm1, %v21271_v31  ;;  %v7414_v35 = vpop.f32.mrf.mxu1 }
 0x46c   : > { %21268 = vst [vmem:[#allocation209_spill] sm:$0xff] %v18474_v15  ;;  %v8108_v19 = vpop.f32.mrf.mxu0  ;;  %v18481_v37 = vadd.f32 %v12459_v38, %v7651_v20  ;;  %v7649_v11 = vadd.f32 %v7414_v35, %v21273_v27  ;;  %v21279_v38 = vld [vmem:[#allocation269_spill] sm:$0xff]  ;;  %v21281_v35 = vld [vmem:[#allocation239_spill] sm:$0xff] }
 0x46d   : > { %v12330_v46 = vpop.f32.mrf.mxu1  ;;  %v21282_v27 = vld [vmem:[#allocation279_spill] sm:$0xff] }
 0x46e   : > { %21272 = vst [vmem:[#allocation210_spill] sm:$0xff] %v18481_v37  ;;  %v12460_v52 = vpop.f32.mrf.mxu0  ;;  %v18484_v18 = vadd.f32 %v8108_v19, %v7649_v11  ;;  %v7652_v9 = vadd.f32 %v12330_v46, %v21275_v45  ;;  %v21283_v11 = vld [vmem:[#allocation77_spill] sm:$0xff] }
 0x46f   : > { %v7417_v24 = vpop.f32.mrf.mxu1 }
 0x470   : > { %21274 = vst [vmem:[#allocation212_spill] sm:$0xff] %v18484_v18  ;;  %v8111_v4 = vpop.f32.mrf.mxu0  ;;  %v18487_v29 = vadd.f32 %v12460_v52, %v7652_v9  ;;  %v7650_v43 = vadd.f32 %v7417_v24, %v21277_v55  ;;  %v21285_v9 = vld [vmem:[#allocation247_spill] sm:$0xff]  ;;  %v21290_v18 = vld [vmem:[#allocation282_spill] sm:$0xff] }
 0x471   : > { %v12333_v15 = vpop.f32.mrf.mxu1  ;;  %12560 = vmatmul.mubr.msk.bf16.gmra.mxu1 %vm697_vm1, %v21278_v49 }
 0x472   : > { %21276 = vst [vmem:[#allocation51_spill] sm:$0xff] %v18487_v29  ;;  %v12463_v31 = vpop.f32.mrf.mxu0  ;;  %12690 = vmatmul.mubr.msk.bf16.gmra.mxu0 %vm697_vm1, %v21279_v38  ;;  %v18494_v20 = vadd.f32 %v8111_v4, %v7650_v43  ;;  %v7655_v19 = vadd.f32 %v12333_v15, %v21281_v35  ;;  %12563 = vmatprep.mubr.msk.bf16.mxu1 %vm697_vm1, %v21282_v27  ;;  %v21287_v43 = vld [vmem:[#allocation52_spill] sm:$0xff]  ;;  %v21289_v27 = vld [vmem:[#allocation255_spill] sm:$0xff] }
 0x473   : > { %12693 = vmatprep.mubr.msk.bf16.mxu0 %vm697_vm1, %v21283_v11  ;;  %v7430_v46 = vpop.f32.mrf.mxu1 }
 0x474   : > { %21280 = vst [vmem:[#allocation214_spill] sm:$0xff] %v18494_v20  ;;  %v8124_v52 = vpop.f32.mrf.mxu0  ;;  %v18501_v45 = vadd.f32 %v12463_v31, %v7655_v19  ;;  %v7653_v24 = vadd.f32 %v7430_v46, %v21285_v9  ;;  %v21291_v31 = vld [vmem:[#allocation283_spill] sm:$0xff]  ;;  %v21294_v9 = vld [vmem:[#allocation293_spill] sm:$0xff] }
 0x475   : > { %v12334_v49 = vpop.f32.mrf.mxu1  ;;  %v21293_v46 = vld [vmem:[#allocation27_spill] sm:$0xff] }
 0x476   : > { %21284 = vst [vmem:[#allocation53_spill] sm:$0xff] %v18501_v45  ;;  %v12464_v55 = vpop.f32.mrf.mxu0  ;;  %v18504_v29 = vadd.f32 %v8124_v52, %v7653_v24  ;;  %v7656_v4 = vadd.f32 %v12334_v49, %v21287_v43  ;;  %v21295_v24 = vld [vmem:[#allocation90_spill] sm:$0xff] }
 0x477   : > { %v7433_v38 = vpop.f32.mrf.mxu1 }
 0x478   : > { %21286 = vst [vmem:[#allocation216_spill] sm:$0xff] %v18504_v29  ;;  %v8127_v15 = vpop.f32.mrf.mxu0  ;;  %v18507_v35 = vadd.f32 %v12464_v55, %v7656_v4  ;;  %v7654_v37 = vadd.f32 %v7433_v38, %v21289_v27  ;;  %v21297_v4 = vld [vmem:[#allocation336_spill] sm:$0xff] }
 0x479   : > { %v12337_v20 = vpop.f32.mrf.mxu1  ;;  %12564 = vmatmul.mubr.msk.bf16.gmra.mxu1 %vm697_vm1, %v21290_v18  ;;  %v21302_v29 = vld [vmem:[#allocation296_spill] sm:$0xff] }
 0x47a   : > { %21288 = vst [vmem:[#allocation218_spill] sm:$0xff] %v18507_v35  ;;  %v12467_v11 = vpop.f32.mrf.mxu0  ;;  %12694 = vmatmul.mubr.msk.bf16.gmra.mxu0 %vm697_vm1, %v21291_v31  ;;  %v18514_v19 = vadd.f32 %v8127_v15, %v7654_v37  ;;  %v7659_v52 = vadd.f32 %v12337_v20, %v21293_v46  ;;  %12567 = vmatprep.mubr.msk.bf16.mxu1 %vm697_vm1, %v21294_v9  ;;  %v21299_v37 = vld [vmem:[#allocation16_spill] sm:$0xff]  ;;  %v21301_v9 = vld [vmem:[#allocation41_spill] sm:$0xff] }
 0x47b   : > { %12697 = vmatprep.mubr.msk.bf16.mxu0 %vm697_vm1, %v21295_v24  ;;  %v7446_v49 = vpop.f32.mrf.mxu1 }
 0x47c   : > { %21292 = vst [vmem:[#allocation221_spill] sm:$0xff] %v18514_v19  ;;  %v8140_v55 = vpop.f32.mrf.mxu0  ;;  %v18521_v43 = vadd.f32 %v12467_v11, %v7659_v52  ;;  %v7657_v38 = vadd.f32 %v7446_v49, %v21297_v4  ;;  %v21303_v11 = vld [vmem:[#allocation297_spill] sm:$0xff]  ;;  %v21305_v49 = vld [vmem:[#allocation338_spill] sm:$0xff] }
 0x47d   : > { %v12338_v18 = vpop.f32.mrf.mxu1  ;;  %v21306_v4 = vld [vmem:[#allocation306_spill] sm:$0xff] }
 0x47e   : > { %21296 = vst [vmem:[#allocation66_spill] sm:$0xff] %v18521_v43  ;;  %v12468_v27 = vpop.f32.mrf.mxu0  ;;  %v18524_v35 = vadd.f32 %v8140_v55, %v7657_v38  ;;  %v7660_v15 = vadd.f32 %v12338_v18, %v21299_v37  ;;  %v21307_v38 = vld [vmem:[#allocation96_spill] sm:$0xff] }
 0x47f   : > { %v7449_v31 = vpop.f32.mrf.mxu1 }
 0x480   : > { %21298 = vst [vmem:[#allocation222_spill] sm:$0xff] %v18524_v35  ;;  %v8143_v20 = vpop.f32.mrf.mxu0  ;;  %v18527_v46 = vadd.f32 %v12468_v27, %v7660_v15  ;;  %v7658_v45 = vadd.f32 %v7449_v31, %v21301_v9  ;;  %v21309_v15 = vld [vmem:[#allocation44_spill] sm:$0xff] }
 0x481   : > { %v12341_v19 = vpop.f32.mrf.mxu1  ;;  %12568 = vmatmul.mubr.msk.bf16.gmra.mxu1 %vm697_vm1, %v21302_v29  ;;  %v21314_v35 = vld [vmem:[#allocation308_spill] sm:$0xff] }
 0x482   : > { %21300 = vst [vmem:[#allocation68_spill] sm:$0xff] %v18527_v46  ;;  %v12471_v24 = vpop.f32.mrf.mxu0  ;;  %12698 = vmatmul.mubr.msk.bf16.gmra.mxu0 %vm697_vm1, %v21303_v11  ;;  %v18534_v52 = vadd.f32 %v8143_v20, %v7658_v45  ;;  %v7663_v55 = vadd.f32 %v12341_v19, %v21305_v49  ;;  %12571 = vmatprep.mubr.msk.bf16.mxu1 %vm697_vm1, %v21306_v4  ;;  %v21311_v45 = vld [vmem:[#allocation317_spill] sm:$0xff] }
 0x483   : > { %12701 = vmatprep.mubr.msk.bf16.mxu0 %vm697_vm1, %v21307_v38  ;;  %v7462_v18 = vpop.f32.mrf.mxu1  ;;  %v21313_v4 = vld [vmem:[#allocation265_spill] sm:$0xff] }
 0x484   : > { %21304 = vst [vmem:[#allocation223_spill] sm:$0xff] %v18534_v52  ;;  %v8156_v27 = vpop.f32.mrf.mxu0  ;;  %v18541_v37 = vadd.f32 %v12471_v24, %v7663_v55  ;;  %v7661_v31 = vadd.f32 %v7462_v18, %v21309_v15  ;;  %v21315_v24 = vld [vmem:[#allocation309_spill] sm:$0xff]  ;;  %v21318_v15 = vld [vmem:[#allocation72_spill] sm:$0xff] }
 0x485   : > { %v12342_v29 = vpop.f32.mrf.mxu1  ;;  %v21317_v18 = vld [vmem:[#allocation57_spill] sm:$0xff] }
 0x486   : > { %21308 = vst [vmem:[#allocation227_spill] sm:$0xff] %v18541_v37  ;;  %v12472_v9 = vpop.f32.mrf.mxu0  ;;  %v18544_v46 = vadd.f32 %v8156_v27, %v7661_v31  ;;  %v7664_v20 = vadd.f32 %v12342_v29, %v21311_v45  ;;  %v21319_v31 = vld [vmem:[#allocation64_spill] sm:$0xff] }
 0x487   : > { %v7465_v11 = vpop.f32.mrf.mxu1 }
 0x488   : > { %21310 = vst [vmem:[#allocation231_spill] sm:$0xff] %v18544_v46  ;;  %v8159_v19 = vpop.f32.mrf.mxu0  ;;  %v18547_v49 = vadd.f32 %v12472_v9, %v7664_v20  ;;  %v7662_v43 = vadd.f32 %v7465_v11, %v21313_v4  ;;  %v21321_v20 = vld [vmem:[#allocation289_spill] sm:$0xff]  ;;  %v21326_v46 = vld [vmem:[#allocation312_spill] sm:$0xff] }
 0x489   : > { %v12345_v52 = vpop.f32.mrf.mxu1  ;;  %12572 = vmatmul.mubr.msk.bf16.gmra.mxu1 %vm697_vm1, %v21314_v35 }
 0x48a   : > { %21312 = vst [vmem:[#allocation79_spill] sm:$0xff] %v18547_v49  ;;  %v12475_v38 = vpop.f32.mrf.mxu0  ;;  %12702 = vmatmul.mubr.msk.bf16.gmra.mxu0 %vm697_vm1, %v21315_v24  ;;  %v18554_v55 = vadd.f32 %v8159_v19, %v7662_v43  ;;  %v7667_v27 = vadd.f32 %v12345_v52, %v21317_v18  ;;  %12575 = vmatprep.mubr.msk.bf16.mxu1 %vm697_vm1, %v21318_v15  ;;  %v21323_v43 = vld [vmem:[#allocation161_spill] sm:$0xff] }
 0x48b   : > { %12705 = vmatprep.mubr.msk.bf16.mxu0 %vm697_vm1, %v21319_v31  ;;  %v7478_v29 = vpop.f32.mrf.mxu1  ;;  %v21325_v15 = vld [vmem:[#allocation277_spill] sm:$0xff] }
 0x48c   : > { %21316 = vst [vmem:[#allocation25_spill] sm:$0xff] %v18554_v55  ;;  %v8172_v9 = vpop.f32.mrf.mxu0  ;;  %v18561_v45 = vadd.f32 %v12475_v38, %v7667_v27  ;;  %v7665_v11 = vadd.f32 %v7478_v29, %v21321_v20  ;;  %v21327_v38 = vld [vmem:[#allocation313_spill] sm:$0xff]  ;;  %v21329_v29 = vld [vmem:[#allocation80_spill] sm:$0xff]  ;;  %v21330_v20 = vld [vmem:[#allocation318_spill] sm:$0xff] }
 0x48d   : > { %v12346_v35 = vpop.f32.mrf.mxu1 }
 0x48e   : > { %21320 = vst [vmem:[#allocation81_spill] sm:$0xff] %v18561_v45  ;;  %v12476_v4 = vpop.f32.mrf.mxu0  ;;  %v18564_v49 = vadd.f32 %v8172_v9, %v7665_v11  ;;  %v7668_v19 = vadd.f32 %v12346_v35, %v21323_v43  ;;  %v21331_v11 = vld [vmem:[#allocation117_spill] sm:$0xff] }
 0x48f   : > { %v7481_v24 = vpop.f32.mrf.mxu1 }
 0x490   : > { %21322 = vst [vmem:[#allocation33_spill] sm:$0xff] %v18564_v49  ;;  %v8175_v52 = vpop.f32.mrf.mxu0  ;;  %v18567_v18 = vadd.f32 %v12476_v4, %v7668_v19  ;;  %v7666_v37 = vadd.f32 %v7481_v24, %v21325_v15  ;;  %v21333_v19 = vld [vmem:[#allocation162_spill] sm:$0xff] }
 0x491   : > { %v12349_v55 = vpop.f32.mrf.mxu1  ;;  %12576 = vmatmul.mubr.msk.bf16.gmra.mxu1 %vm697_vm1, %v21326_v46  ;;  %v21338_v49 = vld [vmem:[#allocation322_spill] sm:$0xff] }
 0x492   : > { %21324 = vst [vmem:[#allocation2_spill] sm:$0xff] %v18567_v18  ;;  %v12479_v31 = vpop.f32.mrf.mxu0  ;;  %12706 = vmatmul.mubr.msk.bf16.gmra.mxu0 %vm697_vm1, %v21327_v38  ;;  %v18574_v27 = vadd.f32 %v8175_v52, %v7666_v37  ;;  %v7671_v9 = vadd.f32 %v12349_v55, %v21329_v29  ;;  %12579 = vmatprep.mubr.msk.bf16.mxu1 %vm697_vm1, %v21330_v20  ;;  %v21335_v37 = vld [vmem:[#allocation73_spill] sm:$0xff]  ;;  %v21337_v20 = vld [vmem:[#allocation294_spill] sm:$0xff] }
 0x493   : > { %12709 = vmatprep.mubr.msk.bf16.mxu0 %vm697_vm1, %v21331_v11  ;;  %v7494_v35 = vpop.f32.mrf.mxu1 }
 0x494   : > { %21328 = vst [vmem:[#allocation237_spill] sm:$0xff] %v18574_v27  ;;  %v8188_v4 = vpop.f32.mrf.mxu0  ;;  %v18581_v43 = vadd.f32 %v12479_v31, %v7671_v9  ;;  %v7669_v24 = vadd.f32 %v7494_v35, %v21333_v19  ;;  %v21339_v31 = vld [vmem:[#allocation323_spill] sm:$0xff]  ;;  %v21342_v19 = vld [vmem:[#allocation98_spill] sm:$0xff] }
 0x495   : > { %v12350_v46 = vpop.f32.mrf.mxu1  ;;  %v21341_v35 = vld [vmem:[#allocation271_spill] sm:$0xff] }
 0x496   : > { %21332 = vst [vmem:[#allocation94_spill] sm:$0xff] %v18581_v43  ;;  %v12480_v15 = vpop.f32.mrf.mxu0  ;;  %v18584_v18 = vadd.f32 %v8188_v4, %v7669_v24  ;;  %v7672_v52 = vadd.f32 %v12350_v46, %v21335_v37  ;;  %v21343_v24 = vld [vmem:[#allocation129_spill] sm:$0xff] }
 0x497   : > { %v7497_v38 = vpop.f32.mrf.mxu1 }
 0x498   : > { %21334 = vst [vmem:[#allocation7_spill] sm:$0xff] %v18584_v18  ;;  %v8191_v55 = vpop.f32.mrf.mxu0  ;;  %v18587_v29 = vadd.f32 %v12480_v15, %v7672_v52  ;;  %v7670_v45 = vadd.f32 %v7497_v38, %v21337_v20  ;;  %v21345_v52 = vld [vmem:[#allocation83_spill] sm:$0xff]  ;;  %v21350_v18 = vld [vmem:[#allocation325_spill] sm:$0xff] }
 0x499   : > { %v12353_v27 = vpop.f32.mrf.mxu1  ;;  %12580 = vmatmul.mubr.msk.bf16.gmra.mxu1 %vm697_vm1, %v21338_v49 }
 0x49a   : > { %21336 = vst [vmem:[#allocation95_spill] sm:$0xff] %v18587_v29  ;;  %v12483_v11 = vpop.f32.mrf.mxu0  ;;  %12710 = vmatmul.mubr.msk.bf16.gmra.mxu0 %vm697_vm1, %v21339_v31  ;;  %v18594_v9 = vadd.f32 %v8191_v55, %v7670_v45  ;;  %v7675_v4 = vadd.f32 %v12353_v27, %v21341_v35  ;;  %12583 = vmatprep.mubr.msk.bf16.mxu1 %vm697_vm1, %v21342_v19  ;;  %v21347_v45 = vld [vmem:[#allocation76_spill] sm:$0xff]  ;;  %v21349_v19 = vld [vmem:[#allocation23_spill] sm:$0xff] }
 0x49b   : > { %12713 = vmatprep.mubr.msk.bf16.mxu0 %vm697_vm1, %v21343_v24  ;;  %v7510_v46 = vpop.f32.mrf.mxu1 }
 0x49c   : > { %21340 = vst [vmem:[#allocation8_spill] sm:$0xff] %v18594_v9  ;;  %v8204_v15 = vpop.f32.mrf.mxu0  ;;  %v18601_v37 = vadd.f32 %v12483_v11, %v7675_v4  ;;  %v7673_v38 = vadd.f32 %v7510_v46, %v21345_v52  ;;  %v21352_v4 = vld [vmem:[#allocation304_spill] sm:$0xff] }
 0x49d   : > { %v12354_v49 = vpop.f32.mrf.mxu1  ;;  %v21354_v52 = vld [vmem:[#allocation140_spill] sm:$0xff] }
 0x49e   : > { %21344 = vst [vmem:[#allocation246_spill] sm:$0xff] %v18601_v37  ;;  %v12484_v20 = vpop.f32.mrf.mxu0  ;;  %v18604_v29 = vadd.f32 %v8204_v15, %v7673_v38  ;;  %v7676_v55 = vadd.f32 %v12354_v49, %v21347_v45  ;;  %v21353_v15 = vld [vmem:[#allocation137_spill] sm:$0xff] }
 0x49f   : > { %v7513_v31 = vpop.f32.mrf.mxu1  ;;  %v21356_v45 = vld [vmem:[#allocation9_spill] sm:$0xff] }
 0x4a0   : > { %21346 = vst [vmem:[#allocation55_spill] sm:$0xff] %v18604_v29  ;;  %v8207_v27 = vpop.f32.mrf.mxu0  ;;  %v18607_v35 = vadd.f32 %v12484_v20, %v7676_v55  ;;  %v7674_v43 = vadd.f32 %v7513_v31, %v21349_v19 }
 0x4a1   : > { %v12357_v9 = vpop.f32.mrf.mxu1  ;;  %12584 = vmatmul.mubr.msk.bf16.gmra.mxu1 %vm697_vm1, %v21350_v18 }
 0x4a2   : > { %21348 = vst [vmem:[#allocation104_spill] sm:$0xff] %v18607_v35  ;;  %v12487_v24 = vpop.f32.mrf.mxu0  ;;  %12714 = vmatmul.mubr.msk.bf16.gmra.mxu0 %vm697_vm1, %v21036_v17  ;;  %v18614_v11 = vadd.f32 %v8207_v27, %v7674_v43  ;;  %v7679_v46 = vadd.f32 %v12357_v9, %v21352_v4  ;;  %12587 = vmatprep.mubr.msk.bf16.mxu1 %vm697_vm1, %v21353_v15  ;;  %v21358_v17 = vld [vmem:[#allocation287_spill] sm:$0xff] }
 0x4a3   : > { %12717 = vmatprep.mubr.msk.bf16.mxu0 %vm697_vm1, %v21354_v52  ;;  %v7526_v38 = vpop.f32.mrf.mxu1  ;;  %v21360_v15 = vld [vmem:[#allocation87_spill] sm:$0xff] }
 0x4a4   : > { %21351 = vst [vmem:[#allocation11_spill] sm:$0xff] %v18614_v11  ;;  %v8220_v49 = vpop.f32.mrf.mxu0  ;;  %v18621_v20 = vadd.f32 %v12487_v24, %v7679_v46  ;;  %v7677_v55 = vadd.f32 %v7526_v38, %v21356_v45  ;;  %v21361_v11 = vld [vmem:[#allocation328_spill] sm:$0xff]  ;;  %v21362_v24 = vld [vmem:[#allocation329_spill] sm:$0xff]  ;;  %v21364_v38 = vld [vmem:[#allocation70_spill] sm:$0xff] }
 0x4a5   : > { %v12358_v18 = vpop.f32.mrf.mxu1  ;;  %v21365_v45 = vld [vmem:[#allocation224_spill] sm:$0xff] }
 0x4a6   : > { %21355 = vst [vmem:[#allocation105_spill] sm:$0xff] %v18621_v20  ;;  %v12488_v31 = vpop.f32.mrf.mxu0  ;;  %v18624_v19 = vadd.f32 %v8220_v49, %v7677_v55  ;;  %v7680_v43 = vadd.f32 %v12358_v18, %v21358_v17  ;;  %v21366_v55 = vld [vmem:[#allocation333_spill] sm:$0xff] }
 0x4a7   : > { %v7529_v27 = vpop.f32.mrf.mxu1 }
 0x4a8   : > { %21357 = vst [vmem:[#allocation252_spill] sm:$0xff] %v18624_v19  ;;  %v8223_v9 = vpop.f32.mrf.mxu0  ;;  %v18627_v4 = vadd.f32 %v12488_v31, %v7680_v43  ;;  %v7678_v35 = vadd.f32 %v7529_v27, %v21360_v15  ;;  %v21368_v43 = vld [vmem:[#allocation147_spill] sm:$0xff] }
 0x4a9   : > { %v12361_v37 = vpop.f32.mrf.mxu1  ;;  %12588 = vmatmul.mubr.msk.bf16.gmra.mxu1 %vm697_vm1, %v21361_v11 }
 0x4aa   : > { %21359 = vst [vmem:[#allocation15_spill] sm:$0xff] %v18627_v4  ;;  %v12491_v52 = vpop.f32.mrf.mxu0  ;;  %12718 = vmatmul.mubr.msk.bf16.gmra.mxu0 %vm697_vm1, %v21362_v24  ;;  %v18634_v46 = vadd.f32 %v8223_v9, %v7678_v35  ;;  %v7683_v49 = vadd.f32 %v12361_v37, %v21364_v38  ;;  %12591 = vmatprep.mubr.msk.bf16.mxu1 %vm697_vm1, %v21365_v45  ;;  %v21370_v35 = vld [vmem:[#allocation93_spill] sm:$0xff] }
 0x4ab   : > { %12721 = vmatprep.mubr.msk.bf16.mxu0 %vm697_vm1, %v21366_v55  ;;  %v7542_v18 = vpop.f32.mrf.mxu1  ;;  %v21372_v45 = vld [vmem:[#allocation233_spill] sm:$0xff]  ;;  %v21373_v55 = vld [vmem:[#allocation119_spill] sm:$0xff] }
 0x4ac   : > { %21363 = vst [vmem:[#allocation258_spill] sm:$0xff] %v18634_v46  ;;  %v8236_v31 = vpop.f32.mrf.mxu0  ;;  %v18641_v17 = vadd.f32 %v12491_v52, %v7683_v49  ;;  %v7681_v27 = vadd.f32 %v7542_v18, %v21368_v43  ;;  %v21374_v49 = vld [vmem:[#allocation232_spill] sm:$0xff]  ;;  %v21377_v43 = vld [vmem:[#allocation310_spill] sm:$0xff] }
 0x4ad   : > { %v12362_v11 = vpop.f32.mrf.mxu1 }
 0x4ae   : > { %21367 = vst [vmem:[#allocation326_spill] sm:$0xff] %v18641_v17  ;;  %v12492_v15 = vpop.f32.mrf.mxu0  ;;  %v18644_v4 = vadd.f32 %v8236_v31, %v7681_v27  ;;  %v7684_v9 = vadd.f32 %v12362_v11, %v21370_v35  ;;  %v21376_v31 = vld [vmem:[#allocation236_spill] sm:$0xff] }
 0x4af   : > { %v7545_v24 = vpop.f32.mrf.mxu1  ;;  %v21379_v17 = vld [vmem:[#allocation100_spill] sm:$0xff] }
 0x4b0   : > { %21369 = vst [vmem:[#allocation115_spill] sm:$0xff] %v18644_v4  ;;  %v8239_v37 = vpop.f32.mrf.mxu0  ;;  %v18647_v38 = vadd.f32 %v12492_v15, %v7684_v9  ;;  %v7682_v20 = vadd.f32 %v7545_v24, %v21372_v45  ;;  %v21378_v15 = vld [vmem:[#allocation275_spill] sm:$0xff] }
 0x4b1   : > { %v12497_v46 = vpop.f32.mrf.mxu1  ;;  %12592 = vmatmul.mubr.msk.bf16.gmra.mxu1 %vm697_vm1, %v21373_v55 }
 0x4b2   : > { %21371 = vst [vmem:[#allocation69_spill] sm:$0xff] %v18647_v38  ;;  %v12627_v52 = vpop.f32.mrf.mxu0  ;;  %12722 = vmatmul.mubr.msk.bf16.gmra.mxu0 %vm697_vm1, %v21374_v49  ;;  %v18654_v18 = vadd.f32 %v8239_v37, %v7682_v20  ;;  %12595 = vmatprep.mubr.msk.bf16.mxu1 %vm697_vm1, %v21376_v31  ;;  %v21380_v37 = vld [vmem:[#allocation311_spill] sm:$0xff]  ;;  %v21381_v31 = vld [vmem:[#allocation28_spill] sm:$0xff] }
 0x4b3   : > { %12725 = vmatprep.mubr.msk.bf16.mxu0 %vm697_vm1, %v21377_v43  ;;  %v8474_v27 = vpop.f32.mrf.mxu1  ;;  %v21382_v43 = vld [vmem:[#allocation261_spill] sm:$0xff] }
 0x4b4   : > { %21375 = vst [vmem:[#allocation116_spill] sm:$0xff] %v18654_v18  ;;  %v9178_v11 = vpop.f32.mrf.mxu0  ;;  %v8985_v35 = vadd.f32 %v8474_v27, %v21378_v15  ;;  %v8987_v18 = vadd.f32 %v12497_v46, %v21382_v43  ;;  %v21383_v27 = vld [vmem:[#allocation245_spill] sm:$0xff]  ;;  %v21387_v43 = vld [vmem:[#allocation86_spill] sm:$0xff] }
 0x4b5   : > { %v12498_v9 = vpop.f32.mrf.mxu1 }
 0x4b6   : > { %v12628_v24 = vpop.f32.mrf.mxu0  ;;  %v9689_v45 = vadd.f32 %v9178_v11, %v8985_v35  ;;  %v21384_v11 = vld [vmem:[#allocation254_spill] sm:$0xff] }
 0x4b7   : > { %v8477_v55 = vpop.f32.mrf.mxu1 }
 0x4b8   : > { %v9181_v38 = vpop.f32.mrf.mxu0  ;;  %v8986_v4 = vadd.f32 %v8477_v55, %v21379_v17  ;;  %9817 = vxpose.xlu0.b32.start [1/16] (narrow) %v9689_v45, 8  ;;  %v9691_v55 = vadd.f32 %v12627_v52, %v8987_v18  ;;  %v21389_v52 = vld [vmem:[#allocation244_spill] sm:$0xff]  ;;  %v21390_v18 = vld [vmem:[#allocation337_spill] sm:$0xff] }
 0x4b9   : > { %v12501_v20 = vpop.f32.mrf.mxu1  ;;  %12596 = vmatmul.mubr.msk.bf16.gmra.mxu1 %vm697_vm1, %v21380_v37  ;;  %v21385_v37 = vld [vmem:[#allocation299_spill] sm:$0xff] }
 0x4ba   : > { %v12631_v49 = vpop.f32.mrf.mxu0  ;;  %12726 = vmatmul.mubr.msk.bf16.gmra.mxu0 %vm697_vm1, %v21381_v31  ;;  %v9690_v19 = vadd.f32 %v9181_v38, %v8986_v4  ;;  %12599 = vmatprep.mubr.msk.bf16.mxu1 %vm697_vm1, %v21383_v27  ;;  %v8988_v29 = vadd.f32 %v12498_v9, %v21385_v37  ;;  %v21386_v4 = vld [vmem:[#allocation238_spill] sm:$0xff]  ;;  %v21388_v27 = vld [vmem:[#allocation36_spill] sm:$0xff] }
 0x4bb   : > { %12729 = vmatprep.mubr.msk.bf16.mxu0 %vm697_vm1, %v21384_v11  ;;  %v8490_v15 = vpop.f32.mrf.mxu1 }
 0x4bc   : > { %v9194_v17 = vpop.f32.mrf.mxu0  ;;  %9818 = vxpose.xlu0.b32.cont [2/16] (narrow) %v9690_v19, 8  ;;  %v9692_v19 = vadd.f32 %v12628_v24, %v8988_v29  ;;  %v8989_v11 = vadd.f32 %v8490_v15, %v21388_v27  ;;  %v18697_v27 = vld [vmem:[%s13070_s25 + $0x294] sm:$0xf]  ;;  %s10997_s25 = sshll.u32 %s21518_s12, 6 }
 0x4bd   : > { %v12502_v35 = vpop.f32.mrf.mxu1  ;;  %s19003_s28 = scalar_lea.vmem %s19142_s3, %s10997_s25 }
 0x4be   : > { %v18671_v45 = vpop.f32.mrf.mxu0  ;;  %v9693_v23 = vadd.f32 %v9194_v17, %v8989_v11  ;;  %v21393_v17 = vld [vmem:[#allocation316_spill] sm:$0xff] }
 0x4bf   : > { %v8493_v21 = vpop.f32.mrf.mxu1  ;;  %v8991_v11 = vadd.f32 %v12501_v20, %v21393_v17 }
 0x4c0   : > { %v9197_v31 = vpop.f32.mrf.mxu0  ;;  %9819 = vxpose.xlu0.b32.cont [3/16] (narrow) %v9691_v55, 8 }
 0x4c1   : > { %v18674_v46 = vpop.f32.mrf.mxu1  ;;  %12600 = vmatmul.mubr.msk.bf16.gmra.mxu1 %vm697_vm1, %v21386_v4  ;;  %v9695_v17 = vadd.f32 %v12631_v49, %v8991_v11 }
 0x4c2   : > { %v18678_v38 = vpop.f32.mrf.mxu0  ;;  %12730 = vmatmul.mubr.msk.bf16.gmra.mxu0 %vm697_vm1, %v21387_v43  ;;  %12603 = vmatprep.mubr.msk.bf16.mxu1 %vm697_vm1, %v21389_v52  ;;  %v21391_v43 = vld [vmem:[#allocation314_spill] sm:$0xff]  ;;  %v8380_v52 = vshrl.u32 %v18697_v27, 16 }
 0x4c3   : > { %12733 = vmatprep.mubr.msk.bf16.mxu0 %vm697_vm1, %v21390_v18  ;;  %v8506_v9 = vpop.f32.mrf.mxu1  ;;  %v8990_v29 = vadd.f32 %v8493_v21, %v21391_v43  ;;  %v8383_v18 = vshll.u32 %v18697_v27, 16 }
 0x4c4   : > { %v18687_v55 = vpop.f32.mrf.mxu0  ;;  %9820 = vxpose.xlu0.b32.cont [4/16] (narrow) %v9692_v19, 8  ;;  %v8393_v19 = vshrl.u32 %v18702_v12, 16  ;;  %v8382_v48 = vrot.slane %v8380_v52, 4  ;;  %v8403_v52 = vshrl.u32 %v18735_v2, 16 }
 0x4c5   : > { %v18689_v37 = vpop.f32.mrf.mxu1  ;;  %v9694_v43 = vadd.f32 %v9197_v31, %v8990_v29  ;;  %v8385_v20 = vrot.slane %v8383_v18, 5  ;;  %v8409_v18 = vshll.u32 %v18739_v13, 16 }
 0x4c6   : > { %v18691_v4 = vpop.f32.mrf.mxu0  ;;  %v8395_v29 = vrot.slane %v8393_v19, 4  ;;  %v21397_v19 = vld [vmem:[#allocation248_spill] sm:$0xff] }
 0x4c7   : > { %v8509_v24 = vpop.f32.mrf.mxu1 }
 0x4c8   : > { %v18694_v15 = vpop.f32.mrf.mxu0  ;;  %9821 = vxpose.xlu0.b32.cont [5/16] (narrow) %v9693_v23, 8  ;;  %v8389_v23 = vshll.u32 %v18702_v12, 16  ;;  %v8994_v22 = vadd.f32 %v8509_v24, %v21402_v54 }
 0x4c9   : > { %v18705_v63 = vpop.f32.mrf.mxu1  ;;  %12604 = vmatmul.mubr.msk.bf16.gmra.mxu1 %vm697_vm1, %v21392_v62 }
 0x4ca   : > { %v18709_v21 = vpop.f32.mrf.mxu0  ;;  %12734 = vmatmul.mubr.msk.bf16.gmra.mxu0 %vm697_vm1, %v21096_v30  ;;  %12607 = vmatprep.mubr.msk.bf16.mxu1 %vm697_vm1, %v21394_v42  ;;  %v18727_v31 = vrot.slane %v8389_v23, 5  ;;  %v21396_v42 = vld [vmem:[#allocation103_spill] sm:$0xff]  ;;  %v8386_v23 = vor.u32 %v8385_v20, %v8382_v48  ;;  %v8405_v20 = vrot.slane %v8403_v52, 4  ;;  %v9119_v52 = vrot.slane %v18735_v2, 5 }
 0x4cb   : > { %12737 = vmatprep.mubr.msk.bf16.mxu0 %vm697_vm1, %v21395_v40  ;;  %v18719_v10 = vpop.f32.mrf.mxu1  ;;  %v8992_v33 = vadd.f32 %v12502_v35, %v21396_v42 }
 0x4cc   : > { %v18721_v62 = vpop.f32.mrf.mxu0  ;;  %9822 = vxpose.xlu0.b32.cont [6/16] (narrow) %v9694_v43, 8  ;;  %v8399_v43 = vshll.u32 %v18735_v2, 16  ;;  %v8396_v11 = vor.u32 %v8395_v29, %v18727_v31  ;;  %v18759_v29 = vrot.slane %v8409_v18, 5  ;;  %v21403_v18 = vld [vmem:[#allocation124_spill] sm:$0xff] }
 0x4cd   : > { %v18723_v57 = vpop.f32.mrf.mxu1  ;;  %v9696_v42 = vadd.f32 %v18671_v45, %v8992_v33  ;;  %v8415_v33 = vrot.slane %v8413_v61, 4 }
 0x4ce   : > { %v18725_v30 = vpop.f32.mrf.mxu0  ;;  %v8401_v26 = vrot.slane %v8399_v43, 5 }
 0x4cf   : > { %v18730_v7 = vpop.f32.mrf.mxu1 }
 0x4d0   : > { %v18732_v40 = vpop.f32.mrf.mxu0  ;;  %9823 = vxpose.xlu0.b32.cont [7/16] (narrow) %v9695_v17, 8  ;;  %v8993_v17 = vadd.f32 %v8506_v9, %v21398_v36  ;;  %v8387_v9 = vrot.slane %v8386_v23, 4  ;;  %v8416_v23 = vor.u32 %v8415_v33, %v18759_v29  ;;  %v21408_v33 = vld [vmem:[#allocation89_spill] sm:$0xff] }
 0x4d1   : > { %v12513_v49 = vpop.f32.mrf.mxu1  ;;  %12608 = vmatmul.mubr.msk.bf16.gmra.mxu1 %vm697_vm1, %v21397_v19 }
 0x4d2   : > { %v18746_v35 = vpop.f32.mrf.mxu0  ;;  %12738 = vmatmul.mubr.msk.bf16.gmra.mxu0 %vm697_vm1, %v21104_v59  ;;  %12611 = vmatprep.mubr.msk.bf16.mxu1 %vm697_vm1, %v21399_v60  ;;  %v21401_v59 = vld [vmem:[#allocation260_spill] sm:$0xff]  ;;  %v8397_v60 = vrot.slane %v8396_v11, 4  ;;  %v8419_v11 = vshll.u32 %v368_v34, 16  ;;  %v8392_v2 = vsel %vm13960_vm7, %v8387_v9, %v18727_v31  ;;  %v8417_v9 = vrot.slane %v8416_v23, 4 }
 0x4d3   : > { %12741 = vmatprep.mubr.msk.bf16.mxu0 %vm697_vm1, %v21400_v32  ;;  %v8538_v19 = vpop.f32.mrf.mxu1  ;;  %v9697_v32 = vadd.f32 %v18687_v55, %v8993_v17  ;;  %v8995_v55 = vadd.f32 %v18674_v46, %v21404_v3  ;;  %v9122_v17 = vrot.slane %v18739_v13, 5  ;;  %v21407_v3 = vld [vmem:[#allocation267_spill] sm:$0xff] }
 0x4d4   : > { %v9242_v5 = vpop.f32.mrf.mxu0  ;;  %v9001_v48 = vadd.f32 %v8538_v19, %v21401_v59  ;;  %9824 = vxpose.xlu0.b32.cont [8/16] (narrow) %v9696_v42, 8  ;;  %v10927_v19 = vrot.slane %v18697_v27, 9  ;;  %v9118_v42 = vrot.slane %v9116_v25, 4  ;;  %v8406_v59 = vor.u32 %v8405_v20, %v8401_v26 }
 0x4d5   : > { %v12514_v36 = vpop.f32.mrf.mxu1  ;;  %v8402_v27 = vsel %vm13960_vm7, %v8397_v60, %v8401_v26  ;;  %v9003_v46 = vadd.f32 %v12513_v49, %v21407_v3  ;;  %v9698_v20 = vadd.f32 %v18694_v15, %v8994_v22  ;;  %v8421_v22 = vrot.slane %v8419_v11, 5  ;;  %v21409_v15 = vld [vmem:[#allocation303_spill] sm:$0xff]  ;;  %v21412_v11 = vld [vmem:[#allocation281_spill] sm:$0xff] }
 0x4d6   : > { %v18761_v45 = vpop.f32.mrf.mxu0  ;;  %v9705_v43 = vadd.f32 %v9242_v5, %v9001_v48  ;;  %v21405_v5 = vld [vmem:[#allocation300_spill] sm:$0xff]  ;;  %v9117_v31 = vsel %vm13358_vm4, %v10927_v19, %v9116_v25  ;;  %v9120_v26 = vsel %vm13358_vm4, %v9118_v42, %v9119_v52  ;;  %v8407_v13 = vrot.slane %v8406_v59, 4 }
 0x4d7   : > { %v8541_v8 = vpop.f32.mrf.mxu1  ;;  %v10861_v49 = vcombine.low %v8392_v2, %v8402_v27  ;;  %v8996_v60 = vadd.f32 %v18689_v37, %v21409_v15  ;;  %v9699_v25 = vadd.f32 %v18678_v38, %v8995_v55  ;;  %v9707_v19 = vadd.f32 %v18746_v35, %v9003_v46  ;;  %v21410_v42 = vld [vmem:[#allocation176_spill] sm:$0xff] }
 0x4d8   : > { %v9245_v12 = vpop.f32.mrf.mxu0  ;;  %v9002_v61 = vadd.f32 %v8541_v8, %v21403_v18  ;;  %9825 = vxpose.xlu0.b32.cont [9/16] (narrow) %v9697_v32, 8  ;;  %9849 = vxpose.xlu1.b32.start [1/16] (narrow) %v9705_v43, 8  ;;  %v9124_v18 = vrot.slane %v9122_v17, 4  ;;  %v10929_v3 = vcombine.low %v9117_v31, %v9120_v26  ;;  %v8412_v37 = vsel %vm13960_vm7, %v8407_v13, %v18759_v29  ;;  %v21411_v38 = vld [vmem:[#allocation324_spill] sm:$0xff] }
 0x4d9   : > { %v18772_v54 = vpop.f32.mrf.mxu1  ;;  %12612 = vmatmul.mubr.msk.bf16.gmra.mxu1 %vm697_vm1, %v21405_v5  ;;  %v9004_v5 = vadd.f32 %v12514_v36, %v21410_v42  ;;  %v8997_v55 = vadd.f32 %v18719_v10, %v21412_v11 }
 0x4da   : > { %v18776_v24 = vpop.f32.mrf.mxu0  ;;  %12742 = vmatmul.mubr.msk.bf16.gmra.mxu0 %vm697_vm1, %v21108_v6  ;;  %v9706_v48 = vadd.f32 %v9245_v12, %v9002_v61  ;;  %12615 = vmatprep.mubr.msk.bf16.mxu1 %vm697_vm1, %v21408_v33  ;;  %v9125_v61 = vrot.slane %v368_v34, 5  ;;  %v9700_v34 = vadd.f32 %v18691_v4, %v8996_v60 }
 0x4db   : > { %12745 = vmatprep.mubr.msk.bf16.mxu0 %vm697_vm1, %v18119_v28  ;;  %v8554_v6 = vpop.f32.mrf.mxu1  ;;  %v9121_v28 = vrot.slane %v9119_v52, 4  ;;  %v8422_v52 = vsel %vm13960_vm7, %v8417_v9, %v8421_v22  ;;  %v9708_v4 = vadd.f32 %v18761_v45, %v9004_v5  ;;  %v9701_v10 = vadd.f32 %v18721_v62, %v8997_v55 }
 0x4dc   : > { %v9258_v32 = vpop.f32.mrf.mxu0  ;;  %9826 = vxpose.xlu0.b32.cont [10/16] (narrow) %v9698_v20, 8  ;;  %9850 = vxpose.xlu1.b32.cont [2/16] (narrow) %v9706_v48, 8  ;;  %v9126_v29 = vsel %vm13358_vm4, %v9124_v18, %v9125_v61  ;;  %v9005_v8 = vadd.f32 %v8554_v6, %v18116_v0  ;;  %v10862_v1 = vcombine.low %v8412_v37, %v8422_v52  ;;  %v21413_v20 = vld [vmem:[#allocation249_spill] sm:$0xff]  ;;  %v21415_v18 = vld [vmem:[#allocation114_spill] sm:$0xff] }
 0x4dd   : > { %v12518_v43 = vpop.f32.mrf.mxu1  ;;  %v9123_v36 = vsel %vm13358_vm4, %v9121_v28, %v9122_v17  ;;  %v8998_v45 = vadd.f32 %v18730_v7, %v21413_v20  ;;  %v9007_v7 = vadd.f32 %v18772_v54, %v18112_v39  ;;  %v21417_v20 = vld [vmem:[#allocation32_spill] sm:$0xff] }
 0x4de   : > { %v18798_v12 = vpop.f32.mrf.mxu0  ;;  %v10930_v48 = vcombine.low %v9123_v36, %v9126_v29  ;;  %v9709_v0 = vadd.f32 %v9258_v32, %v9005_v8  ;;  %v9008_v39 = vadd.f32 %v12518_v43, %v18121_v50 }
 0x4df   : > { %v8557_v59 = vpop.f32.mrf.mxu1  ;;  %v9711_v61 = vadd.f32 %v18776_v24, %v9007_v7 }
 0x4e0   : > { %v9261_v2 = vpop.f32.mrf.mxu0  ;;  %9827 = vxpose.xlu0.b32.cont [11/16] (narrow) %v9699_v25, 8  ;;  %9851 = vxpose.xlu1.b32.cont [3/16] (narrow) %v9707_v19, 8  ;;  %v9006_v33 = vadd.f32 %v8557_v59, %v18130_v16  ;;  %v9702_v16 = vadd.f32 %v18732_v40, %v8998_v45  ;;  %v9712_v5 = vadd.f32 %v18798_v12, %v9008_v39 }
 0x4e1   : > { %v18809_v23 = vpop.f32.mrf.mxu1  ;;  %12616 = vmatmul.mubr.msk.bf16.gmra.mxu1 %vm697_vm1, %v21411_v38 }
 0x4e2   : > { %v18813_v35 = vpop.f32.mrf.mxu0  ;;  %12746 = vmatmul.mubr.msk.bf16.gmra.mxu0 %vm697_vm1, %v18143_v44  ;;  %12619 = vmatprep.mubr.msk.bf16.mxu1 %vm697_vm1, %v10861_v49  ;;  %v21414_v49 = vld [vmem:[#allocation262_spill] sm:$0xff]  ;;  %v9710_v32 = vadd.f32 %v9261_v2, %v9006_v33  ;;  %v9011_v38 = vadd.f32 %v18809_v23, %v18140_v51  ;;  %v21418_v33 = vld [vmem:[#allocation183_spill] sm:$0xff] }
 0x4e3   : > { %12749 = vmatprep.mubr.msk.bf16.mxu0 %vm697_vm1, %v10929_v3  ;;  %v8570_v27 = vpop.f32.mrf.mxu1  ;;  %v8999_v62 = vadd.f32 %v18705_v63, %v21414_v49  ;;  %v9000_v63 = vadd.f32 %v18723_v57, %v21415_v18 }
 0x4e4   : > { %v9274_v46 = vpop.f32.mrf.mxu0  ;;  %9828 = vxpose.xlu0.b32.cont [12/16] (narrow) %v9700_v34, 8  ;;  %9852 = vxpose.xlu1.b32.cont [4/16] (narrow) %v9708_v4, 8  ;;  %v9715_v8 = vadd.f32 %v18813_v35, %v9011_v38 }
 0x4e5   : > { %v18827_v44 = vpop.f32.mrf.mxu1  ;;  %v9703_v28 = vadd.f32 %v18709_v21, %v8999_v62  ;;  %v9704_v42 = vadd.f32 %v18725_v30, %v9000_v63  ;;  %v9009_v21 = vadd.f32 %v8570_v27, %v18145_v53  ;;  %v21419_v62 = vld [vmem:[#allocation92_spill] sm:$0xff] }
 0x4e6   : > { %v18829_v17 = vpop.f32.mrf.mxu0 }
 0x4e7   : > { %v8573_v6 = vpop.f32.mrf.mxu1  ;;  %v9713_v43 = vadd.f32 %v9274_v46, %v9009_v21  ;;  %v21416_v46 = vld [vmem:[#allocation158_spill] sm:$0xff] }
 0x4e8   : > { %v9277_v31 = vpop.f32.mrf.mxu0  ;;  %9829 = vxpose.xlu0.b32.cont [13/16] (narrow) %v9701_v10, 8  ;;  %9853 = vxpose.xlu1.b32.cont [5/16] (narrow) %v9709_v0, 8  ;;  %v9010_v2 = vadd.f32 %v8573_v6, %v18154_v47 }
 0x4e9   : > { %v18835_v26 = vpop.f32.mrf.mxu1  ;;  %12620 = vmatmul.mubr.msk.bf16.gmra.mxu1 %vm697_vm1, %v10862_v1 }
 0x4ea   : > { %v18838_v13 = vpop.f32.mrf.mxu0  ;;  %12750 = vmatmul.mubr.msk.bf16.gmra.mxu0 %vm697_vm1, %v10930_v48 }
 0x4eb   : > { %v8586_v9 = vpop.f32.mrf.mxu1 }
 0x4ec   : > { %v18846_v22 = vpop.f32.mrf.mxu0  ;;  %9830 = vxpose.xlu0.b32.cont [14/16] (narrow) %v9702_v16, 8  ;;  %9854 = vxpose.xlu1.b32.cont [6/16] (narrow) %v9710_v32, 8  ;;  %v9013_v45 = vadd.f32 %v8586_v9, %v21417_v20  ;;  %v21420_v16 = vld [vmem:[#allocation290_spill] sm:$0xff] }
 0x4ed   : > { %v18848_v15 = vpop.f32.mrf.mxu1  ;;  %v21430_v20 = vld [vmem:[#allocation142_spill] sm:$0xff] }
 0x4ee   : > { %v18850_v60 = vpop.f32.mrf.mxu0  ;;  %v9717_v49 = vadd.f32 %v18846_v22, %v9013_v45 }
 0x4ef   : > { %v8589_v54 = vpop.f32.mrf.mxu1 }
 0x4f0   : > { %v18857_v40 = vpop.f32.mrf.mxu0  ;;  %9831 = vxpose.xlu0.b32.cont [15/16] (narrow) %v9703_v28, 8  ;;  %9855 = vxpose.xlu1.b32.cont [7/16] (narrow) %v9711_v61, 8  ;;  %v9014_v7 = vadd.f32 %v8589_v54, %v21419_v62  ;;  %v21421_v61 = vld [vmem:[#allocation12_spill] sm:$0xff] }
 0x4f1   : > { %v12529_v25 = vpop.f32.mrf.mxu1  ;;  %v9015_v39 = vadd.f32 %v18835_v26, %v21421_v61  ;;  %v21431_v62 = vld [vmem:[#allocation292_spill] sm:$0xff] }
 0x4f2   : > { %v12659_v19 = vpop.f32.mrf.mxu0  ;;  %v9019_v36 = vadd.f32 %v12529_v25, %v18181_v41  ;;  %v9718_v25 = vadd.f32 %v18857_v40, %v9014_v7 }
 0x4f3   : > { %v8602_v3 = vpop.f32.mrf.mxu1 }
 0x4f4   : > { %v9306_v59 = vpop.f32.mrf.mxu0  ;;  %v9017_v57 = vadd.f32 %v8602_v3, %v18184_v14  ;;  %9832 = vxpose.xlu0.b32.end [16/16] (narrow) %v9704_v42, 8  ;;  %9856 = vxpose.xlu1.b32.cont [8/16] (narrow) %v9712_v5, 8  ;;  %v9714_v14 = vadd.f32 %v9277_v31, %v9010_v2  ;;  %v9723_v27 = vadd.f32 %v12659_v19, %v9019_v36  ;;  %v21422_v19 = vld [vmem:[#allocation273_spill] sm:$0xff]  ;;  %v21426_v36 = vld [vmem:[#allocation20_spill] sm:$0xff] }
 0x4f5   : > { %v12530_v50 = vpop.f32.mrf.mxu1 }
 0x4f6   : > { %v12660_v24 = vpop.f32.mrf.mxu0  ;;  %v9721_v37 = vadd.f32 %v9306_v59, %v9017_v57  ;;  %v9020_v1 = vadd.f32 %v12530_v50, %v21416_v46  ;;  %v9719_v59 = vadd.f32 %v18838_v13, %v9015_v39  ;;  %v21423_v57 = vld [vmem:[#allocation125_spill] sm:$0xff]  ;;  %v21428_v46 = vld [vmem:[#allocation99_spill] sm:$0xff] }
 0x4f7   : > { %v8605_v52 = vpop.f32.mrf.mxu1  ;;  %v9016_v50 = vadd.f32 %v18848_v15, %v21423_v57 }
 0x4f8   : > { %v9309_v34 = vpop.f32.mrf.mxu0  ;;  %v9018_v30 = vadd.f32 %v8605_v52, %v18194_v56  ;;  %9857 = vxpose.xlu1.b32.cont [9/16] (narrow) %v9713_v43, 8  ;;  %9881 = vxpose.xlu0.b32.start [1/16] (narrow) %v9721_v37, 8  ;;  %v9012_v56 = vadd.f32 %v18827_v44, %v18148_v58  ;;  %v9724_v0 = vadd.f32 %v12660_v24, %v9020_v1  ;;  %v21424_v24 = vld [vmem:[#allocation134_spill] sm:$0xff] }
 0x4f9   : > { %v12533_v12 = vpop.f32.mrf.mxu1 }
 0x4fa   : > { %v12663_v53 = vpop.f32.mrf.mxu0  ;;  %v9722_v29 = vadd.f32 %v9309_v34, %v9018_v30  ;;  %v9716_v10 = vadd.f32 %v18829_v17, %v9012_v56  ;;  %v9023_v22 = vadd.f32 %v12533_v12, %v21422_v19  ;;  %v9720_v34 = vadd.f32 %v18850_v60, %v9016_v50  ;;  %v21425_v12 = vld [vmem:[#allocation135_spill] sm:$0xff] }
 0x4fb   : > { %v8618_v11 = vpop.f32.mrf.mxu1 }
 0x4fc   : > { %v9322_v55 = vpop.f32.mrf.mxu0  ;;  %9858 = vxpose.xlu1.b32.cont [10/16] (narrow) %v9714_v14, 8  ;;  %9882 = vxpose.xlu0.b32.cont [2/16] (narrow) %v9722_v29, 8  ;;  %v9021_v35 = vadd.f32 %v8618_v11, %v21418_v33  ;;  %v9727_v26 = vadd.f32 %v12663_v53, %v9023_v22 }
 0x4fd   : > { %v12534_v47 = vpop.f32.mrf.mxu1 }
 0x4fe   : > { %v12664_v4 = vpop.f32.mrf.mxu0  ;;  %v9725_v32 = vadd.f32 %v9322_v55, %v9021_v35  ;;  %v9024_v40 = vadd.f32 %v12534_v47, %v21424_v24  ;;  %v21427_v55 = vld [vmem:[#allocation19_spill] sm:$0xff]  ;;  %v21435_v24 = vld [vmem:[#allocation49_spill] sm:$0xff] }
 0x4ff   : > { %v8621_v48 = vpop.f32.mrf.mxu1 }
 0x500   : > { %v9325_v51 = vpop.f32.mrf.mxu0  ;;  %9859 = vxpose.xlu1.b32.cont [11/16] (narrow) %v9715_v8, 8  ;;  %9883 = vxpose.xlu0.b32.cont [3/16] (narrow) %v9723_v27, 8  ;;  %v9022_v17 = vadd.f32 %v8621_v48, %v21420_v16  ;;  %v9728_v30 = vadd.f32 %v12664_v4, %v9024_v40  ;;  %v21429_v48 = vld [vmem:[#allocation288_spill] sm:$0xff]  ;;  %v21432_v16 = vld [vmem:[#allocation302_spill] sm:$0xff] }
 0x501   : > { %v12537_v41 = vpop.f32.mrf.mxu1 }
 0x502   : > { %v18872_v23 = vpop.f32.mrf.mxu0  ;;  %v9726_v42 = vadd.f32 %v9325_v51, %v9022_v17  ;;  %v9027_v51 = vadd.f32 %v12537_v41, %v21429_v48 }
 0x503   : > { %v8634_v6 = vpop.f32.mrf.mxu1 }
 0x504   : > { %v9338_v31 = vpop.f32.mrf.mxu0  ;;  %9860 = vxpose.xlu1.b32.cont [12/16] (narrow) %v9716_v10, 8  ;;  %9884 = vxpose.xlu0.b32.cont [4/16] (narrow) %v9724_v0, 8  ;;  %v9025_v38 = vadd.f32 %v8634_v6, %v21425_v12 }
 0x505   : > { %v18877_v58 = vpop.f32.mrf.mxu1 }
 0x506   : > { %v18879_v44 = vpop.f32.mrf.mxu0  ;;  %v9729_v11 = vadd.f32 %v9338_v31, %v9025_v38  ;;  %v9028_v7 = vadd.f32 %v18877_v58, %v21431_v62  ;;  %v21437_v38 = vld [vmem:[#allocation14_spill] sm:$0xff] }
 0x507   : > { %v8637_v28 = vpop.f32.mrf.mxu1 }
 0x508   : > { %v9341_v9 = vpop.f32.mrf.mxu0  ;;  %9861 = vxpose.xlu1.b32.cont [13/16] (narrow) %v9717_v49, 8  ;;  %9885 = vxpose.xlu0.b32.cont [5/16] (narrow) %v9725_v32, 8  ;;  %v9026_v47 = vadd.f32 %v8637_v28, %v21427_v55  ;;  %v9731_v49 = vadd.f32 %v18872_v23, %v9027_v51  ;;  %v9732_v39 = vadd.f32 %v18879_v44, %v9028_v7 }
 0x509   : > { %v18884_v18 = vpop.f32.mrf.mxu1 }
 0x50a   : > { %v18886_v63 = vpop.f32.mrf.mxu0  ;;  %v9730_v10 = vadd.f32 %v9341_v9, %v9026_v47  ;;  %v21439_v47 = vld [vmem:[#allocation141_spill] sm:$0xff] }
 0x50b   : > { %v8650_v54 = vpop.f32.mrf.mxu1 }
 0x50c   : > { %v18892_v5 = vpop.f32.mrf.mxu0  ;;  %9862 = vxpose.xlu1.b32.cont [14/16] (narrow) %v9718_v25, 8  ;;  %9886 = vxpose.xlu0.b32.cont [6/16] (narrow) %v9726_v42, 8  ;;  %v21433_v25 = vld [vmem:[#allocation184_spill] sm:$0xff]  ;;  %v21434_v42 = vld [vmem:[#allocation30_spill] sm:$0xff] }
 0x50d   : > { %v18894_v21 = vpop.f32.mrf.mxu1  ;;  %v9029_v19 = vadd.f32 %v8650_v54, %v21433_v25  ;;  %v21446_v25 = vld [vmem:[#allocation155_spill] sm:$0xff] }
 0x50e   : > { %v18896_v3 = vpop.f32.mrf.mxu0 }
 0x50f   : > { %v8653_v43 = vpop.f32.mrf.mxu1 }
 0x510   : > { %v18902_v2 = vpop.f32.mrf.mxu0  ;;  %9863 = vxpose.xlu1.b32.cont [15/16] (narrow) %v9719_v59, 8  ;;  %9887 = vxpose.xlu0.b32.cont [7/16] (narrow) %v9727_v26, 8  ;;  %v9733_v26 = vadd.f32 %v18892_v5, %v9029_v19  ;;  %v9030_v40 = vadd.f32 %v8653_v43, %v21435_v24  ;;  %v21447_v24 = vld [vmem:[#allocation151_spill] sm:$0xff] }
 0x511   : > { %v12545_v37 = vpop.f32.mrf.mxu1 }
 0x512   : > { %v12675_v52 = vpop.f32.mrf.mxu0  ;;  %v9035_v45 = vadd.f32 %v12545_v37, %v21430_v20 }
 0x513   : > { %v8666_v14 = vpop.f32.mrf.mxu1 }
 0x514   : > { %v9370_v13 = vpop.f32.mrf.mxu0  ;;  %v9033_v29 = vadd.f32 %v8666_v14, %v21426_v36  ;;  %9864 = vxpose.xlu1.b32.end [16/16] (narrow) %v9720_v34, 8  ;;  %9888 = vxpose.xlu0.b32.cont [8/16] (narrow) %v9728_v30, 8  ;;  %v9739_v32 = vadd.f32 %v12675_v52, %v9035_v45  ;;  %v21436_v52 = vld [vmem:[#allocation34_spill] sm:$0xff]  ;;  %v9031_v14 = vadd.f32 %v18884_v18, %v21437_v38 }
 0x515   : > { %v12546_v15 = vpop.f32.mrf.mxu1  ;;  %v21438_v36 = vld [vmem:[#allocation146_spill] sm:$0xff] }
 0x516   : > { %v12676_v53 = vpop.f32.mrf.mxu0  ;;  %v9737_v8 = vadd.f32 %v9370_v13, %v9033_v29  ;;  %v9036_v17 = vadd.f32 %v12546_v15, %v21432_v16  ;;  %v9734_v13 = vadd.f32 %v18902_v2, %v9030_v40  ;;  %v9735_v55 = vadd.f32 %v18886_v63, %v9031_v14  ;;  %v21444_v16 = vld [vmem:[#allocation62_spill] sm:$0xff] }
 0x517   : > { %v8669_v56 = vpop.f32.mrf.mxu1 }
 0x518   : > { %v9373_v27 = vpop.f32.mrf.mxu0  ;;  %v9034_v1 = vadd.f32 %v8669_v56, %v21428_v46  ;;  %9889 = vxpose.xlu0.b32.cont [9/16] (narrow) %v9729_v11, 8  ;;  %9913 = vxpose.xlu1.b32.start [1/16] (narrow) %v9737_v8, 8  ;;  %v9740_v22 = vadd.f32 %v12676_v53, %v9036_v17  ;;  %v9032_v8 = vadd.f32 %v18894_v21, %v21439_v47  ;;  %v21440_v56 = vld [vmem:[#allocation148_spill] sm:$0xff] }
 0x519   : > { %v12549_v60 = vpop.f32.mrf.mxu1 }
 0x51a   : > { %v12679_v4 = vpop.f32.mrf.mxu0  ;;  %v9738_v0 = vadd.f32 %v9373_v27, %v9034_v1  ;;  %v9039_v5 = vadd.f32 %v12549_v60, %v21438_v36  ;;  %v9736_v48 = vadd.f32 %v18896_v3, %v9032_v8 }
 0x51b   : > { %v8682_v33 = vpop.f32.mrf.mxu1 }
 0x51c   : > { %v9386_v35 = vpop.f32.mrf.mxu0  ;;  %9890 = vxpose.xlu0.b32.cont [10/16] (narrow) %v9730_v10, 8  ;;  %9914 = vxpose.xlu1.b32.cont [2/16] (narrow) %v9738_v0, 8  ;;  %v9037_v23 = vadd.f32 %v8682_v33, %v21434_v42  ;;  %v9743_v18 = vadd.f32 %v12679_v4, %v9039_v5  ;;  %v21441_v10 = vld [vmem:[#allocation122_spill] sm:$0xff]  ;;  %v21442_v0 = vld [vmem:[#allocation132_spill] sm:$0xff] }
 0x51d   : > { %v12550_v6 = vpop.f32.mrf.mxu1 }
 0x51e   : > { %v12680_v31 = vpop.f32.mrf.mxu0  ;;  %v9741_v37 = vadd.f32 %v9386_v35, %v9037_v23  ;;  %v9040_v2 = vadd.f32 %v12550_v6, %v21440_v56  ;;  %v21443_v6 = vld [vmem:[#allocation173_spill] sm:$0xff] }
 0x51f   : > { %v8685_v28 = vpop.f32.mrf.mxu1  ;;  %v21451_v56 = vld [vmem:[#allocation177_spill] sm:$0xff] }
 0x520   : > { %v9389_v41 = vpop.f32.mrf.mxu0  ;;  %9891 = vxpose.xlu0.b32.cont [11/16] (narrow) %v9731_v49, 8  ;;  %9915 = vxpose.xlu1.b32.cont [3/16] (narrow) %v9739_v32, 8  ;;  %v9038_v44 = vadd.f32 %v8685_v28, %v21436_v52  ;;  %v9744_v51 = vadd.f32 %v12680_v31, %v9040_v2  ;;  %v21445_v28 = vld [vmem:[#allocation121_spill] sm:$0xff]  ;;  %v21448_v52 = vld [vmem:[#allocation4_spill] sm:$0xff] }
 0x521   : > { %v12553_v9 = vpop.f32.mrf.mxu1 }
 0x522   : > { %v18915_v61 = vpop.f32.mrf.mxu0  ;;  %v9742_v29 = vadd.f32 %v9389_v41, %v9038_v44  ;;  %v9043_v41 = vadd.f32 %v12553_v9, %v21445_v28 }
 0x523   : > { %v8698_v59 = vpop.f32.mrf.mxu1 }
 0x524   : > { %v9402_v57 = vpop.f32.mrf.mxu0  ;;  %9892 = vxpose.xlu0.b32.cont [12/16] (narrow) %v9732_v39, 8  ;;  %9916 = vxpose.xlu1.b32.cont [4/16] (narrow) %v9740_v22, 8  ;;  %v9041_v20 = vadd.f32 %v8698_v59, %v21441_v10 }
 0x525   : > { %v18920_v58 = vpop.f32.mrf.mxu1 }
 0x526   : > { %v18922_v50 = vpop.f32.mrf.mxu0  ;;  %v9745_v35 = vadd.f32 %v9402_v57, %v9041_v20  ;;  %v9044_v40 = vadd.f32 %v18920_v58, %v21447_v24  ;;  %v21453_v20 = vld [vmem:[#allocation153_spill] sm:$0xff] }
 0x527   : > { %v8701_v34 = vpop.f32.mrf.mxu1 }
 0x528   : > { %v9405_v54 = vpop.f32.mrf.mxu0  ;;  %9893 = vxpose.xlu0.b32.cont [13/16] (narrow) %v9733_v26, 8  ;;  %9917 = vxpose.xlu1.b32.cont [5/16] (narrow) %v9741_v37, 8  ;;  %v9042_v49 = vadd.f32 %v8701_v34, %v21443_v6  ;;  %v9747_v26 = vadd.f32 %v18915_v61, %v9043_v41  ;;  %v9748_v14 = vadd.f32 %v18922_v50, %v9044_v40  ;;  %v21450_v61 = vld [vmem:[#allocation65_spill] sm:$0xff] }
 0x529   : > { %v18927_v30 = vpop.f32.mrf.mxu1 }
 0x52a   : > { %v18929_v12 = vpop.f32.mrf.mxu0  ;;  %v9746_v39 = vadd.f32 %v9405_v54, %v9042_v49  ;;  %v21455_v49 = vld [vmem:[#allocation50_spill] sm:$0xff] }
 0x52b   : > { %v8714_v43 = vpop.f32.mrf.mxu1 }
 0x52c   : > { %v18935_v15 = vpop.f32.mrf.mxu0  ;;  %9894 = vxpose.xlu0.b32.cont [14/16] (narrow) %v9734_v13, 8  ;;  %9918 = vxpose.xlu1.b32.cont [6/16] (narrow) %v9742_v29, 8  ;;  %v21449_v13 = vld [vmem:[#allocation47_spill] sm:$0xff] }
 0x52d   : > { %v18937_v53 = vpop.f32.mrf.mxu1  ;;  %v9045_v36 = vadd.f32 %v8714_v43, %v21449_v13 }
 0x52e   : > { %v18939_v11 = vpop.f32.mrf.mxu0 }
 0x52f   : > { %v8717_v27 = vpop.f32.mrf.mxu1 }
 0x530   : > { %v18945_v46 = vpop.f32.mrf.mxu0  ;;  %9895 = vxpose.xlu0.b32.cont [15/16] (narrow) %v9735_v55, 8  ;;  %9919 = vxpose.xlu1.b32.cont [7/16] (narrow) %v9743_v18, 8  ;;  %v9749_v18 = vadd.f32 %v18935_v15, %v9045_v36  ;;  %v9046_v2 = vadd.f32 %v8717_v27, %v21451_v56 }
 0x531   : > { %v12561_v1 = vpop.f32.mrf.mxu1 }
 0x532   : > { %v12691_v60 = vpop.f32.mrf.mxu0  ;;  %v9051_v19 = vadd.f32 %v12561_v1, %v21446_v25 }
 0x533   : > { %v8730_v45 = vpop.f32.mrf.mxu1 }
 0x534   : > { %v9434_v63 = vpop.f32.mrf.mxu0  ;;  %v9049_v33 = vadd.f32 %v8730_v45, %v21442_v0  ;;  %9896 = vxpose.xlu0.b32.end [16/16] (narrow) %v9736_v48, 8  ;;  %9920 = vxpose.xlu1.b32.cont [8/16] (narrow) %v9744_v51, 8  ;;  %v9755_v37 = vadd.f32 %v12691_v60, %v9051_v19  ;;  %v21452_v60 = vld [vmem:[#allocation133_spill] sm:$0xff]  ;;  %v9047_v45 = vadd.f32 %v18927_v30, %v21453_v20  ;;  %v21454_v0 = vld [vmem:[#allocation179_spill] sm:$0xff] }
 0x535   : > { %v12562_v21 = vpop.f32.mrf.mxu1  ;;  %v9048_v30 = vadd.f32 %v18937_v53, %v21455_v49  ;;  %v21458_v53 = vld [vmem:[#allocation198_spill] sm:$0xff] }
 0x536   : > { %v12692_v4 = vpop.f32.mrf.mxu0  ;;  %v9753_v62 = vadd.f32 %v9434_v63, %v9049_v33  ;;  %v9052_v44 = vadd.f32 %v12562_v21, %v21448_v52  ;;  %v9750_v63 = vadd.f32 %v18945_v46, %v9046_v2  ;;  %v9751_v6 = vadd.f32 %v18929_v12, %v9047_v45  ;;  %v21456_v46 = vld [vmem:[#allocation6_spill] sm:$0xff]  ;;  %v21460_v52 = vld [vmem:[#allocation199_spill] sm:$0xff] }
 0x537   : > { %v8733_v7 = vpop.f32.mrf.mxu1  ;;  %v9752_v28 = vadd.f32 %v18939_v11, %v9048_v30 }
 0x538   : > { %v9437_v32 = vpop.f32.mrf.mxu0  ;;  %v9050_v17 = vadd.f32 %v8733_v7, %v21444_v16  ;;  %9921 = vxpose.xlu1.b32.cont [9/16] (narrow) %v9745_v35, 8  ;;  %9945 = vxpose.xlu0.b32.start [1/16] (narrow) %v9753_v62, 8  ;;  %v9756_v5 = vadd.f32 %v12692_v4, %v9052_v44 }
 0x539   : > { %v12565_v3 = vpop.f32.mrf.mxu1 }
 0x53a   : > { %v12695_v31 = vpop.f32.mrf.mxu0  ;;  %v9754_v22 = vadd.f32 %v9437_v32, %v9050_v17  ;;  %v9055_v15 = vadd.f32 %v12565_v3, %v21454_v0 }
 0x53b   : > { %v8746_v42 = vpop.f32.mrf.mxu1 }
 0x53c   : > { %v9450_v23 = vpop.f32.mrf.mxu0  ;;  %9922 = vxpose.xlu1.b32.cont [10/16] (narrow) %v9746_v39, 8  ;;  %9946 = vxpose.xlu0.b32.cont [2/16] (narrow) %v9754_v22, 8  ;;  %v9053_v29 = vadd.f32 %v8746_v42, %v21450_v61  ;;  %v9759_v62 = vadd.f32 %v12695_v31, %v9055_v15  ;;  %v21457_v39 = vld [vmem:[#allocation185_spill] sm:$0xff]  ;;  %v9833_v22 = vpop.trf.xlu0  ;;  %v21465_v15 = vld [vmem:[#allocation190_spill] sm:$0xff] }
 0x53d   : > { %v12566_v59 = vpop.f32.mrf.mxu1  ;;  %10073 = vst [vmem:[%s19003_s28] sm:$0xff] %v9833_v22 }
 0x53e   : > { %v12696_v57 = vpop.f32.mrf.mxu0  ;;  %v9757_v1 = vadd.f32 %v9450_v23, %v9053_v29  ;;  %v9056_v7 = vadd.f32 %v12566_v59, %v21456_v46 }
 0x53f   : > { %v8749_v34 = vpop.f32.mrf.mxu1 }
 0x540   : > { %v9453_v9 = vpop.f32.mrf.mxu0  ;;  %9923 = vxpose.xlu1.b32.cont [11/16] (narrow) %v9747_v26, 8  ;;  %9947 = vxpose.xlu0.b32.cont [3/16] (narrow) %v9755_v37, 8  ;;  %v9054_v50 = vadd.f32 %v8749_v34, %v21452_v60  ;;  %v9760_v41 = vadd.f32 %v12696_v57, %v9056_v7  ;;  %v21459_v57 = vld [vmem:[#allocation189_spill] sm:$0xff] }
 0x541   : > { %v18958_v54 = vpop.f32.mrf.mxu1 }
 0x542   : > { %v18960_v38 = vpop.f32.mrf.mxu0  ;;  %v9758_v33 = vadd.f32 %v9453_v9, %v9054_v50 }
 0x543   : > { %v8762_v55 = vpop.f32.mrf.mxu1 }
 0x544   : > { %v9466_v58 = vpop.f32.mrf.mxu0  ;;  %9924 = vxpose.xlu1.b32.cont [12/16] (narrow) %v9748_v14, 8  ;;  %9948 = vxpose.xlu0.b32.cont [4/16] (narrow) %v9756_v5, 8  ;;  %v9057_v12 = vadd.f32 %v8762_v55, %v21457_v39  ;;  %v21461_v14 = vld [vmem:[#allocation10_spill] sm:$0xff] }
 0x545   : > { %v18965_v47 = vpop.f32.mrf.mxu1  ;;  %v9059_v13 = vadd.f32 %v18958_v54, %v21461_v14  ;;  %v21462_v5 = vld [vmem:[#allocation194_spill] sm:$0xff] }
 0x546   : > { %v18967_v8 = vpop.f32.mrf.mxu0  ;;  %v9761_v11 = vadd.f32 %v9466_v58, %v9057_v12 }
 0x547   : > { %v8765_v48 = vpop.f32.mrf.mxu1  ;;  %v9763_v2 = vadd.f32 %v18960_v38, %v9059_v13 }
 0x548   : > { %v9469_v43 = vpop.f32.mrf.mxu0  ;;  %9925 = vxpose.xlu1.b32.cont [13/16] (narrow) %v9749_v18, 8  ;;  %9949 = vxpose.xlu0.b32.cont [5/16] (narrow) %v9757_v1, 8  ;;  %v9058_v26 = vadd.f32 %v8765_v48, %v21459_v57  ;;  %v21463_v1 = vld [vmem:[#allocation186_spill] sm:$0xff] }
 0x549   : > { %v18972_v51 = vpop.f32.mrf.mxu1  ;;  %v9060_v60 = vadd.f32 %v18965_v47, %v21463_v1  ;;  %v21464_v48 = vld [vmem:[#allocation22_spill] sm:$0xff] }
 0x54a   : > { %v18974_v10 = vpop.f32.mrf.mxu0  ;;  %v9762_v36 = vadd.f32 %v9469_v43, %v9058_v26  ;;  %v21471_v26 = vld [vmem:[#allocation17_spill] sm:$0xff] }
 0x54b   : > { %v18980_v27 = vpop.f32.mrf.mxu1  ;;  %v9764_v0 = vadd.f32 %v18967_v8, %v9060_v60 }
 0x54c   : > { %v18982_v21 = vpop.f32.mrf.mxu0  ;;  %9950 = vxpose.xlu0.b32.cont [6/16] (narrow) %v9758_v33, 8  ;;  %9926 = vxpose.xlu1.b32.cont [14/16] (narrow) %v9750_v63, 8  ;;  %v9061_v33 = vadd.f32 %v18980_v27, %v21465_v15 }
 0x54d   : > { %v18984_v4 = vpop.f32.mrf.mxu1 }
 0x54e   : > { %v18986_v35 = vpop.f32.mrf.mxu0  ;;  %v9765_v7 = vadd.f32 %v18982_v21, %v9061_v33  ;;  %v21470_v21 = vld [vmem:[#allocation24_spill] sm:$0xff]  ;;  %v21478_v33 = vld [vmem:[#allocation53_spill] sm:$0xff] }
 0x54f   : > { %v18992_v32 = vpop.f32.mrf.mxu1 }
 0x550   : > { %v18994_v16 = vpop.f32.mrf.mxu0  ;;  %9951 = vxpose.xlu0.b32.cont [7/16] (narrow) %v9759_v62, 8  ;;  %9927 = vxpose.xlu1.b32.cont [15/16] (narrow) %v9751_v6, 8  ;;  %v21466_v6 = vld [vmem:[#allocation200_spill] sm:$0xff] }
 0x551   : > { %v12577_v17 = vpop.f32.mrf.mxu1 }
 0x552   : > { %v12707_v3 = vpop.f32.mrf.mxu0  ;;  %v9067_v61 = vadd.f32 %v12577_v17, %v21462_v5  ;;  %v21467_v17 = vld [vmem:[#allocation193_spill] sm:$0xff] }
 0x553   : > { %v8794_v25 = vpop.f32.mrf.mxu1 }
 0x554   : > { %v9498_v19 = vpop.f32.mrf.mxu0  ;;  %v9065_v31 = vadd.f32 %v8794_v25, %v21458_v53  ;;  %9952 = vxpose.xlu0.b32.cont [8/16] (narrow) %v9760_v41, 8  ;;  %9928 = vxpose.xlu1.b32.end [16/16] (narrow) %v9752_v28, 8  ;;  %v9865_v42 = vpop.trf.xlu1  ;;  %v9771_v50 = vadd.f32 %v12707_v3, %v9067_v61  ;;  %v9062_v3 = vadd.f32 %v18992_v32, %v21467_v17  ;;  %v21468_v28 = vld [vmem:[#allocation205_spill] sm:$0xff] }
 0x555   : > { %v12578_v23 = vpop.f32.mrf.mxu1  ;;  %10074 = vst [vmem:[%s19003_s28 + $0x8] sm:$0xff] %v9865_v42 }
 0x556   : > { %v12708_v59 = vpop.f32.mrf.mxu0  ;;  %v9769_v24 = vadd.f32 %v9498_v19, %v9065_v31  ;;  %v9068_v20 = vadd.f32 %v12578_v23, %v21464_v48  ;;  %v21469_v19 = vld [vmem:[#allocation13_spill] sm:$0xff]  ;;  %v9766_v31 = vadd.f32 %v18994_v16, %v9062_v3 }
 0x557   : > { %v8797_v40 = vpop.f32.mrf.mxu1  ;;  %v9063_v53 = vadd.f32 %v18972_v51, %v21469_v19  ;;  %v21479_v3 = vld [vmem:[#allocation37_spill] sm:$0xff] }
 0x558   : > { %v9501_v37 = vpop.f32.mrf.mxu0  ;;  %v9066_v44 = vadd.f32 %v8797_v40, %v21460_v52  ;;  %9953 = vxpose.xlu0.b32.cont [9/16] (narrow) %v9761_v11, 8  ;;  %9977 = vxpose.xlu1.b32.start [1/16] (narrow) %v9769_v24, 8  ;;  %v9772_v38 = vadd.f32 %v12708_v59, %v9068_v20  ;;  %v9064_v24 = vadd.f32 %v18984_v4, %v21471_v26  ;;  %v21472_v40 = vld [vmem:[#allocation202_spill] sm:$0xff] }
 0x559   : > { %v12581_v34 = vpop.f32.mrf.mxu1  ;;  %v9767_v57 = vadd.f32 %v18974_v10, %v9063_v53 }
 0x55a   : > { %v12711_v9 = vpop.f32.mrf.mxu0  ;;  %v9770_v29 = vadd.f32 %v9501_v37, %v9066_v44  ;;  %v9071_v22 = vadd.f32 %v12581_v34, %v21470_v21  ;;  %v9768_v14 = vadd.f32 %v18986_v35, %v9064_v24  ;;  %v21476_v35 = vld [vmem:[#allocation221_spill] sm:$0xff]  ;;  %v21481_v21 = vld [vmem:[#allocation212_spill] sm:$0xff] }
 0x55b   : > { %v8810_v55 = vpop.f32.mrf.mxu1 }
 0x55c   : > { %v9514_v58 = vpop.f32.mrf.mxu0  ;;  %9954 = vxpose.xlu0.b32.cont [10/16] (narrow) %v9762_v36, 8  ;;  %9978 = vxpose.xlu1.b32.cont [2/16] (narrow) %v9770_v29, 8  ;;  %v9069_v49 = vadd.f32 %v8810_v55, %v21466_v6  ;;  %v9775_v51 = vadd.f32 %v12711_v9, %v9071_v22  ;;  %v21473_v36 = vld [vmem:[#allocation207_spill] sm:$0xff]  ;;  %v21474_v29 = vld [vmem:[#allocation216_spill] sm:$0xff] }
 0x55d   : > { %v12582_v18 = vpop.f32.mrf.mxu1 }
 0x55e   : > { %v12712_v56 = vpop.f32.mrf.mxu0  ;;  %v9773_v8 = vadd.f32 %v9514_v58, %v9069_v49  ;;  %v9072_v16 = vadd.f32 %v12582_v18, %v21472_v40 }
 0x55f   : > { %v8813_v45 = vpop.f32.mrf.mxu1 }
 0x560   : > { %v9517_v54 = vpop.f32.mrf.mxu0  ;;  %9955 = vxpose.xlu0.b32.cont [11/16] (narrow) %v9763_v2, 8  ;;  %9979 = vxpose.xlu1.b32.cont [3/16] (narrow) %v9771_v50, 8  ;;  %v9070_v41 = vadd.f32 %v8813_v45, %v21468_v28  ;;  %v9776_v13 = vadd.f32 %v12712_v56, %v9072_v16  ;;  %v21475_v2 = vld [vmem:[#allocation209_spill] sm:$0xff]  ;;  %v21483_v16 = vld [vmem:[#allocation214_spill] sm:$0xff] }
 0x561   : > { %v19016_v43 = vpop.f32.mrf.mxu1 }
 0x562   : > { %v19018_v63 = vpop.f32.mrf.mxu0  ;;  %v9774_v42 = vadd.f32 %v9517_v54, %v9070_v41  ;;  %v21477_v54 = vld [vmem:[#allocation35_spill] sm:$0xff]  ;;  %v21480_v41 = vld [vmem:[#allocation218_spill] sm:$0xff] }
 0x563   : > { %v8826_v47 = vpop.f32.mrf.mxu1 }
 0x564   : > { %v9530_v30 = vpop.f32.mrf.mxu0  ;;  %9956 = vxpose.xlu0.b32.cont [12/16] (narrow) %v9764_v0, 8  ;;  %9980 = vxpose.xlu1.b32.cont [4/16] (narrow) %v9772_v38, 8  ;;  %v9073_v5 = vadd.f32 %v8826_v47, %v21473_v36  ;;  %v9075_v0 = vadd.f32 %v19016_v43, %v21477_v54 }
 0x565   : > { %v19024_v62 = vpop.f32.mrf.mxu1 }
 0x566   : > { %v19026_v46 = vpop.f32.mrf.mxu0  ;;  %v9777_v18 = vadd.f32 %v9530_v30, %v9073_v5  ;;  %v9779_v17 = vadd.f32 %v19018_v63, %v9075_v0  ;;  %v21482_v63 = vld [vmem:[#allocation222_spill] sm:$0xff] }
 0x567   : > { %v8829_v27 = vpop.f32.mrf.mxu1 }
 0x568   : > { %v9533_v39 = vpop.f32.mrf.mxu0  ;;  %9957 = vxpose.xlu0.b32.cont [13/16] (narrow) %v9765_v7, 8  ;;  %9981 = vxpose.xlu1.b32.cont [5/16] (narrow) %v9773_v8, 8  ;;  %v9074_v1 = vadd.f32 %v8829_v27, %v21475_v2  ;;  %v9076_v8 = vadd.f32 %v19024_v62, %v21479_v3 }
 0x569   : > { %v19032_v12 = vpop.f32.mrf.mxu1 }
 0x56a   : > { %v19034_v25 = vpop.f32.mrf.mxu0  ;;  %v9778_v15 = vadd.f32 %v9533_v39, %v9074_v1  ;;  %v21487_v1 = vld [vmem:[#allocation51_spill] sm:$0xff] }
 0x56b   : > { %v8842_v32 = vpop.f32.mrf.mxu1 }
 0x56c   : > { %v19040_v23 = vpop.f32.mrf.mxu0  ;;  %9958 = vxpose.xlu0.b32.cont [14/16] (narrow) %v9766_v31, 8  ;;  %9982 = vxpose.xlu1.b32.cont [6/16] (narrow) %v9774_v42, 8  ;;  %v9780_v31 = vadd.f32 %v19026_v46, %v9076_v8  ;;  %v9077_v22 = vadd.f32 %v8842_v32, %v21481_v21  ;;  %v21494_v21 = vld [vmem:[#allocation94_spill] sm:$0xff] }
 0x56d   : > { %v19042_v59 = vpop.f32.mrf.mxu1 }
 0x56e   : > { %v19044_v11 = vpop.f32.mrf.mxu0  ;;  %v9781_v40 = vadd.f32 %v19040_v23, %v9077_v22 }
 0x56f   : > { %v8845_v37 = vpop.f32.mrf.mxu1 }
 0x570   : > { %v19050_v52 = vpop.f32.mrf.mxu0  ;;  %9959 = vxpose.xlu0.b32.cont [15/16] (narrow) %v9767_v57, 8  ;;  %9983 = vxpose.xlu1.b32.cont [7/16] (narrow) %v9775_v51, 8 }
 0x571   : > { %v12593_v44 = vpop.f32.mrf.mxu1 }
 0x572   : > { %v12723_v34 = vpop.f32.mrf.mxu0  ;;  %v9083_v38 = vadd.f32 %v12593_v44, %v21478_v33  ;;  %v9078_v44 = vadd.f32 %v8845_v37, %v21483_v16 }
 0x573   : > { %v8858_v10 = vpop.f32.mrf.mxu1 }
 0x574   : > { %v9562_v61 = vpop.f32.mrf.mxu0  ;;  %v9081_v4 = vadd.f32 %v8858_v10, %v21474_v29  ;;  %9960 = vxpose.xlu0.b32.end [16/16] (narrow) %v9768_v14, 8  ;;  %9984 = vxpose.xlu1.b32.cont [8/16] (narrow) %v9776_v13, 8  ;;  %v9897_v9 = vpop.trf.xlu0  ;;  %v9787_v28 = vadd.f32 %v12723_v34, %v9083_v38  ;;  %v21484_v14 = vld [vmem:[#allocation223_spill] sm:$0xff]  ;;  %v21485_v10 = vld [vmem:[#allocation210_spill] sm:$0xff]  ;;  %v9782_v29 = vadd.f32 %v19050_v52, %v9078_v44 }
 0x575   : > { %v12594_v55 = vpop.f32.mrf.mxu1  ;;  %10075 = vst [vmem:[%s19003_s28 + $0x10] sm:$0xff] %v9897_v9  ;;  %v21496_v44 = vld [vmem:[#allocation95_spill] sm:$0xff] }
 0x576   : > { %v12724_v58 = vpop.f32.mrf.mxu0  ;;  %v9785_v60 = vadd.f32 %v9562_v61, %v9081_v4  ;;  %v9084_v27 = vadd.f32 %v12594_v55, %v21480_v41  ;;  %v9079_v61 = vadd.f32 %v19032_v12, %v21485_v10  ;;  %v21486_v4 = vld [vmem:[#allocation66_spill] sm:$0xff]  ;;  %v21488_v12 = vld [vmem:[#allocation68_spill] sm:$0xff] }
 0x577   : > { %v8861_v50 = vpop.f32.mrf.mxu1  ;;  %v21492_v41 = vld [vmem:[#allocation8_spill] sm:$0xff] }
 0x578   : > { %v9565_v48 = vpop.f32.mrf.mxu0  ;;  %v9082_v56 = vadd.f32 %v8861_v50, %v21476_v35  ;;  %10009 = vxpose.xlu0.b32.start [1/16] (narrow) %v9785_v60, 8  ;;  %9985 = vxpose.xlu1.b32.cont [9/16] (narrow) %v9777_v18, 8  ;;  %v9788_v42 = vadd.f32 %v12724_v58, %v9084_v27  ;;  %v9783_v2 = vadd.f32 %v19034_v25, %v9079_v61  ;;  %v21498_v61 = vld [vmem:[#allocation55_spill] sm:$0xff] }
 0x579   : > { %v12597_v20 = vpop.f32.mrf.mxu1  ;;  %v9080_v60 = vadd.f32 %v19042_v59, %v21487_v1  ;;  %v21500_v1 = vld [vmem:[#allocation11_spill] sm:$0xff] }
 0x57a   : > { %v12727_v45 = vpop.f32.mrf.mxu0  ;;  %v9786_v6 = vadd.f32 %v9565_v48, %v9082_v56  ;;  %v9087_v23 = vadd.f32 %v12597_v20, %v21486_v4 }
 0x57b   : > { %v8874_v49 = vpop.f32.mrf.mxu1  ;;  %v9784_v54 = vadd.f32 %v19044_v11, %v9080_v60 }
 0x57c   : > { %v9578_v47 = vpop.f32.mrf.mxu0  ;;  %10010 = vxpose.xlu0.b32.cont [2/16] (narrow) %v9786_v6, 8  ;;  %9986 = vxpose.xlu1.b32.cont [10/16] (narrow) %v9778_v15, 8  ;;  %v9085_v57 = vadd.f32 %v8874_v49, %v21482_v63  ;;  %v9791_v50 = vadd.f32 %v12727_v45, %v9087_v23  ;;  %v21489_v15 = vld [vmem:[#allocation231_spill] sm:$0xff] }
 0x57d   : > { %v12598_v30 = vpop.f32.mrf.mxu1  ;;  %v21490_v6 = vld [vmem:[#allocation7_spill] sm:$0xff] }
 0x57e   : > { %v12728_v7 = vpop.f32.mrf.mxu0  ;;  %v9789_v34 = vadd.f32 %v9578_v47, %v9085_v57  ;;  %v9088_v48 = vadd.f32 %v12598_v30, %v21488_v12 }
 0x57f   : > { %v8877_v19 = vpop.f32.mrf.mxu1 }
 0x580   : > { %v9581_v43 = vpop.f32.mrf.mxu0  ;;  %10011 = vxpose.xlu0.b32.cont [3/16] (narrow) %v9787_v28, 8  ;;  %9987 = vxpose.xlu1.b32.cont [11/16] (narrow) %v9779_v17, 8  ;;  %v9086_v13 = vadd.f32 %v8877_v19, %v21484_v14  ;;  %v9792_v0 = vadd.f32 %v12728_v7, %v9088_v48  ;;  %v21491_v17 = vld [vmem:[#allocation25_spill] sm:$0xff]  ;;  %v21493_v19 = vld [vmem:[#allocation227_spill] sm:$0xff] }
 0x581   : > { %v19065_v39 = vpop.f32.mrf.mxu1 }
 0x582   : > { %v19067_v53 = vpop.f32.mrf.mxu0  ;;  %v9790_v9 = vadd.f32 %v9581_v43, %v9086_v13  ;;  %v9091_v43 = vadd.f32 %v19065_v39, %v21493_v19 }
 0x583   : > { %v8890_v26 = vpop.f32.mrf.mxu1 }
 0x584   : > { %v9594_v62 = vpop.f32.mrf.mxu0  ;;  %10012 = vxpose.xlu0.b32.cont [4/16] (narrow) %v9788_v42, 8  ;;  %9988 = vxpose.xlu1.b32.cont [12/16] (narrow) %v9780_v31, 8  ;;  %v9089_v33 = vadd.f32 %v8890_v26, %v21489_v15  ;;  %v9795_v26 = vadd.f32 %v19067_v53, %v9091_v43 }
 0x585   : > { %v12602_v24 = vpop.f32.mrf.mxu1 }
 0x586   : > { %v19072_v51 = vpop.f32.mrf.mxu0  ;;  %v9793_v30 = vadd.f32 %v9594_v62, %v9089_v33  ;;  %v21495_v62 = vld [vmem:[#allocation79_spill] sm:$0xff] }
 0x587   : > { %v8893_v46 = vpop.f32.mrf.mxu1 }
 0x588   : > { %v9597_v36 = vpop.f32.mrf.mxu0  ;;  %10013 = vxpose.xlu0.b32.cont [5/16] (narrow) %v9789_v34, 8  ;;  %9989 = vxpose.xlu1.b32.cont [13/16] (narrow) %v9781_v40, 8  ;;  %v9090_v3 = vadd.f32 %v8893_v46, %v21491_v17  ;;  %v9092_v40 = vadd.f32 %v12602_v24, %v21495_v62  ;;  %v21497_v46 = vld [vmem:[#allocation33_spill] sm:$0xff] }
 0x589   : > { %v19077_v32 = vpop.f32.mrf.mxu1  ;;  %v21499_v24 = vld [vmem:[#allocation237_spill] sm:$0xff] }
 0x58a   : > { %v19079_v5 = vpop.f32.mrf.mxu0  ;;  %v9794_v31 = vadd.f32 %v9597_v36, %v9090_v3  ;;  %v9796_v39 = vadd.f32 %v19072_v51, %v9092_v40  ;;  %v21501_v51 = vld [vmem:[#allocation81_spill] sm:$0xff] }
 0x58b   : > { %v8906_v37 = vpop.f32.mrf.mxu1 }
 0x58c   : > { %v9610_v55 = vpop.f32.mrf.mxu0  ;;  %10014 = vxpose.xlu0.b32.cont [6/16] (narrow) %v9790_v9, 8  ;;  %9990 = vxpose.xlu1.b32.cont [14/16] (narrow) %v9782_v29, 8  ;;  %v9093_v36 = vadd.f32 %v8906_v37, %v21497_v46  ;;  %v9095_v37 = vadd.f32 %v19077_v32, %v21501_v51 }
 0x58d   : > { %v19085_v58 = vpop.f32.mrf.mxu1 }
 0x58e   : > { %v19087_v18 = vpop.f32.mrf.mxu0  ;;  %v9797_v53 = vadd.f32 %v9610_v55, %v9093_v36  ;;  %v9799_v55 = vadd.f32 %v19079_v5, %v9095_v37 }
 0x58f   : > { %v8909_v52 = vpop.f32.mrf.mxu1 }
 0x590   : > { %v9613_v35 = vpop.f32.mrf.mxu0  ;;  %10015 = vxpose.xlu0.b32.cont [7/16] (narrow) %v9791_v50, 8  ;;  %9991 = vxpose.xlu1.b32.cont [15/16] (narrow) %v9783_v2, 8  ;;  %v9094_v9 = vadd.f32 %v8909_v52, %v21499_v24  ;;  %v21503_v52 = vld [vmem:[#allocation2_spill] sm:$0xff] }
 0x591   : > { %v12609_v56 = vpop.f32.mrf.mxu1  ;;  %v9096_v33 = vadd.f32 %v19085_v58, %v21503_v52  ;;  %v21506_v58 = vld [vmem:[#allocation258_spill] sm:$0xff] }
 0x592   : > { %v12739_v20 = vpop.f32.mrf.mxu0  ;;  %v9099_v22 = vadd.f32 %v12609_v56, %v21494_v21  ;;  %v9798_v48 = vadd.f32 %v9613_v35, %v9094_v9  ;;  %v21502_v56 = vld [vmem:[#allocation246_spill] sm:$0xff] }
 0x593   : > { %v8922_v38 = vpop.f32.mrf.mxu1  ;;  %v9800_v32 = vadd.f32 %v19087_v18, %v9096_v33 }
 0x594   : > { %v9626_v25 = vpop.f32.mrf.mxu0  ;;  %v9097_v49 = vadd.f32 %v8922_v38, %v21490_v6  ;;  %10016 = vxpose.xlu0.b32.cont [8/16] (narrow) %v9792_v0, 8  ;;  %9992 = vxpose.xlu1.b32.end [16/16] (narrow) %v9784_v54, 8  ;;  %v9929_v59 = vpop.trf.xlu1  ;;  %v9803_v16 = vadd.f32 %v12739_v20, %v9099_v22 }
 0x595   : > { %v12610_v45 = vpop.f32.mrf.mxu1  ;;  %10076 = vst [vmem:[%s19003_s28 + $0x18] sm:$0xff] %v9929_v59 }
 0x596   : > { %v12740_v47 = vpop.f32.mrf.mxu0  ;;  %v9801_v8 = vadd.f32 %v9626_v25, %v9097_v49  ;;  %v9100_v34 = vadd.f32 %v12610_v45, %v21496_v44  ;;  %v21504_v25 = vld [vmem:[#allocation104_spill] sm:$0xff] }
 0x597   : > { %v8925_v28 = vpop.f32.mrf.mxu1  ;;  %v21505_v45 = vld [vmem:[#allocation252_spill] sm:$0xff] }
 0x598   : > { %v9098_v11 = vadd.f32 %v8925_v28, %v21492_v41  ;;  %10017 = vxpose.xlu0.b32.cont [9/16] (narrow) %v9793_v30, 8  ;;  %10041 = vxpose.xlu1.b32.start [1/16] (narrow) %v9801_v8, 8  ;;  %v9629_v7 = vpop.f32.mrf.mxu0  ;;  %v9804_v10 = vadd.f32 %v12740_v47, %v9100_v34  ;;  %v21510_v44 = vld [vmem:[#allocation116_spill] sm:$0xff] }
 0x599   : > { %v12613_v27 = vpop.f32.mrf.mxu1 }
 0x59a   : > { %v9802_v42 = vadd.f32 %v9629_v7, %v9098_v11  ;;  %v12743_v57 = vpop.f32.mrf.mxu0  ;;  %v9103_v20 = vadd.f32 %v12613_v27, %v21502_v56  ;;  %v21507_v11 = vld [vmem:[#allocation105_spill] sm:$0xff] }
 0x59b   : > { %v8938_v63 = vpop.f32.mrf.mxu1 }
 0x59c   : > { %10018 = vxpose.xlu0.b32.cont [10/16] (narrow) %v9794_v31, 8  ;;  %10042 = vxpose.xlu1.b32.cont [2/16] (narrow) %v9802_v42, 8  ;;  %v9642_v13 = vpop.f32.mrf.mxu0  ;;  %v9101_v29 = vadd.f32 %v8938_v63, %v21498_v61  ;;  %v9807_v38 = vadd.f32 %v12743_v57, %v9103_v20  ;;  %v21508_v31 = vld [vmem:[#allocation15_spill] sm:$0xff] }
 0x59d   : > { %v12614_v14 = vpop.f32.mrf.mxu1  ;;  %v21509_v57 = vld [vmem:[#allocation115_spill] sm:$0xff] }
 0x59e   : > { %v12744_v23 = vpop.f32.mrf.mxu0  ;;  %v9805_v2 = vadd.f32 %v9642_v13, %v9101_v29  ;;  %v9104_v6 = vadd.f32 %v12614_v14, %v21504_v25  ;;  %v21511_v13 = vld [vmem:[#allocation326_spill] sm:$0xff] }
 0x59f   : > { %v8941_v4 = vpop.f32.mrf.mxu1 }
 0x5a0   : > { %10019 = vxpose.xlu0.b32.cont [11/16] (narrow) %v9795_v26, 8  ;;  %10043 = vxpose.xlu1.b32.cont [3/16] (narrow) %v9803_v16, 8  ;;  %v9102_v60 = vadd.f32 %v8941_v4, %v21500_v1  ;;  %v9645_v12 = vpop.f32.mrf.mxu0  ;;  %v9808_v35 = vadd.f32 %v12744_v23, %v9104_v6 }
 0x5a1   : > { %v12617_v50 = vpop.f32.mrf.mxu1 }
 0x5a2   : > { %v9806_v54 = vadd.f32 %v9645_v12, %v9102_v60  ;;  %v12747_v15 = vpop.f32.mrf.mxu0  ;;  %v9107_v7 = vadd.f32 %v12617_v50, %v21507_v11 }
 0x5a3   : > { %v8954_v0 = vpop.f32.mrf.mxu1 }
 0x5a4   : > { %10020 = vxpose.xlu0.b32.cont [12/16] (narrow) %v9796_v39, 8  ;;  %10044 = vxpose.xlu1.b32.cont [4/16] (narrow) %v9804_v10, 8  ;;  %v9658_v59 = vpop.f32.mrf.mxu0  ;;  %v9105_v47 = vadd.f32 %v8954_v0, %v21505_v45  ;;  %v9811_v43 = vadd.f32 %v12747_v15, %v9107_v7  ;;  %v21512_v10 = vld [vmem:[#allocation69_spill] sm:$0xff] }
 0x5a5   : > { %v12618_v49 = vpop.f32.mrf.mxu1 }
 0x5a6   : > { %v12748_v17 = vpop.f32.mrf.mxu0  ;;  %v9809_v3 = vadd.f32 %v9658_v59, %v9105_v47  ;;  %v9108_v21 = vadd.f32 %v12618_v49, %v21508_v31 }
 0x5a7   : > { %v8957_v30 = vpop.f32.mrf.mxu1 }
 0x5a8   : > { %10021 = vxpose.xlu0.b32.cont [13/16] (narrow) %v9797_v53, 8  ;;  %10045 = vxpose.xlu1.b32.cont [5/16] (narrow) %v9805_v2, 8  ;;  %v9106_v8 = vadd.f32 %v8957_v30, %v21506_v58  ;;  %v9661_v41 = vpop.f32.mrf.mxu0  ;;  %v9812_v63 = vadd.f32 %v12748_v17, %v9108_v21 }
 0x5a9   : > { %v12621_v28 = vpop.f32.mrf.mxu1 }
 0x5aa   : > { %v9810_v27 = vadd.f32 %v9661_v41, %v9106_v8  ;;  %v12751_v18 = vpop.f32.mrf.mxu0  ;;  %v9111_v39 = vadd.f32 %v12621_v28, %v21511_v13 }
 0x5ab   : > { %v8970_v19 = vpop.f32.mrf.mxu1 }
 0x5ac   : > { %10022 = vxpose.xlu0.b32.cont [14/16] (narrow) %v9798_v48, 8  ;;  %10046 = vxpose.xlu1.b32.cont [6/16] (narrow) %v9806_v54, 8  ;;  %v9674_v42 = vpop.f32.mrf.mxu0  ;;  %v9109_v26 = vadd.f32 %v8970_v19, %v21509_v57  ;;  %v9815_v36 = vadd.f32 %v12751_v18, %v9111_v39 }
 0x5ad   : > { %v12622_v22 = vpop.f32.mrf.mxu1 }
 0x5ae   : > { %v12752_v40 = vpop.f32.mrf.mxu0  ;;  %v9813_v16 = vadd.f32 %v9674_v42, %v9109_v26  ;;  %v9112_v61 = vadd.f32 %v12622_v22, %v21512_v10 }
 0x5af   : > { %v8973_v62 = vpop.f32.mrf.mxu1 }
 0x5b0   : > { %10023 = vxpose.xlu0.b32.cont [15/16] (narrow) %v9799_v55, 8  ;;  %10047 = vxpose.xlu1.b32.cont [7/16] (narrow) %v9807_v38, 8  ;;  %v9110_v34 = vadd.f32 %v8973_v62, %v21510_v44  ;;  %v9677_v14 = vpop.f32.mrf.mxu0  ;;  %v9816_v29 = vadd.f32 %v12752_v40, %v9112_v61 }
 0x5b2   : > { %v9814_v46 = vadd.f32 %v9677_v14, %v9110_v34 }
 0x5b4   : > { %10024 = vxpose.xlu0.b32.end [16/16] (narrow) %v9800_v32, 8  ;;  %10048 = vxpose.xlu1.b32.cont [8/16] (narrow) %v9808_v35, 8  ;;  %v9961_v5 = vpop.trf.xlu0 }
 0x5b5   : > { %10077 = vst [vmem:[%s19003_s28 + $0x20] sm:$0xff] %v9961_v5 }
 0x5b8   : > { %10049 = vxpose.xlu1.b32.cont [9/16] (narrow) %v9809_v3, 8 }
 0x5bc   : > { %10050 = vxpose.xlu1.b32.cont [10/16] (narrow) %v9810_v27, 8 }
 0x5c0   : > { %10051 = vxpose.xlu1.b32.cont [11/16] (narrow) %v9811_v43, 8 }
 0x5c4   : > { %10052 = vxpose.xlu1.b32.cont [12/16] (narrow) %v9812_v63, 8 }
 0x5c8   : > { %10053 = vxpose.xlu1.b32.cont [13/16] (narrow) %v9813_v16, 8 }
 0x5cc   : > { %10054 = vxpose.xlu1.b32.cont [14/16] (narrow) %v9814_v46, 8 }
 0x5d0   : > { %10055 = vxpose.xlu1.b32.cont [15/16] (narrow) %v9815_v36, 8 }
 0x5d4   : > { %10056 = vxpose.xlu1.b32.end [16/16] (narrow) %v9816_v29, 8  ;;  %v9993_v4 = vpop.trf.xlu1 }
 0x5d5   : > { %10078 = vst [vmem:[%s19003_s28 + $0x28] sm:$0xff] %v9993_v4 }
 0x5f4   : > { %v10025_v23 = vpop.trf.xlu0 }
 0x5f5   : > { %10079 = vst [vmem:[%s19003_s28 + $0x30] sm:$0xff] %v10025_v23 }
 0x614   : > { %v10057_v53 = vpop.trf.xlu1 }
 0x615   : > { %10080 = vst [vmem:[%s19003_s28 + $0x38] sm:$0xff] %v10057_v53 }
 0x616 PF: > { %s13_s14 = sadd.s32 1, %s13010_s14   ;;  %s21513_s12 = smov %s13006_s13 }
 0x617   : > { %p10_p5 = scmp.ge.s32.totalorder %s13_s14, 4   ;;  %s21514_s13 = smov %s21516_s15 }
 0x619   :  { %12 = sbr.rel (!%p10_p5) target bundleno = 2 (0x2), region = 71 }

</bundles_post_ra>
